<compile_context>
chip_gen: v5e
topology: v5e:2x2
jax: 0.10.0
libtpu: 0.0.40
codegen_flags: <defaults>
</compile_context>

<pallas_src>
import functools

import jax
import jax.numpy as jnp
from jax.experimental import pallas as pl
from jax.experimental.pallas import tpu as pltpu

H = W = 8                   # chess board spatial size (fixed by the 32*8*8 Linear input)
MXU_DTYPE = jnp.bfloat16    # storage / MXU-operand dtype for weights
VALUE_PAD = 128             # pad value_fc2 fan-out 1 -> 128 for a lane-dense store


# ----------------------------------------------------------------------------
# Pallas kernels
# ----------------------------------------------------------------------------
def _tower_kernel(*refs, num_res_blocks, bt):
    """Fused conv tower: conv_in -> residual blocks -> policy/value head convs.

    refs = (x_ref,
            [w, scale, shift] * (3 + 2*num_res_blocks),   # conv_in, (c1,c2)*blocks, policy, value
            p_out, v_out, pad_ref)
    x_ref       : (bt, H, W, 12)
    w           : (9*cin, cout) bf16 im2col weight; scale/shift: (1, cout) f32 folded BN
    p_out/v_out : (bt, H, W, 32) f32
    pad_ref     : (bt, H+2, W+2, max(12, C)) f32 VMEM halo scratch
    """
    n_conv = 3 + 2 * num_res_blocks
    x_ref = refs[0]
    w_refs = refs[1:1 + 3 * n_conv]
    p_out, v_out, pad_ref = refs[1 + 3 * n_conv:]

    # Zero once per grid step; only the interior is ever rewritten, so the halo stays 0.
    pad_ref[...] = jnp.zeros_like(pad_ref)

    def conv(act, idx, residual=None, relu=True, write_pad=True):
        """3x3 SAME conv + folded-BN affine (+ optional residual) (+ optional ReLU)."""
        w_ref = w_refs[3 * idx]
        s_ref = w_refs[3 * idx + 1]
        b_ref = w_refs[3 * idx + 2]
        cin = act.shape[-1]
        cout = w_ref.shape[-1]
        if write_pad:
            pad_ref[:, 1:1 + H, 1:1 + W, :cin] = act
        # im2col: one (bt*H*W, 9*cin) patch matrix -> a single MXU matmul.
        taps = [pad_ref[:, dy:dy + H, dx:dx + W, :cin]
                for dy in range(3) for dx in range(3)]
        patches = jnp.concatenate(taps, axis=-1).reshape(bt * H * W, 9 * cin)
        y = jnp.dot(patches.astype(w_ref.dtype), w_ref[...],
                    preferred_element_type=jnp.float32)
        y = y * s_ref[0] + b_ref[0]                      # folded BN (f32 epilogue)
        y = y.reshape(bt, H, W, cout)
        if residual is not None:
            y = y + residual
        if relu:
            y = jnp.maximum(y, 0.0)
        return y

    h = conv(x_ref[...].astype(jnp.float32), 0)                      # conv_input block
    for r in range(num_res_blocks):                                  # residual tower
        h1 = conv(h, 1 + 2 * r)
        h = conv(h1, 2 + 2 * r, residual=h)                          # add, then ReLU
    p_out[...] = conv(h, 1 + 2 * num_res_blocks)                     # policy conv+bn+relu
    # pad_ref interior already holds h (same input) -> skip the rewrite.
    v_out[...] = conv(h, 2 + 2 * num_res_blocks, write_pad=False)    # value conv+bn+relu


def _heads_kernel(p_ref, v_ref, wp_ref, bp_ref, wv1_ref, bv1_ref,
                  wv2_ref, bv2_ref, pol_ref, val_ref):
    """policy = p @ Wp + bp ;  value = tanh(relu(v @ Wv1 + bv1) @ Wv2 + bv2)."""
    policy = jnp.dot(p_ref[...].astype(wp_ref.dtype), wp_ref[...],
                     preferred_element_type=jnp.float32) + bp_ref[0]
    pol_ref[...] = policy

    v1 = jnp.dot(v_ref[...].astype(wv1_ref.dtype), wv1_ref[...],
                 preferred_element_type=jnp.float32) + bv1_ref[0]
    v1 = jnp.maximum(v1, 0.0)
    v2 = jnp.dot(v1.astype(wv2_ref.dtype), wv2_ref[...],
                 preferred_element_type=jnp.float32) + bv2_ref[0]
    val_ref[...] = jnp.tanh(v2)                         # padded cols are tanh(0)=0


# ----------------------------------------------------------------------------
# pallas_call wrappers
# ----------------------------------------------------------------------------
def _tower_call(x, params, *, bt):
    bsz = x.shape[0]
    c_mid = params["conv_in"]["w"].shape[1]
    conv_params = ([params["conv_in"]]
                   + [p for blk in params["res_blocks"]
                      for p in (blk["c1"], blk["c2"])]
                   + [params["policy_conv"], params["value_conv"]])

    args = [x]
    in_specs = [pl.BlockSpec((bt, H, W, x.shape[-1]), lambda i: (i, 0, 0, 0))]
    for cp in conv_params:
        for name in ("w", "scale", "shift"):
            a = cp[name]
            args.append(a)
            # Whole-array VMEM-resident weights: constant block index -> loaded once.
            in_specs.append(pl.BlockSpec(a.shape, lambda i, n=a.ndim: (0,) * n))

    kernel = functools.partial(_tower_kernel,
                               num_res_blocks=len(params["res_blocks"]), bt=bt)
    cpad = max(x.shape[-1], c_mid)
    return pl.pallas_call(
        kernel,
        grid=(bsz // bt,),
        in_specs=in_specs,
        out_specs=(pl.BlockSpec((bt, H, W, 32), lambda i: (i, 0, 0, 0)),
                   pl.BlockSpec((bt, H, W, 32), lambda i: (i, 0, 0, 0))),
        out_shape=(jax.ShapeDtypeStruct((bsz, H, W, 32), jnp.float32),
                   jax.ShapeDtypeStruct((bsz, H, W, 32), jnp.float32)),
        scratch_shapes=[pltpu.VMEM((bt, H + 2, W + 2, cpad), jnp.float32)],
        compiler_params=pltpu.CompilerParams(
            dimension_semantics=("parallel",)),
    )(*args)


def _heads_call(p_flat, v_flat, params):
    bsz = p_flat.shape[0]
    num_moves = params["policy_fc"]["w"].shape[1]
    args = [p_flat, v_flat,
            params["policy_fc"]["w"], params["policy_fc"]["b"],
            params["value_fc1"]["w"], params["value_fc1"]["b"],
            params["value_fc2"]["w"], params["value_fc2"]["b"]]
    in_specs = [pl.BlockSpec(a.shape, lambda i, n=a.ndim: (0,) * n) for a in args]
    return pl.pallas_call(
        _heads_kernel,
        grid=(1,),
        in_specs=in_specs,
        out_specs=(pl.BlockSpec((bsz, num_moves), lambda i: (0, 0)),
                   pl.BlockSpec((bsz, VALUE_PAD), lambda i: (0, 0))),
        out_shape=(jax.ShapeDtypeStruct((bsz, num_moves), jnp.float32),
                   jax.ShapeDtypeStruct((bsz, VALUE_PAD), jnp.float32)),
        compiler_params=pltpu.CompilerParams(
            dimension_semantics=("arbitrary",)),
    )(*args)


# ----------------------------------------------------------------------------
# Parameter initialization (deterministic, synthetic)
# ----------------------------------------------------------------------------
def _init_conv_bn(key, cin, cout):
    # PyTorch conv weight (cout, cin, 3, 3) would map via transpose(2,3,1,0).reshape(9*cin, cout).
    k = jax.random.split(key, 6)
    w = jax.random.normal(k[0], (3, 3, cin, cout), jnp.float32) * 0.05
    conv_b = jax.random.normal(k[1], (cout,), jnp.float32) * 0.05
    gamma = 1.0 + 0.1 * jax.random.normal(k[2], (cout,), jnp.float32)
    beta = 0.1 * jax.random.normal(k[3], (cout,), jnp.float32)
    r_mean = 0.1 * jax.random.normal(k[4], (cout,), jnp.float32)
    r_var = 1.0 + 0.1 * jnp.abs(jax.random.normal(k[5], (cout,), jnp.float32))
    scale = gamma / jnp.sqrt(r_var + 1e-5)               # fold BN (eval mode)
    shift = beta + (conv_b - r_mean) * scale             # fold conv bias too
    return {"w": w.reshape(9 * cin, cout).astype(MXU_DTYPE),
            "scale": scale.reshape(1, cout).astype(jnp.float32),
            "shift": shift.reshape(1, cout).astype(jnp.float32)}


def _init_linear(key, fin, fout, pad_out_to=None):
    # PyTorch policy_fc/value_fc1 weights (fout, 32*8*8) have CHW-ordered columns; they
    # would be reindexed CHW->HWC exactly once at import, then transposed to (fin, fout).
    # Synthetic params here are generated directly in HWC row order.
    k = jax.random.split(key, 2)
    w = jax.random.normal(k[0], (fin, fout), jnp.float32) * 0.02
    b = jax.random.normal(k[1], (fout,), jnp.float32) * 0.02
    if pad_out_to is not None and pad_out_to > fout:
        w = jnp.pad(w, ((0, 0), (0, pad_out_to - fout)))
        b = jnp.pad(b, ((0, pad_out_to - fout),))
    return {"w": w.astype(MXU_DTYPE),
            "b": b.reshape(1, -1).astype(jnp.float32)}


def init_params(key, num_res_blocks=2, num_channels=32, num_moves=128):
    keys = jax.random.split(key, 6 + 2 * num_res_blocks)
    params = {
        "conv_in": _init_conv_bn(keys[0], 12, num_channels),
        "res_blocks": [],
        "policy_conv": _init_conv_bn(keys[1], num_channels, 32),
        "policy_fc": _init_linear(keys[2], 32 * H * W, num_moves),
        "value_conv": _init_conv_bn(keys[3], num_channels, 32),
        "value_fc1": _init_linear(keys[4], 32 * H * W, 256),
        "value_fc2": _init_linear(keys[5], 256, 1, pad_out_to=VALUE_PAD),
    }
    for i in range(num_res_blocks):
        c1 = _init_conv_bn(keys[6 + 2 * i], num_channels, num_channels)
        c2 = _init_conv_bn(keys[7 + 2 * i], num_channels, num_channels)
        params["res_blocks"].append({"c1": c1, "c2": c2})
    return params


# ----------------------------------------------------------------------------
# Forward pass (mirrors ChessNetwork.forward, eval-mode BN)
# ----------------------------------------------------------------------------
def chess_network_forward(x, params):
    """x: (B, 8, 8, 12) NHWC float32 -> (policy (B, num_moves), value (B, 1))."""
    B = x.shape[0]
    bt = min(B, 8)                          # boards per grid step (M = bt*64 per matmul)
    bsz = -(-B // bt) * bt                  # pad batch to a multiple of the tile
    if bsz != B:
        x = jnp.pad(x, ((0, bsz - B), (0, 0), (0, 0), (0, 0)))

    p_act, v_act = _tower_call(x, params, bt=bt)

    # NHWC flatten (HWC order) is a free row-major reshape; FC rows are HWC-ordered.
    p_flat = p_act.reshape(bsz, 32 * H * W)
    v_flat = v_act.reshape(bsz, 32 * H * W)

    policy, value_pad = _heads_call(p_flat, v_flat, params)
    return policy[:B], value_pad[:B, :1]


# ----------------------------------------------------------------------------
if __name__ == "__main__":
    key = jax.random.PRNGKey(0)
    k_param, k_x = jax.random.split(key)

    # Small config: num_res_blocks=2, num_channels=32, num_moves=128.
    params = init_params(k_param, num_res_blocks=2, num_channels=32,
                         num_moves=128)

    B = 2
    x = jax.random.normal(k_x, (B, 8, 8, 12), jnp.float32)

    policy, value = jax.jit(chess_network_forward)(x, params)
    policy = jax.block_until_ready(policy)
    value = jax.block_until_ready(value)

    assert policy.shape == (B, 128) and value.shape == (B, 1)
    assert bool(jnp.all(jnp.isfinite(policy))) and bool(jnp.all(jnp.isfinite(value)))
    print("KERNEL_OK")
</pallas_src>

<mosaic_0001>
module attributes {stable_mosaic.version = 11 : i64} {
  func.func @_tower_kernel(%arg0: i32, %arg1: memref<2x8x8x12xf32, #tpu.memory_space<vmem>>, %arg2: memref<108x32xbf16, #tpu.memory_space<vmem>>, %arg3: memref<1x32xf32, #tpu.memory_space<vmem>>, %arg4: memref<1x32xf32, #tpu.memory_space<vmem>>, %arg5: memref<288x32xbf16, #tpu.memory_space<vmem>>, %arg6: memref<1x32xf32, #tpu.memory_space<vmem>>, %arg7: memref<1x32xf32, #tpu.memory_space<vmem>>, %arg8: memref<288x32xbf16, #tpu.memory_space<vmem>>, %arg9: memref<1x32xf32, #tpu.memory_space<vmem>>, %arg10: memref<1x32xf32, #tpu.memory_space<vmem>>, %arg11: memref<288x32xbf16, #tpu.memory_space<vmem>>, %arg12: memref<1x32xf32, #tpu.memory_space<vmem>>, %arg13: memref<1x32xf32, #tpu.memory_space<vmem>>, %arg14: memref<288x32xbf16, #tpu.memory_space<vmem>>, %arg15: memref<1x32xf32, #tpu.memory_space<vmem>>, %arg16: memref<1x32xf32, #tpu.memory_space<vmem>>, %arg17: memref<288x32xbf16, #tpu.memory_space<vmem>>, %arg18: memref<1x32xf32, #tpu.memory_space<vmem>>, %arg19: memref<1x32xf32, #tpu.memory_space<vmem>>, %arg20: memref<288x32xbf16, #tpu.memory_space<vmem>>, %arg21: memref<1x32xf32, #tpu.memory_space<vmem>>, %arg22: memref<1x32xf32, #tpu.memory_space<vmem>>, %arg23: memref<2x8x8x32xf32, #tpu.memory_space<vmem>>, %arg24: memref<2x8x8x32xf32, #tpu.memory_space<vmem>>, %arg25: memref<2x10x10x32xf32, #tpu.memory_space<vmem>>) attributes {dimension_semantics = [#tpu.dimension_semantics<parallel>], iteration_bounds = array<i64: 1>, scalar_prefetch = 0 : i64, scratch_operands = 1 : i64, tpu.core_type = #tpu.core_type<tc>, window_params = [{transform_indices = @transform_0, window_bounds = array<i64: 2, 8, 8, 12>}, {pipeline_mode = #tpu.pipeline_mode<synchronous>, transform_indices = @transform_1, window_bounds = array<i64: 108, 32>}, {pipeline_mode = #tpu.pipeline_mode<synchronous>, transform_indices = @transform_2, window_bounds = array<i64: 1, 32>}, {pipeline_mode = #tpu.pipeline_mode<synchronous>, transform_indices = @transform_3, window_bounds = array<i64: 1, 32>}, {pipeline_mode = #tpu.pipeline_mode<synchronous>, transform_indices = @transform_4, window_bounds = array<i64: 288, 32>}, {pipeline_mode = #tpu.pipeline_mode<synchronous>, transform_indices = @transform_5, window_bounds = array<i64: 1, 32>}, {pipeline_mode = #tpu.pipeline_mode<synchronous>, transform_indices = @transform_6, window_bounds = array<i64: 1, 32>}, {pipeline_mode = #tpu.pipeline_mode<synchronous>, transform_indices = @transform_7, window_bounds = array<i64: 288, 32>}, {pipeline_mode = #tpu.pipeline_mode<synchronous>, transform_indices = @transform_8, window_bounds = array<i64: 1, 32>}, {pipeline_mode = #tpu.pipeline_mode<synchronous>, transform_indices = @transform_9, window_bounds = array<i64: 1, 32>}, {pipeline_mode = #tpu.pipeline_mode<synchronous>, transform_indices = @transform_10, window_bounds = array<i64: 288, 32>}, {pipeline_mode = #tpu.pipeline_mode<synchronous>, transform_indices = @transform_11, window_bounds = array<i64: 1, 32>}, {pipeline_mode = #tpu.pipeline_mode<synchronous>, transform_indices = @transform_12, window_bounds = array<i64: 1, 32>}, {pipeline_mode = #tpu.pipeline_mode<synchronous>, transform_indices = @transform_13, window_bounds = array<i64: 288, 32>}, {pipeline_mode = #tpu.pipeline_mode<synchronous>, transform_indices = @transform_14, window_bounds = array<i64: 1, 32>}, {pipeline_mode = #tpu.pipeline_mode<synchronous>, transform_indices = @transform_15, window_bounds = array<i64: 1, 32>}, {pipeline_mode = #tpu.pipeline_mode<synchronous>, transform_indices = @transform_16, window_bounds = array<i64: 288, 32>}, {pipeline_mode = #tpu.pipeline_mode<synchronous>, transform_indices = @transform_17, window_bounds = array<i64: 1, 32>}, {pipeline_mode = #tpu.pipeline_mode<synchronous>, transform_indices = @transform_18, window_bounds = array<i64: 1, 32>}, {pipeline_mode = #tpu.pipeline_mode<synchronous>, transform_indices = @transform_19, window_bounds = array<i64: 288, 32>}, {pipeline_mode = #tpu.pipeline_mode<synchronous>, transform_indices = @transform_20, window_bounds = array<i64: 1, 32>}, {pipeline_mode = #tpu.pipeline_mode<synchronous>, transform_indices = @transform_21, window_bounds = array<i64: 1, 32>}, {transform_indices = @transform_22, window_bounds = array<i64: 2, 8, 8, 32>}, {transform_indices = @transform_23, window_bounds = array<i64: 2, 8, 8, 32>}]} {
    %cst = arith.constant 0.000000e+00 : f32
    %0 = vector.broadcast %cst : f32 to vector<2x10x10x32xf32>
    %c0 = arith.constant 0 : index
    %c0_0 = arith.constant 0 : index
    %c0_1 = arith.constant 0 : index
    %c0_2 = arith.constant 0 : index
    %1 = vector.load %arg25[%c0, %c0_0, %c0_1, %c0_2] : memref<2x10x10x32xf32, #tpu.memory_space<vmem>>, vector<2x10x10x32xf32>
    tpu.vector_store %arg25[%c0, %c0_0, %c0_1, %c0_2], %0 {strides = array<i32>} : memref<2x10x10x32xf32, #tpu.memory_space<vmem>>, vector<2x10x10x32xf32>,
    %c0_3 = arith.constant 0 : index
    %c0_4 = arith.constant 0 : index
    %c0_5 = arith.constant 0 : index
    %c0_6 = arith.constant 0 : index
    %2 = vector.load %arg1[%c0_3, %c0_4, %c0_5, %c0_6] : memref<2x8x8x12xf32, #tpu.memory_space<vmem>>, vector<2x8x8x12xf32>
    %c0_7 = arith.constant 0 : index
    %c1 = arith.constant 1 : index
    %c1_8 = arith.constant 1 : index
    %c0_9 = arith.constant 0 : index
    %3 = vector.load %arg25[%c0_7, %c1, %c1_8, %c0_9] : memref<2x10x10x32xf32, #tpu.memory_space<vmem>>, vector<2x8x8x12xf32>
    tpu.vector_store %arg25[%c0_7, %c1, %c1_8, %c0_9], %2 {strides = array<i32>} : memref<2x10x10x32xf32, #tpu.memory_space<vmem>>, vector<2x8x8x12xf32>,
    %c0_10 = arith.constant 0 : index
    %c0_11 = arith.constant 0 : index
    %c0_12 = arith.constant 0 : index
    %c0_13 = arith.constant 0 : index
    %4 = vector.load %arg25[%c0_10, %c0_11, %c0_12, %c0_13] : memref<2x10x10x32xf32, #tpu.memory_space<vmem>>, vector<2x8x8x12xf32>
    %c0_14 = arith.constant 0 : index
    %c0_15 = arith.constant 0 : index
    %c1_16 = arith.constant 1 : index
    %c0_17 = arith.constant 0 : index
    %5 = vector.load %arg25[%c0_14, %c0_15, %c1_16, %c0_17] : memref<2x10x10x32xf32, #tpu.memory_space<vmem>>, vector<2x8x8x12xf32>
    %c0_18 = arith.constant 0 : index
    %c0_19 = arith.constant 0 : index
    %c2 = arith.constant 2 : index
    %c0_20 = arith.constant 0 : index
    %6 = vector.load %arg25[%c0_18, %c0_19, %c2, %c0_20] : memref<2x10x10x32xf32, #tpu.memory_space<vmem>>, vector<2x8x8x12xf32>
    %c0_21 = arith.constant 0 : index
    %c1_22 = arith.constant 1 : index
    %c0_23 = arith.constant 0 : index
    %c0_24 = arith.constant 0 : index
    %7 = vector.load %arg25[%c0_21, %c1_22, %c0_23, %c0_24] : memref<2x10x10x32xf32, #tpu.memory_space<vmem>>, vector<2x8x8x12xf32>
    %c0_25 = arith.constant 0 : index
    %c1_26 = arith.constant 1 : index
    %c1_27 = arith.constant 1 : index
    %c0_28 = arith.constant 0 : index
    %8 = vector.load %arg25[%c0_25, %c1_26, %c1_27, %c0_28] : memref<2x10x10x32xf32, #tpu.memory_space<vmem>>, vector<2x8x8x12xf32>
    %c0_29 = arith.constant 0 : index
    %c1_30 = arith.constant 1 : index
    %c2_31 = arith.constant 2 : index
    %c0_32 = arith.constant 0 : index
    %9 = vector.load %arg25[%c0_29, %c1_30, %c2_31, %c0_32] : memref<2x10x10x32xf32, #tpu.memory_space<vmem>>, vector<2x8x8x12xf32>
    %c0_33 = arith.constant 0 : index
    %c2_34 = arith.constant 2 : index
    %c0_35 = arith.constant 0 : index
    %c0_36 = arith.constant 0 : index
    %10 = vector.load %arg25[%c0_33, %c2_34, %c0_35, %c0_36] : memref<2x10x10x32xf32, #tpu.memory_space<vmem>>, vector<2x8x8x12xf32>
    %c0_37 = arith.constant 0 : index
    %c2_38 = arith.constant 2 : index
    %c1_39 = arith.constant 1 : index
    %c0_40 = arith.constant 0 : index
    %11 = vector.load %arg25[%c0_37, %c2_38, %c1_39, %c0_40] : memref<2x10x10x32xf32, #tpu.memory_space<vmem>>, vector<2x8x8x12xf32>
    %c0_41 = arith.constant 0 : index
    %c2_42 = arith.constant 2 : index
    %c2_43 = arith.constant 2 : index
    %c0_44 = arith.constant 0 : index
    %12 = vector.load %arg25[%c0_41, %c2_42, %c2_43, %c0_44] : memref<2x10x10x32xf32, #tpu.memory_space<vmem>>, vector<2x8x8x12xf32>
    %13 = tpu.concatenate %4, %5, %6, %7, %8, %9, %10, %11, %12 in 3 : vector<2x8x8x12xf32>, vector<2x8x8x12xf32>, vector<2x8x8x12xf32>, vector<2x8x8x12xf32>, vector<2x8x8x12xf32>, vector<2x8x8x12xf32>, vector<2x8x8x12xf32>, vector<2x8x8x12xf32>, vector<2x8x8x12xf32> -> vector<2x8x8x108xf32>
    %14 = vector.shape_cast %13 : vector<2x8x8x108xf32> to vector<128x108xf32>
    %15 = arith.truncf %14 : vector<128x108xf32> to vector<128x108xbf16>
    %c0_45 = arith.constant 0 : index
    %c0_46 = arith.constant 0 : index
    %16 = vector.load %arg2[%c0_45, %c0_46] : memref<108x32xbf16, #tpu.memory_space<vmem>>, vector<108x32xbf16>
    %cst_47 = arith.constant dense<0.000000e+00> : vector<128x32xf32>
    %17 = tpu.matmul %15, %16, %cst_47 {dimension_numbers = #tpu.dot_dimension_numbers<[1], [0], [0], [1], [0, 0, 1, 1], [], []>} : vector<128x108xbf16>, vector<108x32xbf16>, vector<128x32xf32> -> vector<128x32xf32>
    %c0_48 = arith.constant 0 : index
    %c0_49 = arith.constant 0 : index
    %18 = vector.load %arg3[%c0_48, %c0_49] : memref<1x32xf32, #tpu.memory_space<vmem>>, vector<1x32xf32>
    %19 = vector.shape_cast %18 : vector<1x32xf32> to vector<32xf32>
    %20 = vector.shape_cast %19 : vector<32xf32> to vector<1x32xf32>
    %21 = vector.broadcast %20 : vector<1x32xf32> to vector<128x32xf32>
    %22 = arith.mulf %17, %21 : vector<128x32xf32>
    %c0_50 = arith.constant 0 : index
    %c0_51 = arith.constant 0 : index
    %23 = vector.load %arg4[%c0_50, %c0_51] : memref<1x32xf32, #tpu.memory_space<vmem>>, vector<1x32xf32>
    %24 = vector.shape_cast %23 : vector<1x32xf32> to vector<32xf32>
    %25 = vector.shape_cast %24 : vector<32xf32> to vector<1x32xf32>
    %26 = vector.broadcast %25 : vector<1x32xf32> to vector<128x32xf32>
    %27 = arith.addf %22, %26 : vector<128x32xf32>
    %28 = vector.shape_cast %27 : vector<128x32xf32> to vector<2x8x8x32xf32>
    %cst_52 = arith.constant 0.000000e+00 : f32
    %29 = vector.broadcast %cst_52 : f32 to vector<2x8x8x32xf32>
    %30 = arith.maximumf %28, %29 : vector<2x8x8x32xf32>
    %c0_53 = arith.constant 0 : index
    %c1_54 = arith.constant 1 : index
    %c1_55 = arith.constant 1 : index
    %c0_56 = arith.constant 0 : index
    %31 = vector.load %arg25[%c0_53, %c1_54, %c1_55, %c0_56] : memref<2x10x10x32xf32, #tpu.memory_space<vmem>>, vector<2x8x8x32xf32>
    tpu.vector_store %arg25[%c0_53, %c1_54, %c1_55, %c0_56], %30 {strides = array<i32>} : memref<2x10x10x32xf32, #tpu.memory_space<vmem>>, vector<2x8x8x32xf32>,
    %c0_57 = arith.constant 0 : index
    %c0_58 = arith.constant 0 : index
    %c0_59 = arith.constant 0 : index
    %c0_60 = arith.constant 0 : index
    %32 = vector.load %arg25[%c0_57, %c0_58, %c0_59, %c0_60] : memref<2x10x10x32xf32, #tpu.memory_space<vmem>>, vector<2x8x8x32xf32>
    %c0_61 = arith.constant 0 : index
    %c0_62 = arith.constant 0 : index
    %c1_63 = arith.constant 1 : index
    %c0_64 = arith.constant 0 : index
    %33 = vector.load %arg25[%c0_61, %c0_62, %c1_63, %c0_64] : memref<2x10x10x32xf32, #tpu.memory_space<vmem>>, vector<2x8x8x32xf32>
    %c0_65 = arith.constant 0 : index
    %c0_66 = arith.constant 0 : index
    %c2_67 = arith.constant 2 : index
    %c0_68 = arith.constant 0 : index
    %34 = vector.load %arg25[%c0_65, %c0_66, %c2_67, %c0_68] : memref<2x10x10x32xf32, #tpu.memory_space<vmem>>, vector<2x8x8x32xf32>
    %c0_69 = arith.constant 0 : index
    %c1_70 = arith.constant 1 : index
    %c0_71 = arith.constant 0 : index
    %c0_72 = arith.constant 0 : index
    %35 = vector.load %arg25[%c0_69, %c1_70, %c0_71, %c0_72] : memref<2x10x10x32xf32, #tpu.memory_space<vmem>>, vector<2x8x8x32xf32>
    %c0_73 = arith.constant 0 : index
    %c1_74 = arith.constant 1 : index
    %c1_75 = arith.constant 1 : index
    %c0_76 = arith.constant 0 : index
    %36 = vector.load %arg25[%c0_73, %c1_74, %c1_75, %c0_76] : memref<2x10x10x32xf32, #tpu.memory_space<vmem>>, vector<2x8x8x32xf32>
    %c0_77 = arith.constant 0 : index
    %c1_78 = arith.constant 1 : index
    %c2_79 = arith.constant 2 : index
    %c0_80 = arith.constant 0 : index
    %37 = vector.load %arg25[%c0_77, %c1_78, %c2_79, %c0_80] : memref<2x10x10x32xf32, #tpu.memory_space<vmem>>, vector<2x8x8x32xf32>
    %c0_81 = arith.constant 0 : index
    %c2_82 = arith.constant 2 : index
    %c0_83 = arith.constant 0 : index
    %c0_84 = arith.constant 0 : index
    %38 = vector.load %arg25[%c0_81, %c2_82, %c0_83, %c0_84] : memref<2x10x10x32xf32, #tpu.memory_space<vmem>>, vector<2x8x8x32xf32>
    %c0_85 = arith.constant 0 : index
    %c2_86 = arith.constant 2 : index
    %c1_87 = arith.constant 1 : index
    %c0_88 = arith.constant 0 : index
    %39 = vector.load %arg25[%c0_85, %c2_86, %c1_87, %c0_88] : memref<2x10x10x32xf32, #tpu.memory_space<vmem>>, vector<2x8x8x32xf32>
    %c0_89 = arith.constant 0 : index
    %c2_90 = arith.constant 2 : index
    %c2_91 = arith.constant 2 : index
    %c0_92 = arith.constant 0 : index
    %40 = vector.load %arg25[%c0_89, %c2_90, %c2_91, %c0_92] : memref<2x10x10x32xf32, #tpu.memory_space<vmem>>, vector<2x8x8x32xf32>
    %41 = tpu.concatenate %32, %33, %34, %35, %36, %37, %38, %39, %40 in 3 : vector<2x8x8x32xf32>, vector<2x8x8x32xf32>, vector<2x8x8x32xf32>, vector<2x8x8x32xf32>, vector<2x8x8x32xf32>, vector<2x8x8x32xf32>, vector<2x8x8x32xf32>, vector<2x8x8x32xf32>, vector<2x8x8x32xf32> -> vector<2x8x8x288xf32>
    %42 = vector.shape_cast %41 : vector<2x8x8x288xf32> to vector<128x288xf32>
    %43 = arith.truncf %42 : vector<128x288xf32> to vector<128x288xbf16>
    %c0_93 = arith.constant 0 : index
    %c0_94 = arith.constant 0 : index
    %44 = vector.load %arg5[%c0_93, %c0_94] : memref<288x32xbf16, #tpu.memory_space<vmem>>, vector<288x32xbf16>
    %cst_95 = arith.constant dense<0.000000e+00> : vector<128x32xf32>
    %45 = tpu.matmul %43, %44, %cst_95 {dimension_numbers = #tpu.dot_dimension_numbers<[1], [0], [0], [1], [0, 0, 1, 1], [], []>} : vector<128x288xbf16>, vector<288x32xbf16>, vector<128x32xf32> -> vector<128x32xf32>
    %c0_96 = arith.constant 0 : index
    %c0_97 = arith.constant 0 : index
    %46 = vector.load %arg6[%c0_96, %c0_97] : memref<1x32xf32, #tpu.memory_space<vmem>>, vector<1x32xf32>
    %47 = vector.shape_cast %46 : vector<1x32xf32> to vector<32xf32>
    %48 = vector.shape_cast %47 : vector<32xf32> to vector<1x32xf32>
    %49 = vector.broadcast %48 : vector<1x32xf32> to vector<128x32xf32>
    %50 = arith.mulf %45, %49 : vector<128x32xf32>
    %c0_98 = arith.constant 0 : index
    %c0_99 = arith.constant 0 : index
    %51 = vector.load %arg7[%c0_98, %c0_99] : memref<1x32xf32, #tpu.memory_space<vmem>>, vector<1x32xf32>
    %52 = vector.shape_cast %51 : vector<1x32xf32> to vector<32xf32>
    %53 = vector.shape_cast %52 : vector<32xf32> to vector<1x32xf32>
    %54 = vector.broadcast %53 : vector<1x32xf32> to vector<128x32xf32>
    %55 = arith.addf %50, %54 : vector<128x32xf32>
    %56 = vector.shape_cast %55 : vector<128x32xf32> to vector<2x8x8x32xf32>
    %cst_100 = arith.constant 0.000000e+00 : f32
    %57 = vector.broadcast %cst_100 : f32 to vector<2x8x8x32xf32>
    %58 = arith.maximumf %56, %57 : vector<2x8x8x32xf32>
    %c0_101 = arith.constant 0 : index
    %c1_102 = arith.constant 1 : index
    %c1_103 = arith.constant 1 : index
    %c0_104 = arith.constant 0 : index
    %59 = vector.load %arg25[%c0_101, %c1_102, %c1_103, %c0_104] : memref<2x10x10x32xf32, #tpu.memory_space<vmem>>, vector<2x8x8x32xf32>
    tpu.vector_store %arg25[%c0_101, %c1_102, %c1_103, %c0_104], %58 {strides = array<i32>} : memref<2x10x10x32xf32, #tpu.memory_space<vmem>>, vector<2x8x8x32xf32>,
    %c0_105 = arith.constant 0 : index
    %c0_106 = arith.constant 0 : index
    %c0_107 = arith.constant 0 : index
    %c0_108 = arith.constant 0 : index
    %60 = vector.load %arg25[%c0_105, %c0_106, %c0_107, %c0_108] : memref<2x10x10x32xf32, #tpu.memory_space<vmem>>, vector<2x8x8x32xf32>
    %c0_109 = arith.constant 0 : index
    %c0_110 = arith.constant 0 : index
    %c1_111 = arith.constant 1 : index
    %c0_112 = arith.constant 0 : index
    %61 = vector.load %arg25[%c0_109, %c0_110, %c1_111, %c0_112] : memref<2x10x10x32xf32, #tpu.memory_space<vmem>>, vector<2x8x8x32xf32>
    %c0_113 = arith.constant 0 : index
    %c0_114 = arith.constant 0 : index
    %c2_115 = arith.constant 2 : index
    %c0_116 = arith.constant 0 : index
    %62 = vector.load %arg25[%c0_113, %c0_114, %c2_115, %c0_116] : memref<2x10x10x32xf32, #tpu.memory_space<vmem>>, vector<2x8x8x32xf32>
    %c0_117 = arith.constant 0 : index
    %c1_118 = arith.constant 1 : index
    %c0_119 = arith.constant 0 : index
    %c0_120 = arith.constant 0 : index
    %63 = vector.load %arg25[%c0_117, %c1_118, %c0_119, %c0_120] : memref<2x10x10x32xf32, #tpu.memory_space<vmem>>, vector<2x8x8x32xf32>
    %c0_121 = arith.constant 0 : index
    %c1_122 = arith.constant 1 : index
    %c1_123 = arith.constant 1 : index
    %c0_124 = arith.constant 0 : index
    %64 = vector.load %arg25[%c0_121, %c1_122, %c1_123, %c0_124] : memref<2x10x10x32xf32, #tpu.memory_space<vmem>>, vector<2x8x8x32xf32>
    %c0_125 = arith.constant 0 : index
    %c1_126 = arith.constant 1 : index
    %c2_127 = arith.constant 2 : index
    %c0_128 = arith.constant 0 : index
    %65 = vector.load %arg25[%c0_125, %c1_126, %c2_127, %c0_128] : memref<2x10x10x32xf32, #tpu.memory_space<vmem>>, vector<2x8x8x32xf32>
    %c0_129 = arith.constant 0 : index
    %c2_130 = arith.constant 2 : index
    %c0_131 = arith.constant 0 : index
    %c0_132 = arith.constant 0 : index
    %66 = vector.load %arg25[%c0_129, %c2_130, %c0_131, %c0_132] : memref<2x10x10x32xf32, #tpu.memory_space<vmem>>, vector<2x8x8x32xf32>
    %c0_133 = arith.constant 0 : index
    %c2_134 = arith.constant 2 : index
    %c1_135 = arith.constant 1 : index
    %c0_136 = arith.constant 0 : index
    %67 = vector.load %arg25[%c0_133, %c2_134, %c1_135, %c0_136] : memref<2x10x10x32xf32, #tpu.memory_space<vmem>>, vector<2x8x8x32xf32>
    %c0_137 = arith.constant 0 : index
    %c2_138 = arith.constant 2 : index
    %c2_139 = arith.constant 2 : index
    %c0_140 = arith.constant 0 : index
    %68 = vector.load %arg25[%c0_137, %c2_138, %c2_139, %c0_140] : memref<2x10x10x32xf32, #tpu.memory_space<vmem>>, vector<2x8x8x32xf32>
    %69 = tpu.concatenate %60, %61, %62, %63, %64, %65, %66, %67, %68 in 3 : vector<2x8x8x32xf32>, vector<2x8x8x32xf32>, vector<2x8x8x32xf32>, vector<2x8x8x32xf32>, vector<2x8x8x32xf32>, vector<2x8x8x32xf32>, vector<2x8x8x32xf32>, vector<2x8x8x32xf32>, vector<2x8x8x32xf32> -> vector<2x8x8x288xf32>
    %70 = vector.shape_cast %69 : vector<2x8x8x288xf32> to vector<128x288xf32>
    %71 = arith.truncf %70 : vector<128x288xf32> to vector<128x288xbf16>
    %c0_141 = arith.constant 0 : index
    %c0_142 = arith.constant 0 : index
    %72 = vector.load %arg8[%c0_141, %c0_142] : memref<288x32xbf16, #tpu.memory_space<vmem>>, vector<288x32xbf16>
    %cst_143 = arith.constant dense<0.000000e+00> : vector<128x32xf32>
    %73 = tpu.matmul %71, %72, %cst_143 {dimension_numbers = #tpu.dot_dimension_numbers<[1], [0], [0], [1], [0, 0, 1, 1], [], []>} : vector<128x288xbf16>, vector<288x32xbf16>, vector<128x32xf32> -> vector<128x32xf32>
    %c0_144 = arith.constant 0 : index
    %c0_145 = arith.constant 0 : index
    %74 = vector.load %arg9[%c0_144, %c0_145] : memref<1x32xf32, #tpu.memory_space<vmem>>, vector<1x32xf32>
    %75 = vector.shape_cast %74 : vector<1x32xf32> to vector<32xf32>
    %76 = vector.shape_cast %75 : vector<32xf32> to vector<1x32xf32>
    %77 = vector.broadcast %76 : vector<1x32xf32> to vector<128x32xf32>
    %78 = arith.mulf %73, %77 : vector<128x32xf32>
    %c0_146 = arith.constant 0 : index
    %c0_147 = arith.constant 0 : index
    %79 = vector.load %arg10[%c0_146, %c0_147] : memref<1x32xf32, #tpu.memory_space<vmem>>, vector<1x32xf32>
    %80 = vector.shape_cast %79 : vector<1x32xf32> to vector<32xf32>
    %81 = vector.shape_cast %80 : vector<32xf32> to vector<1x32xf32>
    %82 = vector.broadcast %81 : vector<1x32xf32> to vector<128x32xf32>
    %83 = arith.addf %78, %82 : vector<128x32xf32>
    %84 = vector.shape_cast %83 : vector<128x32xf32> to vector<2x8x8x32xf32>
    %85 = arith.addf %84, %30 : vector<2x8x8x32xf32>
    %cst_148 = arith.constant 0.000000e+00 : f32
    %86 = vector.broadcast %cst_148 : f32 to vector<2x8x8x32xf32>
    %87 = arith.maximumf %85, %86 : vector<2x8x8x32xf32>
    %c0_149 = arith.constant 0 : index
    %c1_150 = arith.constant 1 : index
    %c1_151 = arith.constant 1 : index
    %c0_152 = arith.constant 0 : index
    %88 = vector.load %arg25[%c0_149, %c1_150, %c1_151, %c0_152] : memref<2x10x10x32xf32, #tpu.memory_space<vmem>>, vector<2x8x8x32xf32>
    tpu.vector_store %arg25[%c0_149, %c1_150, %c1_151, %c0_152], %87 {strides = array<i32>} : memref<2x10x10x32xf32, #tpu.memory_space<vmem>>, vector<2x8x8x32xf32>,
    %c0_153 = arith.constant 0 : index
    %c0_154 = arith.constant 0 : index
    %c0_155 = arith.constant 0 : index
    %c0_156 = arith.constant 0 : index
    %89 = vector.load %arg25[%c0_153, %c0_154, %c0_155, %c0_156] : memref<2x10x10x32xf32, #tpu.memory_space<vmem>>, vector<2x8x8x32xf32>
    %c0_157 = arith.constant 0 : index
    %c0_158 = arith.constant 0 : index
    %c1_159 = arith.constant 1 : index
    %c0_160 = arith.constant 0 : index
    %90 = vector.load %arg25[%c0_157, %c0_158, %c1_159, %c0_160] : memref<2x10x10x32xf32, #tpu.memory_space<vmem>>, vector<2x8x8x32xf32>
    %c0_161 = arith.constant 0 : index
    %c0_162 = arith.constant 0 : index
    %c2_163 = arith.constant 2 : index
    %c0_164 = arith.constant 0 : index
    %91 = vector.load %arg25[%c0_161, %c0_162, %c2_163, %c0_164] : memref<2x10x10x32xf32, #tpu.memory_space<vmem>>, vector<2x8x8x32xf32>
    %c0_165 = arith.constant 0 : index
    %c1_166 = arith.constant 1 : index
    %c0_167 = arith.constant 0 : index
    %c0_168 = arith.constant 0 : index
    %92 = vector.load %arg25[%c0_165, %c1_166, %c0_167, %c0_168] : memref<2x10x10x32xf32, #tpu.memory_space<vmem>>, vector<2x8x8x32xf32>
    %c0_169 = arith.constant 0 : index
    %c1_170 = arith.constant 1 : index
    %c1_171 = arith.constant 1 : index
    %c0_172 = arith.constant 0 : index
    %93 = vector.load %arg25[%c0_169, %c1_170, %c1_171, %c0_172] : memref<2x10x10x32xf32, #tpu.memory_space<vmem>>, vector<2x8x8x32xf32>
    %c0_173 = arith.constant 0 : index
    %c1_174 = arith.constant 1 : index
    %c2_175 = arith.constant 2 : index
    %c0_176 = arith.constant 0 : index
    %94 = vector.load %arg25[%c0_173, %c1_174, %c2_175, %c0_176] : memref<2x10x10x32xf32, #tpu.memory_space<vmem>>, vector<2x8x8x32xf32>
    %c0_177 = arith.constant 0 : index
    %c2_178 = arith.constant 2 : index
    %c0_179 = arith.constant 0 : index
    %c0_180 = arith.constant 0 : index
    %95 = vector.load %arg25[%c0_177, %c2_178, %c0_179, %c0_180] : memref<2x10x10x32xf32, #tpu.memory_space<vmem>>, vector<2x8x8x32xf32>
    %c0_181 = arith.constant 0 : index
    %c2_182 = arith.constant 2 : index
    %c1_183 = arith.constant 1 : index
    %c0_184 = arith.constant 0 : index
    %96 = vector.load %arg25[%c0_181, %c2_182, %c1_183, %c0_184] : memref<2x10x10x32xf32, #tpu.memory_space<vmem>>, vector<2x8x8x32xf32>
    %c0_185 = arith.constant 0 : index
    %c2_186 = arith.constant 2 : index
    %c2_187 = arith.constant 2 : index
    %c0_188 = arith.constant 0 : index
    %97 = vector.load %arg25[%c0_185, %c2_186, %c2_187, %c0_188] : memref<2x10x10x32xf32, #tpu.memory_space<vmem>>, vector<2x8x8x32xf32>
    %98 = tpu.concatenate %89, %90, %91, %92, %93, %94, %95, %96, %97 in 3 : vector<2x8x8x32xf32>, vector<2x8x8x32xf32>, vector<2x8x8x32xf32>, vector<2x8x8x32xf32>, vector<2x8x8x32xf32>, vector<2x8x8x32xf32>, vector<2x8x8x32xf32>, vector<2x8x8x32xf32>, vector<2x8x8x32xf32> -> vector<2x8x8x288xf32>
    %99 = vector.shape_cast %98 : vector<2x8x8x288xf32> to vector<128x288xf32>
    %100 = arith.truncf %99 : vector<128x288xf32> to vector<128x288xbf16>
    %c0_189 = arith.constant 0 : index
    %c0_190 = arith.constant 0 : index
    %101 = vector.load %arg11[%c0_189, %c0_190] : memref<288x32xbf16, #tpu.memory_space<vmem>>, vector<288x32xbf16>
    %cst_191 = arith.constant dense<0.000000e+00> : vector<128x32xf32>
    %102 = tpu.matmul %100, %101, %cst_191 {dimension_numbers = #tpu.dot_dimension_numbers<[1], [0], [0], [1], [0, 0, 1, 1], [], []>} : vector<128x288xbf16>, vector<288x32xbf16>, vector<128x32xf32> -> vector<128x32xf32>
    %c0_192 = arith.constant 0 : index
    %c0_193 = arith.constant 0 : index
    %103 = vector.load %arg12[%c0_192, %c0_193] : memref<1x32xf32, #tpu.memory_space<vmem>>, vector<1x32xf32>
    %104 = vector.shape_cast %103 : vector<1x32xf32> to vector<32xf32>
    %105 = vector.shape_cast %104 : vector<32xf32> to vector<1x32xf32>
    %106 = vector.broadcast %105 : vector<1x32xf32> to vector<128x32xf32>
    %107 = arith.mulf %102, %106 : vector<128x32xf32>
    %c0_194 = arith.constant 0 : index
    %c0_195 = arith.constant 0 : index
    %108 = vector.load %arg13[%c0_194, %c0_195] : memref<1x32xf32, #tpu.memory_space<vmem>>, vector<1x32xf32>
    %109 = vector.shape_cast %108 : vector<1x32xf32> to vector<32xf32>
    %110 = vector.shape_cast %109 : vector<32xf32> to vector<1x32xf32>
    %111 = vector.broadcast %110 : vector<1x32xf32> to vector<128x32xf32>
    %112 = arith.addf %107, %111 : vector<128x32xf32>
    %113 = vector.shape_cast %112 : vector<128x32xf32> to vector<2x8x8x32xf32>
    %cst_196 = arith.constant 0.000000e+00 : f32
    %114 = vector.broadcast %cst_196 : f32 to vector<2x8x8x32xf32>
    %115 = arith.maximumf %113, %114 : vector<2x8x8x32xf32>
    %c0_197 = arith.constant 0 : index
    %c1_198 = arith.constant 1 : index
    %c1_199 = arith.constant 1 : index
    %c0_200 = arith.constant 0 : index
    %116 = vector.load %arg25[%c0_197, %c1_198, %c1_199, %c0_200] : memref<2x10x10x32xf32, #tpu.memory_space<vmem>>, vector<2x8x8x32xf32>
    tpu.vector_store %arg25[%c0_197, %c1_198, %c1_199, %c0_200], %115 {strides = array<i32>} : memref<2x10x10x32xf32, #tpu.memory_space<vmem>>, vector<2x8x8x32xf32>,
    %c0_201 = arith.constant 0 : index
    %c0_202 = arith.constant 0 : index
    %c0_203 = arith.constant 0 : index
    %c0_204 = arith.constant 0 : index
    %117 = vector.load %arg25[%c0_201, %c0_202, %c0_203, %c0_204] : memref<2x10x10x32xf32, #tpu.memory_space<vmem>>, vector<2x8x8x32xf32>
    %c0_205 = arith.constant 0 : index
    %c0_206 = arith.constant 0 : index
    %c1_207 = arith.constant 1 : index
    %c0_208 = arith.constant 0 : index
    %118 = vector.load %arg25[%c0_205, %c0_206, %c1_207, %c0_208] : memref<2x10x10x32xf32, #tpu.memory_space<vmem>>, vector<2x8x8x32xf32>
    %c0_209 = arith.constant 0 : index
    %c0_210 = arith.constant 0 : index
    %c2_211 = arith.constant 2 : index
    %c0_212 = arith.constant 0 : index
    %119 = vector.load %arg25[%c0_209, %c0_210, %c2_211, %c0_212] : memref<2x10x10x32xf32, #tpu.memory_space<vmem>>, vector<2x8x8x32xf32>
    %c0_213 = arith.constant 0 : index
    %c1_214 = arith.constant 1 : index
    %c0_215 = arith.constant 0 : index
    %c0_216 = arith.constant 0 : index
    %120 = vector.load %arg25[%c0_213, %c1_214, %c0_215, %c0_216] : memref<2x10x10x32xf32, #tpu.memory_space<vmem>>, vector<2x8x8x32xf32>
    %c0_217 = arith.constant 0 : index
    %c1_218 = arith.constant 1 : index
    %c1_219 = arith.constant 1 : index
    %c0_220 = arith.constant 0 : index
    %121 = vector.load %arg25[%c0_217, %c1_218, %c1_219, %c0_220] : memref<2x10x10x32xf32, #tpu.memory_space<vmem>>, vector<2x8x8x32xf32>
    %c0_221 = arith.constant 0 : index
    %c1_222 = arith.constant 1 : index
    %c2_223 = arith.constant 2 : index
    %c0_224 = arith.constant 0 : index
    %122 = vector.load %arg25[%c0_221, %c1_222, %c2_223, %c0_224] : memref<2x10x10x32xf32, #tpu.memory_space<vmem>>, vector<2x8x8x32xf32>
    %c0_225 = arith.constant 0 : index
    %c2_226 = arith.constant 2 : index
    %c0_227 = arith.constant 0 : index
    %c0_228 = arith.constant 0 : index
    %123 = vector.load %arg25[%c0_225, %c2_226, %c0_227, %c0_228] : memref<2x10x10x32xf32, #tpu.memory_space<vmem>>, vector<2x8x8x32xf32>
    %c0_229 = arith.constant 0 : index
    %c2_230 = arith.constant 2 : index
    %c1_231 = arith.constant 1 : index
    %c0_232 = arith.constant 0 : index
    %124 = vector.load %arg25[%c0_229, %c2_230, %c1_231, %c0_232] : memref<2x10x10x32xf32, #tpu.memory_space<vmem>>, vector<2x8x8x32xf32>
    %c0_233 = arith.constant 0 : index
    %c2_234 = arith.constant 2 : index
    %c2_235 = arith.constant 2 : index
    %c0_236 = arith.constant 0 : index
    %125 = vector.load %arg25[%c0_233, %c2_234, %c2_235, %c0_236] : memref<2x10x10x32xf32, #tpu.memory_space<vmem>>, vector<2x8x8x32xf32>
    %126 = tpu.concatenate %117, %118, %119, %120, %121, %122, %123, %124, %125 in 3 : vector<2x8x8x32xf32>, vector<2x8x8x32xf32>, vector<2x8x8x32xf32>, vector<2x8x8x32xf32>, vector<2x8x8x32xf32>, vector<2x8x8x32xf32>, vector<2x8x8x32xf32>, vector<2x8x8x32xf32>, vector<2x8x8x32xf32> -> vector<2x8x8x288xf32>
    %127 = vector.shape_cast %126 : vector<2x8x8x288xf32> to vector<128x288xf32>
    %128 = arith.truncf %127 : vector<128x288xf32> to vector<128x288xbf16>
    %c0_237 = arith.constant 0 : index
    %c0_238 = arith.constant 0 : index
    %129 = vector.load %arg14[%c0_237, %c0_238] : memref<288x32xbf16, #tpu.memory_space<vmem>>, vector<288x32xbf16>
    %cst_239 = arith.constant dense<0.000000e+00> : vector<128x32xf32>
    %130 = tpu.matmul %128, %129, %cst_239 {dimension_numbers = #tpu.dot_dimension_numbers<[1], [0], [0], [1], [0, 0, 1, 1], [], []>} : vector<128x288xbf16>, vector<288x32xbf16>, vector<128x32xf32> -> vector<128x32xf32>
    %c0_240 = arith.constant 0 : index
    %c0_241 = arith.constant 0 : index
    %131 = vector.load %arg15[%c0_240, %c0_241] : memref<1x32xf32, #tpu.memory_space<vmem>>, vector<1x32xf32>
    %132 = vector.shape_cast %131 : vector<1x32xf32> to vector<32xf32>
    %133 = vector.shape_cast %132 : vector<32xf32> to vector<1x32xf32>
    %134 = vector.broadcast %133 : vector<1x32xf32> to vector<128x32xf32>
    %135 = arith.mulf %130, %134 : vector<128x32xf32>
    %c0_242 = arith.constant 0 : index
    %c0_243 = arith.constant 0 : index
    %136 = vector.load %arg16[%c0_242, %c0_243] : memref<1x32xf32, #tpu.memory_space<vmem>>, vector<1x32xf32>
    %137 = vector.shape_cast %136 : vector<1x32xf32> to vector<32xf32>
    %138 = vector.shape_cast %137 : vector<32xf32> to vector<1x32xf32>
    %139 = vector.broadcast %138 : vector<1x32xf32> to vector<128x32xf32>
    %140 = arith.addf %135, %139 : vector<128x32xf32>
    %141 = vector.shape_cast %140 : vector<128x32xf32> to vector<2x8x8x32xf32>
    %142 = arith.addf %141, %87 : vector<2x8x8x32xf32>
    %cst_244 = arith.constant 0.000000e+00 : f32
    %143 = vector.broadcast %cst_244 : f32 to vector<2x8x8x32xf32>
    %144 = arith.maximumf %142, %143 : vector<2x8x8x32xf32>
    %c0_245 = arith.constant 0 : index
    %c1_246 = arith.constant 1 : index
    %c1_247 = arith.constant 1 : index
    %c0_248 = arith.constant 0 : index
    %145 = vector.load %arg25[%c0_245, %c1_246, %c1_247, %c0_248] : memref<2x10x10x32xf32, #tpu.memory_space<vmem>>, vector<2x8x8x32xf32>
    tpu.vector_store %arg25[%c0_245, %c1_246, %c1_247, %c0_248], %144 {strides = array<i32>} : memref<2x10x10x32xf32, #tpu.memory_space<vmem>>, vector<2x8x8x32xf32>,
    %c0_249 = arith.constant 0 : index
    %c0_250 = arith.constant 0 : index
    %c0_251 = arith.constant 0 : index
    %c0_252 = arith.constant 0 : index
    %146 = vector.load %arg25[%c0_249, %c0_250, %c0_251, %c0_252] : memref<2x10x10x32xf32, #tpu.memory_space<vmem>>, vector<2x8x8x32xf32>
    %c0_253 = arith.constant 0 : index
    %c0_254 = arith.constant 0 : index
    %c1_255 = arith.constant 1 : index
    %c0_256 = arith.constant 0 : index
    %147 = vector.load %arg25[%c0_253, %c0_254, %c1_255, %c0_256] : memref<2x10x10x32xf32, #tpu.memory_space<vmem>>, vector<2x8x8x32xf32>
    %c0_257 = arith.constant 0 : index
    %c0_258 = arith.constant 0 : index
    %c2_259 = arith.constant 2 : index
    %c0_260 = arith.constant 0 : index
    %148 = vector.load %arg25[%c0_257, %c0_258, %c2_259, %c0_260] : memref<2x10x10x32xf32, #tpu.memory_space<vmem>>, vector<2x8x8x32xf32>
    %c0_261 = arith.constant 0 : index
    %c1_262 = arith.constant 1 : index
    %c0_263 = arith.constant 0 : index
    %c0_264 = arith.constant 0 : index
    %149 = vector.load %arg25[%c0_261, %c1_262, %c0_263, %c0_264] : memref<2x10x10x32xf32, #tpu.memory_space<vmem>>, vector<2x8x8x32xf32>
    %c0_265 = arith.constant 0 : index
    %c1_266 = arith.constant 1 : index
    %c1_267 = arith.constant 1 : index
    %c0_268 = arith.constant 0 : index
    %150 = vector.load %arg25[%c0_265, %c1_266, %c1_267, %c0_268] : memref<2x10x10x32xf32, #tpu.memory_space<vmem>>, vector<2x8x8x32xf32>
    %c0_269 = arith.constant 0 : index
    %c1_270 = arith.constant 1 : index
    %c2_271 = arith.constant 2 : index
    %c0_272 = arith.constant 0 : index
    %151 = vector.load %arg25[%c0_269, %c1_270, %c2_271, %c0_272] : memref<2x10x10x32xf32, #tpu.memory_space<vmem>>, vector<2x8x8x32xf32>
    %c0_273 = arith.constant 0 : index
    %c2_274 = arith.constant 2 : index
    %c0_275 = arith.constant 0 : index
    %c0_276 = arith.constant 0 : index
    %152 = vector.load %arg25[%c0_273, %c2_274, %c0_275, %c0_276] : memref<2x10x10x32xf32, #tpu.memory_space<vmem>>, vector<2x8x8x32xf32>
    %c0_277 = arith.constant 0 : index
    %c2_278 = arith.constant 2 : index
    %c1_279 = arith.constant 1 : index
    %c0_280 = arith.constant 0 : index
    %153 = vector.load %arg25[%c0_277, %c2_278, %c1_279, %c0_280] : memref<2x10x10x32xf32, #tpu.memory_space<vmem>>, vector<2x8x8x32xf32>
    %c0_281 = arith.constant 0 : index
    %c2_282 = arith.constant 2 : index
    %c2_283 = arith.constant 2 : index
    %c0_284 = arith.constant 0 : index
    %154 = vector.load %arg25[%c0_281, %c2_282, %c2_283, %c0_284] : memref<2x10x10x32xf32, #tpu.memory_space<vmem>>, vector<2x8x8x32xf32>
    %155 = tpu.concatenate %146, %147, %148, %149, %150, %151, %152, %153, %154 in 3 : vector<2x8x8x32xf32>, vector<2x8x8x32xf32>, vector<2x8x8x32xf32>, vector<2x8x8x32xf32>, vector<2x8x8x32xf32>, vector<2x8x8x32xf32>, vector<2x8x8x32xf32>, vector<2x8x8x32xf32>, vector<2x8x8x32xf32> -> vector<2x8x8x288xf32>
    %156 = vector.shape_cast %155 : vector<2x8x8x288xf32> to vector<128x288xf32>
    %157 = arith.truncf %156 : vector<128x288xf32> to vector<128x288xbf16>
    %c0_285 = arith.constant 0 : index
    %c0_286 = arith.constant 0 : index
    %158 = vector.load %arg17[%c0_285, %c0_286] : memref<288x32xbf16, #tpu.memory_space<vmem>>, vector<288x32xbf16>
    %cst_287 = arith.constant dense<0.000000e+00> : vector<128x32xf32>
    %159 = tpu.matmul %157, %158, %cst_287 {dimension_numbers = #tpu.dot_dimension_numbers<[1], [0], [0], [1], [0, 0, 1, 1], [], []>} : vector<128x288xbf16>, vector<288x32xbf16>, vector<128x32xf32> -> vector<128x32xf32>
    %c0_288 = arith.constant 0 : index
    %c0_289 = arith.constant 0 : index
    %160 = vector.load %arg18[%c0_288, %c0_289] : memref<1x32xf32, #tpu.memory_space<vmem>>, vector<1x32xf32>
    %161 = vector.shape_cast %160 : vector<1x32xf32> to vector<32xf32>
    %162 = vector.shape_cast %161 : vector<32xf32> to vector<1x32xf32>
    %163 = vector.broadcast %162 : vector<1x32xf32> to vector<128x32xf32>
    %164 = arith.mulf %159, %163 : vector<128x32xf32>
    %c0_290 = arith.constant 0 : index
    %c0_291 = arith.constant 0 : index
    %165 = vector.load %arg19[%c0_290, %c0_291] : memref<1x32xf32, #tpu.memory_space<vmem>>, vector<1x32xf32>
    %166 = vector.shape_cast %165 : vector<1x32xf32> to vector<32xf32>
    %167 = vector.shape_cast %166 : vector<32xf32> to vector<1x32xf32>
    %168 = vector.broadcast %167 : vector<1x32xf32> to vector<128x32xf32>
    %169 = arith.addf %164, %168 : vector<128x32xf32>
    %170 = vector.shape_cast %169 : vector<128x32xf32> to vector<2x8x8x32xf32>
    %cst_292 = arith.constant 0.000000e+00 : f32
    %171 = vector.broadcast %cst_292 : f32 to vector<2x8x8x32xf32>
    %172 = arith.maximumf %170, %171 : vector<2x8x8x32xf32>
    %c0_293 = arith.constant 0 : index
    %c0_294 = arith.constant 0 : index
    %c0_295 = arith.constant 0 : index
    %c0_296 = arith.constant 0 : index
    %173 = vector.load %arg23[%c0_293, %c0_294, %c0_295, %c0_296] : memref<2x8x8x32xf32, #tpu.memory_space<vmem>>, vector<2x8x8x32xf32>
    tpu.vector_store %arg23[%c0_293, %c0_294, %c0_295, %c0_296], %172 {strides = array<i32>} : memref<2x8x8x32xf32, #tpu.memory_space<vmem>>, vector<2x8x8x32xf32>,
    %c0_297 = arith.constant 0 : index
    %c0_298 = arith.constant 0 : index
    %c0_299 = arith.constant 0 : index
    %c0_300 = arith.constant 0 : index
    %174 = vector.load %arg25[%c0_297, %c0_298, %c0_299, %c0_300] : memref<2x10x10x32xf32, #tpu.memory_space<vmem>>, vector<2x8x8x32xf32>
    %c0_301 = arith.constant 0 : index
    %c0_302 = arith.constant 0 : index
    %c1_303 = arith.constant 1 : index
    %c0_304 = arith.constant 0 : index
    %175 = vector.load %arg25[%c0_301, %c0_302, %c1_303, %c0_304] : memref<2x10x10x32xf32, #tpu.memory_space<vmem>>, vector<2x8x8x32xf32>
    %c0_305 = arith.constant 0 : index
    %c0_306 = arith.constant 0 : index
    %c2_307 = arith.constant 2 : index
    %c0_308 = arith.constant 0 : index
    %176 = vector.load %arg25[%c0_305, %c0_306, %c2_307, %c0_308] : memref<2x10x10x32xf32, #tpu.memory_space<vmem>>, vector<2x8x8x32xf32>
    %c0_309 = arith.constant 0 : index
    %c1_310 = arith.constant 1 : index
    %c0_311 = arith.constant 0 : index
    %c0_312 = arith.constant 0 : index
    %177 = vector.load %arg25[%c0_309, %c1_310, %c0_311, %c0_312] : memref<2x10x10x32xf32, #tpu.memory_space<vmem>>, vector<2x8x8x32xf32>
    %c0_313 = arith.constant 0 : index
    %c1_314 = arith.constant 1 : index
    %c1_315 = arith.constant 1 : index
    %c0_316 = arith.constant 0 : index
    %178 = vector.load %arg25[%c0_313, %c1_314, %c1_315, %c0_316] : memref<2x10x10x32xf32, #tpu.memory_space<vmem>>, vector<2x8x8x32xf32>
    %c0_317 = arith.constant 0 : index
    %c1_318 = arith.constant 1 : index
    %c2_319 = arith.constant 2 : index
    %c0_320 = arith.constant 0 : index
    %179 = vector.load %arg25[%c0_317, %c1_318, %c2_319, %c0_320] : memref<2x10x10x32xf32, #tpu.memory_space<vmem>>, vector<2x8x8x32xf32>
    %c0_321 = arith.constant 0 : index
    %c2_322 = arith.constant 2 : index
    %c0_323 = arith.constant 0 : index
    %c0_324 = arith.constant 0 : index
    %180 = vector.load %arg25[%c0_321, %c2_322, %c0_323, %c0_324] : memref<2x10x10x32xf32, #tpu.memory_space<vmem>>, vector<2x8x8x32xf32>
    %c0_325 = arith.constant 0 : index
    %c2_326 = arith.constant 2 : index
    %c1_327 = arith.constant 1 : index
    %c0_328 = arith.constant 0 : index
    %181 = vector.load %arg25[%c0_325, %c2_326, %c1_327, %c0_328] : memref<2x10x10x32xf32, #tpu.memory_space<vmem>>, vector<2x8x8x32xf32>
    %c0_329 = arith.constant 0 : index
    %c2_330 = arith.constant 2 : index
    %c2_331 = arith.constant 2 : index
    %c0_332 = arith.constant 0 : index
    %182 = vector.load %arg25[%c0_329, %c2_330, %c2_331, %c0_332] : memref<2x10x10x32xf32, #tpu.memory_space<vmem>>, vector<2x8x8x32xf32>
    %183 = tpu.concatenate %174, %175, %176, %177, %178, %179, %180, %181, %182 in 3 : vector<2x8x8x32xf32>, vector<2x8x8x32xf32>, vector<2x8x8x32xf32>, vector<2x8x8x32xf32>, vector<2x8x8x32xf32>, vector<2x8x8x32xf32>, vector<2x8x8x32xf32>, vector<2x8x8x32xf32>, vector<2x8x8x32xf32> -> vector<2x8x8x288xf32>
    %184 = vector.shape_cast %183 : vector<2x8x8x288xf32> to vector<128x288xf32>
    %185 = arith.truncf %184 : vector<128x288xf32> to vector<128x288xbf16>
    %c0_333 = arith.constant 0 : index
    %c0_334 = arith.constant 0 : index
    %186 = vector.load %arg20[%c0_333, %c0_334] : memref<288x32xbf16, #tpu.memory_space<vmem>>, vector<288x32xbf16>
    %cst_335 = arith.constant dense<0.000000e+00> : vector<128x32xf32>
    %187 = tpu.matmul %185, %186, %cst_335 {dimension_numbers = #tpu.dot_dimension_numbers<[1], [0], [0], [1], [0, 0, 1, 1], [], []>} : vector<128x288xbf16>, vector<288x32xbf16>, vector<128x32xf32> -> vector<128x32xf32>
    %c0_336 = arith.constant 0 : index
    %c0_337 = arith.constant 0 : index
    %188 = vector.load %arg21[%c0_336, %c0_337] : memref<1x32xf32, #tpu.memory_space<vmem>>, vector<1x32xf32>
    %189 = vector.shape_cast %188 : vector<1x32xf32> to vector<32xf32>
    %190 = vector.shape_cast %189 : vector<32xf32> to vector<1x32xf32>
    %191 = vector.broadcast %190 : vector<1x32xf32> to vector<128x32xf32>
    %192 = arith.mulf %187, %191 : vector<128x32xf32>
    %c0_338 = arith.constant 0 : index
    %c0_339 = arith.constant 0 : index
    %193 = vector.load %arg22[%c0_338, %c0_339] : memref<1x32xf32, #tpu.memory_space<vmem>>, vector<1x32xf32>
    %194 = vector.shape_cast %193 : vector<1x32xf32> to vector<32xf32>
    %195 = vector.shape_cast %194 : vector<32xf32> to vector<1x32xf32>
    %196 = vector.broadcast %195 : vector<1x32xf32> to vector<128x32xf32>
    %197 = arith.addf %192, %196 : vector<128x32xf32>
    %198 = vector.shape_cast %197 : vector<128x32xf32> to vector<2x8x8x32xf32>
    %cst_340 = arith.constant 0.000000e+00 : f32
    %199 = vector.broadcast %cst_340 : f32 to vector<2x8x8x32xf32>
    %200 = arith.maximumf %198, %199 : vector<2x8x8x32xf32>
    %c0_341 = arith.constant 0 : index
    %c0_342 = arith.constant 0 : index
    %c0_343 = arith.constant 0 : index
    %c0_344 = arith.constant 0 : index
    %201 = vector.load %arg24[%c0_341, %c0_342, %c0_343, %c0_344] : memref<2x8x8x32xf32, #tpu.memory_space<vmem>>, vector<2x8x8x32xf32>
    tpu.vector_store %arg24[%c0_341, %c0_342, %c0_343, %c0_344], %200 {strides = array<i32>} : memref<2x8x8x32xf32, #tpu.memory_space<vmem>>, vector<2x8x8x32xf32>,
    return
  }
  func.func @transform_0(%arg0: i32) -> (i32, i32, i32, i32) {
    %c0_i32 = arith.constant 0 : i32
    %c0_i32_0 = arith.constant 0 : i32
    %c0_i32_1 = arith.constant 0 : i32
    %c0_i32_2 = arith.constant 0 : i32
    return %arg0, %c0_i32, %c0_i32_0, %c0_i32_1 : i32, i32, i32, i32
  }
  func.func @transform_1(%arg0: i32) -> (i32, i32) {
    %c0_i32 = arith.constant 0 : i32
    %c0_i32_0 = arith.constant 0 : i32
    %c0_i32_1 = arith.constant 0 : i32
    return %c0_i32, %c0_i32_0 : i32, i32
  }
  func.func @transform_2(%arg0: i32) -> (i32, i32) {
    %c0_i32 = arith.constant 0 : i32
    %c0_i32_0 = arith.constant 0 : i32
    %c0_i32_1 = arith.constant 0 : i32
    return %c0_i32, %c0_i32_0 : i32, i32
  }
  func.func @transform_3(%arg0: i32) -> (i32, i32) {
    %c0_i32 = arith.constant 0 : i32
    %c0_i32_0 = arith.constant 0 : i32
    %c0_i32_1 = arith.constant 0 : i32
    return %c0_i32, %c0_i32_0 : i32, i32
  }
  func.func @transform_4(%arg0: i32) -> (i32, i32) {
    %c0_i32 = arith.constant 0 : i32
    %c0_i32_0 = arith.constant 0 : i32
    %c0_i32_1 = arith.constant 0 : i32
    return %c0_i32, %c0_i32_0 : i32, i32
  }
  func.func @transform_5(%arg0: i32) -> (i32, i32) {
    %c0_i32 = arith.constant 0 : i32
    %c0_i32_0 = arith.constant 0 : i32
    %c0_i32_1 = arith.constant 0 : i32
    return %c0_i32, %c0_i32_0 : i32, i32
  }
  func.func @transform_6(%arg0: i32) -> (i32, i32) {
    %c0_i32 = arith.constant 0 : i32
    %c0_i32_0 = arith.constant 0 : i32
    %c0_i32_1 = arith.constant 0 : i32
    return %c0_i32, %c0_i32_0 : i32, i32
  }
  func.func @transform_7(%arg0: i32) -> (i32, i32) {
    %c0_i32 = arith.constant 0 : i32
    %c0_i32_0 = arith.constant 0 : i32
    %c0_i32_1 = arith.constant 0 : i32
    return %c0_i32, %c0_i32_0 : i32, i32
  }
  func.func @transform_8(%arg0: i32) -> (i32, i32) {
    %c0_i32 = arith.constant 0 : i32
    %c0_i32_0 = arith.constant 0 : i32
    %c0_i32_1 = arith.constant 0 : i32
    return %c0_i32, %c0_i32_0 : i32, i32
  }
  func.func @transform_9(%arg0: i32) -> (i32, i32) {
    %c0_i32 = arith.constant 0 : i32
    %c0_i32_0 = arith.constant 0 : i32
    %c0_i32_1 = arith.constant 0 : i32
    return %c0_i32, %c0_i32_0 : i32, i32
  }
  func.func @transform_10(%arg0: i32) -> (i32, i32) {
    %c0_i32 = arith.constant 0 : i32
    %c0_i32_0 = arith.constant 0 : i32
    %c0_i32_1 = arith.constant 0 : i32
    return %c0_i32, %c0_i32_0 : i32, i32
  }
  func.func @transform_11(%arg0: i32) -> (i32, i32) {
    %c0_i32 = arith.constant 0 : i32
    %c0_i32_0 = arith.constant 0 : i32
    %c0_i32_1 = arith.constant 0 : i32
    return %c0_i32, %c0_i32_0 : i32, i32
  }
  func.func @transform_12(%arg0: i32) -> (i32, i32) {
    %c0_i32 = arith.constant 0 : i32
    %c0_i32_0 = arith.constant 0 : i32
    %c0_i32_1 = arith.constant 0 : i32
    return %c0_i32, %c0_i32_0 : i32, i32
  }
  func.func @transform_13(%arg0: i32) -> (i32, i32) {
    %c0_i32 = arith.constant 0 : i32
    %c0_i32_0 = arith.constant 0 : i32
    %c0_i32_1 = arith.constant 0 : i32
    return %c0_i32, %c0_i32_0 : i32, i32
  }
  func.func @transform_14(%arg0: i32) -> (i32, i32) {
    %c0_i32 = arith.constant 0 : i32
    %c0_i32_0 = arith.constant 0 : i32
    %c0_i32_1 = arith.constant 0 : i32
    return %c0_i32, %c0_i32_0 : i32, i32
  }
  func.func @transform_15(%arg0: i32) -> (i32, i32) {
    %c0_i32 = arith.constant 0 : i32
    %c0_i32_0 = arith.constant 0 : i32
    %c0_i32_1 = arith.constant 0 : i32
    return %c0_i32, %c0_i32_0 : i32, i32
  }
  func.func @transform_16(%arg0: i32) -> (i32, i32) {
    %c0_i32 = arith.constant 0 : i32
    %c0_i32_0 = arith.constant 0 : i32
    %c0_i32_1 = arith.constant 0 : i32
    return %c0_i32, %c0_i32_0 : i32, i32
  }
  func.func @transform_17(%arg0: i32) -> (i32, i32) {
    %c0_i32 = arith.constant 0 : i32
    %c0_i32_0 = arith.constant 0 : i32
    %c0_i32_1 = arith.constant 0 : i32
    return %c0_i32, %c0_i32_0 : i32, i32
  }
  func.func @transform_18(%arg0: i32) -> (i32, i32) {
    %c0_i32 = arith.constant 0 : i32
    %c0_i32_0 = arith.constant 0 : i32
    %c0_i32_1 = arith.constant 0 : i32
    return %c0_i32, %c0_i32_0 : i32, i32
  }
  func.func @transform_19(%arg0: i32) -> (i32, i32) {
    %c0_i32 = arith.constant 0 : i32
    %c0_i32_0 = arith.constant 0 : i32
    %c0_i32_1 = arith.constant 0 : i32
    return %c0_i32, %c0_i32_0 : i32, i32
  }
  func.func @transform_20(%arg0: i32) -> (i32, i32) {
    %c0_i32 = arith.constant 0 : i32
    %c0_i32_0 = arith.constant 0 : i32
    %c0_i32_1 = arith.constant 0 : i32
    return %c0_i32, %c0_i32_0 : i32, i32
  }
  func.func @transform_21(%arg0: i32) -> (i32, i32) {
    %c0_i32 = arith.constant 0 : i32
    %c0_i32_0 = arith.constant 0 : i32
    %c0_i32_1 = arith.constant 0 : i32
    return %c0_i32, %c0_i32_0 : i32, i32
  }
  func.func @transform_22(%arg0: i32) -> (i32, i32, i32, i32) {
    %c0_i32 = arith.constant 0 : i32
    %c0_i32_0 = arith.constant 0 : i32
    %c0_i32_1 = arith.constant 0 : i32
    %c0_i32_2 = arith.constant 0 : i32
    return %arg0, %c0_i32, %c0_i32_0, %c0_i32_1 : i32, i32, i32, i32
  }
  func.func @transform_23(%arg0: i32) -> (i32, i32, i32, i32) {
    %c0_i32 = arith.constant 0 : i32
    %c0_i32_0 = arith.constant 0 : i32
    %c0_i32_1 = arith.constant 0 : i32
    %c0_i32_2 = arith.constant 0 : i32
    return %arg0, %c0_i32, %c0_i32_0, %c0_i32_1 : i32, i32, i32, i32
  }
}

module attributes {stable_mosaic.version = 11 : i64} {
  func.func @_heads_kernel(%arg0: i32, %arg1: memref<2x2048xf32, #tpu.memory_space<vmem>>, %arg2: memref<2x2048xf32, #tpu.memory_space<vmem>>, %arg3: memref<2048x128xbf16, #tpu.memory_space<vmem>>, %arg4: memref<1x128xf32, #tpu.memory_space<vmem>>, %arg5: memref<2048x256xbf16, #tpu.memory_space<vmem>>, %arg6: memref<1x256xf32, #tpu.memory_space<vmem>>, %arg7: memref<256x128xbf16, #tpu.memory_space<vmem>>, %arg8: memref<1x128xf32, #tpu.memory_space<vmem>>, %arg9: memref<2x128xf32, #tpu.memory_space<vmem>>, %arg10: memref<2x128xf32, #tpu.memory_space<vmem>>) attributes {dimension_semantics = [#tpu.dimension_semantics<arbitrary>], iteration_bounds = array<i64: 1>, scalar_prefetch = 0 : i64, scratch_operands = 0 : i64, tpu.core_type = #tpu.core_type<tc>, window_params = [{pipeline_mode = #tpu.pipeline_mode<synchronous>, transform_indices = @transform_0, window_bounds = array<i64: 2, 2048>}, {pipeline_mode = #tpu.pipeline_mode<synchronous>, transform_indices = @transform_1, window_bounds = array<i64: 2, 2048>}, {pipeline_mode = #tpu.pipeline_mode<synchronous>, transform_indices = @transform_2, window_bounds = array<i64: 2048, 128>}, {pipeline_mode = #tpu.pipeline_mode<synchronous>, transform_indices = @transform_3, window_bounds = array<i64: 1, 128>}, {pipeline_mode = #tpu.pipeline_mode<synchronous>, transform_indices = @transform_4, window_bounds = array<i64: 2048, 256>}, {pipeline_mode = #tpu.pipeline_mode<synchronous>, transform_indices = @transform_5, window_bounds = array<i64: 1, 256>}, {pipeline_mode = #tpu.pipeline_mode<synchronous>, transform_indices = @transform_6, window_bounds = array<i64: 256, 128>}, {pipeline_mode = #tpu.pipeline_mode<synchronous>, transform_indices = @transform_7, window_bounds = array<i64: 1, 128>}, {pipeline_mode = #tpu.pipeline_mode<synchronous>, transform_indices = @transform_8, window_bounds = array<i64: 2, 128>}, {pipeline_mode = #tpu.pipeline_mode<synchronous>, transform_indices = @transform_9, window_bounds = array<i64: 2, 128>}]} {
    %c0 = arith.constant 0 : index
    %c0_0 = arith.constant 0 : index
    %0 = vector.load %arg1[%c0, %c0_0] : memref<2x2048xf32, #tpu.memory_space<vmem>>, vector<2x2048xf32>
    %1 = arith.truncf %0 : vector<2x2048xf32> to vector<2x2048xbf16>
    %c0_1 = arith.constant 0 : index
    %c0_2 = arith.constant 0 : index
    %2 = vector.load %arg3[%c0_1, %c0_2] : memref<2048x128xbf16, #tpu.memory_space<vmem>>, vector<2048x128xbf16>
    %cst = arith.constant dense<0.000000e+00> : vector<2x128xf32>
    %3 = tpu.matmul %1, %2, %cst {dimension_numbers = #tpu.dot_dimension_numbers<[1], [0], [0], [1], [0, 0, 1, 1], [], []>} : vector<2x2048xbf16>, vector<2048x128xbf16>, vector<2x128xf32> -> vector<2x128xf32>
    %c0_3 = arith.constant 0 : index
    %c0_4 = arith.constant 0 : index
    %4 = vector.load %arg4[%c0_3, %c0_4] : memref<1x128xf32, #tpu.memory_space<vmem>>, vector<1x128xf32>
    %5 = vector.shape_cast %4 : vector<1x128xf32> to vector<128xf32>
    %6 = vector.shape_cast %5 : vector<128xf32> to vector<1x128xf32>
    %7 = vector.broadcast %6 : vector<1x128xf32> to vector<2x128xf32>
    %8 = arith.addf %3, %7 : vector<2x128xf32>
    %c0_5 = arith.constant 0 : index
    %c0_6 = arith.constant 0 : index
    %9 = vector.load %arg9[%c0_5, %c0_6] : memref<2x128xf32, #tpu.memory_space<vmem>>, vector<2x128xf32>
    tpu.vector_store %arg9[%c0_5, %c0_6], %8 {strides = array<i32>} : memref<2x128xf32, #tpu.memory_space<vmem>>, vector<2x128xf32>,
    %c0_7 = arith.constant 0 : index
    %c0_8 = arith.constant 0 : index
    %10 = vector.load %arg2[%c0_7, %c0_8] : memref<2x2048xf32, #tpu.memory_space<vmem>>, vector<2x2048xf32>
    %11 = arith.truncf %10 : vector<2x2048xf32> to vector<2x2048xbf16>
    %c0_9 = arith.constant 0 : index
    %c0_10 = arith.constant 0 : index
    %12 = vector.load %arg5[%c0_9, %c0_10] : memref<2048x256xbf16, #tpu.memory_space<vmem>>, vector<2048x256xbf16>
    %cst_11 = arith.constant dense<0.000000e+00> : vector<2x256xf32>
    %13 = tpu.matmul %11, %12, %cst_11 {dimension_numbers = #tpu.dot_dimension_numbers<[1], [0], [0], [1], [0, 0, 1, 1], [], []>} : vector<2x2048xbf16>, vector<2048x256xbf16>, vector<2x256xf32> -> vector<2x256xf32>
    %c0_12 = arith.constant 0 : index
    %c0_13 = arith.constant 0 : index
    %14 = vector.load %arg6[%c0_12, %c0_13] : memref<1x256xf32, #tpu.memory_space<vmem>>, vector<1x256xf32>
    %15 = vector.shape_cast %14 : vector<1x256xf32> to vector<256xf32>
    %16 = vector.shape_cast %15 : vector<256xf32> to vector<1x256xf32>
    %17 = vector.broadcast %16 : vector<1x256xf32> to vector<2x256xf32>
    %18 = arith.addf %13, %17 : vector<2x256xf32>
    %cst_14 = arith.constant 0.000000e+00 : f32
    %19 = vector.broadcast %cst_14 : f32 to vector<2x256xf32>
    %20 = arith.maximumf %18, %19 : vector<2x256xf32>
    %21 = arith.truncf %20 : vector<2x256xf32> to vector<2x256xbf16>
    %c0_15 = arith.constant 0 : index
    %c0_16 = arith.constant 0 : index
    %22 = vector.load %arg7[%c0_15, %c0_16] : memref<256x128xbf16, #tpu.memory_space<vmem>>, vector<256x128xbf16>
    %cst_17 = arith.constant dense<0.000000e+00> : vector<2x128xf32>
    %23 = tpu.matmul %21, %22, %cst_17 {dimension_numbers = #tpu.dot_dimension_numbers<[1], [0], [0], [1], [0, 0, 1, 1], [], []>} : vector<2x256xbf16>, vector<256x128xbf16>, vector<2x128xf32> -> vector<2x128xf32>
    %c0_18 = arith.constant 0 : index
    %c0_19 = arith.constant 0 : index
    %24 = vector.load %arg8[%c0_18, %c0_19] : memref<1x128xf32, #tpu.memory_space<vmem>>, vector<1x128xf32>
    %25 = vector.shape_cast %24 : vector<1x128xf32> to vector<128xf32>
    %26 = vector.shape_cast %25 : vector<128xf32> to vector<1x128xf32>
    %27 = vector.broadcast %26 : vector<1x128xf32> to vector<2x128xf32>
    %28 = arith.addf %23, %27 : vector<2x128xf32>
    %29 = math.tanh %28 : vector<2x128xf32>
    %c0_20 = arith.constant 0 : index
    %c0_21 = arith.constant 0 : index
    %30 = vector.load %arg10[%c0_20, %c0_21] : memref<2x128xf32, #tpu.memory_space<vmem>>, vector<2x128xf32>
    tpu.vector_store %arg10[%c0_20, %c0_21], %29 {strides = array<i32>} : memref<2x128xf32, #tpu.memory_space<vmem>>, vector<2x128xf32>,
    return
  }
  func.func @transform_0(%arg0: i32) -> (i32, i32) {
    %c0_i32 = arith.constant 0 : i32
    %c0_i32_0 = arith.constant 0 : i32
    %c0_i32_1 = arith.constant 0 : i32
    return %c0_i32, %c0_i32_0 : i32, i32
  }
  func.func @transform_1(%arg0: i32) -> (i32, i32) {
    %c0_i32 = arith.constant 0 : i32
    %c0_i32_0 = arith.constant 0 : i32
    %c0_i32_1 = arith.constant 0 : i32
    return %c0_i32, %c0_i32_0 : i32, i32
  }
  func.func @transform_2(%arg0: i32) -> (i32, i32) {
    %c0_i32 = arith.constant 0 : i32
    %c0_i32_0 = arith.constant 0 : i32
    %c0_i32_1 = arith.constant 0 : i32
    return %c0_i32, %c0_i32_0 : i32, i32
  }
  func.func @transform_3(%arg0: i32) -> (i32, i32) {
    %c0_i32 = arith.constant 0 : i32
    %c0_i32_0 = arith.constant 0 : i32
    %c0_i32_1 = arith.constant 0 : i32
    return %c0_i32, %c0_i32_0 : i32, i32
  }
  func.func @transform_4(%arg0: i32) -> (i32, i32) {
    %c0_i32 = arith.constant 0 : i32
    %c0_i32_0 = arith.constant 0 : i32
    %c0_i32_1 = arith.constant 0 : i32
    return %c0_i32, %c0_i32_0 : i32, i32
  }
  func.func @transform_5(%arg0: i32) -> (i32, i32) {
    %c0_i32 = arith.constant 0 : i32
    %c0_i32_0 = arith.constant 0 : i32
    %c0_i32_1 = arith.constant 0 : i32
    return %c0_i32, %c0_i32_0 : i32, i32
  }
  func.func @transform_6(%arg0: i32) -> (i32, i32) {
    %c0_i32 = arith.constant 0 : i32
    %c0_i32_0 = arith.constant 0 : i32
    %c0_i32_1 = arith.constant 0 : i32
    return %c0_i32, %c0_i32_0 : i32, i32
  }
  func.func @transform_7(%arg0: i32) -> (i32, i32) {
    %c0_i32 = arith.constant 0 : i32
    %c0_i32_0 = arith.constant 0 : i32
    %c0_i32_1 = arith.constant 0 : i32
    return %c0_i32, %c0_i32_0 : i32, i32
  }
  func.func @transform_8(%arg0: i32) -> (i32, i32) {
    %c0_i32 = arith.constant 0 : i32
    %c0_i32_0 = arith.constant 0 : i32
    %c0_i32_1 = arith.constant 0 : i32
    return %c0_i32, %c0_i32_0 : i32, i32
  }
  func.func @transform_9(%arg0: i32) -> (i32, i32) {
    %c0_i32 = arith.constant 0 : i32
    %c0_i32_0 = arith.constant 0 : i32
    %c0_i32_1 = arith.constant 0 : i32
    return %c0_i32, %c0_i32_0 : i32, i32
  }
}

</mosaic_0001>

<bundles_post_ra>
// kernel: chess_network_forward.3
= control target key start
LH: loop header
LB: loop body
LE: loop exit
PB: predicated region body
PF: predicated region fallthrough
CT: control target
= control target key end

     0   :  { %15 = vsyncpa [#allocation3], 0  ;;  %s5976_s0 = inlined_call_operand.vmem [shape: f32[2,2048], index: 0, kind: input, shape index: {}]   ;;  %s5977_s1 = inlined_call_operand.vmem [shape: f32[2,2048], index: 1, kind: input, shape index: {}]   ;;  %s5978_s2 = inlined_call_operand.hbm [shape: bf16[2048,128], index: 2, kind: input, shape index: {}]   ;;  %s5979_s3 = inlined_call_operand.vmem [shape: f32[1,128], index: 3, kind: input, shape index: {}]   ;;  %s5980_s4 = inlined_call_operand.hbm [shape: bf16[2048,256], index: 4, kind: input, shape index: {}]   ;;  %s5981_s5 = inlined_call_operand.vmem [shape: f32[1,256], index: 5, kind: input, shape index: {}]   ;;  %s5982_s6 = inlined_call_operand.vmem [shape: bf16[256,128], index: 6, kind: input, shape index: {}]   ;;  %s5983_s7 = inlined_call_operand.vmem [shape: f32[1,128], index: 7, kind: input, shape index: {}]   ;;  %s5984_s8 = inlined_call_operand.hbm [shape: f32[2,128], index: 8, kind: output, shape index: {0}]   ;;  %s5985_s9 = inlined_call_operand.vmem [shape: f32[2,128], index: 9, kind: output, shape index: {1}]  }
   0x1   :  { %16 = vsyncpa [#allocation6], 0 }
   0x2   :  { %17 = vsyncpa [#allocation4], 0  ;;  %s26_s11 = sshll.u32 %s5978_s2, 4  ;;  %s5656_s12 = smov [#allocation2]   ;;  %s27_s11 = int_to_ptr.hbm [resolvable:$true] %s26_s11 }
   0x3   :  { %s28_s13 = sshll.u32 %s5656_s12, 4  ;;  %s41_s16 = sshll.u32 %s5980_s4, 4  ;;  %s29_s13 = int_to_ptr.vmem [resolvable:$true] %s28_s13  ;;  %s42_s16 = int_to_ptr.hbm [resolvable:$true] %s41_s16 }
   0x4   :  { %s5657_s17 = smov 64   ;;  %s5658_s18 = smov 4  }
   0x5   :  { %34 = dma.hbm_to_vmem [thread:$0]  %s27_s11, 16384, %s29_s13, [#allocation3], %s5657_s17, %s5657_s17, %s5658_s18  }
   0x6   :  { %s5659_s19 = smov [#allocation5]   ;;  %s5660_s21 = smov 128  }
   0x7   :  { %s43_s20 = sshll.u32 %s5659_s19, 4  ;;  %s5661_s22 = smov 8   ;;  %s44_s20 = int_to_ptr.vmem [resolvable:$true] %s43_s20 }
   0x8   :  { %49 = dma.hbm_to_vmem [thread:$0]  %s42_s16, 32768, %s44_s20, [#allocation6], %s5660_s21, %s5660_s21, %s5661_s22  }
   0x9   :  { %5650 = dma.done.wait [#allocation3], 16384  }
   0xa   :  { %5651 = vsyncadd [#allocation3], 4294950912 }
   0xb   :  { %5652 = dma.done.wait [#allocation6], 32768  }
   0xc   :  { %5653 = vsyncadd [#allocation6], 4294934528  ;;  %v5174_v0 = vld [vmem:[#allocation2 + $0x38] sm:$0xff]  ;;  %v5173_v4 = vld [vmem:[#allocation2 + $0x30] sm:$0xff]  ;;  %s3552_s4 = sshll.u32 %s5984_s8, 4  ;;  %s3553_s4 = int_to_ptr.hbm [resolvable:$true] %s3552_s4 }
   0xd   :  { %v5182_v1 = vld [vmem:[#allocation2 + $0x78] sm:$0xff]  ;;  %1153 = vmatpush.bf16.msra.mxu0 %v5174_v0  ;;  %v5181_v5 = vld [vmem:[#allocation2 + $0x70] sm:$0xff]  ;;  %v5172_v8 = vld [vmem:[#allocation2 + $0x28] sm:$0xff] }
   0xe   :  { %v5190_v2 = vld [vmem:[#allocation2 + $0xb8] sm:$0xff]  ;;  %1166 = vmatpush.bf16.msra.mxu1 %v5182_v1  ;;  %v5189_v6 = vld [vmem:[#allocation2 + $0xb0] sm:$0xff]  ;;  %v5180_v9 = vld [vmem:[#allocation2 + $0x68] sm:$0xff] }
   0xf   :  { %v5198_v3 = vld [vmem:[#allocation2 + $0xf8] sm:$0xff]  ;;  %1179 = vmatpush.bf16.msra.mxu2 %v5190_v2  ;;  %v5197_v7 = vld [vmem:[#allocation2 + $0xf0] sm:$0xff]  ;;  %v5188_v10 = vld [vmem:[#allocation2 + $0xa8] sm:$0xff] }
  0x10   :  { %1192 = vmatpush.bf16.msra.mxu3 %v5198_v3  ;;  %v5196_v11 = vld [vmem:[#allocation2 + $0xe8] sm:$0xff]  ;;  %v5171_v12 = vld [vmem:[#allocation2 + $0x20] sm:$0xff]  ;;  %v5170_v16 = vld [vmem:[#allocation2 + $0x18] sm:$0xff] }
  0x11   :  { %1154 = vmatpush.bf16.msra.mxu0 %v5173_v4  ;;  %v5179_v13 = vld [vmem:[#allocation2 + $0x60] sm:$0xff]  ;;  %v5178_v17 = vld [vmem:[#allocation2 + $0x58] sm:$0xff]  ;;  %v5169_v20 = vld [vmem:[#allocation2 + $0x10] sm:$0xff] }
  0x12   :  { %1167 = vmatpush.bf16.msra.mxu1 %v5181_v5  ;;  %v5187_v14 = vld [vmem:[#allocation2 + $0xa0] sm:$0xff]  ;;  %v5186_v18 = vld [vmem:[#allocation2 + $0x98] sm:$0xff]  ;;  %v5177_v21 = vld [vmem:[#allocation2 + $0x50] sm:$0xff] }
  0x13   :  { %1180 = vmatpush.bf16.msra.mxu2 %v5189_v6  ;;  %v5195_v15 = vld [vmem:[#allocation2 + $0xe0] sm:$0xff]  ;;  %v5194_v19 = vld [vmem:[#allocation2 + $0xd8] sm:$0xff]  ;;  %v5185_v23 = vld [vmem:[#allocation2 + $0x90] sm:$0xff] }
  0x14   :  { %1193 = vmatpush.bf16.msra.mxu3 %v5197_v7  ;;  %v64_v22 = vld [vmem:[%s5976_s0] sm:$0xff]  ;;  %v5193_v24 = vld [vmem:[#allocation2 + $0xd0] sm:$0xff]  ;;  %v5168_v25 = vld [vmem:[#allocation2 + $0x8] sm:$0xff] }
  0x15   :  { %1155 = vmatpush.bf16.msra.mxu0 %v5172_v8  ;;  %72 = vst [vmem:[#allocation1] ss:$4 sm:$0xff] %v64_v22  ;;  %v5176_v26 = vld [vmem:[#allocation2 + $0x48] sm:$0xff]  ;;  %v5167_v29 = vld [vmem:[#allocation2] sm:$0xff]  ;;  %v5206_v38 = vld [vmem:[#allocation2 + $0x138] sm:$0xff] }
  0x16   :  { %1168 = vmatpush.bf16.msra.mxu1 %v5180_v9  ;;  %v5184_v27 = vld [vmem:[#allocation2 + $0x88] sm:$0xff]  ;;  %v5175_v30 = vld [vmem:[#allocation2 + $0x40] sm:$0xff]  ;;  %v5214_v39 = vld [vmem:[#allocation2 + $0x178] sm:$0xff] }
  0x17   :  { %1181 = vmatpush.bf16.msra.mxu2 %v5188_v10  ;;  %v5192_v28 = vld [vmem:[#allocation2 + $0xc8] sm:$0xff]  ;;  %v5183_v31 = vld [vmem:[#allocation2 + $0x80] sm:$0xff]  ;;  %v5222_v40 = vld [vmem:[#allocation2 + $0x1b8] sm:$0xff] }
  0x18   :  { %1194 = vmatpush.bf16.msra.mxu3 %v5196_v11  ;;  %v5191_v33 = vld [vmem:[#allocation2 + $0xc0] sm:$0xff]  ;;  %v66_v35 = vld [vmem:[%s5976_s0 + $0x10] sm:$0xff]  ;;  %v5230_v41 = vld [vmem:[#allocation2 + $0x1f8] sm:$0xff] }
  0x19   :  { %1156 = vmatpush.bf16.msra.mxu0 %v5171_v12  ;;  %v65_v42 = vld [vmem:[%s5976_s0 + $0x8] sm:$0xff]  ;;  %v5205_v47 = vld [vmem:[#allocation2 + $0x130] sm:$0xff]  ;;  %v5204_v51 = vld [vmem:[#allocation2 + $0x128] sm:$0xff] }
  0x1a   :  { %1169 = vmatpush.bf16.msra.mxu1 %v5179_v13  ;;  %74 = vst [vmem:[#allocation1 + $0x20] ss:$4 sm:$0xff] %v65_v42  ;;  %v5213_v48 = vld [vmem:[#allocation2 + $0x170] sm:$0xff]  ;;  %v5212_v52 = vld [vmem:[#allocation2 + $0x168] sm:$0xff]  ;;  %v5203_v55 = vld [vmem:[#allocation2 + $0x120] sm:$0xff] }
  0x1b   :  { %1182 = vmatpush.bf16.msra.mxu2 %v5187_v14  ;;  %v5221_v49 = vld [vmem:[#allocation2 + $0x1b0] sm:$0xff]  ;;  %v5220_v53 = vld [vmem:[#allocation2 + $0x1a8] sm:$0xff]  ;;  %v5211_v57 = vld [vmem:[#allocation2 + $0x160] sm:$0xff] }
  0x1c   :  { %1195 = vmatpush.bf16.msra.mxu3 %v5195_v15  ;;  %v77_v32 = vld.sshfl [vmem:[#allocation1 + $0x10] sm:$0xff pattern:$0x73625140]  ;;  %v75_v34 = vld.sshfl [vmem:[#allocation1] sm:$0xff pattern:$0x73625140] }
  0x1d   :  { %1157 = vmatpush.bf16.msra.mxu0 %v5170_v16  ;;  %v78_v36 = vld.sshfl [vmem:[#allocation1 + $0x18] sm:$0xff pattern:$0x73625140]  ;;  %v76_v37 = vld.sshfl [vmem:[#allocation1 + $0x8] sm:$0xff pattern:$0x73625140]  ;;  %v111_v43 = vpack.c.bf16 %v77_v32, %v77_v32  ;;  %v109_v44 = vpack.c.bf16 %v75_v34, %v75_v34 }
  0x1e   :  { %1170 = vmatpush.bf16.msra.mxu1 %v5178_v17  ;;  %83 = vst [vmem:[#allocation1] ss:$4 sm:$0xff] %v66_v35  ;;  %v112_v45 = vpack.c.bf16 %v78_v36, %v78_v36  ;;  %v110_v46 = vpack.c.bf16 %v76_v37, %v76_v37  ;;  %v5229_v50 = vld [vmem:[#allocation2 + $0x1f0] sm:$0xff]  ;;  %v5228_v54 = vld [vmem:[#allocation2 + $0x1e8] sm:$0xff]  ;;  %v5219_v62 = vld [vmem:[#allocation2 + $0x1a0] sm:$0xff] }
  0x1f   :  { %1183 = vmatpush.bf16.msra.mxu2 %v5186_v18  ;;  %v67_v59 = vld [vmem:[%s5976_s0 + $0x18] sm:$0xff]  ;;  %v5227_v63 = vld [vmem:[#allocation2 + $0x1e0] sm:$0xff]  ;;  %v5202_v0 = vld [vmem:[#allocation2 + $0x118] sm:$0xff] }
  0x20   :  { %1196 = vmatpush.bf16.msra.mxu3 %v5194_v19  ;;  %v5210_v1 = vld [vmem:[#allocation2 + $0x158] sm:$0xff]  ;;  %v5201_v4 = vld [vmem:[#allocation2 + $0x110] sm:$0xff]  ;;  %v5200_v8 = vld [vmem:[#allocation2 + $0x108] sm:$0xff] }
  0x21   :  { %1158 = vmatpush.bf16.msra.mxu0 %v5169_v20  ;;  %v5728_v56 = vld.sshfl [vmem:[#allocation1 + $0x30] sm:$0xff pattern:$0x73625140]  ;;  %v5730_v58 = vld.sshfl [vmem:[#allocation1 + $0x20] sm:$0xff pattern:$0x73625140] }
  0x22   :  { %1171 = vmatpush.bf16.msra.mxu1 %v5177_v21  ;;  %v5735_v60 = vld.sshfl [vmem:[#allocation1 + $0x38] sm:$0xff pattern:$0x73625140]  ;;  %v5737_v61 = vld.sshfl [vmem:[#allocation1 + $0x28] sm:$0xff pattern:$0x73625140]  ;;  %v115_v21 = vpack.c.bf16 %v5728_v56, %v5728_v56  ;;  %v113_v22 = vpack.c.bf16 %v5730_v58, %v5730_v58 }
  0x23   :  { %1184 = vmatpush.bf16.msra.mxu2 %v5185_v23  ;;  %84 = vst [vmem:[#allocation1 + $0x20] ss:$4 sm:$0xff] %v67_v59  ;;  %v5218_v2 = vld [vmem:[#allocation2 + $0x198] sm:$0xff]  ;;  %v5209_v5 = vld [vmem:[#allocation2 + $0x150] sm:$0xff]  ;;  %v5208_v9 = vld [vmem:[#allocation2 + $0x148] sm:$0xff] }
  0x24   :  { %1197 = vmatpush.bf16.msra.mxu3 %v5193_v24  ;;  %v5226_v3 = vld [vmem:[#allocation2 + $0x1d8] sm:$0xff]  ;;  %v5217_v6 = vld [vmem:[#allocation2 + $0x190] sm:$0xff]  ;;  %v5216_v10 = vld [vmem:[#allocation2 + $0x188] sm:$0xff] }
  0x25   :  { %1159 = vmatpush.bf16.msra.mxu0 %v5168_v25  ;;  %v5225_v7 = vld [vmem:[#allocation2 + $0x1d0] sm:$0xff]  ;;  %v5224_v11 = vld [vmem:[#allocation2 + $0x1c8] sm:$0xff]  ;;  %v5199_v12 = vld [vmem:[#allocation2 + $0x100] sm:$0xff]  ;;  %v116_v25 = vpack.c.bf16 %v5735_v60, %v5735_v60 }
  0x26   :  { %1172 = vmatpush.bf16.msra.mxu1 %v5176_v26  ;;  %v5207_v13 = vld [vmem:[#allocation2 + $0x140] sm:$0xff]  ;;  %v5238_v16 = vld [vmem:[#allocation2 + $0x238] sm:$0xff]  ;;  %v5237_v20 = vld [vmem:[#allocation2 + $0x230] sm:$0xff]  ;;  %v114_v26 = vpack.c.bf16 %v5737_v61, %v5737_v61 }
  0x27   :  { %1185 = vmatpush.bf16.msra.mxu2 %v5184_v27  ;;  %v5215_v14 = vld [vmem:[#allocation2 + $0x180] sm:$0xff]  ;;  %v5246_v17 = vld [vmem:[#allocation2 + $0x278] sm:$0xff]  ;;  %v5245_v23 = vld [vmem:[#allocation2 + $0x270] sm:$0xff] }
  0x28   :  { %1198 = vmatpush.bf16.msra.mxu3 %v5192_v28  ;;  %v5223_v15 = vld [vmem:[#allocation2 + $0x1c0] sm:$0xff]  ;;  %v5254_v18 = vld [vmem:[#allocation2 + $0x2b8] sm:$0xff]  ;;  %v5253_v24 = vld [vmem:[#allocation2 + $0x2b0] sm:$0xff] }
  0x29   :  { %1160 = vmatpush.bf16.msra.mxu0 %v5167_v29  ;;  %v5262_v19 = vld [vmem:[#allocation2 + $0x2f8] sm:$0xff]  ;;  %v5749_v28 = vld.sshfl [vmem:[#allocation1 + $0x10] sm:$0xff pattern:$0x73625140]  ;;  %v5235_v37 = vld [vmem:[#allocation2 + $0x220] sm:$0xff] }
  0x2a   :  { %1173 = vmatpush.bf16.msra.mxu1 %v5175_v30  ;;  %v5747_v27 = vld.sshfl [vmem:[#allocation1] sm:$0xff pattern:$0x73625140]  ;;  %v5751_v29 = vld.sshfl [vmem:[#allocation1 + $0x8] sm:$0xff pattern:$0x73625140] }
  0x2b   :  { %1186 = vmatpush.bf16.msra.mxu2 %v5183_v31  ;;  %v5261_v30 = vld [vmem:[#allocation2 + $0x2f0] sm:$0xff]  ;;  %v1362_v32 = vld [vmem:[%s5977_s1] sm:$0xff]  ;;  %v5244_v34 = vld [vmem:[#allocation2 + $0x268] sm:$0xff]  ;;  %v117_v61 = vpack.c.bf16 %v5747_v27, %v5747_v27 }
  0x2c   :  { %1199 = vmatpush.bf16.msra.mxu3 %v5191_v33  ;;  %1161 = vmatmul.bf16.vlgmr.msra.gmra.mxu0 %v109_v44  ;;  %v5753_v31 = vld.sshfl [vmem:[#allocation1 + $0x18] sm:$0xff pattern:$0x73625140]  ;;  %v5236_v33 = vld [vmem:[#allocation2 + $0x228] sm:$0xff]  ;;  %v5242_v42 = vld [vmem:[#allocation2 + $0x258] sm:$0xff] }
  0x2d   :  { %1205 = vmatpush.bf16.msrb.mxu0 %v5206_v38  ;;  %1174 = vmatmul.bf16.vlgmr.msra.gmra.mxu1 %v110_v46  ;;  %1370 = vst [vmem:[#allocation1] ss:$4 sm:$0xff] %v1362_v32  ;;  %v5252_v35 = vld [vmem:[#allocation2 + $0x2a8] sm:$0xff]  ;;  %v5243_v38 = vld [vmem:[#allocation2 + $0x260] sm:$0xff]  ;;  %v5258_v44 = vld [vmem:[#allocation2 + $0x2d8] sm:$0xff] }
  0x2e   :  { %1218 = vmatpush.bf16.msrb.mxu1 %v5214_v39  ;;  %1187 = vmatmul.bf16.vlgmr.msra.gmra.mxu2 %v111_v43  ;;  %v5260_v36 = vld [vmem:[#allocation2 + $0x2e8] sm:$0xff]  ;;  %v5251_v39 = vld [vmem:[#allocation2 + $0x2a0] sm:$0xff]  ;;  %v5250_v43 = vld [vmem:[#allocation2 + $0x298] sm:$0xff] }
  0x2f   :  { %1231 = vmatpush.bf16.msrb.mxu2 %v5222_v40  ;;  %1200 = vmatmul.bf16.vlgmr.msra.gmra.mxu3 %v112_v45  ;;  %v5259_v40 = vld [vmem:[#allocation2 + $0x2e0] sm:$0xff]  ;;  %v5233_v45 = vld [vmem:[#allocation2 + $0x210] sm:$0xff]  ;;  %v5278_v58 = vld [vmem:[#allocation2 + $0x378] sm:$0xff] }
  0x30   :  { %1244 = vmatpush.bf16.msrb.mxu3 %v5230_v41  ;;  %v5234_v41 = vld [vmem:[#allocation2 + $0x218] sm:$0xff]  ;;  %v5241_v46 = vld [vmem:[#allocation2 + $0x250] sm:$0xff]  ;;  %v5255_v56 = vld [vmem:[#allocation2 + $0x2c0] sm:$0xff] }
  0x31   :  { %1206 = vmatpush.bf16.msrb.mxu0 %v5205_v47  ;;  %v5249_v47 = vld [vmem:[#allocation2 + $0x290] sm:$0xff]  ;;  %v5286_v59 = vld [vmem:[#allocation2 + $0x3b8] sm:$0xff]  ;;  %v5272_v27 = vld [vmem:[#allocation2 + $0x348] sm:$0xff] }
  0x32   :  { %1219 = vmatpush.bf16.msrb.mxu1 %v5213_v48  ;;  %v5257_v48 = vld [vmem:[#allocation2 + $0x2d0] sm:$0xff]  ;;  %v5294_v60 = vld [vmem:[#allocation2 + $0x3f8] sm:$0xff] }
  0x33   :  { %1232 = vmatpush.bf16.msrb.mxu2 %v5221_v49  ;;  %v5232_v49 = vld [vmem:[#allocation2 + $0x208] sm:$0xff]  ;;  %v4137_v32 = vld [vmem:[#allocation5 + $0x70] sm:$0xf] }
  0x34   :  { %1245 = vmatpush.bf16.msrb.mxu3 %v5229_v50  ;;  %v5240_v50 = vld [vmem:[#allocation2 + $0x248] sm:$0xff] }
  0x35   :  { %1207 = vmatpush.bf16.msrb.mxu0 %v5204_v51  ;;  %v5248_v51 = vld [vmem:[#allocation2 + $0x288] sm:$0xff] }
  0x36   :  { %1220 = vmatpush.bf16.msrb.mxu1 %v5212_v52  ;;  %v5256_v52 = vld [vmem:[#allocation2 + $0x2c8] sm:$0xff] }
  0x37   :  { %1233 = vmatpush.bf16.msrb.mxu2 %v5220_v53  ;;  %v5231_v53 = vld [vmem:[#allocation2 + $0x200] sm:$0xff] }
  0x38   :  { %1246 = vmatpush.bf16.msrb.mxu3 %v5228_v54  ;;  %v5239_v54 = vld [vmem:[#allocation2 + $0x240] sm:$0xff] }
  0x39   :  { %1208 = vmatpush.bf16.msrb.mxu0 %v5203_v55  ;;  %v5247_v55 = vld [vmem:[#allocation2 + $0x280] sm:$0xff] }
  0x3a   :  { %1221 = vmatpush.bf16.msrb.mxu1 %v5211_v57  ;;  %v5270_v57 = vld [vmem:[#allocation2 + $0x338] sm:$0xff] }
  0x3b   :  { %1234 = vmatpush.bf16.msrb.mxu2 %v5219_v62  ;;  %v119_v62 = vpack.c.bf16 %v5749_v28, %v5749_v28  ;;  %v5280_v28 = vld [vmem:[#allocation2 + $0x388] sm:$0xff] }
  0x3c   :  { %1247 = vmatpush.bf16.msrb.mxu3 %v5227_v63  ;;  %v5269_v63 = vld [vmem:[#allocation2 + $0x330] sm:$0xff] }
  0x3d   :  { %1209 = vmatpush.bf16.msrb.mxu0 %v5202_v0  ;;  %v118_v0 = vpack.c.bf16 %v5751_v29, %v5751_v29  ;;  %v5288_v29 = vld [vmem:[#allocation2 + $0x3c8] sm:$0xff] }
  0x3e   :  { %1222 = vmatpush.bf16.msrb.mxu1 %v5210_v1  ;;  %v120_v1 = vpack.c.bf16 %v5753_v31, %v5753_v31  ;;  %v5271_v31 = vld [vmem:[#allocation2 + $0x340] sm:$0xff] }
  0x3f   :  { %1235 = vmatpush.bf16.msrb.mxu2 %v5218_v2  ;;  %v5277_v2 = vld [vmem:[#allocation2 + $0x370] sm:$0xff] }
  0x40   :  { %1248 = vmatpush.bf16.msrb.mxu3 %v5226_v3  ;;  %v5285_v3 = vld [vmem:[#allocation2 + $0x3b0] sm:$0xff] }
  0x41   :  { %1210 = vmatpush.bf16.msrb.mxu0 %v5201_v4  ;;  %v5766_v4 = vld.sshfl [vmem:[#allocation1 + $0x20] sm:$0xff pattern:$0x73625140] }
  0x42   :  { %1223 = vmatpush.bf16.msrb.mxu1 %v5209_v5  ;;  %v5768_v5 = vld.sshfl [vmem:[#allocation1 + $0x30] sm:$0xff pattern:$0x73625140] }
  0x43   :  { %1236 = vmatpush.bf16.msrb.mxu2 %v5217_v6  ;;  %v5770_v6 = vld.sshfl [vmem:[#allocation1 + $0x28] sm:$0xff pattern:$0x73625140] }
  0x44   :  { %1249 = vmatpush.bf16.msrb.mxu3 %v5225_v7  ;;  %v5293_v7 = vld [vmem:[#allocation2 + $0x3f0] sm:$0xff] }
  0x45   :  { %1211 = vmatpush.bf16.msrb.mxu0 %v5200_v8  ;;  %v5772_v8 = vld.sshfl [vmem:[#allocation1 + $0x38] sm:$0xff pattern:$0x73625140] }
  0x46   :  { %1224 = vmatpush.bf16.msrb.mxu1 %v5208_v9  ;;  %v1363_v9 = vld [vmem:[%s5977_s1 + $0x8] sm:$0xff] }
  0x47   :  { %1237 = vmatpush.bf16.msrb.mxu2 %v5216_v10  ;;  %1372 = vst [vmem:[#allocation1 + $0x20] ss:$4 sm:$0xff] %v1363_v9  ;;  %v5268_v10 = vld [vmem:[#allocation2 + $0x328] sm:$0xff] }
  0x48   :  { %1250 = vmatpush.bf16.msrb.mxu3 %v5224_v11  ;;  %v5276_v11 = vld [vmem:[#allocation2 + $0x368] sm:$0xff] }
  0x49   :  { %1212 = vmatpush.bf16.msrb.mxu0 %v5199_v12  ;;  %v5284_v12 = vld [vmem:[#allocation2 + $0x3a8] sm:$0xff] }
  0x4a   :  { %1225 = vmatpush.bf16.msrb.mxu1 %v5207_v13  ;;  %v5292_v13 = vld [vmem:[#allocation2 + $0x3e8] sm:$0xff] }
  0x4b   :  { %1238 = vmatpush.bf16.msrb.mxu2 %v5215_v14  ;;  %v5267_v14 = vld [vmem:[#allocation2 + $0x320] sm:$0xff]  ;;  %v5304_v9 = vld [vmem:[#allocation5 + $0x44] sm:$0xf0] }
  0x4c   :  { %1251 = vmatpush.bf16.msrb.mxu3 %v5223_v15  ;;  %1213 = vmatmul.bf16.vlgmr.msrb.gmra.mxu0 %v113_v22  ;;  %v5275_v15 = vld [vmem:[#allocation2 + $0x360] sm:$0xff]  ;;  %v5265_v22 = vld [vmem:[#allocation2 + $0x310] sm:$0xff] }
  0x4d   :  { %1257 = vmatpush.bf16.msra.mxu0 %v5238_v16  ;;  %1226 = vmatmul.bf16.vlgmr.msrb.gmra.mxu1 %v114_v26  ;;  %v5283_v16 = vld [vmem:[#allocation2 + $0x3a0] sm:$0xff]  ;;  %v5264_v26 = vld [vmem:[#allocation2 + $0x308] sm:$0xff] }
  0x4e   :  { %1270 = vmatpush.bf16.msra.mxu1 %v5246_v17  ;;  %1239 = vmatmul.bf16.vlgmr.msrb.gmra.mxu2 %v115_v21  ;;  %v5291_v17 = vld [vmem:[#allocation2 + $0x3e0] sm:$0xff]  ;;  %v5290_v21 = vld [vmem:[#allocation2 + $0x3d8] sm:$0xff] }
  0x4f   :  { %1283 = vmatpush.bf16.msra.mxu2 %v5254_v18  ;;  %1252 = vmatmul.bf16.vlgmr.msrb.gmra.mxu3 %v116_v25  ;;  %v5266_v18 = vld [vmem:[#allocation2 + $0x318] sm:$0xff]  ;;  %v5289_v25 = vld [vmem:[#allocation2 + $0x3d0] sm:$0xff] }
  0x50   :  { %1296 = vmatpush.bf16.msra.mxu3 %v5262_v19  ;;  %v5274_v19 = vld [vmem:[#allocation2 + $0x358] sm:$0xff] }
  0x51   :  { %1258 = vmatpush.bf16.msra.mxu0 %v5237_v20  ;;  %v5282_v20 = vld [vmem:[#allocation2 + $0x398] sm:$0xff] }
  0x52   :  { %1271 = vmatpush.bf16.msra.mxu1 %v5245_v23  ;;  %v5273_v23 = vld [vmem:[#allocation2 + $0x350] sm:$0xff] }
  0x53   :  { %1284 = vmatpush.bf16.msra.mxu2 %v5253_v24  ;;  %v5281_v24 = vld [vmem:[#allocation2 + $0x390] sm:$0xff] }
  0x54   :  { %1297 = vmatpush.bf16.msra.mxu3 %v5261_v30  ;;  %v5263_v30 = vld [vmem:[#allocation2 + $0x300] sm:$0xff] }
  0x55   :  { %1259 = vmatpush.bf16.msra.mxu0 %v5236_v33  ;;  %v5310_v33 = vld [vmem:[#allocation5 + $0x74] sm:$0xf0] }
  0x56   :  { %1272 = vmatpush.bf16.msra.mxu1 %v5244_v34  ;;  %v4201_v34 = vld [vmem:[#allocation5 + $0xf0] sm:$0xf] }
  0x57   :  { %1285 = vmatpush.bf16.msra.mxu2 %v5252_v35  ;;  %v5326_v35 = vld [vmem:[#allocation5 + $0xf4] sm:$0xf0] }
  0x58   :  { %1298 = vmatpush.bf16.msra.mxu3 %v5260_v36  ;;  %v4265_v36 = vld [vmem:[#allocation5 + $0x170] sm:$0xf] }
  0x59   :  { %1260 = vmatpush.bf16.msra.mxu0 %v5235_v37  ;;  %v5342_v37 = vld [vmem:[#allocation5 + $0x174] sm:$0xf0] }
  0x5a   :  { %1273 = vmatpush.bf16.msra.mxu1 %v5243_v38  ;;  %v4329_v38 = vld [vmem:[#allocation5 + $0x1f0] sm:$0xf] }
  0x5b   :  { %1286 = vmatpush.bf16.msra.mxu2 %v5251_v39  ;;  %v5358_v39 = vld [vmem:[#allocation5 + $0x1f4] sm:$0xf0] }
  0x5c   :  { %1299 = vmatpush.bf16.msra.mxu3 %v5259_v40  ;;  %v5279_v40 = vld [vmem:[#allocation2 + $0x380] sm:$0xff] }
  0x5d   :  { %1261 = vmatpush.bf16.msra.mxu0 %v5234_v41  ;;  %v5287_v41 = vld [vmem:[#allocation2 + $0x3c0] sm:$0xff] }
  0x5e   :  { %1274 = vmatpush.bf16.msra.mxu1 %v5242_v42  ;;  %v4138_v42 = vor.u32 %v5310_v33, %v4137_v32  ;;  %v4097_v32 = vld [vmem:[#allocation5 + $0x20] sm:$0xf]  ;;  %v5300_v33 = vld [vmem:[#allocation5 + $0x24] sm:$0xf0] }
  0x5f   :  { %1287 = vmatpush.bf16.msra.mxu2 %v5250_v43  ;;  %v4202_v43 = vor.u32 %v5326_v35, %v4201_v34 }
  0x60   :  { %1300 = vmatpush.bf16.msra.mxu3 %v5258_v44  ;;  %v4129_v44 = vld [vmem:[#allocation5 + $0x60] sm:$0xf] }
  0x61   :  { %1262 = vmatpush.bf16.msra.mxu0 %v5233_v45  ;;  %v5308_v45 = vld [vmem:[#allocation5 + $0x64] sm:$0xf0] }
  0x62   :  { %1275 = vmatpush.bf16.msra.mxu1 %v5241_v46  ;;  %v4266_v46 = vor.u32 %v5342_v37, %v4265_v36  ;;  %v4161_v36 = vld [vmem:[#allocation5 + $0xa0] sm:$0xf]  ;;  %v5316_v37 = vld [vmem:[#allocation5 + $0xa4] sm:$0xf0] }
  0x63   :  { %1288 = vmatpush.bf16.msra.mxu2 %v5249_v47  ;;  %v4330_v47 = vor.u32 %v5358_v39, %v4329_v38  ;;  %v4225_v38 = vld [vmem:[#allocation5 + $0x120] sm:$0xf]  ;;  %v5332_v39 = vld [vmem:[#allocation5 + $0x124] sm:$0xf0] }
  0x64   :  { %1301 = vmatpush.bf16.msra.mxu3 %v5257_v48  ;;  %v4193_v48 = vld [vmem:[#allocation5 + $0xe0] sm:$0xf] }
  0x65   :  { %1263 = vmatpush.bf16.msra.mxu0 %v5232_v49  ;;  %v5324_v49 = vld [vmem:[#allocation5 + $0xe4] sm:$0xf0] }
  0x66   :  { %1276 = vmatpush.bf16.msra.mxu1 %v5240_v50  ;;  %v4257_v50 = vld [vmem:[#allocation5 + $0x160] sm:$0xf] }
  0x67   :  { %1289 = vmatpush.bf16.msra.mxu2 %v5248_v51  ;;  %v121_v51 = vpack.c.bf16 %v5766_v4, %v5766_v4  ;;  %v4313_v4 = vld [vmem:[#allocation5 + $0x1d0] sm:$0xf] }
  0x68   :  { %1302 = vmatpush.bf16.msra.mxu3 %v5256_v52  ;;  %v123_v52 = vpack.c.bf16 %v5768_v5, %v5768_v5  ;;  %v5354_v5 = vld [vmem:[#allocation5 + $0x1d4] sm:$0xf0] }
  0x69   :  { %1264 = vmatpush.bf16.msra.mxu0 %v5231_v53  ;;  %v5340_v53 = vld [vmem:[#allocation5 + $0x164] sm:$0xf0] }
  0x6a   :  { %1277 = vmatpush.bf16.msra.mxu1 %v5239_v54  ;;  %v4321_v54 = vld [vmem:[#allocation5 + $0x1e0] sm:$0xf] }
  0x6b   :  { %1290 = vmatpush.bf16.msra.mxu2 %v5247_v55  ;;  %v5356_v55 = vld [vmem:[#allocation5 + $0x1e4] sm:$0xf0] }
  0x6c   :  { %1303 = vmatpush.bf16.msra.mxu3 %v5255_v56  ;;  %1265 = vmatmul.bf16.vlgmr.msra.gmra.mxu0 %v117_v61  ;;  %v122_v56 = vpack.c.bf16 %v5770_v6, %v5770_v6  ;;  %v5306_v61 = vld [vmem:[#allocation5 + $0x54] sm:$0xf0] }
  0x6d   :  { %1309 = vmatpush.bf16.msrb.mxu0 %v5270_v57  ;;  %1278 = vmatmul.bf16.vlgmr.msra.gmra.mxu1 %v118_v0  ;;  %v124_v57 = vpack.c.bf16 %v5772_v8, %v5772_v8  ;;  %v4185_v0 = vld [vmem:[#allocation5 + $0xd0] sm:$0xf]  ;;  %v4113_v8 = vld [vmem:[#allocation5 + $0x40] sm:$0xf] }
  0x6e   :  { %1322 = vmatpush.bf16.msrb.mxu1 %v5278_v58  ;;  %1291 = vmatmul.bf16.vlgmr.msra.gmra.mxu2 %v119_v62  ;;  %v4130_v58 = vor.u32 %v5308_v45, %v4129_v44  ;;  %v4258_v62 = vor.u32 %v5340_v53, %v4257_v50  ;;  %v4089_v44 = vld [vmem:[#allocation5 + $0x10] sm:$0xf]  ;;  %v5298_v45 = vld [vmem:[#allocation5 + $0x14] sm:$0xf0] }
  0x6f   :  { %1335 = vmatpush.bf16.msrb.mxu2 %v5286_v59  ;;  %1304 = vmatmul.bf16.vlgmr.msra.gmra.mxu3 %v120_v1  ;;  %v4194_v59 = vor.u32 %v5324_v49, %v4193_v48  ;;  %v5322_v1 = vld [vmem:[#allocation5 + $0xd4] sm:$0xf0]  ;;  %v4153_v48 = vld [vmem:[#allocation5 + $0x90] sm:$0xf] }
  0x70   :  { %1348 = vmatpush.bf16.msrb.mxu3 %v5294_v60  ;;  %v4121_v60 = vld [vmem:[#allocation5 + $0x50] sm:$0xf]  ;;  %v5314_v49 = vld [vmem:[#allocation5 + $0x94] sm:$0xf0] }
  0x71   :  { %1310 = vmatpush.bf16.msrb.mxu0 %v5269_v63  ;;  %v4322_v63 = vor.u32 %v5356_v55, %v4321_v54  ;;  %v4122_v6 = vor.u32 %v5306_v61, %v4121_v60  ;;  %v4217_v50 = vld [vmem:[#allocation5 + $0x110] sm:$0xf]  ;;  %v5346_v53 = vld [vmem:[#allocation5 + $0x194] sm:$0xf0]  ;;  %v4081_v54 = vld [vmem:[#allocation5] sm:$0xf]  ;;  %v4090_v55 = vor.u32 %v5298_v45, %v4089_v44 }
  0x72   :  { %1323 = vmatpush.bf16.msrb.mxu1 %v5277_v2  ;;  %v4249_v2 = vld [vmem:[#allocation5 + $0x150] sm:$0xf]  ;;  %v5418_v45 = vld [vmem:[#allocation5 + $0x3d4] sm:$0xf0] }
  0x73   :  { %1336 = vmatpush.bf16.msrb.mxu2 %v5285_v3  ;;  %v5338_v3 = vld [vmem:[#allocation5 + $0x154] sm:$0xf0]  ;;  %v4569_v44 = vld [vmem:[#allocation5 + $0x3d0] sm:$0xf] }
  0x74   :  { %1349 = vmatpush.bf16.msrb.mxu3 %v5293_v7  ;;  %v4186_v7 = vor.u32 %v5322_v1, %v4185_v0  ;;  %v4273_v0 = vld [vmem:[#allocation5 + $0x180] sm:$0xf]  ;;  %v5344_v1 = vld [vmem:[#allocation5 + $0x184] sm:$0xf0] }
  0x75   :  { %1311 = vmatpush.bf16.msrb.mxu0 %v5268_v10  ;;  %v4250_v10 = vor.u32 %v5338_v3, %v4249_v2  ;;  %v4393_v2 = vld [vmem:[#allocation5 + $0x270] sm:$0xf]  ;;  %v5374_v3 = vld [vmem:[#allocation5 + $0x274] sm:$0xf0] }
  0x76   :  { %1324 = vmatpush.bf16.msrb.mxu1 %v5276_v11  ;;  %v4314_v11 = vor.u32 %v5354_v5, %v4313_v4  ;;  %v4457_v4 = vld [vmem:[#allocation5 + $0x2f0] sm:$0xf]  ;;  %v5390_v5 = vld [vmem:[#allocation5 + $0x2f4] sm:$0xf0] }
  0x77   :  { %1337 = vmatpush.bf16.msrb.mxu2 %v5284_v12  ;;  %v4177_v12 = vld [vmem:[#allocation5 + $0xc0] sm:$0xf] }
  0x78   :  { %1350 = vmatpush.bf16.msrb.mxu3 %v5292_v13  ;;  %v5320_v13 = vld [vmem:[#allocation5 + $0xc4] sm:$0xf0] }
  0x79   :  { %1312 = vmatpush.bf16.msrb.mxu0 %v5267_v14  ;;  %v4241_v14 = vld [vmem:[#allocation5 + $0x140] sm:$0xf] }
  0x7a   :  { %1325 = vmatpush.bf16.msrb.mxu1 %v5275_v15  ;;  %v5336_v15 = vld [vmem:[#allocation5 + $0x144] sm:$0xf0] }
  0x7b   :  { %1338 = vmatpush.bf16.msrb.mxu2 %v5283_v16  ;;  %v4305_v16 = vld [vmem:[#allocation5 + $0x1c0] sm:$0xf] }
  0x7c   :  { %1351 = vmatpush.bf16.msrb.mxu3 %v5291_v17  ;;  %v5352_v17 = vld [vmem:[#allocation5 + $0x1c4] sm:$0xf0] }
  0x7d   :  { %1313 = vmatpush.bf16.msrb.mxu0 %v5266_v18  ;;  %v4114_v18 = vor.u32 %v5304_v9, %v4113_v8  ;;  %v5406_v9 = vld [vmem:[#allocation5 + $0x374] sm:$0xf0] }
  0x7e   :  { %1326 = vmatpush.bf16.msrb.mxu1 %v5274_v19  ;;  %v4178_v19 = vor.u32 %v5320_v13, %v4177_v12  ;;  %v4274_v13 = vor.u32 %v5344_v1, %v4273_v0 }
  0x7f   :  { %1339 = vmatpush.bf16.msrb.mxu2 %v5282_v20  ;;  %v4105_v20 = vld [vmem:[#allocation5 + $0x30] sm:$0xf] }
  0x80   :  { %1352 = vmatpush.bf16.msrb.mxu3 %v5290_v21  ;;  %v5302_v21 = vld [vmem:[#allocation5 + $0x34] sm:$0xf0] }
  0x81   :  { %1314 = vmatpush.bf16.msrb.mxu0 %v5265_v22  ;;  %v4242_v22 = vor.u32 %v5336_v15, %v4241_v14  ;;  %v4385_v14 = vld [vmem:[#allocation5 + $0x260] sm:$0xf]  ;;  %v5372_v15 = vld [vmem:[#allocation5 + $0x264] sm:$0xf0] }
  0x82   :  { %1327 = vmatpush.bf16.msrb.mxu1 %v5273_v23  ;;  %v4306_v23 = vor.u32 %v5352_v17, %v4305_v16  ;;  %v1375_v16 = vld.sshfl [vmem:[#allocation1 + $0x10] sm:$0xff pattern:$0x73625140]  ;;  %v1373_v17 = vld.sshfl [vmem:[#allocation1] sm:$0xff pattern:$0x73625140] }
  0x83   :  { %1340 = vmatpush.bf16.msrb.mxu2 %v5281_v24  ;;  %v4169_v24 = vld [vmem:[#allocation5 + $0xb0] sm:$0xf] }
  0x84   :  { %1353 = vmatpush.bf16.msrb.mxu3 %v5289_v25  ;;  %v5318_v25 = vld [vmem:[#allocation5 + $0xb4] sm:$0xf0] }
  0x85   :  { %1315 = vmatpush.bf16.msrb.mxu0 %v5264_v26  ;;  %v4233_v26 = vld [vmem:[#allocation5 + $0x130] sm:$0xf] }
  0x86   :  { %1328 = vmatpush.bf16.msrb.mxu1 %v5272_v27  ;;  %v5334_v27 = vld [vmem:[#allocation5 + $0x134] sm:$0xf0] }
  0x87   :  { %1341 = vmatpush.bf16.msrb.mxu2 %v5280_v28  ;;  %v4297_v28 = vld [vmem:[#allocation5 + $0x1b0] sm:$0xf]  ;;  %v4234_v34 = vor.u32 %v5334_v27, %v4233_v26  ;;  %v4513_v26 = vld [vmem:[#allocation5 + $0x360] sm:$0xf]  ;;  %v5404_v27 = vld [vmem:[#allocation5 + $0x364] sm:$0xf0] }
  0x88   :  { %1354 = vmatpush.bf16.msrb.mxu3 %v5288_v29  ;;  %v5350_v29 = vld [vmem:[#allocation5 + $0x1b4] sm:$0xf0] }
  0x89   :  { %1316 = vmatpush.bf16.msrb.mxu0 %v5263_v30  ;;  %v4106_v30 = vor.u32 %v5302_v21, %v4105_v20  ;;  %v4298_v35 = vor.u32 %v5350_v29, %v4297_v28  ;;  %v1376_v20 = vld.sshfl [vmem:[#allocation1 + $0x18] sm:$0xff pattern:$0x73625140]  ;;  %v1374_v21 = vld.sshfl [vmem:[#allocation1 + $0x8] sm:$0xff pattern:$0x73625140] }
  0x8a   :  { %1329 = vmatpush.bf16.msrb.mxu1 %v5271_v31  ;;  %v4170_v31 = vor.u32 %v5318_v25, %v4169_v24  ;;  %v4449_v24 = vld [vmem:[#allocation5 + $0x2e0] sm:$0xf]  ;;  %v5388_v25 = vld [vmem:[#allocation5 + $0x2e4] sm:$0xf0] }
  0x8b   :  { %1342 = vmatpush.bf16.msrb.mxu2 %v5279_v40  ;;  %v4289_v40 = vld [vmem:[#allocation5 + $0x1a0] sm:$0xf]  ;;  %v5420_v29 = vld [vmem:[#allocation5 + $0x3e4] sm:$0xf0] }
  0x8c   :  { %1355 = vmatpush.bf16.msrb.mxu3 %v5287_v41  ;;  %1317 = vmatmul.bf16.vlgmr.msrb.gmra.mxu0 %v121_v51  ;;  %v5348_v41 = vld [vmem:[#allocation5 + $0x1a4] sm:$0xf0]  ;;  %v5330_v51 = vld [vmem:[#allocation5 + $0x114] sm:$0xf0]  ;;  %v4577_v28 = vld [vmem:[#allocation5 + $0x3e0] sm:$0xf] }
  0x8d   :  { %2965 = vmatpush.bf16.msra.mxu0 %v4138_v42  ;;  %1330 = vmatmul.bf16.vlgmr.msrb.gmra.mxu1 %v122_v56  ;;  %v4098_v42 = vor.u32 %v5300_v33, %v4097_v32  ;;  %v4154_v56 = vor.u32 %v5314_v49, %v4153_v48  ;;  %v4218_v60 = vor.u32 %v5330_v51, %v4217_v50  ;;  %v4369_v48 = vld [vmem:[#allocation5 + $0x240] sm:$0xf]  ;;  %v5368_v49 = vld [vmem:[#allocation5 + $0x244] sm:$0xf0]  ;;  %v5574_v50 = vld [vmem:[%s5979_s3] ss:$0 sm:$0xff] }
  0x8e   :  { %2978 = vmatpush.bf16.msra.mxu1 %v4202_v43  ;;  %1343 = vmatmul.bf16.vlgmr.msrb.gmra.mxu2 %v123_v52  ;;  %v4162_v43 = vor.u32 %v5316_v37, %v4161_v36  ;;  %v4281_v52 = vld [vmem:[#allocation5 + $0x190] sm:$0xf]  ;;  %v5789_v32 = vpack.c.bf16 %v1376_v20, %v1376_v20  ;;  %v5791_v33 = vpack.c.bf16 %v1374_v21, %v1374_v21  ;;  %v5370_v37 = vld [vmem:[#allocation5 + $0x254] sm:$0xf0]  ;;  %v5396_v21 = vld [vmem:[#allocation5 + $0x324] sm:$0xf0] }
  0x8f   :  { %2991 = vmatpush.bf16.msra.mxu2 %v4266_v46  ;;  %1356 = vmatmul.bf16.vlgmr.msrb.gmra.mxu3 %v124_v57  ;;  %v4226_v46 = vor.u32 %v5332_v39, %v4225_v38  ;;  %v5296_v57 = vld [vmem:[#allocation5 + $0x4] sm:$0xf0]  ;;  %v4282_v61 = vor.u32 %v5346_v53, %v4281_v52  ;;  %v4377_v36 = vld [vmem:[#allocation5 + $0x250] sm:$0xf]  ;;  %v4514_v38 = vor.u32 %v5404_v27, %v4513_v26  ;;  %v4433_v53 = vld [vmem:[#allocation5 + $0x2c0] sm:$0xf] }
  0x90   :  { %3004 = vmatpush.bf16.msra.mxu3 %v4330_v47  ;;  %v4290_v47 = vor.u32 %v5348_v41, %v4289_v40  ;;  %v4578_v39 = vor.u32 %v5420_v29, %v4577_v28  ;;  %v4441_v40 = vld [vmem:[#allocation5 + $0x2d0] sm:$0xf]  ;;  %v5386_v41 = vld [vmem:[#allocation5 + $0x2d4] sm:$0xf0]  ;;  %v4570_v52 = vor.u32 %v5418_v45, %v4569_v44  ;;  %v4337_v45 = vld [vmem:[#allocation5 + $0x200] sm:$0xf] }
  0x91   :  { %2966 = vmatpush.bf16.msra.mxu0 %v4130_v58  ;;  %v4145_v58 = vld [vmem:[#allocation5 + $0x80] sm:$0xf]  ;;  %v4345_v29 = vld [vmem:[#allocation5 + $0x210] sm:$0xf]  ;;  %v5410_v44 = vld [vmem:[#allocation5 + $0x394] sm:$0xf0] }
  0x92   :  { %2979 = vmatpush.bf16.msra.mxu1 %v4194_v59  ;;  %v5312_v59 = vld [vmem:[#allocation5 + $0x84] sm:$0xf0] }
  0x93   :  { %2992 = vmatpush.bf16.msra.mxu2 %v4258_v62  ;;  %v4209_v62 = vld [vmem:[#allocation5 + $0x100] sm:$0xf]  ;;  %v4146_v8 = vor.u32 %v5312_v59, %v4145_v58  ;;  %v5416_v58 = vld [vmem:[#allocation5 + $0x3c4] sm:$0xf0] }
  0x94   :  { %3005 = vmatpush.bf16.msra.mxu3 %v4322_v63  ;;  %v5328_v63 = vld [vmem:[#allocation5 + $0x104] sm:$0xf0] }
  0x95   :  { %2967 = vmatpush.bf16.msra.mxu0 %v4122_v6  ;;  %v4521_v6 = vld [vmem:[#allocation5 + $0x370] sm:$0xf]  ;;  %v4210_v12 = vor.u32 %v5328_v63, %v4209_v62  ;;  %v5366_v63 = vld [vmem:[#allocation5 + $0x234] sm:$0xf0] }
  0x96   :  { %2980 = vmatpush.bf16.msra.mxu1 %v4186_v7  ;;  %v4082_v7 = vor.u32 %v5296_v57, %v4081_v54  ;;  %v5384_v54 = vld [vmem:[#allocation5 + $0x2c4] sm:$0xf0]  ;;  %v4561_v57 = vld [vmem:[#allocation5 + $0x3c0] sm:$0xf]  ;;  %v4361_v62 = vld [vmem:[#allocation5 + $0x230] sm:$0xf] }
  0x97   :  { %2993 = vmatpush.bf16.msra.mxu2 %v4250_v10  ;;  %v4585_v10 = vld [vmem:[#allocation5 + $0x3f0] sm:$0xf] }
  0x98   :  { %3006 = vmatpush.bf16.msra.mxu3 %v4314_v11  ;;  %v5422_v11 = vld [vmem:[#allocation5 + $0x3f4] sm:$0xf0] }
  0x99   :  { %2968 = vmatpush.bf16.msra.mxu0 %v4114_v18  ;;  %v4394_v18 = vor.u32 %v5374_v3, %v4393_v2  ;;  %v4562_v3 = vor.u32 %v5416_v58, %v4561_v57  ;;  %v4649_v57 = vld [vmem:[#allocation5 + $0x470] sm:$0xf] }
  0x9a   :  { %2981 = vmatpush.bf16.msra.mxu1 %v4178_v19  ;;  %v4458_v19 = vor.u32 %v5390_v5, %v4457_v4  ;;  %v4425_v4 = vld [vmem:[#allocation5 + $0x2b0] sm:$0xf]  ;;  %v5382_v5 = vld [vmem:[#allocation5 + $0x2b4] sm:$0xf0] }
  0x9b   :  { %2994 = vmatpush.bf16.msra.mxu2 %v4242_v22  ;;  %v4522_v22 = vor.u32 %v5406_v9, %v4521_v6  ;;  %v4489_v6 = vld [vmem:[#allocation5 + $0x330] sm:$0xf]  ;;  %v5414_v9 = vld [vmem:[#allocation5 + $0x3b4] sm:$0xf0] }
  0x9c   :  { %3007 = vmatpush.bf16.msra.mxu3 %v4306_v23  ;;  %v4586_v23 = vor.u32 %v5422_v11, %v4585_v10  ;;  %v4362_v11 = vor.u32 %v5366_v63, %v4361_v62  ;;  %v1364_v62 = vld [vmem:[%s5977_s1 + $0x10] sm:$0xff]  ;;  %v5454_v63 = vld [vmem:[#allocation5 + $0x4f4] sm:$0xf0] }
  0x9d   :  { %2969 = vmatpush.bf16.msra.mxu0 %v4106_v30  ;;  %v5785_v30 = vpack.c.bf16 %v1375_v16, %v1375_v16  ;;  %1381 = vst [vmem:[#allocation1] ss:$4 sm:$0xff] %v1364_v62 }
  0x9e   :  { %2982 = vmatpush.bf16.msra.mxu1 %v4170_v31  ;;  %v5787_v31 = vpack.c.bf16 %v1373_v17, %v1373_v17  ;;  %v4417_v17 = vld [vmem:[#allocation5 + $0x2a0] sm:$0xf] }
  0x9f   :  { %2995 = vmatpush.bf16.msra.mxu2 %v4234_v34  ;;  %v4386_v34 = vor.u32 %v5372_v15, %v4385_v14  ;;  %v5364_v14 = vld [vmem:[#allocation5 + $0x224] sm:$0xf0] }
  0xa0   :  { %3008 = vmatpush.bf16.msra.mxu3 %v4298_v35  ;;  %v4450_v35 = vor.u32 %v5388_v25, %v4449_v24 }
  0xa1   :  { %2970 = vmatpush.bf16.msra.mxu0 %v4098_v42  ;;  %v4505_v42 = vld [vmem:[#allocation5 + $0x350] sm:$0xf] }
  0xa2   :  { %2983 = vmatpush.bf16.msra.mxu1 %v4162_v43  ;;  %v5402_v43 = vld [vmem:[#allocation5 + $0x354] sm:$0xf0] }
  0xa3   :  { %2996 = vmatpush.bf16.msra.mxu2 %v4226_v46  ;;  %v4378_v46 = vor.u32 %v5370_v37, %v4377_v36  ;;  %v4506_v51 = vor.u32 %v5402_v43, %v4505_v42  ;;  %v5394_v42 = vld [vmem:[#allocation5 + $0x314] sm:$0xf0]  ;;  %v4537_v43 = vld [vmem:[#allocation5 + $0x390] sm:$0xf] }
  0xa4   :  { %3009 = vmatpush.bf16.msra.mxu3 %v4290_v47  ;;  %v4442_v47 = vor.u32 %v5386_v41, %v4441_v40  ;;  %v5378_v40 = vld [vmem:[#allocation5 + $0x294] sm:$0xf0]  ;;  %v4473_v41 = vld [vmem:[#allocation5 + $0x310] sm:$0xf] }
  0xa5   :  { %2971 = vmatpush.bf16.msra.mxu0 %v4090_v55  ;;  %v4497_v55 = vld [vmem:[#allocation5 + $0x340] sm:$0xf] }
  0xa6   :  { %2984 = vmatpush.bf16.msra.mxu1 %v4154_v56  ;;  %v5400_v56 = vld [vmem:[#allocation5 + $0x344] sm:$0xf0] }
  0xa7   :  { %2997 = vmatpush.bf16.msra.mxu2 %v4218_v60  ;;  %v4370_v60 = vor.u32 %v5368_v49, %v4369_v48  ;;  %v4498_v2 = vor.u32 %v5400_v56, %v4497_v55  ;;  %v4529_v55 = vld [vmem:[#allocation5 + $0x380] sm:$0xf]  ;;  %v5408_v56 = vld [vmem:[#allocation5 + $0x384] sm:$0xf0] }
  0xa8   :  { %3010 = vmatpush.bf16.msra.mxu3 %v4282_v61  ;;  %v4434_v61 = vor.u32 %v5384_v54, %v4433_v53  ;;  %v4474_v53 = vor.u32 %v5394_v42, %v4473_v41  ;;  %v4538_v54 = vor.u32 %v5410_v44, %v4537_v43  ;;  %v4761_v41 = vld [vmem:[#allocation5 + $0x550] sm:$0xf]  ;;  %v5466_v42 = vld [vmem:[#allocation5 + $0x554] sm:$0xf0] }
  0xa9   :  { %2972 = vmatpush.bf16.msra.mxu0 %v4082_v7  ;;  %v1162_v59 = vpop.f32.mrf.mxu0  ;;  %v5398_v7 = vld [vmem:[#allocation5 + $0x334] sm:$0xf0]  ;;  %v4825_v43 = vld [vmem:[#allocation5 + $0x5d0] sm:$0xf] }
  0xaa   :  { %2985 = vmatpush.bf16.msra.mxu1 %v4146_v8  ;;  %v1163_v0 = vadd.f32 %v5574_v50, %v1162_v59  ;;  %v1175_v1 = vpop.f32.mrf.mxu1  ;;  %v4553_v8 = vld [vmem:[#allocation5 + $0x3b0] sm:$0xf]  ;;  %v4490_v15 = vor.u32 %v5398_v7, %v4489_v6  ;;  %v5376_v50 = vld [vmem:[#allocation5 + $0x284] sm:$0xf0]  ;;  %v5438_v59 = vld [vmem:[#allocation5 + $0x474] sm:$0xf0]  ;;  %v4530_v7 = vor.u32 %v5408_v56, %v4529_v55 }
  0xab   :  { %2998 = vmatpush.bf16.msra.mxu2 %v4210_v12  ;;  %v4426_v12 = vor.u32 %v5382_v5, %v4425_v4  ;;  %v4554_v16 = vor.u32 %v5414_v9, %v4553_v8  ;;  %v4841_v4 = vld [vmem:[#allocation5 + $0x5f0] sm:$0xf]  ;;  %v5486_v5 = vld [vmem:[#allocation5 + $0x5f4] sm:$0xf0]  ;;  %v4641_v8 = vld [vmem:[#allocation5 + $0x460] sm:$0xf] }
  0xac   :  { %3011 = vmatpush.bf16.msra.mxu3 %v4274_v13  ;;  %2973 = vmatmul.bf16.vlgmr.msra.gmra.mxu0 %v5787_v31  ;;  %v1176_v10 = vadd.f32 %v1175_v1, %v1163_v0  ;;  %v4353_v13 = vld [vmem:[#allocation5 + $0x220] sm:$0xf]  ;;  %v4777_v0 = vld [vmem:[#allocation5 + $0x570] sm:$0xf]  ;;  %v5436_v9 = vld [vmem:[#allocation5 + $0x464] sm:$0xf0] }
  0xad   :  { %3017 = vmatpush.bf16.msrb.mxu0 %v4394_v18  ;;  %2986 = vmatmul.bf16.vlgmr.msra.gmra.mxu1 %v5791_v33  ;;  %v5380_v18 = vld [vmem:[#allocation5 + $0x2a4] sm:$0xf0]  ;;  %v4354_v27 = vor.u32 %v5364_v14, %v4353_v13  ;;  %v1380_v14 = vld.sshfl [vmem:[#allocation1 + $0x38] sm:$0xff pattern:$0x73625140] }
  0xae   :  { %3030 = vmatpush.bf16.msrb.mxu1 %v4458_v19  ;;  %2999 = vmatmul.bf16.vlgmr.msra.gmra.mxu2 %v5785_v30  ;;  %v4481_v19 = vld [vmem:[#allocation5 + $0x320] sm:$0xf]  ;;  %v4418_v28 = vor.u32 %v5380_v18, %v4417_v17  ;;  %v4842_v17 = vor.u32 %v5486_v5, %v4841_v4  ;;  %v5482_v44 = vld [vmem:[#allocation5 + $0x5d4] sm:$0xf0]  ;;  %v5480_v56 = vld [vmem:[#allocation5 + $0x5c4] sm:$0xf0] }
  0xaf   :  { %3043 = vmatpush.bf16.msrb.mxu2 %v4522_v22  ;;  %3012 = vmatmul.bf16.vlgmr.msra.gmra.mxu3 %v5789_v32  ;;  %v4545_v22 = vld [vmem:[#allocation5 + $0x3a0] sm:$0xf]  ;;  %v4482_v37 = vor.u32 %v5396_v21, %v4481_v19  ;;  %v5452_v19 = vld [vmem:[#allocation5 + $0x4e4] sm:$0xf0]  ;;  %v5462_v4 = vld [vmem:[#allocation5 + $0x534] sm:$0xf0] }
  0xb0   :  { %3056 = vmatpush.bf16.msrb.mxu3 %v4586_v23  ;;  %v5412_v23 = vld [vmem:[#allocation5 + $0x3a4] sm:$0xf0]  ;;  %v4705_v18 = vld [vmem:[#allocation5 + $0x4e0] sm:$0xf]  ;;  %v4809_v5 = vld [vmem:[#allocation5 + $0x5b0] sm:$0xf] }
  0xb1   :  { %3018 = vmatpush.bf16.msrb.mxu0 %v4386_v34  ;;  %v1188_v20 = vpop.f32.mrf.mxu2  ;;  %v1164_v26 = vpop.f32.mrf.mxu0  ;;  %v5362_v34 = vld [vmem:[#allocation5 + $0x214] sm:$0xf0]  ;;  %v5468_v21 = vld [vmem:[#allocation5 + $0x564] sm:$0xf0]  ;;  %v4817_v55 = vld [vmem:[#allocation5 + $0x5c0] sm:$0xf] }
  0xb2   :  { %3031 = vmatpush.bf16.msrb.mxu1 %v4450_v35  ;;  %v1189_v24 = vadd.f32 %v1188_v20, %v1176_v10  ;;  %v1201_v25 = vpop.f32.mrf.mxu3  ;;  %v1177_v36 = vpop.f32.mrf.mxu1  ;;  %v4346_v48 = vor.u32 %v5362_v34, %v4345_v29  ;;  %v1379_v10 = vld.sshfl [vmem:[#allocation1 + $0x30] sm:$0xff pattern:$0x73625140]  ;;  %v4769_v20 = vld [vmem:[#allocation5 + $0x560] sm:$0xf]  ;;  %v5809_v26 = vpack.c.bf16 %v1380_v14, %v1380_v14  ;;  %v4706_v29 = vor.u32 %v5452_v19, %v4705_v18 }
  0xb3   :  { %3044 = vmatpush.bf16.msrb.mxu2 %v4514_v38  ;;  %v4546_v38 = vor.u32 %v5412_v23, %v4545_v22  ;;  %v4833_v22 = vld [vmem:[#allocation5 + $0x5e0] sm:$0xf]  ;;  %v5484_v23 = vld [vmem:[#allocation5 + $0x5e4] sm:$0xf0]  ;;  %v4633_v34 = vld [vmem:[#allocation5 + $0x450] sm:$0xf] }
  0xb4   :  { %3057 = vmatpush.bf16.msrb.mxu3 %v4578_v39  ;;  %v5800_v35 = vadd.f32 %v1201_v25, %v1189_v24  ;;  %v4409_v39 = vld [vmem:[#allocation5 + $0x290] sm:$0xf]  ;;  %v5805_v24 = vpack.c.bf16 %v1379_v10, %v1379_v10  ;;  %v5434_v36 = vld [vmem:[#allocation5 + $0x454] sm:$0xf0]  ;;  %v5428_v10 = vld [vmem:[#allocation5 + $0x424] sm:$0xf0] }
  0xb5   :  { %3019 = vmatpush.bf16.msrb.mxu0 %v4378_v46  ;;  %v5360_v46 = vld [vmem:[#allocation5 + $0x204] sm:$0xf0]  ;;  %v4410_v49 = vor.u32 %v5378_v40, %v4409_v39  ;;  %v4697_v39 = vld [vmem:[#allocation5 + $0x4d0] sm:$0xf]  ;;  %v5450_v40 = vld [vmem:[#allocation5 + $0x4d4] sm:$0xf0] }
  0xb6   :  { %3032 = vmatpush.bf16.msrb.mxu1 %v4442_v47  ;;  %v4401_v47 = vld [vmem:[#allocation5 + $0x280] sm:$0xf]  ;;  %v4338_v1 = vor.u32 %v5360_v46, %v4337_v45  ;;  %v4634_v45 = vor.u32 %v5434_v36, %v4633_v34  ;;  %v4698_v46 = vor.u32 %v5450_v40, %v4697_v39  ;;  %v5444_v14 = vld [vmem:[#allocation5 + $0x4a4] sm:$0xf0]  ;;  %v5442_v39 = vld [vmem:[#allocation5 + $0x494] sm:$0xf0] }
  0xb7   :  { %3045 = vmatpush.bf16.msrb.mxu2 %v4506_v51  ;;  %v4465_v51 = vld [vmem:[#allocation5 + $0x300] sm:$0xf]  ;;  %v5476_v19 = vld [vmem:[#allocation5 + $0x5a4] sm:$0xf0]  ;;  %v4729_v40 = vld [vmem:[#allocation5 + $0x510] sm:$0xf] }
  0xb8   :  { %3058 = vmatpush.bf16.msrb.mxu3 %v4570_v52  ;;  %v5392_v52 = vld [vmem:[#allocation5 + $0x304] sm:$0xf0]  ;;  %v4801_v18 = vld [vmem:[#allocation5 + $0x5a0] sm:$0xf] }
  0xb9   :  { %3020 = vmatpush.bf16.msrb.mxu0 %v4370_v60  ;;  %v1190_v58 = vpop.f32.mrf.mxu2  ;;  %v4713_v60 = vld [vmem:[#allocation5 + $0x4f0] sm:$0xf]  ;;  %v4466_v6 = vor.u32 %v5392_v52, %v4465_v51  ;;  %v4689_v51 = vld [vmem:[#allocation5 + $0x4c0] sm:$0xf]  ;;  %v5448_v52 = vld [vmem:[#allocation5 + $0x4c4] sm:$0xf0] }
  0xba   :  { %3033 = vmatpush.bf16.msrb.mxu1 %v4434_v61  ;;  %v1203_v61 = vpop.f32.mrf.mxu3  ;;  %v4714_v13 = vor.u32 %v5454_v63, %v4713_v60  ;;  %v4617_v60 = vld [vmem:[#allocation5 + $0x430] sm:$0xf] }
  0xbb   :  { %3046 = vmatpush.bf16.msrb.mxu2 %v4498_v2  ;;  %v4402_v2 = vor.u32 %v5376_v50, %v4401_v47  ;;  %v4625_v47 = vld [vmem:[#allocation5 + $0x440] sm:$0xf]  ;;  %v4826_v50 = vor.u32 %v5482_v44, %v4825_v43  ;;  %v5430_v61 = vld [vmem:[#allocation5 + $0x434] sm:$0xf0] }
  0xbc   :  { %3059 = vmatpush.bf16.msrb.mxu3 %v4562_v3  ;;  %v5470_v3 = vld [vmem:[#allocation5 + $0x574] sm:$0xf0]  ;;  %v4593_v44 = vld [vmem:[#allocation5 + $0x400] sm:$0xf] }
  0xbd   :  { %3021 = vmatpush.bf16.msrb.mxu0 %v4362_v11  ;;  %v1377_v11 = vld.sshfl [vmem:[#allocation1 + $0x20] sm:$0xff pattern:$0x73625140] }
  0xbe   :  { %3034 = vmatpush.bf16.msrb.mxu1 %v4426_v12  ;;  %v4650_v12 = vor.u32 %v5438_v59, %v4649_v57  ;;  %v5807_v25 = vpack.c.bf16 %v1377_v11, %v1377_v11  ;;  %v4690_v59 = vor.u32 %v5448_v52, %v4689_v51  ;;  %v5474_v43 = vld [vmem:[#allocation5 + $0x594] sm:$0xf0]  ;;  %v5456_v51 = vld [vmem:[#allocation5 + $0x504] sm:$0xf0]  ;;  %v4785_v52 = vld [vmem:[#allocation5 + $0x580] sm:$0xf] }
  0xbf   :  { %3047 = vmatpush.bf16.msrb.mxu2 %v4490_v15  ;;  %v1378_v15 = vld.sshfl [vmem:[#allocation1 + $0x28] sm:$0xff pattern:$0x73625140] }
  0xc0   :  { %3060 = vmatpush.bf16.msrb.mxu3 %v4554_v16  ;;  %v4778_v16 = vor.u32 %v5470_v3, %v4777_v0  ;;  %v4818_v0 = vor.u32 %v5480_v56, %v4817_v55  ;;  %v4745_v3 = vld [vmem:[#allocation5 + $0x530] sm:$0xf] }
  0xc1   :  { %3022 = vmatpush.bf16.msrb.mxu0 %v4354_v27  ;;  %v5811_v27 = vpack.c.bf16 %v1378_v15, %v1378_v15  ;;  %v4746_v11 = vor.u32 %v5462_v4, %v4745_v3  ;;  %v4737_v15 = vld [vmem:[#allocation5 + $0x520] sm:$0xf]  ;;  %v4905_v56 = vld [vmem:[#allocation5 + $0x670] sm:$0xf]  ;;  %v5550_v4 = vld [vmem:[#allocation5 + $0x7f4] sm:$0xf0] }
  0xc2   :  { %3035 = vmatpush.bf16.msrb.mxu1 %v4418_v28  ;;  %v4642_v28 = vor.u32 %v5436_v9, %v4641_v8  ;;  %v4609_v9 = vld [vmem:[#allocation5 + $0x420] sm:$0xf]  ;;  %v5097_v3 = vld [vmem:[#allocation5 + $0x7f0] sm:$0xf] }
  0xc3   :  { %3048 = vmatpush.bf16.msrb.mxu2 %v4482_v37  ;;  %v4770_v37 = vor.u32 %v5468_v21, %v4769_v20 }
  0xc4   :  { %3061 = vmatpush.bf16.msrb.mxu3 %v4546_v38  ;;  %v4834_v38 = vor.u32 %v5484_v23, %v4833_v22  ;;  %v4610_v22 = vor.u32 %v5428_v10, %v4609_v9 }
  0xc5   :  { %3023 = vmatpush.bf16.msrb.mxu0 %v4346_v48  ;;  %v5432_v48 = vld [vmem:[#allocation5 + $0x444] sm:$0xf0] }
  0xc6   :  { %3036 = vmatpush.bf16.msrb.mxu1 %v4410_v49  ;;  %v4762_v49 = vor.u32 %v5466_v42, %v4761_v41  ;;  %v4626_v58 = vor.u32 %v5432_v48, %v4625_v47  ;;  %v5458_v41 = vld [vmem:[#allocation5 + $0x514] sm:$0xf0]  ;;  %v4793_v42 = vld [vmem:[#allocation5 + $0x590] sm:$0xf]  ;;  %v5440_v47 = vld [vmem:[#allocation5 + $0x484] sm:$0xf0] }
  0xc7   :  { %3049 = vmatpush.bf16.msrb.mxu2 %v4474_v53  ;;  %v4753_v53 = vld [vmem:[#allocation5 + $0x540] sm:$0xf]  ;;  %v4794_v55 = vor.u32 %v5474_v43, %v4793_v42  ;;  %v4889_v42 = vld [vmem:[#allocation5 + $0x650] sm:$0xf]  ;;  %v5498_v43 = vld [vmem:[#allocation5 + $0x654] sm:$0xf0] }
  0xc8   :  { %3062 = vmatpush.bf16.msrb.mxu3 %v4538_v54  ;;  %v5464_v54 = vld [vmem:[#allocation5 + $0x544] sm:$0xf0] }
  0xc9   :  { %3024 = vmatpush.bf16.msrb.mxu0 %v4338_v1  ;;  %v5817_v57 = vpop.f32.mrf.mxu0  ;;  %v4754_v63 = vor.u32 %v5464_v54, %v4753_v53  ;;  %v4681_v1 = vld [vmem:[#allocation5 + $0x4b0] sm:$0xf]  ;;  %v5472_v53 = vld [vmem:[#allocation5 + $0x584] sm:$0xf0]  ;;  %v4730_v54 = vor.u32 %v5458_v41, %v4729_v40 }
  0xca   :  { %3037 = vmatpush.bf16.msrb.mxu1 %v4402_v2  ;;  %v5819_v62 = vpop.f32.mrf.mxu1  ;;  %v5446_v2 = vld [vmem:[#allocation5 + $0x4b4] sm:$0xf0]  ;;  %v4786_v10 = vor.u32 %v5472_v53, %v4785_v52  ;;  %v4890_v52 = vor.u32 %v5498_v43, %v4889_v42  ;;  %v5524_v43 = vld [vmem:[#allocation5 + $0x724] sm:$0xf0] }
  0xcb   :  { %3050 = vmatpush.bf16.msrb.mxu2 %v4466_v6  ;;  %v5478_v6 = vld [vmem:[#allocation5 + $0x5b4] sm:$0xf0]  ;;  %v4682_v8 = vor.u32 %v5446_v2, %v4681_v1  ;;  %v1365_v2 = vld [vmem:[%s5977_s1 + $0x18] sm:$0xff] }
  0xcc   :  { %3063 = vmatpush.bf16.msrb.mxu3 %v4530_v7  ;;  %3025 = vmatmul.bf16.vlgmr.msrb.gmra.mxu0 %v5807_v25  ;;  %v4618_v7 = vor.u32 %v5430_v61, %v4617_v60  ;;  %v5518_v60 = vld [vmem:[#allocation5 + $0x6f4] sm:$0xf0]  ;;  %1382 = vst [vmem:[#allocation1 + $0x20] ss:$4 sm:$0xff] %v1365_v2 }
  0xcd   :  { %3069 = vmatpush.bf16.msra.mxu0 %v4650_v12  ;;  %3038 = vmatmul.bf16.vlgmr.msrb.gmra.mxu1 %v5811_v27  ;;  %v4810_v12 = vor.u32 %v5478_v6, %v4809_v5 }
  0xce   :  { %3082 = vmatpush.bf16.msra.mxu1 %v4714_v13  ;;  %3051 = vmatmul.bf16.vlgmr.msrb.gmra.mxu2 %v5805_v24  ;;  %v4673_v13 = vld [vmem:[#allocation5 + $0x4a0] sm:$0xf] }
  0xcf   :  { %3095 = vmatpush.bf16.msra.mxu2 %v4778_v16  ;;  %3064 = vmatmul.bf16.vlgmr.msrb.gmra.mxu3 %v5809_v26  ;;  %v4674_v23 = vor.u32 %v5444_v14, %v4673_v13 }
  0xd0   :  { %3108 = vmatpush.bf16.msra.mxu3 %v4842_v17  ;;  %v5460_v17 = vld [vmem:[#allocation5 + $0x524] sm:$0xf0] }
  0xd1   :  { %3070 = vmatpush.bf16.msra.mxu0 %v4642_v28  ;;  %v5821_v16 = vpop.f32.mrf.mxu2  ;;  %v1216_v21 = vpop.f32.mrf.mxu0  ;;  %v4601_v28 = vld [vmem:[#allocation5 + $0x410] sm:$0xf]  ;;  %v4738_v36 = vor.u32 %v5460_v17, %v4737_v15  ;;  %v4897_v15 = vld [vmem:[#allocation5 + $0x660] sm:$0xf]  ;;  %v5500_v17 = vld [vmem:[#allocation5 + $0x664] sm:$0xf0] }
  0xd2   :  { %3083 = vmatpush.bf16.msra.mxu1 %v4706_v29  ;;  %v5823_v20 = vpop.f32.mrf.mxu3  ;;  %v5426_v29 = vld [vmem:[#allocation5 + $0x414] sm:$0xf0]  ;;  %v1229_v34 = vpop.f32.mrf.mxu1  ;;  %v4961_v21 = vld [vmem:[#allocation5 + $0x6e0] sm:$0xf]  ;;  %v4898_v40 = vor.u32 %v5500_v17, %v4897_v15  ;;  %v1215_v17 = vadd.f32 %v5817_v57, %v5800_v35  ;;  %v5540_v35 = vld [vmem:[#allocation5 + $0x7a4] sm:$0xf0] }
  0xd3   :  { %3096 = vmatpush.bf16.msra.mxu2 %v4770_v37  ;;  %v4802_v37 = vor.u32 %v5476_v19, %v4801_v18  ;;  %v4602_v48 = vor.u32 %v5426_v29, %v4601_v28  ;;  %v5098_v19 = vor.u32 %v5550_v4, %v5097_v3  ;;  %v5532_v34 = vld [vmem:[#allocation5 + $0x764] sm:$0xf0]  ;;  %v5542_v15 = vld [vmem:[#allocation5 + $0x7b4] sm:$0xf0] }
  0xd4   :  { %3109 = vmatpush.bf16.msra.mxu3 %v4834_v38  ;;  %v4665_v38 = vld [vmem:[#allocation5 + $0x490] sm:$0xf] }
  0xd5   :  { %3071 = vmatpush.bf16.msra.mxu0 %v4634_v45  ;;  %v5424_v45 = vld [vmem:[#allocation5 + $0x404] sm:$0xf0] }
  0xd6   :  { %3084 = vmatpush.bf16.msra.mxu1 %v4698_v46  ;;  %v4657_v46 = vld [vmem:[#allocation5 + $0x480] sm:$0xf]  ;;  %v4594_v5 = vor.u32 %v5424_v45, %v4593_v44 }
  0xd7   :  { %3097 = vmatpush.bf16.msra.mxu2 %v4762_v49  ;;  %v4666_v49 = vor.u32 %v5442_v39, %v4665_v38  ;;  %v4658_v6 = vor.u32 %v5440_v47, %v4657_v46  ;;  %v4953_v46 = vld [vmem:[#allocation5 + $0x6d0] sm:$0xf]  ;;  %v5514_v47 = vld [vmem:[#allocation5 + $0x6d4] sm:$0xf0] }
  0xd8   :  { %3110 = vmatpush.bf16.msra.mxu3 %v4826_v50  ;;  %v4721_v50 = vld [vmem:[#allocation5 + $0x500] sm:$0xf]  ;;  %v4954_v53 = vor.u32 %v5514_v47, %v4953_v46 }
  0xd9   :  { %3072 = vmatpush.bf16.msra.mxu0 %v4626_v58  ;;  %v5502_v58 = vld [vmem:[#allocation5 + $0x674] sm:$0xf0]  ;;  %v1242_v61 = vpop.f32.mrf.mxu2  ;;  %v4722_v9 = vor.u32 %v5456_v51, %v4721_v50  ;;  %v5081_v50 = vld [vmem:[#allocation5 + $0x7d0] sm:$0xf] }
  0xda   :  { %3085 = vmatpush.bf16.msra.mxu1 %v4690_v59  ;;  %v4969_v59 = vld [vmem:[#allocation5 + $0x6f0] sm:$0xf]  ;;  %v1255_v1 = vpop.f32.mrf.mxu3  ;;  %v4906_v13 = vor.u32 %v5502_v58, %v4905_v56  ;;  %v5546_v51 = vld [vmem:[#allocation5 + $0x7d4] sm:$0xf0]  ;;  %v5009_v61 = vld [vmem:[#allocation5 + $0x740] sm:$0xf] }
  0xdb   :  { %3098 = vmatpush.bf16.msra.mxu2 %v4754_v63  ;;  %v5033_v63 = vld [vmem:[#allocation5 + $0x770] sm:$0xf]  ;;  %v4970_v14 = vor.u32 %v5518_v60, %v4969_v59  ;;  %v5082_v58 = vor.u32 %v5546_v51, %v5081_v50  ;;  %v4945_v59 = vld [vmem:[#allocation5 + $0x6c0] sm:$0xf]  ;;  %v5512_v60 = vld [vmem:[#allocation5 + $0x6c4] sm:$0xf0] }
  0xdc   :  { %3111 = vmatpush.bf16.msra.mxu3 %v4818_v0  ;;  %v5534_v0 = vld [vmem:[#allocation5 + $0x774] sm:$0xf0]  ;;  %v5544_v1 = vld [vmem:[#allocation5 + $0x7c4] sm:$0xf0]  ;;  %v4946_v4 = vor.u32 %v5512_v60, %v4945_v59  ;;  %v4849_v60 = vld [vmem:[#allocation5 + $0x600] sm:$0xf] }
  0xdd   :  { %3073 = vmatpush.bf16.msra.mxu0 %v4618_v7  ;;  %v1383_v7 = vld.sshfl [vmem:[#allocation1] sm:$0xff pattern:$0x73625140]  ;;  %v5034_v18 = vor.u32 %v5534_v0, %v5033_v63  ;;  %v5528_v63 = vld [vmem:[#allocation5 + $0x744] sm:$0xf0] }
  0xde   :  { %3086 = vmatpush.bf16.msra.mxu1 %v4682_v8  ;;  %v1385_v8 = vld.sshfl [vmem:[#allocation1 + $0x10] sm:$0xff pattern:$0x73625140]  ;;  %v5828_v28 = vpack.c.bf16 %v1383_v7, %v1383_v7  ;;  %v5073_v0 = vld [vmem:[#allocation5 + $0x7c0] sm:$0xf] }
  0xdf   :  { %3099 = vmatpush.bf16.msra.mxu2 %v4746_v11  ;;  %v1384_v11 = vld.sshfl [vmem:[#allocation1 + $0x8] sm:$0xff pattern:$0x73625140]  ;;  %v5830_v29 = vpack.c.bf16 %v1385_v8, %v1385_v8  ;;  %v5494_v7 = vld [vmem:[#allocation5 + $0x634] sm:$0xf0]  ;;  %v5010_v8 = vor.u32 %v5528_v63, %v5009_v61 }
  0xe0   :  { %3112 = vmatpush.bf16.msra.mxu3 %v4810_v12  ;;  %v1386_v12 = vld.sshfl [vmem:[#allocation1 + $0x18] sm:$0xff pattern:$0x73625140]  ;;  %v5832_v38 = vpack.c.bf16 %v1384_v11, %v1384_v11  ;;  %v5510_v11 = vld [vmem:[#allocation5 + $0x6b4] sm:$0xf0] }
  0xe1   :  { %3074 = vmatpush.bf16.msra.mxu0 %v4610_v22  ;;  %v5516_v22 = vld [vmem:[#allocation5 + $0x6e4] sm:$0xf0]  ;;  %v5834_v39 = vpack.c.bf16 %v1386_v12, %v1386_v12  ;;  %v5001_v12 = vld [vmem:[#allocation5 + $0x730] sm:$0xf]  ;;  %v5538_v59 = vld [vmem:[#allocation5 + $0x794] sm:$0xf0] }
  0xe2   :  { %3087 = vmatpush.bf16.msra.mxu1 %v4674_v23  ;;  %v5025_v23 = vld [vmem:[#allocation5 + $0x760] sm:$0xf]  ;;  %v4962_v41 = vor.u32 %v5516_v22, %v4961_v21  ;;  %v5492_v22 = vld [vmem:[#allocation5 + $0x624] sm:$0xf0] }
  0xe3   :  { %3100 = vmatpush.bf16.msra.mxu2 %v4738_v36  ;;  %v5089_v36 = vld [vmem:[#allocation5 + $0x7e0] sm:$0xf]  ;;  %v5026_v44 = vor.u32 %v5532_v34, %v5025_v23  ;;  %v5488_v61 = vld [vmem:[#allocation5 + $0x604] sm:$0xf0] }
  0xe4   :  { %3113 = vmatpush.bf16.msra.mxu3 %v4802_v37  ;;  %v5548_v37 = vld [vmem:[#allocation5 + $0x7e4] sm:$0xf0]  ;;  %v4865_v21 = vld [vmem:[#allocation5 + $0x620] sm:$0xf] }
  0xe5   :  { %3075 = vmatpush.bf16.msra.mxu0 %v4602_v48  ;;  %v5090_v45 = vor.u32 %v5548_v37, %v5089_v36  ;;  %v5017_v48 = vld [vmem:[#allocation5 + $0x750] sm:$0xf]  ;;  %v4929_v37 = vld [vmem:[#allocation5 + $0x6a0] sm:$0xf]  ;;  %v4866_v46 = vor.u32 %v5492_v22, %v4865_v21  ;;  %v5504_v63 = vld [vmem:[#allocation5 + $0x684] sm:$0xf0] }
  0xe6   :  { %3088 = vmatpush.bf16.msra.mxu1 %v4666_v49  ;;  %v5530_v49 = vld [vmem:[#allocation5 + $0x754] sm:$0xf0]  ;;  %v4331_v21 = vld [vmem:[#allocation5 + $0x1f8] sm:$0xf0] }
  0xe7   :  { %3101 = vmatpush.bf16.msra.mxu2 %v4730_v54  ;;  %v4881_v54 = vld [vmem:[#allocation5 + $0x640] sm:$0xf]  ;;  %v5018_v56 = vor.u32 %v5530_v49, %v5017_v48  ;;  %v4857_v48 = vld [vmem:[#allocation5 + $0x610] sm:$0xf]  ;;  %v5490_v49 = vld [vmem:[#allocation5 + $0x614] sm:$0xf0] }
  0xe8   :  { %3114 = vmatpush.bf16.msra.mxu3 %v4794_v55  ;;  %v5496_v55 = vld [vmem:[#allocation5 + $0x644] sm:$0xf0] }
  0xe9   :  { %3076 = vmatpush.bf16.msra.mxu0 %v4594_v5  ;;  %v5840_v2 = vpop.f32.mrf.mxu0  ;;  %v4882_v3 = vor.u32 %v5496_v55, %v4881_v54  ;;  %v5506_v54 = vld [vmem:[#allocation5 + $0x694] sm:$0xf0]  ;;  %v4985_v55 = vld [vmem:[#allocation5 + $0x710] sm:$0xf] }
  0xea   :  { %3089 = vmatpush.bf16.msra.mxu1 %v4658_v6  ;;  %v5842_v5 = vpop.f32.mrf.mxu1  ;;  %v4873_v6 = vld [vmem:[#allocation5 + $0x630] sm:$0xf] }
  0xeb   :  { %3102 = vmatpush.bf16.msra.mxu2 %v4722_v9  ;;  %v5074_v9 = vor.u32 %v5544_v1, %v5073_v0  ;;  %v4858_v1 = vor.u32 %v5490_v49, %v4857_v48  ;;  %v4131_v48 = vld [vmem:[#allocation5 + $0x68] sm:$0xf0] }
  0xec   :  { %3115 = vmatpush.bf16.msra.mxu3 %v4786_v10  ;;  %3077 = vmatmul.bf16.vlgmr.msra.gmra.mxu0 %v5828_v28  ;;  %v4937_v10 = vld [vmem:[#allocation5 + $0x6b0] sm:$0xf] }
  0xed   :  { %3121 = vmatpush.bf16.msrb.mxu0 %v4906_v13  ;;  %3090 = vmatmul.bf16.vlgmr.msra.gmra.mxu1 %v5832_v38  ;;  %v5526_v13 = vld [vmem:[#allocation5 + $0x734] sm:$0xf0] }
  0xee   :  { %3134 = vmatpush.bf16.msrb.mxu1 %v4970_v14  ;;  %3103 = vmatmul.bf16.vlgmr.msra.gmra.mxu2 %v5830_v29  ;;  %v5065_v14 = vld [vmem:[#allocation5 + $0x7b0] sm:$0xf]  ;;  %v5002_v23 = vor.u32 %v5526_v13, %v5001_v12  ;;  %v4139_v12 = vld [vmem:[#allocation5 + $0x78] sm:$0xf0] }
  0xef   :  { %3147 = vmatpush.bf16.msrb.mxu2 %v5034_v18  ;;  %3116 = vmatmul.bf16.vlgmr.msra.gmra.mxu3 %v5834_v39  ;;  %v4874_v18 = vor.u32 %v5494_v7, %v4873_v6  ;;  %v5066_v34 = vor.u32 %v5542_v15, %v5065_v14  ;;  %v5520_v6 = vld [vmem:[#allocation5 + $0x704] sm:$0xf0]  ;;  %v5041_v7 = vld [vmem:[#allocation5 + $0x780] sm:$0xf]  ;;  %v5325_v14 = vld [vmem:[#allocation5 + $0xf4] sm:$0xf] }
  0xf0   :  { %3160 = vmatpush.bf16.msrb.mxu3 %v5098_v19  ;;  %v4938_v19 = vor.u32 %v5510_v11, %v4937_v10  ;;  %v5536_v10 = vld [vmem:[#allocation5 + $0x784] sm:$0xf0]  ;;  %v5309_v11 = vld [vmem:[#allocation5 + $0x74] sm:$0xf]  ;;  %v4203_v15 = vld [vmem:[#allocation5 + $0xf8] sm:$0xf0] }
  0xf1   :  { %3122 = vmatpush.bf16.msrb.mxu0 %v4898_v40  ;;  %v5846_v36 = vpop.f32.mrf.mxu2  ;;  %v5508_v40 = vld [vmem:[#allocation5 + $0x6a4] sm:$0xf0]  ;;  %v1268_v57 = vpop.f32.mrf.mxu0 }
  0xf2   :  { %3135 = vmatpush.bf16.msrb.mxu1 %v4962_v41  ;;  %v4993_v41 = vld [vmem:[#allocation5 + $0x720] sm:$0xf]  ;;  %v5848_v42 = vpop.f32.mrf.mxu3  ;;  %v4930_v47 = vor.u32 %v5508_v40, %v4929_v37  ;;  %v1281_v50 = vpop.f32.mrf.mxu1  ;;  %v1387_v37 = vld.sshfl [vmem:[#allocation1 + $0x20] sm:$0xff pattern:$0x73625140] }
  0xf3   :  { %3148 = vmatpush.bf16.msrb.mxu2 %v5026_v44  ;;  %v5057_v44 = vld [vmem:[#allocation5 + $0x7a0] sm:$0xf]  ;;  %v4994_v51 = vor.u32 %v5524_v43, %v4993_v41  ;;  %v1389_v40 = vld.sshfl [vmem:[#allocation1 + $0x30] sm:$0xff pattern:$0x73625140]  ;;  %v5042_v43 = vor.u32 %v5536_v10, %v5041_v7 }
  0xf4   :  { %3161 = vmatpush.bf16.msrb.mxu3 %v5090_v45  ;;  %v1228_v45 = vadd.f32 %v5819_v62, %v1215_v17  ;;  %v4913_v62 = vld [vmem:[#allocation5 + $0x680] sm:$0xf]  ;;  %v5341_v17 = vld [vmem:[#allocation5 + $0x174] sm:$0xf]  ;;  %v5323_v50 = vld [vmem:[#allocation5 + $0xe4] sm:$0xf] }
  0xf5   :  { %3123 = vmatpush.bf16.msrb.mxu0 %v4890_v52  ;;  %v5058_v52 = vor.u32 %v5540_v35, %v5057_v44  ;;  %v1388_v44 = vld.sshfl [vmem:[#allocation1 + $0x28] sm:$0xff pattern:$0x73625140]  ;;  %v1390_v35 = vld.sshfl [vmem:[#allocation1 + $0x38] sm:$0xff pattern:$0x73625140] }
  0xf6   :  { %3136 = vmatpush.bf16.msrb.mxu1 %v4954_v53  ;;  %v4921_v53 = vld [vmem:[#allocation5 + $0x690] sm:$0xf]  ;;  %v1241_v0 = vadd.f32 %v5821_v16, %v1228_v45  ;;  %v4267_v16 = vld [vmem:[#allocation5 + $0x178] sm:$0xf0]  ;;  %v4142_v45 = vor.u32 %v5309_v11, %v4139_v12  ;;  %v5337_v7 = vld [vmem:[#allocation5 + $0x154] sm:$0xf] }
  0xf7   :  { %3149 = vmatpush.bf16.msrb.mxu2 %v5018_v56  ;;  %v5522_v56 = vld [vmem:[#allocation5 + $0x714] sm:$0xf0]  ;;  %v4270_v49 = vor.u32 %v5341_v17, %v4267_v16  ;;  %v4315_v10 = vld [vmem:[#allocation5 + $0x1d8] sm:$0xf0]  ;;  %v5319_v17 = vld [vmem:[#allocation5 + $0xc4] sm:$0xf] }
  0xf8   :  { %3162 = vmatpush.bf16.msrb.mxu3 %v5082_v58  ;;  %v5049_v58 = vld [vmem:[#allocation5 + $0x790] sm:$0xf]  ;;  %v1254_v22 = vadd.f32 %v5823_v20, %v1241_v0  ;;  %v4123_v0 = vld [vmem:[#allocation5 + $0x58] sm:$0xf0]  ;;  %v5335_v16 = vld [vmem:[#allocation5 + $0x144] sm:$0xf] }
  0xf9   :  { %3124 = vmatpush.bf16.msrb.mxu0 %v4882_v3  ;;  %v4922_v3 = vor.u32 %v5506_v54, %v4921_v53  ;;  %v1294_v13 = vpop.f32.mrf.mxu2  ;;  %v5854_v53 = vpack.c.bf16 %v1387_v37, %v1387_v37  ;;  %v5856_v54 = vpack.c.bf16 %v1389_v40, %v1389_v40 }
  0xfa   :  { %3137 = vmatpush.bf16.msrb.mxu1 %v4946_v4  ;;  %v4977_v4 = vld [vmem:[#allocation5 + $0x700] sm:$0xf]  ;;  %v1267_v57 = vadd.f32 %v5840_v2, %v1254_v22  ;;  %v5858_v2 = vpack.c.bf16 %v1388_v44, %v1388_v44  ;;  %v5303_v13 = vld [vmem:[#allocation5 + $0x44] sm:$0xf]  ;;  %v5301_v44 = vld [vmem:[#allocation5 + $0x34] sm:$0xf] }
  0xfb   :  { %3150 = vmatpush.bf16.msrb.mxu2 %v5010_v8  ;;  %v4986_v8 = vor.u32 %v5522_v56, %v4985_v55  ;;  %v4978_v41 = vor.u32 %v5520_v6, %v4977_v4  ;;  %v4259_v55 = vld [vmem:[#allocation5 + $0x168] sm:$0xf0]  ;;  %v5355_v56 = vld [vmem:[#allocation5 + $0x1e4] sm:$0xf]  ;;  %v5321_v4 = vld [vmem:[#allocation5 + $0xd4] sm:$0xf] }
  0xfc   :  { %3163 = vmatpush.bf16.msrb.mxu3 %v5074_v9  ;;  %v5050_v9 = vor.u32 %v5538_v59, %v5049_v58  ;;  %v4323_v58 = vld [vmem:[#allocation5 + $0x1e8] sm:$0xf0]  ;;  %v5860_v59 = vpack.c.bf16 %v1390_v35, %v1390_v35  ;;  %v4187_v6 = vld [vmem:[#allocation5 + $0xd8] sm:$0xf0]  ;;  %v5351_v22 = vld [vmem:[#allocation5 + $0x1c4] sm:$0xf] }
  0xfd   :  { %3125 = vmatpush.bf16.msrb.mxu0 %v4874_v18  ;;  %v1307_v18 = vpop.f32.mrf.mxu3  ;;  %v4190_v12 = vor.u32 %v5321_v4, %v4187_v6  ;;  %v4107_v35 = vld [vmem:[#allocation5 + $0x38] sm:$0xf0]  ;;  %v4227_v4 = vld [vmem:[#allocation5 + $0x128] sm:$0xf0]  ;;  %v5347_v6 = vld [vmem:[#allocation5 + $0x1a4] sm:$0xf] }
  0xfe   :  { %3138 = vmatpush.bf16.msrb.mxu1 %v4938_v19  ;;  %v5357_v19 = vld [vmem:[#allocation5 + $0x1f4] sm:$0xf]  ;;  %v4179_v18 = vld [vmem:[#allocation5 + $0xc8] sm:$0xf0] }
  0xff   :  { %3151 = vmatpush.bf16.msrb.mxu2 %v5002_v23  ;;  %v4850_v23 = vor.u32 %v5488_v61, %v4849_v60  ;;  %v4334_v20 = vor.u32 %v5357_v19, %v4331_v21  ;;  %v1280_v60 = vadd.f32 %v5842_v5, %v1267_v57  ;;  %v4251_v5 = vld [vmem:[#allocation5 + $0x158] sm:$0xf0]  ;;  %v4243_v21 = vld [vmem:[#allocation5 + $0x148] sm:$0xf0] }
 0x100   :  { %3164 = vmatpush.bf16.msrb.mxu3 %v5066_v34  ;;  %v4914_v34 = vor.u32 %v5504_v63, %v4913_v62  ;;  %v5305_v63 = vld [vmem:[#allocation5 + $0x54] sm:$0xf]  ;;  %v4246_v57 = vor.u32 %v5335_v16, %v4243_v21  ;;  %v4219_v16 = vld [vmem:[#allocation5 + $0x118] sm:$0xf0] }
 0x101   :  { %3126 = vmatpush.bf16.msrb.mxu0 %v4866_v46  ;;  %v4206_v46 = vor.u32 %v5325_v14, %v4203_v15  ;;  %v4126_v11 = vor.u32 %v5305_v63, %v4123_v0  ;;  %v4115_v14 = vld [vmem:[#allocation5 + $0x48] sm:$0xf0]  ;;  %v5331_v0 = vld [vmem:[#allocation5 + $0x124] sm:$0xf]  ;;  %v4283_v21 = vld [vmem:[#allocation5 + $0x198] sm:$0xf0] }
 0x102   :  { %3139 = vmatpush.bf16.msrb.mxu1 %v4930_v47  ;;  %v5307_v47 = vld [vmem:[#allocation5 + $0x64] sm:$0xf]  ;;  %v4118_v40 = vor.u32 %v5303_v13, %v4115_v14  ;;  %v4163_v63 = vld [vmem:[#allocation5 + $0xa8] sm:$0xf0]  ;;  %v5313_v13 = vld [vmem:[#allocation5 + $0x94] sm:$0xf] }
 0x103   :  { %3152 = vmatpush.bf16.msrb.mxu2 %v4994_v51  ;;  %v4195_v51 = vld [vmem:[#allocation5 + $0xe8] sm:$0xf0]  ;;  %v4134_v61 = vor.u32 %v5307_v47, %v4131_v48  ;;  %v4171_v47 = vld [vmem:[#allocation5 + $0xb8] sm:$0xf0]  ;;  %v5333_v48 = vld [vmem:[#allocation5 + $0x134] sm:$0xf] }
 0x104   :  { %3165 = vmatpush.bf16.msrb.mxu3 %v5058_v52  ;;  %v5339_v52 = vld [vmem:[#allocation5 + $0x164] sm:$0xf]  ;;  %v4198_v62 = vor.u32 %v5323_v50, %v4195_v51  ;;  %v4110_v51 = vor.u32 %v5301_v44, %v4107_v35 }
 0x105   :  { %3127 = vmatpush.bf16.msrb.mxu0 %v4858_v1  ;;  %v4262_v1 = vor.u32 %v5339_v52, %v4259_v55  ;;  %v5299_v55 = vld [vmem:[#allocation5 + $0x24] sm:$0xf] }
 0x106   :  { %3140 = vmatpush.bf16.msrb.mxu1 %v4922_v3  ;;  %v4326_v3 = vor.u32 %v5355_v56, %v4323_v58  ;;  %v4099_v56 = vld [vmem:[#allocation5 + $0x28] sm:$0xf0]  ;;  %v5327_v35 = vld [vmem:[#allocation5 + $0x104] sm:$0xf] }
 0x107   :  { %3153 = vmatpush.bf16.msrb.mxu2 %v4986_v8  ;;  %v1293_v8 = vadd.f32 %v5846_v36, %v1280_v60  ;;  %v4254_v36 = vor.u32 %v5337_v7, %v4251_v5  ;;  %v4291_v7 = vld [vmem:[#allocation5 + $0x1a8] sm:$0xf0] }
 0x108   :  { %3166 = vmatpush.bf16.msrb.mxu3 %v5050_v9  ;;  %v5353_v9 = vld [vmem:[#allocation5 + $0x1d4] sm:$0xf] }
 0x109   :  { %3128 = vmatpush.bf16.msrb.mxu0 %v4850_v23  ;;  %v4318_v15 = vor.u32 %v5353_v9, %v4315_v10  ;;  %v1306_v19 = vadd.f32 %v5848_v42, %v1293_v8  ;;  %v4307_v23 = vld [vmem:[#allocation5 + $0x1c8] sm:$0xf0]  ;;  %v4235_v42 = vld [vmem:[#allocation5 + $0x138] sm:$0xf0]  ;;  %v4102_v9 = vor.u32 %v5299_v55, %v4099_v56 }
 0x10a   :  { %3141 = vmatpush.bf16.msrb.mxu1 %v4914_v34  ;;  %v1318_v34 = vpop.f32.mrf.mxu0  ;;  %v4238_v58 = vor.u32 %v5333_v48, %v4235_v42  ;;  %v5373_v48 = vld [vmem:[#allocation5 + $0x274] sm:$0xf]  ;;  %v4395_v42 = vld [vmem:[#allocation5 + $0x278] sm:$0xf0] }
 0x10b   :  { %3154 = vmatpush.bf16.msrb.mxu2 %v4978_v41  ;;  %v1319_v37 = vadd.f32 %v1318_v34, %v1306_v19  ;;  %v4182_v41 = vor.u32 %v5319_v17, %v4179_v18  ;;  %v4155_v17 = vld [vmem:[#allocation5 + $0x98] sm:$0xf0]  ;;  %v5329_v18 = vld [vmem:[#allocation5 + $0x114] sm:$0xf] }
 0x10c   :  { %3167 = vmatpush.bf16.msrb.mxu3 %v5042_v43  ;;  %3129 = vmatmul.bf16.vlgmr.msrb.gmra.mxu0 %v5854_v53  ;;  %v1331_v43 = vpop.f32.mrf.mxu1  ;;  %v5345_v19 = vld [vmem:[#allocation5 + $0x194] sm:$0xf]  ;;  %v4158_v34 = vor.u32 %v5313_v13, %v4155_v17  ;;  %v4523_v56 = vld [vmem:[#allocation5 + $0x378] sm:$0xf0] }
 0x10d   :  { %3173 = vmatpush.bf16.msra.mxu0 %v4142_v45  ;;  %3142 = vmatmul.bf16.vlgmr.msrb.gmra.mxu1 %v5858_v2  ;;  %v4310_v45 = vor.u32 %v5351_v22, %v4307_v23  ;;  %v1332_v50 = vadd.f32 %v1331_v43, %v1319_v37  ;;  %v5295_v22 = vld [vmem:[#allocation5 + $0x4] sm:$0xf]  ;;  %v4083_v37 = vld [vmem:[#allocation5 + $0x8] sm:$0xf0]  ;;  %v4222_v43 = vor.u32 %v5329_v18, %v4219_v16  ;;  %v4443_v16 = vld [vmem:[#allocation5 + $0x2d8] sm:$0xf0] }
 0x10e   :  { %3186 = vmatpush.bf16.msra.mxu1 %v4206_v46  ;;  %3155 = vmatmul.bf16.vlgmr.msrb.gmra.mxu2 %v5856_v54  ;;  %v5317_v46 = vld [vmem:[#allocation5 + $0xb4] sm:$0xf]  ;;  %v4286_v44 = vor.u32 %v5345_v19, %v4283_v21  ;;  %v5872_v21 = vld [vmem:[%s5981_s5] sm:$0x3] }
 0x10f   :  { %3199 = vmatpush.bf16.msra.mxu2 %v4270_v49  ;;  %3168 = vmatmul.bf16.vlgmr.msrb.gmra.mxu3 %v5860_v59  ;;  %v5349_v49 = vld [vmem:[#allocation5 + $0x1b4] sm:$0xf]  ;;  %v4174_v52 = vor.u32 %v5317_v46, %v4171_v47  ;;  %v4275_v47 = vld [vmem:[#allocation5 + $0x188] sm:$0xf0] }
 0x110   :  { %3212 = vmatpush.bf16.msra.mxu3 %v4334_v20  ;;  %v4299_v20 = vld [vmem:[#allocation5 + $0x1b8] sm:$0xf0]  ;;  %v5401_v19 = vld [vmem:[#allocation5 + $0x354] sm:$0xf] }
 0x111   :  { %3174 = vmatpush.bf16.msra.mxu0 %v4134_v61  ;;  %v4302_v60 = vor.u32 %v5349_v49, %v4299_v20  ;;  %v1344_v61 = vpop.f32.mrf.mxu2  ;;  %v5389_v20 = vld [vmem:[#allocation5 + $0x2f4] sm:$0xf] }
 0x112   :  { %3187 = vmatpush.bf16.msra.mxu1 %v4198_v62  ;;  %v5315_v62 = vld [vmem:[#allocation5 + $0xa4] sm:$0xf]  ;;  %v1320_v8 = vpop.f32.mrf.mxu0 }
 0x113   :  { %3200 = vmatpush.bf16.msra.mxu2 %v4262_v1  ;;  %v1345_v1 = vadd.f32 %v1344_v61, %v1332_v50  ;;  %v4166_v10 = vor.u32 %v5315_v62, %v4163_v63  ;;  %v4459_v50 = vld [vmem:[#allocation5 + $0x2f8] sm:$0xf0]  ;;  %v4398_v63 = vor.u32 %v5373_v48, %v4395_v42  ;;  %v4451_v8 = vld [vmem:[#allocation5 + $0x2e8] sm:$0xf0] }
 0x114   :  { %3213 = vmatpush.bf16.msra.mxu3 %v4326_v3  ;;  %v1357_v3 = vpop.f32.mrf.mxu3  ;;  %v1333_v14 = vpop.f32.mrf.mxu1 }
 0x115   :  { %3175 = vmatpush.bf16.msra.mxu0 %v4126_v11  ;;  %v1358_v5 = vadd.f32 %v1357_v3, %v1345_v1  ;;  %v5297_v11 = vld [vmem:[#allocation5 + $0x14] sm:$0xf]  ;;  %v5371_v1 = vld [vmem:[#allocation5 + $0x264] sm:$0xf]  ;;  %v4387_v3 = vld [vmem:[#allocation5 + $0x268] sm:$0xf0] }
 0x116   :  { %3188 = vmatpush.bf16.msra.mxu1 %v4190_v12  ;;  %v4091_v12 = vld [vmem:[#allocation5 + $0x18] sm:$0xf0]  ;;  %v5369_v14 = vld [vmem:[#allocation5 + $0x254] sm:$0xf] }
 0x117   :  { %3201 = vmatpush.bf16.msra.mxu2 %v4254_v36  ;;  %v4230_v36 = vor.u32 %v5331_v0, %v4227_v4  ;;  %1361 = vst [vmem:[#allocation7] sm:$0x3] %v1358_v5  ;;  %v4094_v23 = vor.u32 %v5297_v11, %v4091_v12  ;;  %v4462_v0 = vor.u32 %v5389_v20, %v4459_v50  ;;  %v5403_v5 = vld [vmem:[#allocation5 + $0x364] sm:$0xf]  ;;  %v4579_v11 = vld [vmem:[#allocation5 + $0x3e8] sm:$0xf0] }
 0x118   :  { %3214 = vmatpush.bf16.msra.mxu3 %v4318_v15  ;;  %v4294_v15 = vor.u32 %v5347_v6, %v4291_v7  ;;  %v5387_v7 = vld [vmem:[#allocation5 + $0x2e4] sm:$0xf]  ;;  %v4390_v12 = vor.u32 %v5371_v1, %v4387_v3  ;;  %v4363_v20 = vld [vmem:[#allocation5 + $0x238] sm:$0xf0] }
 0x119   :  { %3176 = vmatpush.bf16.msra.mxu0 %v4118_v40  ;;  %v5311_v40 = vld [vmem:[#allocation5 + $0x84] sm:$0xf]  ;;  %v1346_v46 = vpop.f32.mrf.mxu2  ;;  %v4454_v13 = vor.u32 %v5387_v7, %v4451_v8 }
 0x11a   :  { %3189 = vmatpush.bf16.msra.mxu1 %v4182_v41  ;;  %v4147_v41 = vld [vmem:[#allocation5 + $0x88] sm:$0xf0]  ;;  %v5399_v46 = vld [vmem:[#allocation5 + $0x344] sm:$0xf] }
 0x11b   :  { %3202 = vmatpush.bf16.msra.mxu2 %v4246_v57  ;;  %v4211_v57 = vld [vmem:[#allocation5 + $0x108] sm:$0xf0]  ;;  %v4150_v55 = vor.u32 %v5311_v40, %v4147_v41  ;;  %v5367_v41 = vld [vmem:[#allocation5 + $0x244] sm:$0xf] }
 0x11c   :  { %3215 = vmatpush.bf16.msra.mxu3 %v4310_v45  ;;  %v5343_v45 = vld [vmem:[#allocation5 + $0x184] sm:$0xf]  ;;  %v1359_v49 = vpop.f32.mrf.mxu3  ;;  %v4214_v61 = vor.u32 %v5327_v35, %v4211_v57 }
 0x11d   :  { %3177 = vmatpush.bf16.msra.mxu0 %v4110_v51  ;;  %v5405_v51 = vld [vmem:[#allocation5 + $0x374] sm:$0xf]  ;;  %v4278_v62 = vor.u32 %v5343_v45, %v4275_v47  ;;  %v5383_v45 = vld [vmem:[#allocation5 + $0x2c4] sm:$0xf] }
 0x11e   :  { %3190 = vmatpush.bf16.msra.mxu1 %v4174_v52  ;;  %v4086_v52 = vor.u32 %v5295_v22, %v4083_v37  ;;  %v4526_v4 = vor.u32 %v5405_v51, %v4523_v56  ;;  %v4507_v22 = vld [vmem:[#allocation5 + $0x358] sm:$0xf0]  ;;  %v5415_v47 = vld [vmem:[#allocation5 + $0x3c4] sm:$0xf]  ;;  %v5365_v49 = vld [vmem:[#allocation5 + $0x234] sm:$0xf] }
 0x11f   :  { %3203 = vmatpush.bf16.msra.mxu2 %v4238_v58  ;;  %v5421_v58 = vld [vmem:[#allocation5 + $0x3f4] sm:$0xf]  ;;  %v4510_v35 = vor.u32 %v5401_v19, %v4507_v22  ;;  %v4366_v1 = vor.u32 %v5365_v49, %v4363_v20  ;;  %v4347_v22 = vld [vmem:[#allocation5 + $0x218] sm:$0xf0]  ;;  %v5391_v49 = vld [vmem:[#allocation5 + $0x304] sm:$0xf] }
 0x120   :  { %3216 = vmatpush.bf16.msra.mxu3 %v4302_v60  ;;  %v4587_v60 = vld [vmem:[#allocation5 + $0x3f8] sm:$0xf0]  ;;  %v5381_v56 = vld [vmem:[#allocation5 + $0x2b4] sm:$0xf]  ;;  %v4467_v20 = vld [vmem:[#allocation5 + $0x308] sm:$0xf0] }
 0x121   :  { %3178 = vmatpush.bf16.msra.mxu0 %v4102_v9  ;;  %v4590_v6 = vor.u32 %v5421_v58, %v4587_v60  ;;  %v4515_v9 = vld [vmem:[#allocation5 + $0x368] sm:$0xf0]  ;;  %v4427_v58 = vld [vmem:[#allocation5 + $0x2b8] sm:$0xf0]  ;;  %v5397_v60 = vld [vmem:[#allocation5 + $0x334] sm:$0xf] }
 0x122   :  { %3191 = vmatpush.bf16.msra.mxu1 %v4166_v10  ;;  %v5419_v10 = vld [vmem:[#allocation5 + $0x3e4] sm:$0xf]  ;;  %v4518_v17 = vor.u32 %v5403_v5, %v4515_v9  ;;  %v4430_v3 = vor.u32 %v5381_v56, %v4427_v58  ;;  %v4419_v9 = vld [vmem:[#allocation5 + $0x2a8] sm:$0xf0]  ;;  %v5361_v19 = vld [vmem:[#allocation5 + $0x214] sm:$0xf] }
 0x123   :  { %3204 = vmatpush.bf16.msra.mxu2 %v4230_v36  ;;  %v4379_v36 = vld [vmem:[#allocation5 + $0x258] sm:$0xf0]  ;;  %v4582_v18 = vor.u32 %v5419_v10, %v4579_v11  ;;  %v5379_v5 = vld [vmem:[#allocation5 + $0x2a4] sm:$0xf] }
 0x124   :  { %3217 = vmatpush.bf16.msra.mxu3 %v4294_v15  ;;  %v5385_v15 = vld [vmem:[#allocation5 + $0x2d4] sm:$0xf]  ;;  %v4382_v37 = vor.u32 %v5369_v14, %v4379_v36  ;;  %v5395_v10 = vld [vmem:[#allocation5 + $0x324] sm:$0xf]  ;;  %v4547_v14 = vld [vmem:[#allocation5 + $0x3a8] sm:$0xf0] }
 0x125   :  { %3179 = vmatpush.bf16.msra.mxu0 %v4094_v23  ;;  %v5417_v23 = vld [vmem:[#allocation5 + $0x3d4] sm:$0xf]  ;;  %v4446_v40 = vor.u32 %v5385_v15, %v4443_v16  ;;  %v4422_v16 = vor.u32 %v5379_v5, %v4419_v9  ;;  %v4651_v56 = vld [vmem:[#allocation5 + $0x478] sm:$0xf0]  ;;  %v5435_v9 = vld [vmem:[#allocation5 + $0x464] sm:$0xf] }
 0x126   :  { %3192 = vmatpush.bf16.msra.mxu1 %v4158_v34  ;;  %v4571_v34 = vld [vmem:[#allocation5 + $0x3d8] sm:$0xf0] }
 0x127   :  { %3205 = vmatpush.bf16.msra.mxu2 %v4222_v43  ;;  %v4371_v43 = vld [vmem:[#allocation5 + $0x248] sm:$0xf0]  ;;  %v4574_v57 = vor.u32 %v5417_v23, %v4571_v34 }
 0x128   :  { %3218 = vmatpush.bf16.msra.mxu3 %v4286_v44  ;;  %v1681_v44 = vperm.slane %v5872_v21, 0 }
 0x129   :  { %3180 = vmatpush.bf16.msra.mxu0 %v4086_v52  ;;  %v2974_v48 = vpop.f32.mrf.mxu0 }
 0x12a   :  { %3193 = vmatpush.bf16.msra.mxu1 %v4150_v55  ;;  %v2975_v50 = vadd.f32 %v2974_v48, %v1681_v44  ;;  %v2987_v51 = vpop.f32.mrf.mxu1  ;;  %v5393_v44 = vld [vmem:[#allocation5 + $0x314] sm:$0xf]  ;;  %v4403_v48 = vld [vmem:[#allocation5 + $0x288] sm:$0xf0] }
 0x12b   :  { %3206 = vmatpush.bf16.msra.mxu2 %v4214_v61  ;;  %v4491_v61 = vld [vmem:[#allocation5 + $0x338] sm:$0xf0] }
 0x12c   :  { %3219 = vmatpush.bf16.msra.mxu3 %v4278_v62  ;;  %3181 = vmatmul.bf16.vlgmr.msra.gmra.mxu0 %v5787_v31  ;;  %v4499_v31 = vld [vmem:[#allocation5 + $0x348] sm:$0xf0]  ;;  %v5413_v62 = vld [vmem:[#allocation5 + $0x3b4] sm:$0xf]  ;;  %v4494_v7 = vor.u32 %v5397_v60, %v4491_v61  ;;  %v4715_v61 = vld [vmem:[#allocation5 + $0x4f8] sm:$0xf0] }
 0x12d   :  { %3225 = vmatpush.bf16.msrb.mxu0 %v4398_v63  ;;  %3194 = vmatmul.bf16.vlgmr.msra.gmra.mxu1 %v5791_v33  ;;  %v4374_v33 = vor.u32 %v5367_v41, %v4371_v43  ;;  %v4502_v52 = vor.u32 %v5399_v46, %v4499_v31  ;;  %v4555_v63 = vld [vmem:[#allocation5 + $0x3b8] sm:$0xf0]  ;;  %v5377_v41 = vld [vmem:[#allocation5 + $0x294] sm:$0xf]  ;;  %v4350_v46 = vor.u32 %v5361_v19, %v4347_v22 }
 0x12e   :  { %3238 = vmatpush.bf16.msrb.mxu1 %v4462_v0  ;;  %3207 = vmatmul.bf16.vlgmr.msra.gmra.mxu2 %v5785_v30  ;;  %v4435_v30 = vld [vmem:[#allocation5 + $0x2c8] sm:$0xf0]  ;;  %v2988_v0 = vadd.f32 %v2987_v51, %v2975_v50  ;;  %v4558_v8 = vor.u32 %v5413_v62, %v4555_v63  ;;  %v4411_v43 = vld [vmem:[#allocation5 + $0x298] sm:$0xf0]  ;;  %v5407_v50 = vld [vmem:[#allocation5 + $0x384] sm:$0xf] }
 0x12f   :  { %3251 = vmatpush.bf16.msrb.mxu2 %v4526_v4  ;;  %3220 = vmatmul.bf16.vlgmr.msra.gmra.mxu3 %v5789_v32  ;;  %v4563_v32 = vld [vmem:[#allocation5 + $0x3c8] sm:$0xf0]  ;;  %v4438_v42 = vor.u32 %v5383_v45, %v4435_v30  ;;  %v5363_v4 = vld [vmem:[#allocation5 + $0x224] sm:$0xf]  ;;  %v4539_v45 = vld [vmem:[#allocation5 + $0x398] sm:$0xf0]  ;;  %v4414_v31 = vor.u32 %v5377_v41, %v4411_v43 }
 0x130   :  { %3264 = vmatpush.bf16.msrb.mxu3 %v4590_v6  ;;  %v4566_v55 = vor.u32 %v5415_v47, %v4563_v32  ;;  %v4355_v6 = vld [vmem:[#allocation5 + $0x228] sm:$0xf0]  ;;  %v5359_v30 = vld [vmem:[#allocation5 + $0x204] sm:$0xf]  ;;  %v5453_v60 = vld [vmem:[#allocation5 + $0x4f4] sm:$0xf] }
 0x131   :  { %3226 = vmatpush.bf16.msrb.mxu0 %v4390_v12  ;;  %v3000_v11 = vpop.f32.mrf.mxu2  ;;  %v4483_v12 = vld [vmem:[#allocation5 + $0x328] sm:$0xf0]  ;;  %v5375_v32 = vld [vmem:[#allocation5 + $0x284] sm:$0xf]  ;;  %v5469_v62 = vld [vmem:[#allocation5 + $0x574] sm:$0xf]  ;;  %v4718_v5 = vor.u32 %v5453_v60, %v4715_v61 }
 0x132   :  { %3239 = vmatpush.bf16.msrb.mxu1 %v4454_v13  ;;  %v5411_v13 = vld [vmem:[#allocation5 + $0x3a4] sm:$0xf]  ;;  %v3001_v36 = vadd.f32 %v3000_v11, %v2988_v0  ;;  %v3013_v15 = vpop.f32.mrf.mxu3  ;;  %v2989_v34 = vpop.f32.mrf.mxu1  ;;  %v4339_v47 = vld [vmem:[#allocation5 + $0x208] sm:$0xf0]  ;;  %v4406_v0 = vor.u32 %v5375_v32, %v4403_v48  ;;  %v5433_v22 = vld [vmem:[#allocation5 + $0x454] sm:$0xf] }
 0x133   :  { %3252 = vmatpush.bf16.msrb.mxu2 %v4518_v17  ;;  %v2976_v17 = vpop.f32.mrf.mxu0  ;;  %v4342_v63 = vor.u32 %v5359_v30, %v4339_v47  ;;  %v4635_v34 = vld [vmem:[#allocation5 + $0x458] sm:$0xf0]  ;;  %v5449_v41 = vld [vmem:[#allocation5 + $0x4d4] sm:$0xf]  ;;  %v4627_v47 = vld [vmem:[#allocation5 + $0x448] sm:$0xf0] }
 0x134   :  { %3265 = vmatpush.bf16.msrb.mxu3 %v4582_v18  ;;  %v4358_v18 = vor.u32 %v5363_v4, %v4355_v6  ;;  %v5879_v23 = vadd.f32 %v3013_v15, %v3001_v36  ;;  %v4843_v4 = vld [vmem:[#allocation5 + $0x5f8] sm:$0xf0]  ;;  %v4470_v6 = vor.u32 %v5391_v49, %v4467_v20  ;;  %v5467_v36 = vld [vmem:[#allocation5 + $0x564] sm:$0xf]  ;;  %v4771_v15 = vld [vmem:[#allocation5 + $0x568] sm:$0xf0]  ;;  %v4638_v30 = vor.u32 %v5433_v22, %v4635_v34 }
 0x135   :  { %3227 = vmatpush.bf16.msrb.mxu0 %v4382_v37  ;;  %v4486_v37 = vor.u32 %v5395_v10, %v4483_v12  ;;  %v4643_v10 = vld [vmem:[#allocation5 + $0x468] sm:$0xf0]  ;;  %v5483_v17 = vld [vmem:[#allocation5 + $0x5e4] sm:$0xf]  ;;  %v4699_v43 = vld [vmem:[#allocation5 + $0x4d8] sm:$0xf0] }
 0x136   :  { %3240 = vmatpush.bf16.msrb.mxu1 %v4446_v40  ;;  %v4550_v40 = vor.u32 %v5411_v13, %v4547_v14  ;;  %v5451_v13 = vld [vmem:[#allocation5 + $0x4e4] sm:$0xf]  ;;  %v4707_v14 = vld [vmem:[#allocation5 + $0x4e8] sm:$0xf0]  ;;  %v5445_v60 = vld [vmem:[#allocation5 + $0x4b4] sm:$0xf] }
 0x137   :  { %3253 = vmatpush.bf16.msrb.mxu2 %v4510_v35  ;;  %v4475_v35 = vld [vmem:[#allocation5 + $0x318] sm:$0xf0]  ;;  %v4710_v19 = vor.u32 %v5451_v13, %v4707_v14  ;;  %v4755_v49 = vld [vmem:[#allocation5 + $0x548] sm:$0xf0]  ;;  %v5479_v20 = vld [vmem:[#allocation5 + $0x5c4] sm:$0xf] }
 0x138   :  { %3266 = vmatpush.bf16.msrb.mxu3 %v4574_v57  ;;  %v5409_v57 = vld [vmem:[#allocation5 + $0x394] sm:$0xf]  ;;  %v4683_v61 = vld [vmem:[#allocation5 + $0x4b8] sm:$0xf0]  ;;  %v4739_v13 = vld [vmem:[#allocation5 + $0x528] sm:$0xf0] }
 0x139   :  { %3228 = vmatpush.bf16.msrb.mxu0 %v4374_v33  ;;  %v4478_v33 = vor.u32 %v5393_v44, %v4475_v35  ;;  %v3002_v51 = vpop.f32.mrf.mxu2  ;;  %v5465_v44 = vld [vmem:[#allocation5 + $0x554] sm:$0xf]  ;;  %v4763_v35 = vld [vmem:[#allocation5 + $0x558] sm:$0xf0]  ;;  %v5475_v14 = vld [vmem:[#allocation5 + $0x5a4] sm:$0xf] }
 0x13a   :  { %3241 = vmatpush.bf16.msrb.mxu1 %v4438_v42  ;;  %v4542_v42 = vor.u32 %v5409_v57, %v4539_v45  ;;  %v3015_v58 = vpop.f32.mrf.mxu3  ;;  %v5481_v57 = vld [vmem:[#allocation5 + $0x5d4] sm:$0xf]  ;;  %v4827_v45 = vld [vmem:[#allocation5 + $0x5d8] sm:$0xf0]  ;;  %v4766_v32 = vor.u32 %v5465_v44, %v4763_v35 }
 0x13b   :  { %3254 = vmatpush.bf16.msrb.mxu2 %v4502_v52  ;;  %v4531_v52 = vld [vmem:[#allocation5 + $0x388] sm:$0xf0]  ;;  %v4830_v48 = vor.u32 %v5481_v57, %v4827_v45  ;;  %v5429_v51 = vld [vmem:[#allocation5 + $0x434] sm:$0xf]  ;;  %v4603_v22 = vld [vmem:[#allocation5 + $0x418] sm:$0xf0] }
 0x13c   :  { %3267 = vmatpush.bf16.msrb.mxu3 %v4566_v55  ;;  %v5437_v55 = vld [vmem:[#allocation5 + $0x474] sm:$0xf]  ;;  %v4731_v35 = vld [vmem:[#allocation5 + $0x518] sm:$0xf0] }
 0x13d   :  { %3229 = vmatpush.bf16.msrb.mxu0 %v4366_v1  ;;  %v4779_v1 = vld [vmem:[#allocation5 + $0x578] sm:$0xf0]  ;;  %v5457_v44 = vld [vmem:[#allocation5 + $0x514] sm:$0xf] }
 0x13e   :  { %3242 = vmatpush.bf16.msrb.mxu1 %v4430_v3  ;;  %v5485_v3 = vld [vmem:[#allocation5 + $0x5f4] sm:$0xf]  ;;  %v4782_v11 = vor.u32 %v5469_v62, %v4779_v1  ;;  %v4811_v1 = vld [vmem:[#allocation5 + $0x5b8] sm:$0xf0] }
 0x13f   :  { %3255 = vmatpush.bf16.msrb.mxu2 %v4494_v7  ;;  %v4534_v7 = vor.u32 %v5407_v50, %v4531_v52  ;;  %v4846_v12 = vor.u32 %v5485_v3, %v4843_v4  ;;  %v4619_v52 = vld [vmem:[#allocation5 + $0x438] sm:$0xf0]  ;;  %v5461_v62 = vld [vmem:[#allocation5 + $0x534] sm:$0xf]  ;;  %v4686_v4 = vor.u32 %v5445_v60, %v4683_v61 }
 0x140   :  { %3268 = vmatpush.bf16.msrb.mxu3 %v4558_v8  ;;  %v4654_v8 = vor.u32 %v5437_v55, %v4651_v56  ;;  %v4622_v3 = vor.u32 %v5429_v51, %v4619_v52  ;;  %v5473_v57 = vld [vmem:[#allocation5 + $0x594] sm:$0xf]  ;;  %v4795_v45 = vld [vmem:[#allocation5 + $0x598] sm:$0xf0] }
 0x141   :  { %3230 = vmatpush.bf16.msrb.mxu0 %v4358_v18  ;;  %v4835_v18 = vld [vmem:[#allocation5 + $0x5e8] sm:$0xf0]  ;;  %v4907_v51 = vld [vmem:[#allocation5 + $0x678] sm:$0xf0]  ;;  %v5533_v60 = vld [vmem:[#allocation5 + $0x774] sm:$0xf] }
 0x142   :  { %3243 = vmatpush.bf16.msrb.mxu1 %v4422_v16  ;;  %v4646_v16 = vor.u32 %v5435_v9, %v4643_v10  ;;  %v5443_v9 = vld [vmem:[#allocation5 + $0x4a4] sm:$0xf]  ;;  %v4675_v10 = vld [vmem:[#allocation5 + $0x4a8] sm:$0xf0] }
 0x143   :  { %3256 = vmatpush.bf16.msrb.mxu2 %v4486_v37  ;;  %v4774_v37 = vor.u32 %v5467_v36, %v4771_v15  ;;  %v4803_v36 = vld [vmem:[#allocation5 + $0x5a8] sm:$0xf0] }
 0x144   :  { %3269 = vmatpush.bf16.msrb.mxu3 %v4550_v40  ;;  %v4838_v40 = vor.u32 %v5483_v17, %v4835_v18 }
 0x145   :  { %3231 = vmatpush.bf16.msrb.mxu0 %v4350_v46  ;;  %v4702_v46 = vor.u32 %v5449_v41, %v4699_v43  ;;  %v5441_v41 = vld [vmem:[#allocation5 + $0x494] sm:$0xf]  ;;  %v4667_v43 = vld [vmem:[#allocation5 + $0x498] sm:$0xf0] }
 0x146   :  { %3244 = vmatpush.bf16.msrb.mxu1 %v4414_v31  ;;  %v5431_v31 = vld [vmem:[#allocation5 + $0x444] sm:$0xf] }
 0x147   :  { %3257 = vmatpush.bf16.msrb.mxu2 %v4478_v33  ;;  %v4691_v33 = vld [vmem:[#allocation5 + $0x4c8] sm:$0xf0] }
 0x148   :  { %3270 = vmatpush.bf16.msrb.mxu3 %v4542_v42  ;;  %v5463_v42 = vld [vmem:[#allocation5 + $0x544] sm:$0xf] }
 0x149   :  { %3232 = vmatpush.bf16.msrb.mxu0 %v4342_v63  ;;  %v5885_v50 = vpop.f32.mrf.mxu0  ;;  %v4758_v56 = vor.u32 %v5463_v42, %v4755_v49  ;;  %v4747_v63 = vld [vmem:[#allocation5 + $0x538] sm:$0xf0]  ;;  %v5455_v42 = vld [vmem:[#allocation5 + $0x504] sm:$0xf]  ;;  %v4723_v49 = vld [vmem:[#allocation5 + $0x508] sm:$0xf0] }
 0x14a   :  { %3245 = vmatpush.bf16.msrb.mxu1 %v4406_v0  ;;  %v5887_v55 = vpop.f32.mrf.mxu1  ;;  %v5477_v0 = vld [vmem:[#allocation5 + $0x5b4] sm:$0xf] }
 0x14b   :  { %3258 = vmatpush.bf16.msrb.mxu2 %v4470_v6  ;;  %v5427_v6 = vld [vmem:[#allocation5 + $0x424] sm:$0xf] }
 0x14c   :  { %3271 = vmatpush.bf16.msrb.mxu3 %v4534_v7  ;;  %3233 = vmatmul.bf16.vlgmr.msrb.gmra.mxu0 %v5807_v25  ;;  %v4819_v25 = vld [vmem:[#allocation5 + $0x5c8] sm:$0xf0] }
 0x14d   :  { %3277 = vmatpush.bf16.msra.mxu0 %v4654_v8  ;;  %3246 = vmatmul.bf16.vlgmr.msrb.gmra.mxu1 %v5811_v27  ;;  %v4822_v58 = vor.u32 %v5479_v20, %v4819_v25  ;;  %v4611_v7 = vld [vmem:[#allocation5 + $0x428] sm:$0xf0]  ;;  %v4750_v8 = vor.u32 %v5461_v62, %v4747_v63  ;;  %v5471_v20 = vld [vmem:[#allocation5 + $0x584] sm:$0xf]  ;;  %v5035_v63 = vld [vmem:[#allocation5 + $0x778] sm:$0xf0] }
 0x14e   :  { %3290 = vmatpush.bf16.msra.mxu1 %v4718_v5  ;;  %3259 = vmatmul.bf16.vlgmr.msrb.gmra.mxu2 %v5805_v24  ;;  %v5447_v24 = vld [vmem:[#allocation5 + $0x4c4] sm:$0xf]  ;;  %v4814_v5 = vor.u32 %v5477_v0, %v4811_v1  ;;  %v4614_v18 = vor.u32 %v5427_v6, %v4611_v7  ;;  %v5549_v0 = vld [vmem:[#allocation5 + $0x7f4] sm:$0xf]  ;;  %v5099_v1 = vld [vmem:[#allocation5 + $0x7f8] sm:$0xf0] }
 0x14f   :  { %3303 = vmatpush.bf16.msra.mxu2 %v4782_v11  ;;  %3272 = vmatmul.bf16.vlgmr.msrb.gmra.mxu3 %v5809_v26  ;;  %v4630_v26 = vor.u32 %v5431_v31, %v4627_v47  ;;  %v4694_v27 = vor.u32 %v5447_v24, %v4691_v33  ;;  %v5459_v11 = vld [vmem:[#allocation5 + $0x524] sm:$0xf]  ;;  %v4670_v31 = vor.u32 %v5441_v41, %v4667_v43  ;;  %v4595_v47 = vld [vmem:[#allocation5 + $0x408] sm:$0xf0]  ;;  %v5513_v41 = vld [vmem:[#allocation5 + $0x6d4] sm:$0xf] }
 0x150   :  { %3316 = vmatpush.bf16.msra.mxu3 %v4846_v12  ;;  %v4734_v24 = vor.u32 %v5457_v44, %v4731_v35  ;;  %v4798_v33 = vor.u32 %v5473_v57, %v4795_v45  ;;  %v4955_v43 = vld [vmem:[#allocation5 + $0x6d8] sm:$0xf0]  ;;  %v5529_v44 = vld [vmem:[#allocation5 + $0x754] sm:$0xf] }
 0x151   :  { %3278 = vmatpush.bf16.msra.mxu0 %v4646_v16  ;;  %v5889_v12 = vpop.f32.mrf.mxu2  ;;  %v3028_v17 = vpop.f32.mrf.mxu0  ;;  %v4678_v16 = vor.u32 %v5443_v9, %v4675_v10  ;;  %v5038_v9 = vor.u32 %v5533_v60, %v5035_v63  ;;  %v5102_v10 = vor.u32 %v5549_v0, %v5099_v1  ;;  %v5019_v35 = vld [vmem:[#allocation5 + $0x758] sm:$0xf0]  ;;  %v5545_v57 = vld [vmem:[#allocation5 + $0x7d4] sm:$0xf] }
 0x152   :  { %3291 = vmatpush.bf16.msra.mxu1 %v4710_v19  ;;  %v5891_v15 = vpop.f32.mrf.mxu3  ;;  %v5425_v19 = vld [vmem:[#allocation5 + $0x414] sm:$0xf]  ;;  %v3041_v34 = vpop.f32.mrf.mxu1  ;;  %v5547_v17 = vld [vmem:[#allocation5 + $0x7e4] sm:$0xf]  ;;  %v5083_v45 = vld [vmem:[#allocation5 + $0x7d8] sm:$0xf0] }
 0x153   :  { %3304 = vmatpush.bf16.msra.mxu2 %v4774_v37  ;;  %v4742_v37 = vor.u32 %v5459_v11, %v4739_v13  ;;  %v5515_v11 = vld [vmem:[#allocation5 + $0x6e4] sm:$0xf]  ;;  %v4963_v13 = vld [vmem:[#allocation5 + $0x6e8] sm:$0xf0]  ;;  %v4891_v34 = vld [vmem:[#allocation5 + $0x658] sm:$0xf0] }
 0x154   :  { %3317 = vmatpush.bf16.msra.mxu3 %v4838_v40  ;;  %v4806_v40 = vor.u32 %v5475_v14, %v4803_v36  ;;  %v5531_v14 = vld [vmem:[#allocation5 + $0x764] sm:$0xf]  ;;  %v5027_v36 = vld [vmem:[#allocation5 + $0x768] sm:$0xf0]  ;;  %v5525_v60 = vld [vmem:[#allocation5 + $0x734] sm:$0xf] }
 0x155   :  { %3279 = vmatpush.bf16.msra.mxu0 %v4638_v30  ;;  %v5423_v30 = vld [vmem:[#allocation5 + $0x404] sm:$0xf]  ;;  %v5067_v63 = vld [vmem:[#allocation5 + $0x7b8] sm:$0xf0] }
 0x156   :  { %3292 = vmatpush.bf16.msra.mxu1 %v4702_v46  ;;  %v4606_v46 = vor.u32 %v5425_v19, %v4603_v22  ;;  %v4598_v61 = vor.u32 %v5423_v30, %v4595_v47  ;;  %v4966_v19 = vor.u32 %v5515_v11, %v4963_v13  ;;  %v5497_v22 = vld [vmem:[#allocation5 + $0x654] sm:$0xf]  ;;  %v4883_v47 = vld [vmem:[#allocation5 + $0x648] sm:$0xf0] }
 0x157   :  { %3305 = vmatpush.bf16.msra.mxu2 %v4766_v32  ;;  %v5439_v32 = vld [vmem:[#allocation5 + $0x484] sm:$0xf]  ;;  %v4894_v30 = vor.u32 %v5497_v22, %v4891_v34  ;;  %v4995_v13 = vld [vmem:[#allocation5 + $0x728] sm:$0xf0]  ;;  %v5489_v22 = vld [vmem:[#allocation5 + $0x614] sm:$0xf] }
 0x158   :  { %3318 = vmatpush.bf16.msra.mxu3 %v4830_v48  ;;  %v4659_v48 = vld [vmem:[#allocation5 + $0x488] sm:$0xf0]  ;;  %v4859_v34 = vld [vmem:[#allocation5 + $0x618] sm:$0xf0] }
 0x159   :  { %3280 = vmatpush.bf16.msra.mxu0 %v4630_v26  ;;  %v3054_v25 = vpop.f32.mrf.mxu2  ;;  %v4787_v26 = vld [vmem:[#allocation5 + $0x588] sm:$0xf0]  ;;  %v4662_v62 = vor.u32 %v5439_v32, %v4659_v48  ;;  %v5022_v32 = vor.u32 %v5529_v44, %v5019_v35  ;;  %v5086_v48 = vor.u32 %v5545_v57, %v5083_v45  ;;  %v4923_v44 = vld [vmem:[#allocation5 + $0x698] sm:$0xf0]  ;;  %v5521_v35 = vld [vmem:[#allocation5 + $0x714] sm:$0xf] }
 0x15a   :  { %3293 = vmatpush.bf16.msra.mxu1 %v4694_v27  ;;  %v5501_v27 = vld [vmem:[#allocation5 + $0x674] sm:$0xf]  ;;  %v3067_v52 = vpop.f32.mrf.mxu3  ;;  %v4987_v57 = vld [vmem:[#allocation5 + $0x718] sm:$0xf0] }
 0x15b   :  { %3306 = vmatpush.bf16.msra.mxu2 %v4758_v56  ;;  %v5517_v56 = vld [vmem:[#allocation5 + $0x6f4] sm:$0xf]  ;;  %v4910_v6 = vor.u32 %v5501_v27, %v4907_v51  ;;  %v4875_v27 = vld [vmem:[#allocation5 + $0x638] sm:$0xf0] }
 0x15c   :  { %3319 = vmatpush.bf16.msra.mxu3 %v4822_v58  ;;  %v4971_v58 = vld [vmem:[#allocation5 + $0x6f8] sm:$0xf0]  ;;  %v5537_v45 = vld [vmem:[#allocation5 + $0x794] sm:$0xf] }
 0x15d   :  { %3281 = vmatpush.bf16.msra.mxu0 %v4622_v3  ;;  %v4726_v3 = vor.u32 %v5455_v42, %v4723_v49  ;;  %v4974_v7 = vor.u32 %v5517_v56, %v4971_v58  ;;  %v5543_v42 = vld [vmem:[#allocation5 + $0x7c4] sm:$0xf]  ;;  %v5075_v49 = vld [vmem:[#allocation5 + $0x7c8] sm:$0xf0]  ;;  %v5509_v56 = vld [vmem:[#allocation5 + $0x6b4] sm:$0xf] }
 0x15e   :  { %3294 = vmatpush.bf16.msra.mxu1 %v4686_v4  ;;  %v4790_v4 = vor.u32 %v5471_v20, %v4787_v26  ;;  %v5493_v26 = vld [vmem:[#allocation5 + $0x634] sm:$0xf]  ;;  %v5078_v52 = vor.u32 %v5543_v42, %v5075_v49  ;;  %v4939_v58 = vld [vmem:[#allocation5 + $0x6b8] sm:$0xf0]  ;;  %v4979_v42 = vld [vmem:[#allocation5 + $0x708] sm:$0xf0] }
 0x15f   :  { %3307 = vmatpush.bf16.msra.mxu2 %v4750_v8  ;;  %v5499_v8 = vld [vmem:[#allocation5 + $0x664] sm:$0xf]  ;;  %v4878_v0 = vor.u32 %v5493_v26, %v4875_v27  ;;  %v4942_v1 = vor.u32 %v5509_v56, %v4939_v58  ;;  %v5558_v56 = vld [vmem:[%s5982_s6 + $0x38] sm:$0xff] }
 0x160   :  { %3320 = vmatpush.bf16.msra.mxu3 %v4814_v5  ;;  %v4899_v5 = vld [vmem:[#allocation5 + $0x668] sm:$0xf0]  ;;  %v5535_v49 = vld [vmem:[#allocation5 + $0x784] sm:$0xf] }
 0x161   :  { %3282 = vmatpush.bf16.msra.mxu0 %v4614_v18  ;;  %v5091_v18 = vld [vmem:[#allocation5 + $0x7e8] sm:$0xf0] }
 0x162   :  { %3295 = vmatpush.bf16.msra.mxu1 %v4678_v16  ;;  %v4902_v16 = vor.u32 %v5499_v8, %v4899_v5  ;;  %v5507_v5 = vld [vmem:[#allocation5 + $0x6a4] sm:$0xf] }
 0x163   :  { %3308 = vmatpush.bf16.msra.mxu2 %v4742_v37  ;;  %v5030_v37 = vor.u32 %v5531_v14, %v5027_v36  ;;  %v5539_v14 = vld [vmem:[#allocation5 + $0x7a4] sm:$0xf]  ;;  %v5059_v36 = vld [vmem:[#allocation5 + $0x7a8] sm:$0xf0] }
 0x164   :  { %3321 = vmatpush.bf16.msra.mxu3 %v4806_v40  ;;  %v5094_v40 = vor.u32 %v5547_v17, %v5091_v18  ;;  %v3027_v17 = vadd.f32 %v5885_v50, %v5879_v23  ;;  %v4862_v50 = vor.u32 %v5489_v22, %v4859_v34 }
 0x165   :  { %3283 = vmatpush.bf16.msra.mxu0 %v4606_v46  ;;  %v4958_v46 = vor.u32 %v5513_v41, %v4955_v43  ;;  %v5062_v41 = vor.u32 %v5539_v14, %v5059_v36  ;;  %v5505_v43 = vld [vmem:[#allocation5 + $0x694] sm:$0xf]  ;;  %v1682_v36 = vperm.slane %v5872_v21, 1 }
 0x166   :  { %3296 = vmatpush.bf16.msra.mxu1 %v4670_v31  ;;  %v5495_v31 = vld [vmem:[#allocation5 + $0x644] sm:$0xf]  ;;  %v3040_v23 = vadd.f32 %v5887_v55, %v3027_v17  ;;  %v5566_v21 = vld [vmem:[%s5982_s6 + $0x78] sm:$0xff] }
 0x167   :  { %3309 = vmatpush.bf16.msra.mxu2 %v4734_v24  ;;  %v4947_v24 = vld [vmem:[#allocation5 + $0x6c8] sm:$0xf0] }
 0x168   :  { %3322 = vmatpush.bf16.msra.mxu3 %v4798_v33  ;;  %v5011_v33 = vld [vmem:[#allocation5 + $0x748] sm:$0xf0]  ;;  %v3053_v55 = vadd.f32 %v5889_v12, %v3040_v23 }
 0x169   :  { %3284 = vmatpush.bf16.msra.mxu0 %v4598_v61  ;;  %v5897_v20 = vpop.f32.mrf.mxu0  ;;  %v5003_v61 = vld [vmem:[#allocation5 + $0x738] sm:$0xf0]  ;;  %v5557_v12 = vld [vmem:[%s5982_s6 + $0x30] sm:$0xff] }
 0x16a   :  { %3297 = vmatpush.bf16.msra.mxu1 %v4662_v62  ;;  %v5899_v25 = vpop.f32.mrf.mxu1  ;;  %v5541_v62 = vld [vmem:[#allocation5 + $0x7b4] sm:$0xf]  ;;  %v3066_v58 = vadd.f32 %v5891_v15, %v3053_v55 }
 0x16b   :  { %3310 = vmatpush.bf16.msra.mxu2 %v4726_v3  ;;  %v5491_v3 = vld [vmem:[#allocation5 + $0x624] sm:$0xf] }
 0x16c   :  { %3323 = vmatpush.bf16.msra.mxu3 %v4790_v4  ;;  %3285 = vmatmul.bf16.vlgmr.msra.gmra.mxu0 %v5828_v28  ;;  %v5511_v28 = vld [vmem:[#allocation5 + $0x6c4] sm:$0xf]  ;;  %v4867_v4 = vld [vmem:[#allocation5 + $0x628] sm:$0xf0] }
 0x16d   :  { %3329 = vmatpush.bf16.msrb.mxu0 %v4910_v6  ;;  %3298 = vmatmul.bf16.vlgmr.msra.gmra.mxu1 %v5832_v38  ;;  %v4886_v38 = vor.u32 %v5495_v31, %v4883_v47  ;;  %v5006_v6 = vor.u32 %v5525_v60, %v5003_v61  ;;  %v5487_v31 = vld [vmem:[#allocation5 + $0x604] sm:$0xf]  ;;  %v4851_v47 = vld [vmem:[#allocation5 + $0x608] sm:$0xf0]  ;;  %v3079_v60 = vadd.f32 %v5897_v20, %v3066_v58 }
 0x16e   :  { %3342 = vmatpush.bf16.msrb.mxu1 %v4974_v7  ;;  %3311 = vmatmul.bf16.vlgmr.msra.gmra.mxu2 %v5830_v29  ;;  %v5527_v29 = vld [vmem:[#allocation5 + $0x744] sm:$0xf]  ;;  %v5070_v7 = vor.u32 %v5541_v62, %v5067_v63  ;;  %v4854_v26 = vor.u32 %v5487_v31, %v4851_v47  ;;  %v5565_v31 = vld [vmem:[%s5982_s6 + $0x70] sm:$0xff] }
 0x16f   :  { %3355 = vmatpush.bf16.msrb.mxu2 %v5038_v9  ;;  %3324 = vmatmul.bf16.vlgmr.msra.gmra.mxu3 %v5834_v39  ;;  %v4950_v39 = vor.u32 %v5511_v28, %v4947_v24  ;;  %v5014_v51 = vor.u32 %v5527_v29, %v5011_v33  ;;  %v4931_v9 = vld [vmem:[#allocation5 + $0x6a8] sm:$0xf0]  ;;  %v5503_v28 = vld [vmem:[#allocation5 + $0x684] sm:$0xf]  ;;  %v3092_v15 = vadd.f32 %v5899_v25, %v3079_v60 }
 0x170   :  { %3368 = vmatpush.bf16.msrb.mxu3 %v5102_v10  ;;  %v5523_v10 = vld [vmem:[#allocation5 + $0x724] sm:$0xf]  ;;  %v4915_v24 = vld [vmem:[#allocation5 + $0x688] sm:$0xf0] }
 0x171   :  { %3330 = vmatpush.bf16.msrb.mxu0 %v4902_v16  ;;  %v5901_v8 = vpop.f32.mrf.mxu2  ;;  %v3080_v18 = vpop.f32.mrf.mxu0  ;;  %v4870_v16 = vor.u32 %v5491_v3, %v4867_v4  ;;  %v5519_v29 = vld [vmem:[#allocation5 + $0x704] sm:$0xf]  ;;  %v4918_v27 = vor.u32 %v5503_v28, %v4915_v24  ;;  %v5553_v4 = vld [vmem:[%s5982_s6 + $0x10] sm:$0xff]  ;;  %v5563_v28 = vld [vmem:[%s5982_s6 + $0x60] sm:$0xff] }
 0x172   :  { %3343 = vmatpush.bf16.msrb.mxu1 %v4966_v19  ;;  %v5903_v11 = vpop.f32.mrf.mxu3  ;;  %v4934_v19 = vor.u32 %v5507_v5, %v4931_v9  ;;  %v5556_v20 = vld [vmem:[%s5982_s6 + $0x28] sm:$0xff]  ;;  %v3105_v61 = vadd.f32 %v5901_v8, %v3092_v15  ;;  %v5562_v24 = vld [vmem:[%s5982_s6 + $0x58] sm:$0xff] }
 0x173   :  { %3356 = vmatpush.bf16.msrb.mxu2 %v5030_v37  ;;  %v3093_v37 = vpop.f32.mrf.mxu1  ;;  %v5552_v8 = vld [vmem:[%s5982_s6 + $0x8] sm:$0xff] }
 0x174   :  { %3369 = vmatpush.bf16.msrb.mxu3 %v5094_v40  ;;  %v4998_v40 = vor.u32 %v5523_v10, %v4995_v13  ;;  %v5564_v47 = vld [vmem:[%s5982_s6 + $0x68] sm:$0xff] }
 0x175   :  { %3331 = vmatpush.bf16.msrb.mxu0 %v4894_v30  ;;  %v5051_v30 = vld [vmem:[#allocation5 + $0x798] sm:$0xf0] }
 0x176   :  { %3344 = vmatpush.bf16.msrb.mxu1 %v4958_v46  ;;  %v4926_v46 = vor.u32 %v5505_v43, %v4923_v44 }
 0x177   :  { %3357 = vmatpush.bf16.msrb.mxu2 %v5022_v32  ;;  %v4990_v32 = vor.u32 %v5521_v35, %v4987_v57 }
 0x178   :  { %3370 = vmatpush.bf16.msrb.mxu3 %v5086_v48  ;;  %v5054_v48 = vor.u32 %v5537_v45, %v5051_v30 }
 0x179   :  { %3332 = vmatpush.bf16.msrb.mxu0 %v4886_v38  ;;  %v3106_v33 = vpop.f32.mrf.mxu2  ;;  %v5043_v38 = vld [vmem:[#allocation5 + $0x788] sm:$0xf0] }
 0x17a   :  { %3345 = vmatpush.bf16.msrb.mxu1 %v4950_v39  ;;  %v3119_v39 = vpop.f32.mrf.mxu3  ;;  %v5561_v33 = vld [vmem:[%s5982_s6 + $0x50] sm:$0xff] }
 0x17b   :  { %3358 = vmatpush.bf16.msrb.mxu2 %v5014_v51  ;;  %v4982_v51 = vor.u32 %v5519_v29, %v4979_v42 }
 0x17c   :  { %3371 = vmatpush.bf16.msrb.mxu3 %v5078_v52  ;;  %v5046_v52 = vor.u32 %v5535_v49, %v5043_v38  ;;  %v5560_v49 = vld [vmem:[%s5982_s6 + $0x48] sm:$0xff] }
 0x17d   :  { %3333 = vmatpush.bf16.msrb.mxu0 %v4878_v0 }
 0x17e   :  { %3346 = vmatpush.bf16.msrb.mxu1 %v4942_v1 }
 0x17f   :  { %3359 = vmatpush.bf16.msrb.mxu2 %v5006_v6 }
 0x180   :  { %3372 = vmatpush.bf16.msrb.mxu3 %v5070_v7 }
 0x181   :  { %3334 = vmatpush.bf16.msrb.mxu0 %v4870_v16 }
 0x182   :  { %3347 = vmatpush.bf16.msrb.mxu1 %v4934_v19 }
 0x183   :  { %3360 = vmatpush.bf16.msrb.mxu2 %v4998_v40 }
 0x184   :  { %3373 = vmatpush.bf16.msrb.mxu3 %v5062_v41 }
 0x185   :  { %3335 = vmatpush.bf16.msrb.mxu0 %v4862_v50 }
 0x186   :  { %3348 = vmatpush.bf16.msrb.mxu1 %v4926_v46 }
 0x187   :  { %3361 = vmatpush.bf16.msrb.mxu2 %v4990_v32 }
 0x188   :  { %3374 = vmatpush.bf16.msrb.mxu3 %v5054_v48 }
 0x189   :  { %3336 = vmatpush.bf16.msrb.mxu0 %v4854_v26  ;;  %v3130_v62 = vpop.f32.mrf.mxu0 }
 0x18a   :  { %3349 = vmatpush.bf16.msrb.mxu1 %v4918_v27  ;;  %v5559_v27 = vld [vmem:[%s5982_s6 + $0x40] sm:$0xff] }
 0x18b   :  { %3362 = vmatpush.bf16.msrb.mxu2 %v4982_v51 }
 0x18c   :  { %3375 = vmatpush.bf16.msrb.mxu3 %v5046_v52  ;;  %3337 = vmatmul.bf16.vlgmr.msrb.gmra.mxu0 %v5854_v53  ;;  %v5555_v53 = vld [vmem:[%s5982_s6 + $0x20] sm:$0xff] }
 0x18d   :  { %3517 = vmatpush.bf16.msra.mxu0 %v5558_v56  ;;  %3350 = vmatmul.bf16.vlgmr.msrb.gmra.mxu1 %v5858_v2  ;;  %v3143_v2 = vpop.f32.mrf.mxu1 }
 0x18e   :  { %3363 = vmatmul.bf16.vlgmr.msrb.gmra.mxu2 %v5856_v54  ;;  %v3118_v54 = vadd.f32 %v5903_v11, %v3105_v61  ;;  %v5551_v11 = vld [vmem:[%s5982_s6] sm:$0xff]  ;;  %3530 = vmatpush.bf16.msra.mxu1 %v5566_v21 }
 0x18f   :  { %3376 = vmatmul.bf16.vlgmr.msrb.gmra.mxu3 %v5860_v59  ;;  %v5554_v59 = vld [vmem:[%s5982_s6 + $0x18] sm:$0xff]  ;;  %s5662_s6 = smov [#allocation7]  }
 0x190   :  { %v3131_v63 = vadd.f32 %v3130_v62, %v3118_v54  ;;  %s3550_s21 = sshll.u32 %s5662_s6, 4  ;;  %s3551_s21 = int_to_ptr.vmem [resolvable:$true] %s3550_s21 }
 0x191   :  { %3518 = vmatpush.bf16.msra.mxu0 %v5557_v12  ;;  %v3156_v25 = vpop.f32.mrf.mxu2  ;;  %v3132_v3 = vpop.f32.mrf.mxu0  ;;  %3555 = dma.vmem_to_hbm [thread:$0]  %s3551_s21, 32, %s3553_s4, [#allocation4]  }
 0x192   :  { %v3169_v0 = vpop.f32.mrf.mxu3  ;;  %v3144_v1 = vadd.f32 %v3143_v2, %v3131_v63  ;;  %3531 = vmatpush.bf16.msra.mxu1 %v5565_v31 }
 0x194   :  { %v3157_v7 = vadd.f32 %v3156_v25, %v3144_v1 }
 0x195   :  { %3519 = vmatpush.bf16.msra.mxu0 %v5556_v20  ;;  %v3145_v6 = vpop.f32.mrf.mxu1 }
 0x196   :  { %v3170_v5 = vadd.f32 %v3169_v0, %v3157_v7  ;;  %3532 = vmatpush.bf16.msra.mxu1 %v5564_v47 }
 0x198   :  { %v3381_v13 = vmax.f32 %v3170_v5, 0.0 }
 0x199   :  { %3520 = vmatpush.bf16.msra.mxu0 %v5555_v53  ;;  %v3158_v9 = vpop.f32.mrf.mxu2 }
 0x19a   :  { %v3171_v10 = vpop.f32.mrf.mxu3  ;;  %v3383_v14 = vpack.c.bf16 %v3381_v13, %v3381_v13  ;;  %3533 = vmatpush.bf16.msra.mxu1 %v5563_v28 }
 0x19d   :  { %3521 = vmatpush.bf16.msra.mxu0 %v5554_v59 }
 0x19e   :  { %3534 = vmatpush.bf16.msra.mxu1 %v5562_v24 }
 0x1a1   :  { %3522 = vmatpush.bf16.msra.mxu0 %v5553_v4 }
 0x1a2   :  { %3535 = vmatpush.bf16.msra.mxu1 %v5561_v33 }
 0x1a5   :  { %3523 = vmatpush.bf16.msra.mxu0 %v5552_v8 }
 0x1a6   :  { %3536 = vmatpush.bf16.msra.mxu1 %v5560_v49 }
 0x1a9   :  { %3524 = vmatpush.bf16.msra.mxu0 %v5551_v11  ;;  %v3182_v17 = vpop.f32.mrf.mxu0  ;;  %v5575_v11 = vld [vmem:[%s5983_s7] ss:$0 sm:$0xff] }
 0x1aa   :  { %v3183_v18 = vadd.f32 %v3182_v17, %v1682_v36  ;;  %v3195_v16 = vpop.f32.mrf.mxu1  ;;  %3537 = vmatpush.bf16.msra.mxu1 %v5559_v27 }
 0x1ac   :  { %3525 = vmatmul.bf16.vlgmr.msra.gmra.mxu0 %v3383_v14  ;;  %v3196_v19 = vadd.f32 %v3195_v16, %v3183_v18 }
 0x1b1   :  { %v3208_v22 = vpop.f32.mrf.mxu2  ;;  %v3184_v40 = vpop.f32.mrf.mxu0 }
 0x1b2   :  { %v3209_v34 = vadd.f32 %v3208_v22, %v3196_v19  ;;  %v3221_v37 = vpop.f32.mrf.mxu3  ;;  %v3197_v43 = vpop.f32.mrf.mxu1 }
 0x1b4   :  { %v3222_v41 = vadd.f32 %v3221_v37, %v3209_v34 }
 0x1b9   :  { %v3210_v44 = vpop.f32.mrf.mxu2 }
 0x1ba   :  { %v3223_v35 = vpop.f32.mrf.mxu3 }
 0x1c9   :  { %v3234_v57 = vpop.f32.mrf.mxu0 }
 0x1ca   :  { %v3247_v45 = vpop.f32.mrf.mxu1  ;;  %v3235_v38 = vadd.f32 %v3234_v57, %v3222_v41 }
 0x1cc   :  { %v3248_v51 = vadd.f32 %v3247_v45, %v3235_v38 }
 0x1d1   :  { %v3260_v30 = vpop.f32.mrf.mxu2  ;;  %v3236_v50 = vpop.f32.mrf.mxu0 }
 0x1d2   :  { %v3273_v23 = vpop.f32.mrf.mxu3  ;;  %v3249_v46 = vpop.f32.mrf.mxu1  ;;  %v3261_v56 = vadd.f32 %v3260_v30, %v3248_v51 }
 0x1d4   :  { %v3274_v12 = vadd.f32 %v3273_v23, %v3261_v56 }
 0x1d9   :  { %v3262_v32 = vpop.f32.mrf.mxu2 }
 0x1da   :  { %v3275_v48 = vpop.f32.mrf.mxu3 }
 0x1e9   :  { %v3286_v29 = vpop.f32.mrf.mxu0 }
 0x1ea   :  { %v3299_v42 = vpop.f32.mrf.mxu1  ;;  %v3287_v15 = vadd.f32 %v3286_v29, %v3274_v12 }
 0x1ec   :  { %v3300_v20 = vadd.f32 %v3299_v42, %v3287_v15 }
 0x1f1   :  { %v3312_v39 = vpop.f32.mrf.mxu2  ;;  %v3288_v26 = vpop.f32.mrf.mxu0 }
 0x1f2   :  { %v3325_v55 = vpop.f32.mrf.mxu3  ;;  %v3301_v52 = vpop.f32.mrf.mxu1  ;;  %v3313_v61 = vadd.f32 %v3312_v39, %v3300_v20 }
 0x1f4   :  { %v3326_v62 = vadd.f32 %v3325_v55, %v3313_v61 }
 0x1f9   :  { %v3314_v58 = vpop.f32.mrf.mxu2 }
 0x1fa   :  { %v3327_v60 = vpop.f32.mrf.mxu3 }
 0x209   :  { %v3338_v53 = vpop.f32.mrf.mxu0 }
 0x20a   :  { %v3351_v2 = vpop.f32.mrf.mxu1  ;;  %v3339_v54 = vadd.f32 %v3338_v53, %v3326_v62 }
 0x20c   :  { %v3352_v63 = vadd.f32 %v3351_v2, %v3339_v54 }
 0x211   :  { %v3364_v59 = vpop.f32.mrf.mxu2  ;;  %v3340_v1 = vpop.f32.mrf.mxu0 }
 0x212   :  { %v3377_v25 = vpop.f32.mrf.mxu3  ;;  %v3365_v0 = vadd.f32 %v3364_v59, %v3352_v63  ;;  %v3353_v3 = vpop.f32.mrf.mxu1 }
 0x214   :  { %v3378_v4 = vadd.f32 %v3377_v25, %v3365_v0 }
 0x216   :  { %v3382_v6 = vmax.f32 %v3378_v4, 0.0 }
 0x218   :  { %v3384_v7 = vpack.c.bf16 %v3382_v6, %v3382_v6 }
 0x219   :  { %v3366_v8 = vpop.f32.mrf.mxu2 }
 0x21a   :  { %v3379_v5 = vpop.f32.mrf.mxu3  ;;  %3538 = vmatmul.bf16.vlgmr.msra.gmra.mxu1 %v3384_v7 }
 0x229   :  { %v3526_v9 = vpop.f32.mrf.mxu0 }
 0x22a   :  { %v3527_v13 = vadd.f32 %v5575_v11, %v3526_v9 }
 0x231   :  { %v3528_v10 = vpop.f32.mrf.mxu0 }
 0x297   :  { %v3539_v14 = vpop.f32.mrf.mxu1 }
 0x298   :  { %v3540_v36 = vadd.f32 %v3539_v14, %v3527_v13 }
 0x29a   :  { %5576 = vtanh.f32 %v3540_v36 }
 0x29f   :  { %v3541_v17 = vpop.f32.mrf.mxu1 }
 0x2a0   :  { %v5577_v18 = vpop.eup %5576 }
 0x2a1   :  { %3544 = vst [vmem:[%s5985_s9] sm:$0x3] %v5577_v18 }
 0x2a2   :  { %5654 = dma.done.wait [#allocation4], 32  }
 0x2a3   :  { %5655 = vsyncadd [#allocation4], 4294967264 }
 0x2a4   :  { %3564 = vsyncpa [#allocation3], 1 }
 0x2a5   :  { %3565 = vsyncpa [#allocation6], 1 }
 0x2a6   :  { %3566 = vsyncpa [#allocation4], 1 }

// kernel: chess_network_forward.2
= control target key start
LH: loop header
LB: loop body
LE: loop exit
PB: predicated region body
PF: predicated region fallthrough
CT: control target
= control target key end

     0   :  { %vm74_vm0 = vcmask 261120   ;;  %vm76_vm1 = vcmask 254976   ;;  %v9841_v0 = vmov 0.0   ;;  %vm133_vm2 = vcmask 97280   ;;  %s9843_s26 = smov 24   ;;  %s9846_s27 = smov 60   ;;  %s14188_s0 = inlined_call_operand.vmem [shape: f32[2,8,8,12], index: 0, kind: input, shape index: {}]   ;;  %s14189_s1 = inlined_call_operand.vmem [shape: bf16[108,32], index: 1, kind: input, shape index: {}]   ;;  %s14190_s2 = inlined_call_operand.vmem [shape: f32[1,32], index: 2, kind: input, shape index: {}]   ;;  %s14191_s3 = inlined_call_operand.vmem [shape: f32[1,32], index: 3, kind: input, shape index: {}]   ;;  %s14192_s4 = inlined_call_operand.vmem [shape: bf16[288,32], index: 4, kind: input, shape index: {}]   ;;  %s14193_s5 = inlined_call_operand.vmem [shape: f32[1,32], index: 5, kind: input, shape index: {}]   ;;  %s14194_s6 = inlined_call_operand.vmem [shape: f32[1,32], index: 6, kind: input, shape index: {}]   ;;  %s14195_s7 = inlined_call_operand.vmem [shape: bf16[288,32], index: 7, kind: input, shape index: {}]   ;;  %s14196_s8 = inlined_call_operand.vmem [shape: f32[1,32], index: 8, kind: input, shape index: {}]   ;;  %s14197_s9 = inlined_call_operand.vmem [shape: f32[1,32], index: 9, kind: input, shape index: {}]   ;;  %s14198_s10 = inlined_call_operand.vmem [shape: bf16[288,32], index: 10, kind: input, shape index: {}]   ;;  %s14199_s11 = inlined_call_operand.vmem [shape: f32[1,32], index: 11, kind: input, shape index: {}]   ;;  %s14200_s12 = inlined_call_operand.vmem [shape: f32[1,32], index: 12, kind: input, shape index: {}]   ;;  %s14201_s13 = inlined_call_operand.vmem [shape: bf16[288,32], index: 13, kind: input, shape index: {}]   ;;  %s14202_s14 = inlined_call_operand.vmem [shape: f32[1,32], index: 14, kind: input, shape index: {}]   ;;  %s14203_s15 = inlined_call_operand.vmem [shape: f32[1,32], index: 15, kind: input, shape index: {}]   ;;  %s14204_s16 = inlined_call_operand.vmem [shape: bf16[288,32], index: 16, kind: input, shape index: {}]   ;;  %s14205_s19 = inlined_call_operand.vmem [shape: bf16[288,32], index: 19, kind: input, shape index: {}]   ;;  %s14206_s17 = inlined_call_operand.vmem [shape: f32[1,32], index: 17, kind: input, shape index: {}]   ;;  %s14207_s18 = inlined_call_operand.vmem [shape: f32[1,32], index: 18, kind: input, shape index: {}]   ;;  %s14208_s20 = inlined_call_operand.vmem [shape: f32[1,32], index: 20, kind: input, shape index: {}]   ;;  %s14209_s21 = inlined_call_operand.vmem [shape: f32[1,32], index: 21, kind: input, shape index: {}]   ;;  %s14210_s22 = inlined_call_operand.vmem [shape: f32[2,8,8,32], index: 22, kind: output, shape index: {0}]   ;;  %s14211_s23 = inlined_call_operand.vmem [shape: f32[2,8,8,32], index: 23, kind: output, shape index: {1}]  }
   0x1   :  { %14259 = sst [smem:[#allocation9_spill]] %s14188_s0  ;;  %84 = vst.msk [vmem:[#allocation2 + $0x40] sm:$0xff] %vm74_vm0, %v9841_v0  ;;  %s9848_s28 = smov 84   ;;  %vm823_vm3 = vcmask 195584   ;;  %vm840_vm4 = vcmask 293888   ;;  %vm857_vm5 = vcmask 392192  }
   0x2   :  { %14260 = sst [smem:[#allocation10_spill]] %s14189_s1  ;;  %85 = vst.msk [vmem:[#allocation2 + $0x48] sm:$0x3] %vm76_vm1, %v9841_v0  ;;  %s9842_s1 = smov 12   ;;  %vm1030_vm6 = vcmask 1045504   ;;  %vm874_vm7 = vcmask 490496  }
   0x3   :  { %14261 = sst [smem:[#allocation11_spill]] %s14190_s2  ;;  %86 = vst.msk [vmem:[#allocation2 + $0x50] sm:$0xff] %vm74_vm0, %v9841_v0  ;;  %s9849_s29 = smov 96   ;;  %vm891_vm8 = vcmask 588800   ;;  %vm908_vm9 = vcmask 687104   ;;  %vm925_vm10 = vcmask 785408  }
   0x4   :  { %14262 = sst [smem:[#allocation12_spill]] %s14191_s3  ;;  %87 = vst.msk [vmem:[#allocation2 + $0x58] sm:$0x3] %vm76_vm1, %v9841_v0  ;;  %vm1005_vm11 = vcmask 883712   ;;  %s9850_s3 = smov 64   ;;  %vm1699_vm12 = vcmask 523264  }
   0x5   :  { %14263 = sst [smem:[#allocation13_spill]] %s14192_s4  ;;  %75 = vst.msk [vmem:[#allocation2] sm:$0xff] %vm74_vm0, %v9841_v0  ;;  %s9851_s0 = smov 32  }
   0x6   :  { %14264 = sst [smem:[#allocation14_spill]] %s14193_s5  ;;  %77 = vst.msk [vmem:[#allocation2 + $0x8] sm:$0x3] %vm76_vm1, %v9841_v0 }
   0x7   :  { %14265 = sst [smem:[#allocation15_spill]] %s14194_s6  ;;  %78 = vst.msk [vmem:[#allocation2 + $0x10] sm:$0xff] %vm74_vm0, %v9841_v0  ;;  %s9845_s6 = smov 48  }
   0x8   :  { %14266 = sst [smem:[#allocation16_spill]] %s14195_s7  ;;  %79 = vst.msk [vmem:[#allocation2 + $0x18] sm:$0x3] %vm76_vm1, %v9841_v0  ;;  %s9847_s7 = smov 72  }
   0x9   :  { %s14267_s24 = sld [smem:[#allocation9_spill]]  ;;  %80 = vst.msk [vmem:[#allocation2 + $0x20] sm:$0xff] %vm74_vm0, %v9841_v0 }
   0xa   :  { %81 = vst.msk [vmem:[#allocation2 + $0x28] sm:$0x3] %vm76_vm1, %v9841_v0  ;;  %s14273_s4 = sld [smem:[#allocation10_spill]] }
   0xb   :  { %82 = vst.msk [vmem:[#allocation2 + $0x30] sm:$0xff] %vm74_vm0, %v9841_v0  ;;  %s14280_s5 = sld [smem:[#allocation11_spill]] }
   0xc   :  { %83 = vst.msk [vmem:[#allocation2 + $0x38] sm:$0x3] %vm76_vm1, %v9841_v0  ;;  %s14281_s2 = sld [smem:[#allocation12_spill]] }
   0xd   :  { %88 = vst.msk [vmem:[#allocation2 + $0x60] sm:$0xff] %vm74_vm0, %v9841_v0  ;;  %v166_v14 = vld [vmem:[#allocation2 + $0x1] sm:$0xff]  ;;  %s14287_s30 = sld [smem:[#allocation14_spill]] }
   0xe   :  { %89 = vst.msk [vmem:[#allocation2 + $0x68] sm:$0x3] %vm76_vm1, %v9841_v0  ;;  %v182_v43 = vld [vmem:[#allocation2 + $0x2] sm:$0xff] }
   0xf   :  { %v119_v1 = vld [vmem:[%s14267_s24 + $0x18] sm:$0xff]  ;;  %v120_v2 = vld [vmem:[%s14267_s24 + $0x20] sm:$0xff]  ;;  %90 = vst.msk [vmem:[#allocation2 + $0x70] sm:$0xff] %vm74_vm0, %v9841_v0  ;;  %v121_v7 = vld [vmem:[%s14267_s24 + $0x28] sm:$0xff] }
  0x10   :  { %137 = vst.msk [vmem:[#allocation2 + $0x41] sm:$0xff] %vm133_vm2, %v119_v1  ;;  %v116_v6 = vld [vmem:[%s14267_s24] sm:$0xff]  ;;  %v122_v8 = vld [vmem:[%s14267_s24 + $0x30] sm:$0xff]  ;;  %v117_v9 = vld [vmem:[%s14267_s24 + $0x8] sm:$0xff] }
  0x11   :  { %138 = vst.msk [vmem:[#allocation2 + $0x51] sm:$0xff] %vm133_vm2, %v120_v2  ;;  %v118_v10 = vld [vmem:[%s14267_s24 + $0x10] sm:$0xff]  ;;  %v124_v11 = vld [vmem:[%s14267_s24 + $0x40] sm:$0xff]  ;;  %v129_v12 = vld [vmem:[%s14267_s24 + $0x68] sm:$0xff] }
  0x12   :  { %91 = vst.msk [vmem:[#allocation2 + $0x78] sm:$0x3] %vm76_vm1, %v9841_v0  ;;  %v130_v13 = vld [vmem:[%s14267_s24 + $0x70] sm:$0xff]  ;;  %v127_v15 = vld [vmem:[%s14267_s24 + $0x58] sm:$0xff]  ;;  %v128_v16 = vld [vmem:[%s14267_s24 + $0x60] sm:$0xff] }
  0x13   :  { %92 = vst.msk [vmem:[#allocation2 + $0x80] sm:$0xff] %vm74_vm0, %v9841_v0  ;;  %v125_v18 = vld [vmem:[%s14267_s24 + $0x48] sm:$0xff]  ;;  %v126_v21 = vld [vmem:[%s14267_s24 + $0x50] sm:$0xff]  ;;  %v123_v32 = vld [vmem:[%s14267_s24 + $0x38] sm:$0xff] }
  0x14   :  { %93 = vst.msk [vmem:[#allocation2 + $0x88] sm:$0x3] %vm76_vm1, %v9841_v0  ;;  %v131_v54 = vld [vmem:[%s14267_s24 + $0x78] sm:$0xff]  ;;  %s9844_s24 = smov 36  }
  0x15   :  { %94 = vst.msk [vmem:[#allocation2 + $0x90] sm:$0xff] %vm74_vm0, %v9841_v0 }
  0x16   :  { %95 = vst.msk [vmem:[#allocation2 + $0x98] sm:$0x3] %vm76_vm1, %v9841_v0 }
  0x17   :  { %v9989_v3 = vld [vmem:[#allocation2 + $0x41] sm:$0xff]  ;;  %96 = vst.msk [vmem:[#allocation2 + $0xa0] sm:$0xff] %vm74_vm0, %v9841_v0 }
  0x18   :  { %v9992_v4 = vld [vmem:[#allocation2 + $0x51] sm:$0xff]  ;;  %97 = vst.msk [vmem:[#allocation2 + $0xa8] sm:$0x3] %vm76_vm1, %v9841_v0  ;;  %v10132_v39 = vld [vmem:[#allocation2 + $0x42] sm:$0xff] }
  0x19   :  { %v9997_v5 = vpack.i.bf16 %v9992_v4, %v9989_v3  ;;  %98 = vst.msk [vmem:[#allocation2 + $0xb0] sm:$0xff] %vm74_vm0, %v9841_v0  ;;  %v10134_v40 = vld [vmem:[#allocation2 + $0x52] sm:$0xff] }
  0x1a   :  { %99 = vst.msk [vmem:[#allocation2 + $0xb8] sm:$0x3] %vm76_vm1, %v9841_v0  ;;  %v10144_v42 = vpack.i.bf16 %v10134_v40, %v10132_v39 }
  0x1b   :  { %8076 = vrot.lane.b32.xlu1 %v9997_v5, %s9842_s1  ;;  %100 = vst.msk [vmem:[#allocation2 + $0xc0] sm:$0xff] %vm74_vm0, %v9841_v0 }
  0x1c   :  { %101 = vst.msk [vmem:[#allocation2 + $0xc8] sm:$0x3] %vm76_vm1, %v9841_v0 }
  0x1d   :  { %102 = vst.msk [vmem:[#allocation2 + $0xd0] sm:$0xff] %vm74_vm0, %v9841_v0 }
  0x1e   :  { %103 = vst.msk [vmem:[#allocation2 + $0xd8] sm:$0x3] %vm76_vm1, %v9841_v0 }
  0x1f   :  { %104 = vst.msk [vmem:[#allocation2 + $0xe0] sm:$0xff] %vm74_vm0, %v9841_v0  ;;  %v174_v24 = vld [vmem:[#allocation2 + $0xa1] sm:$0xff] }
  0x20   :  { %105 = vst.msk [vmem:[#allocation2 + $0xe8] sm:$0x3] %vm76_vm1, %v9841_v0  ;;  %v190_v55 = vld [vmem:[#allocation2 + $0xa2] sm:$0xff] }
  0x21   :  { %106 = vst.msk [vmem:[#allocation2 + $0xf0] sm:$0xff] %vm74_vm0, %v9841_v0 }
  0x22   :  { %107 = vst.msk [vmem:[#allocation2 + $0xf8] sm:$0x3] %vm76_vm1, %v9841_v0 }
  0x23   :  { %108 = vst.msk [vmem:[#allocation2 + $0x100] sm:$0xff] %vm74_vm0, %v9841_v0 }
  0x24   :  { %109 = vst.msk [vmem:[#allocation2 + $0x108] sm:$0x3] %vm76_vm1, %v9841_v0 }
  0x25   :  { %110 = vst.msk [vmem:[#allocation2 + $0x110] sm:$0xff] %vm74_vm0, %v9841_v0 }
  0x26   :  { %111 = vst.msk [vmem:[#allocation2 + $0x118] sm:$0x3] %vm76_vm1, %v9841_v0 }
  0x27   :  { %112 = vst.msk [vmem:[#allocation2 + $0x120] sm:$0xff] %vm74_vm0, %v9841_v0 }
  0x28   :  { %113 = vst.msk [vmem:[#allocation2 + $0x128] sm:$0x3] %vm76_vm1, %v9841_v0 }
  0x29   :  { %114 = vst.msk [vmem:[#allocation2 + $0x130] sm:$0xff] %vm74_vm0, %v9841_v0 }
  0x2a   :  { %115 = vst.msk [vmem:[#allocation2 + $0x138] sm:$0x3] %vm76_vm1, %v9841_v0 }
  0x2b   :  { %134 = vst.msk [vmem:[#allocation2 + $0x11] sm:$0xff] %vm133_vm2, %v116_v6 }
  0x2c   :  { %139 = vst.msk [vmem:[#allocation2 + $0x61] sm:$0xff] %vm133_vm2, %v121_v7 }
  0x2d   :  { %140 = vst.msk [vmem:[#allocation2 + $0x71] sm:$0xff] %vm133_vm2, %v122_v8 }
  0x2e   :  { %135 = vst.msk [vmem:[#allocation2 + $0x21] sm:$0xff] %vm133_vm2, %v117_v9 }
  0x2f   :  { %136 = vst.msk [vmem:[#allocation2 + $0x31] sm:$0xff] %vm133_vm2, %v118_v10 }
  0x30   :  { %142 = vst.msk [vmem:[#allocation2 + $0xb1] sm:$0xff] %vm133_vm2, %v124_v11  ;;  %v10225_v11 = vld [vmem:[#allocation2 + $0x40] sm:$0xff] }
  0x31   :  { %147 = vst.msk [vmem:[#allocation2 + $0x101] sm:$0xff] %vm133_vm2, %v129_v12  ;;  %v10229_v12 = vld [vmem:[#allocation2 + $0x50] sm:$0xff] }
  0x32   :  { %v10067_v17 = vld [vmem:[#allocation2 + $0x11] sm:$0xff]  ;;  %148 = vst.msk [vmem:[#allocation2 + $0x111] sm:$0xff] %vm133_vm2, %v130_v13 }
  0x33   :  { %v8065_v19 = vpack.i.bf16 %v10067_v17, %v166_v14  ;;  %v10074_v20 = vld [vmem:[#allocation2 + $0x61] sm:$0xff]  ;;  %145 = vst.msk [vmem:[#allocation2 + $0xe1] sm:$0xff] %vm133_vm2, %v127_v15  ;;  %v10146_v44 = vld [vmem:[#allocation2 + $0x12] sm:$0xff] }
  0x34   :  { %v10080_v22 = vld [vmem:[#allocation2 + $0x71] sm:$0xff]  ;;  %146 = vst.msk [vmem:[#allocation2 + $0xf1] sm:$0xff] %vm133_vm2, %v128_v16  ;;  %v8105_v47 = vpack.i.bf16 %v10146_v44, %v182_v43  ;;  %v10170_v52 = vld [vmem:[#allocation2 + $0x62] sm:$0xff] }
  0x35   :  { %8066 = vrot.lane.b32.xlu0 %v8065_v19, %s9842_s1  ;;  %v10086_v23 = vpack.i.bf16 %v10080_v22, %v10074_v20  ;;  %143 = vst.msk [vmem:[#allocation2 + $0xc1] sm:$0xff] %vm133_vm2, %v125_v18  ;;  %v10089_v25 = vld [vmem:[#allocation2 + $0x21] sm:$0xff]  ;;  %v10172_v53 = vld [vmem:[#allocation2 + $0x72] sm:$0xff] }
  0x36   :  { %v10091_v26 = vld [vmem:[#allocation2 + $0x31] sm:$0xff]  ;;  %144 = vst.msk [vmem:[#allocation2 + $0xd1] sm:$0xff] %vm133_vm2, %v126_v21  ;;  %v10150_v45 = vld [vmem:[#allocation2 + $0x22] sm:$0xff]  ;;  %v10184_v57 = vpack.i.bf16 %v10172_v53, %v10170_v52 }
  0x37   :  { %8081 = vrot.lane.b32.xlu1 %v10086_v23, %s9842_s1  ;;  %v10096_v27 = vld [vmem:[#allocation2 + $0xb1] sm:$0xff]  ;;  %v10103_v30 = vpack.i.bf16 %v10091_v26, %v10089_v25  ;;  %141 = vst.msk [vmem:[#allocation2 + $0x81] sm:$0xff] %vm133_vm2, %v123_v32  ;;  %v10190_v59 = vld [vmem:[#allocation2 + $0x20] sm:$0xff] }
  0x38   :  { %v8085_v28 = vpack.i.bf16 %v10096_v27, %v174_v24  ;;  %v10099_v29 = vld [vmem:[#allocation2 + $0x101] sm:$0xff]  ;;  %v10152_v46 = vld [vmem:[#allocation2 + $0x32] sm:$0xff]  ;;  %149 = vst.msk [vmem:[#allocation2 + $0x121] sm:$0xff] %vm133_vm2, %v131_v54  ;;  %v8190_v54 = vpack.i.bf16 %v9989_v3, %v10091_v26  ;;  %v8195_v26 = vpack.i.bf16 %v10074_v20, %v9992_v4  ;;  %v8235_v4 = vpack.i.bf16 %v10170_v52, %v10134_v40 }
  0x39   :  { %v10105_v31 = vld [vmem:[#allocation2 + $0x111] sm:$0xff]  ;;  %v10163_v50 = vpack.i.bf16 %v10152_v46, %v10150_v45  ;;  %v10202_v0 = vld [vmem:[#allocation2 + $0x102] sm:$0xff]  ;;  %v8225_v20 = vpack.i.bf16 %v10150_v45, %v10146_v44 }
  0x3a   :  { %8086 = vrot.lane.b32.xlu2 %v8085_v28, %s9842_s1  ;;  %v10113_v33 = vpack.i.bf16 %v10105_v31, %v10099_v29  ;;  %v10122_v36 = vld [vmem:[#allocation2 + $0xe1] sm:$0xff]  ;;  %v10180_v56 = vld [vmem:[#allocation2 + $0xb2] sm:$0xff] }
  0x3b   :  { %v10124_v37 = vld [vmem:[#allocation2 + $0xf1] sm:$0xff]  ;;  %v8125_v60 = vpack.i.bf16 %v10180_v56, %v190_v55  ;;  %v10197_v62 = vld [vmem:[#allocation2 + $0xe2] sm:$0xff] }
  0x3c   :  { %v10116_v34 = vld [vmem:[#allocation2 + $0xc1] sm:$0xff]  ;;  %v10138_v41 = vpack.i.bf16 %v10124_v37, %v10122_v36  ;;  %v10188_v58 = vld [vmem:[#allocation2 + $0x10] sm:$0xff] }
  0x3d   :  { %8071 = vrot.lane.b32.xlu0 %v10103_v30, %s9842_s1  ;;  %v10120_v35 = vld [vmem:[#allocation2 + $0xd1] sm:$0xff]  ;;  %v10157_v48 = vld [vmem:[#allocation2 + $0xc2] sm:$0xff]  ;;  %v8145_v61 = vpack.i.bf16 %v10190_v59, %v10188_v58 }
  0x3e   :  { %v10128_v38 = vpack.i.bf16 %v10120_v35, %v10116_v34  ;;  %v10159_v49 = vld [vmem:[#allocation2 + $0xd2] sm:$0xff]  ;;  %v10213_v7 = vld [vmem:[#allocation2 + $0x80] sm:$0xff] }
  0x3f   :  { %8101 = vrot.lane.b32.xlu1 %v10113_v33, %s9842_s1  ;;  %v10168_v51 = vpack.i.bf16 %v10159_v49, %v10157_v48  ;;  %v10199_v63 = vld [vmem:[#allocation2 + $0xf2] sm:$0xff]  ;;  %v10231_v13 = vld [vmem:[#allocation2 + $0x60] sm:$0xff] }
  0x40   :  { %v10204_v1 = vld [vmem:[#allocation2 + $0x112] sm:$0xff]  ;;  %v10208_v2 = vpack.i.bf16 %v10199_v63, %v10197_v62  ;;  %v10238_v16 = vld [vmem:[#allocation2 + $0x100] sm:$0xff]  ;;  %v8155_v18 = vpack.i.bf16 %v10231_v13, %v10229_v12  ;;  %v8255_v40 = vpack.i.bf16 %v10202_v0, %v10199_v63 }
  0x41   :  { %v10211_v6 = vld [vmem:[#allocation2 + $0x70] sm:$0xff]  ;;  %v10217_v8 = vpack.i.bf16 %v10204_v1, %v10202_v0  ;;  %v10247_v24 = vld [vmem:[#allocation2 + $0xc0] sm:$0xff] }
  0x42   :  { %8091 = vrot.lane.b32.xlu2 %v10128_v38, %s9842_s1  ;;  %v8160_v9 = vpack.i.bf16 %v10213_v7, %v10211_v6  ;;  %v10223_v10 = vld [vmem:[#allocation2 + $0x30] sm:$0xff]  ;;  %v10252_v32 = vld [vmem:[#allocation2 + $0xe0] sm:$0xff] }
  0x43   :  { %v8150_v14 = vpack.i.bf16 %v10225_v11, %v10223_v10  ;;  %v10236_v15 = vld [vmem:[#allocation2 + $0xf0] sm:$0xff]  ;;  %v10274_v3 = vld [vmem:[#allocation2 + $0x81] sm:$0xff] }
  0x44   :  { %v8175_v19 = vpack.i.bf16 %v10238_v16, %v10236_v15  ;;  %v10245_v21 = vld [vmem:[#allocation2 + $0xb0] sm:$0xff] }
  0x45   :  { %8096 = vrot.lane.b32.xlu0 %v10138_v41, %s9842_s1  ;;  %v10250_v28 = vld [vmem:[#allocation2 + $0xd0] sm:$0xff]  ;;  %v8165_v43 = vpack.i.bf16 %v10247_v24, %v10245_v21 }
  0x46   :  { %v10262_v55 = vld [vmem:[#allocation2 + $0x110] sm:$0xff]  ;;  %v8285_v63 = vpack.i.bf16 %v10250_v28, %v10247_v24 }
  0x47   :  { %8116 = vrot.lane.b32.xlu1 %v10144_v42, %s9843_s26  ;;  %v254_v44 = vld [vmem:[#allocation2 + $0x90] sm:$0xff] }
  0x4a   :  { %8106 = vrot.lane.b32.xlu2 %v8105_v47, %s9843_s26  ;;  %v8170_v47 = vpack.i.bf16 %v10252_v32, %v10250_v28 }
  0x4d   :  { %8111 = vrot.lane.b32.xlu0 %v10163_v50, %s9843_s26 }
  0x4f   :  { %8131 = vrot.lane.b32.xlu1 %v10168_v51, %s9843_s26 }
  0x52   :  { %8121 = vrot.lane.b32.xlu2 %v10184_v57, %s9843_s26 }
  0x55   :  { %8126 = vrot.lane.b32.xlu0 %v8125_v60, %s9843_s26  ;;  %v10264_v60 = vld [vmem:[#allocation2 + $0x120] sm:$0xff] }
  0x57   :  { %8146 = vrot.lane.b32.xlu1 %v8145_v61, %s9844_s24  ;;  %v8180_v61 = vpack.i.bf16 %v10264_v60, %v10262_v55 }
  0x5a   :  { %8136 = vrot.lane.b32.xlu2 %v10208_v2, %s9843_s26 }
  0x5d   :  { %8141 = vrot.lane.b32.xlu0 %v10217_v8, %s9843_s26 }
  0x5f   :  { %8161 = vrot.lane.b32.xlu1 %v8160_v9, %s9844_s24  ;;  %v8185_v9 = vpack.i.bf16 %v10089_v25, %v10067_v17  ;;  %v8210_v25 = vpack.i.bf16 %v10122_v36, %v10120_v35  ;;  %v8245_v35 = vpack.i.bf16 %v10157_v48, %v10180_v56  ;;  %v8265_v36 = vpack.i.bf16 %v10223_v10, %v10190_v59 }
  0x60   :  { %v8295_v56 = vpack.i.bf16 %v10262_v55, %v10238_v16 }
  0x62   :  { %8151 = vrot.lane.b32.xlu2 %v8150_v14, %s9844_s24  ;;  %v8205_v14 = vpack.i.bf16 %v10116_v34, %v10096_v27  ;;  %v8215_v27 = vpack.i.bf16 %v10099_v29, %v10124_v37  ;;  %v10296_v34 = vld [vmem:[#allocation2 + $0x82] sm:$0xff] }
  0x63   :  { %v8240_v29 = vpack.i.bf16 %v10296_v34, %v10172_v53  ;;  %v8275_v53 = vpack.i.bf16 %v10211_v6, %v10231_v13 }
  0x65   :  { %8156 = vrot.lane.b32.xlu0 %v8155_v18, %s9844_s24  ;;  %v10278_v18 = vld [vmem:[#allocation2 + $0x121] sm:$0xff] }
  0x66   :  { %v8220_v17 = vpack.i.bf16 %v10278_v18, %v10105_v31  ;;  %v8250_v31 = vpack.i.bf16 %v10197_v62, %v10159_v49  ;;  %v8270_v49 = vpack.i.bf16 %v10229_v12, %v10225_v11 }
  0x67   :  { %8176 = vrot.lane.b32.xlu1 %v8175_v19, %s9844_s24  ;;  %v8200_v19 = vpack.i.bf16 %v10274_v3, %v10080_v22  ;;  %v8230_v22 = vpack.i.bf16 %v10132_v39, %v10152_v46  ;;  %v10306_v39 = vld [vmem:[#allocation2 + $0x122] sm:$0xff]  ;;  %v8280_v46 = vpack.i.bf16 %v254_v44, %v10213_v7 }
  0x68   :  { %v8260_v45 = vpack.i.bf16 %v10306_v39, %v10204_v1  ;;  %v8290_v1 = vpack.i.bf16 %v10236_v15, %v10252_v32 }
  0x6a   :  { %8166 = vrot.lane.b32.xlu2 %v8165_v43, %s9844_s24  ;;  %v262_v43 = vld [vmem:[#allocation2 + $0x130] sm:$0xff] }
  0x6d   :  { %8171 = vrot.lane.b32.xlu0 %v8170_v47, %s9844_s24 }
  0x6f   :  { %8191 = vrot.lane.b32.xlu1 %v8190_v54, %s9845_s6  ;;  %v8300_v54 = vpack.i.bf16 %v262_v43, %v10264_v60 }
  0x72   :  { %8181 = vrot.lane.b32.xlu2 %v8180_v61, %s9844_s24 }
  0x75   :  { %8186 = vrot.lane.b32.xlu0 %v8185_v9, %s9845_s6 }
  0x77   :  { %8206 = vrot.lane.b32.xlu1 %v8205_v14, %s9845_s6 }
  0x7a   :  { %8196 = vrot.lane.b32.xlu2 %v8195_v26, %s9845_s6  ;;  %v270_v26 = vld [vmem:[#allocation2 + $0x91] sm:$0xff] }
  0x7b   :  { %v8320_v60 = vpack.i.bf16 %v270_v26, %v10274_v3 }
  0x7d   :  { %8201 = vrot.lane.b32.xlu0 %v8200_v19, %s9845_s6 }
  0x7f   :  { %8221 = vrot.lane.b32.xlu1 %v8220_v17, %s9845_s6  ;;  %v278_v17 = vld [vmem:[#allocation2 + $0x131] sm:$0xff] }
  0x82   :  { %8211 = vrot.lane.b32.xlu2 %v8210_v25, %s9845_s6 }
  0x85   :  { %8216 = vrot.lane.b32.xlu0 %v8215_v27, %s9845_s6 }
  0x87   :  { %8236 = vrot.lane.b32.xlu1 %v8235_v4, %s9846_s27 }
  0x8a   :  { %8226 = vrot.lane.b32.xlu2 %v8225_v20, %s9846_s27 }
  0x8d   :  { %8231 = vrot.lane.b32.xlu0 %v8230_v22, %s9846_s27  ;;  %v10317_v52 = vpop.permute.xlu1 %8076  ;;  %v158_v22 = vld [vmem:[#allocation2 + $0xa0] sm:$0xff] }
  0x8f   :  { %8251 = vrot.lane.b32.xlu1 %v8250_v31, %s9846_s27 }
  0x92   :  { %8241 = vrot.lane.b32.xlu2 %v8240_v29, %s9846_s27 }
  0x94   :  { %v10304_v37 = vpop.permute.xlu2 %8086 }
  0x95   :  { %8246 = vrot.lane.b32.xlu0 %v8245_v35, %s9846_s27  ;;  %v8088_v3 = vunpack.i.l.bf16 %v10304_v37 }
  0x97   :  { %8266 = vrot.lane.b32.xlu1 %v8265_v36, %s9847_s7  ;;  %v815_v36 = vsel %vm133_vm2, %v158_v22, %v8088_v3 }
  0x9a   :  { %8256 = vrot.lane.b32.xlu2 %v8255_v40, %s9846_s27 }
  0x9c   :  { %v10313_v48 = vpop.permute.xlu2 %8091 }
  0x9d   :  { %8261 = vrot.lane.b32.xlu0 %v8260_v45, %s9846_s27  ;;  %v10373_v45 = vld [vmem:[#allocation2 + $0x92] sm:$0xff]  ;;  %s14282_s27 = sld [smem:[#allocation13_spill]] }
  0x9e   :  { %14269 = vst [vmem:[#allocation4_spill] sm:$0xff] %v10373_v45 }
  0x9f   :  { %8281 = vrot.lane.b32.xlu1 %v8280_v46, %s9847_s7 }
  0xa2   :  { %8271 = vrot.lane.b32.xlu2 %v8270_v49, %s9847_s7 }
  0xa4   :  { %v10323_v62 = vpop.permute.xlu2 %8106 }
  0xa5   :  { %8276 = vrot.lane.b32.xlu0 %v8275_v53, %s9847_s7 }
  0xa7   :  { %v10327_v0 = vpop.permute.xlu0 %8066  ;;  %8296 = vrot.lane.b32.xlu1 %v8295_v56, %s9847_s7  ;;  %v294_v56 = vld [vmem:[#allocation2 + $0x132] sm:$0xff] }
  0xa9   :  { %v10331_v7 = vpop.permute.xlu1 %8081 }
  0xaa   :  { %8286 = vrot.lane.b32.xlu2 %v8285_v63, %s9847_s7 }
  0xac   :  { %v10333_v47 = vpop.permute.xlu2 %8121 }
  0xad   :  { %14268 = vst [vmem:[#allocation3_spill] sm:$0xff] %v10333_v47  ;;  %8291 = vrot.lane.b32.xlu0 %v8290_v1, %s9847_s7  ;;  %v8093_v1 = vunpack.i.l.bf16 %v10313_v48 }
  0xaf   :  { %v10336_v61 = vpop.permute.xlu0 %8071  ;;  %8311 = vrot.lane.b32.xlu1 %v9997_v5, %s9848_s28  ;;  %v8340_v5 = vpack.i.bf16 %v278_v17, %v10278_v18 }
  0xb1   :  { %v10339_v9 = vpop.permute.xlu1 %8101 }
  0xb2   :  { %8301 = vrot.lane.b32.xlu2 %v8300_v54, %s9847_s7 }
  0xb4   :  { %v10341_v14 = vpop.permute.xlu2 %8136 }
  0xb5   :  { %8306 = vrot.lane.b32.xlu0 %v10103_v30, %s9848_s28 }
  0xb7   :  { %v10344_v19 = vpop.permute.xlu0 %8096  ;;  %8326 = vrot.lane.b32.xlu1 %v10128_v38, %s9848_s28  ;;  %v8089_v38 = vunpack.i.h.bf16 %v10304_v37 }
  0xb9   :  { %v10348_v25 = vpop.permute.xlu1 %8116 }
  0xba   :  { %8316 = vrot.lane.b32.xlu2 %v10086_v23, %s9848_s28 }
  0xbc   :  { %v10352_v27 = vpop.permute.xlu2 %8151 }
  0xbd   :  { %8321 = vrot.lane.b32.xlu0 %v8320_v60, %s9848_s28 }
  0xbf   :  { %v10354_v4 = vpop.permute.xlu0 %8111  ;;  %8341 = vrot.lane.b32.xlu1 %v8340_v5, %s9848_s28  ;;  %v817_v5 = vsel %vm133_vm2, %v10247_v24, %v8093_v1 }
  0xc1   :  { %v8132_v30 = vpop.permute.xlu1 %8131 }
  0xc2   :  { %8331 = vrot.lane.b32.xlu2 %v10138_v41, %s9848_s28  ;;  %v816_v41 = vsel %vm133_vm2, %v10245_v21, %v8089_v38  ;;  %v8360_v21 = vpack.i.bf16 %v10373_v45, %v10296_v34  ;;  %v8134_v54 = vunpack.i.h.bf16 %v8132_v30  ;;  %v8133_v26 = vunpack.i.l.bf16 %v8132_v30 }
  0xc4   :  { %v8167_v20 = vpop.permute.xlu2 %8166 }
  0xc5   :  { %8336 = vrot.lane.b32.xlu0 %v10113_v33, %s9848_s28  ;;  %v8169_v31 = vunpack.i.h.bf16 %v8167_v20  ;;  %v8168_v18 = vunpack.i.l.bf16 %v8167_v20 }
  0xc7   :  { %v8127_v23 = vpop.permute.xlu0 %8126  ;;  %8356 = vrot.lane.b32.xlu1 %v10184_v57, %s9849_s29 }
  0xc8   :  { %v8129_v29 = vunpack.i.h.bf16 %v8127_v23  ;;  %v8128_v35 = vunpack.i.l.bf16 %v8127_v23 }
  0xc9   :  { %v10365_v40 = vpop.permute.xlu1 %8146 }
  0xca   :  { %v833_v33 = vsel %vm823_vm3, %v816_v41, %v8129_v29  ;;  %v832_v37 = vsel %vm823_vm3, %v815_v36, %v8128_v35  ;;  %8346 = vrot.lane.b32.xlu2 %v10163_v50, %s9849_s29 }
  0xcb   :  { %v849_v57 = vsel %vm840_vm4, %v832_v37, %v8168_v18  ;;  %v850_v44 = vsel %vm840_vm4, %v833_v33, %v8169_v31 }
  0xcc   :  { %v10375_v46 = vpop.permute.xlu2 %8181 }
  0xcd   :  { %8351 = vrot.lane.b32.xlu0 %v10144_v42, %s9849_s29  ;;  %v8380_v42 = vpack.i.bf16 %v294_v56, %v10306_v39  ;;  %v7928_v56 = vld [vmem:[%s14273_s4 + $0x30] sm:$0x30] }
  0xcf   :  { %v10381_v49 = vpop.permute.xlu0 %8141  ;;  %8371 = vrot.lane.b32.xlu1 %v10208_v2, %s9849_s29  ;;  %v8094_v2 = vunpack.i.h.bf16 %v10313_v48  ;;  %v834_v48 = vsel %vm823_vm3, %v817_v5, %v8133_v26  ;;  %v7926_v26 = vld [vmem:[%s14273_s4 + $0x20] sm:$0xff]  ;;  %v7924_v5 = vld [vmem:[%s14273_s4 + $0x10] sm:$0xff] }
  0xd1   :  { %v10385_v50 = vpop.permute.xlu1 %8161  ;;  %v818_v39 = vsel %vm133_vm2, %v10250_v28, %v8094_v2 }
  0xd2   :  { %14270 = vst [vmem:[#allocation5_spill] sm:$0xff] %v10385_v50  ;;  %8361 = vrot.lane.b32.xlu2 %v8360_v21, %s9849_s29  ;;  %v835_v38 = vsel %vm823_vm3, %v818_v39, %v8134_v54  ;;  %v7432_v21 = vld [vmem:[%s14273_s4 + $0x30] sm:$0xf] }
  0xd4   :  { %v10388_v53 = vpop.permute.xlu2 %8196 }
  0xd5   :  { %8366 = vrot.lane.b32.xlu0 %v10168_v51, %s9849_s29 }
  0xd7   :  { %v10392_v63 = vpop.permute.xlu0 %8156 }
  0xd9   :  { %v10395_v34 = vpop.permute.xlu1 %8176 }
  0xda   :  { %8376 = vrot.lane.b32.xlu2 %v10217_v8, %s9849_s29 }
  0xdc   :  { %v8212_v43 = vpop.permute.xlu2 %8211 }
  0xdd   :  { %8381 = vrot.lane.b32.xlu0 %v8380_v42, %s9849_s29  ;;  %v8214_v17 = vunpack.i.h.bf16 %v8212_v43  ;;  %v8213_v60 = vunpack.i.l.bf16 %v8212_v43  ;;  %v7433_v42 = vor.u32 %v7928_v56, %v7432_v21 }
  0xdf   :  { %v8172_v51 = vpop.permute.xlu0 %8171  ;;  %v1032_v1 = vsel %vm1030_vm6, %v7433_v42, 0  ;;  %v7922_v42 = vld [vmem:[%s14273_s4] sm:$0xff] }
  0xe0   :  { %v8174_v20 = vunpack.i.h.bf16 %v8172_v51  ;;  %v8173_v8 = vunpack.i.l.bf16 %v8172_v51  ;;  %1035 = vmatpush.bf16.msra.mxu0 %v1032_v1  ;;  %8037 = vmatpush.bf16.msra.mxu2 %v1032_v1 }
  0xe1   :  { %v10408_v3 = vpop.permute.xlu1 %8191 }
  0xe2   :  { %v852_v30 = vsel %vm840_vm4, %v835_v38, %v8174_v20  ;;  %v851_v22 = vsel %vm840_vm4, %v834_v48, %v8173_v8 }
  0xe3   :  { %v868_v23 = vsel %vm857_vm5, %v851_v22, %v8213_v60  ;;  %v869_v28 = vsel %vm857_vm5, %v852_v30, %v8214_v17  ;;  %v7925_v17 = vld [vmem:[%s14273_s4 + $0x18] sm:$0xff]  ;;  %v7923_v22 = vld [vmem:[%s14273_s4 + $0x8] sm:$0xff] }
  0xe4   :  { %v10414_v31 = vpop.permute.xlu2 %8226 }
  0xe7   :  { %v10416_v24 = vpop.permute.xlu0 %8186 }
  0xe9   :  { %v8207_v18 = vpop.permute.xlu1 %8206 }
  0xea   :  { %v8209_v29 = vunpack.i.h.bf16 %v8207_v18  ;;  %v8208_v35 = vunpack.i.l.bf16 %v8207_v18 }
  0xec   :  { %v866_v36 = vsel %vm857_vm5, %v849_v57, %v8208_v35  ;;  %v867_v41 = vsel %vm857_vm5, %v850_v44, %v8209_v29  ;;  %v10420_v33 = vpop.permute.xlu2 %8241  ;;  %v7927_v44 = vld [vmem:[%s14273_s4 + $0x28] sm:$0xff] }
  0xed   :  { %14271 = vst [vmem:[#allocation6_spill] sm:$0xff] %v10420_v33  ;;  %1036 = vmatpush.bf16.msra.mxu0 %v7927_v44  ;;  %8038 = vmatpush.bf16.msra.mxu2 %v7927_v44  ;;  %v8188_v33 = vunpack.i.l.bf16 %v10416_v24 }
  0xef   :  { %v10422_v37 = vpop.permute.xlu0 %8201 }
  0xf0   :  { %14272 = vst [vmem:[#allocation7_spill] sm:$0xff] %v10422_v37 }
  0xf1   :  { %v10430_v2 = vpop.permute.xlu1 %8221  ;;  %1037 = vmatpush.bf16.msra.mxu0 %v7926_v26  ;;  %8039 = vmatpush.bf16.msra.mxu2 %v7926_v26 }
  0xf4   :  { %v10432_v57 = vpop.permute.xlu2 %8256 }
  0xf5   :  { %1038 = vmatpush.bf16.msra.mxu0 %v7925_v17  ;;  %8040 = vmatpush.bf16.msra.mxu2 %v7925_v17 }
  0xf7   :  { %v10437_v43 = vpop.permute.xlu0 %8216 }
  0xf9   :  { %v10439_v54 = vpop.permute.xlu1 %8236  ;;  %1039 = vmatpush.bf16.msra.mxu0 %v7924_v5  ;;  %8041 = vmatpush.bf16.msra.mxu2 %v7924_v5 }
  0xfc   :  { %v10444_v51 = vpop.permute.xlu2 %8271 }
  0xfd   :  { %1040 = vmatpush.bf16.msra.mxu0 %v7923_v22  ;;  %8042 = vmatpush.bf16.msra.mxu2 %v7923_v22  ;;  %v8069_v22 = vunpack.i.h.bf16 %v10327_v0 }
  0xff   :  { %v10449_v60 = vpop.permute.xlu0 %8231 }
 0x101   :  { %v8252_v39 = vpop.permute.xlu1 %8251  ;;  %1041 = vmatpush.bf16.msra.mxu0 %v7922_v42  ;;  %8043 = vmatpush.bf16.msra.mxu2 %v7922_v42  ;;  %v8148_v42 = vunpack.i.l.bf16 %v10365_v40 }
 0x102   :  { %v8254_v20 = vunpack.i.h.bf16 %v8252_v39  ;;  %v8253_v8 = vunpack.i.l.bf16 %v8252_v39 }
 0x104   :  { %v885_v38 = vsel %vm874_vm7, %v868_v23, %v8253_v8  ;;  %v886_v48 = vsel %vm874_vm7, %v869_v28, %v8254_v20  ;;  %v8287_v30 = vpop.permute.xlu2 %8286 }
 0x105   :  { %v8289_v29 = vunpack.i.h.bf16 %v8287_v30  ;;  %v8288_v35 = vunpack.i.l.bf16 %v8287_v30  ;;  %v150_v30 = vld [vmem:[#allocation2] sm:$0xff] }
 0x107   :  { %v8247_v18 = vpop.permute.xlu0 %8246 }
 0x108   :  { %v8249_v21 = vunpack.i.h.bf16 %v8247_v18  ;;  %v8248_v56 = vunpack.i.l.bf16 %v8247_v18 }
 0x109   :  { %v8267_v23 = vpop.permute.xlu1 %8266 }
 0x10a   :  { %v883_v28 = vsel %vm874_vm7, %v866_v36, %v8248_v56  ;;  %v884_v1 = vsel %vm874_vm7, %v867_v41, %v8249_v21  ;;  %v8068_v41 = vunpack.i.l.bf16 %v10327_v0  ;;  %v8109_v21 = vunpack.i.h.bf16 %v10323_v62 }
 0x10b   :  { %v10465_v44 = vsel %vm891_vm8, %v883_v28, %v8288_v35  ;;  %v10468_v26 = vsel %vm891_vm8, %v884_v1, %v8289_v29  ;;  %v8108_v29 = vunpack.i.l.bf16 %v10323_v62  ;;  %v808_v56 = vsel %vm133_vm2, %v10188_v58, %v8069_v22 }
 0x10c   :  { %v10470_v17 = vpop.permute.xlu2 %8301  ;;  %v807_v35 = vsel %vm133_vm2, %v150_v30, %v8068_v41  ;;  %v8189_v41 = vunpack.i.h.bf16 %v10416_v24  ;;  %v825_v62 = vsel %vm823_vm3, %v808_v56, %v8109_v21  ;;  %v8229_v21 = vunpack.i.h.bf16 %v10414_v31 }
 0x10d   :  { %v824_v50 = vsel %vm823_vm3, %v807_v35, %v8108_v29  ;;  %v8268_v56 = vunpack.i.l.bf16 %v8267_v23 }
 0x10f   :  { %v10472_v39 = vpop.permute.xlu0 %8261 }
 0x111   :  { %v10474_v5 = vpop.permute.xlu1 %8281 }
 0x112   :  { %14274 = vst [vmem:[#allocation8_spill] sm:$0xff] %v10474_v5  ;;  %v8149_v5 = vunpack.i.h.bf16 %v10365_v40  ;;  %v8228_v40 = vunpack.i.l.bf16 %v10414_v31 }
 0x114   :  { %v10476_v20 = vpop.permute.xlu2 %8316  ;;  %v842_v24 = vsel %vm840_vm4, %v825_v62, %v8149_v5  ;;  %v8079_v5 = vunpack.i.h.bf16 %v10317_v52 }
 0x117   :  { %v10478_v8 = vpop.permute.xlu0 %8276 }
 0x119   :  { %v10480_v36 = vpop.permute.xlu1 %8296 }
 0x11c   :  { %v8332_v18 = vpop.permute.xlu2 %8331 }
 0x11d   :  { %v8334_v1 = vunpack.i.h.bf16 %v8332_v18  ;;  %v8333_v45 = vunpack.i.l.bf16 %v8332_v18  ;;  %v841_v18 = vsel %vm840_vm4, %v824_v50, %v8148_v42 }
 0x11e   :  { %v858_v35 = vsel %vm857_vm5, %v841_v18, %v8188_v33  ;;  %v8078_v33 = vunpack.i.l.bf16 %v10317_v52  ;;  %v8098_v52 = vunpack.i.l.bf16 %v10344_v19 }
 0x11f   :  { %v8292_v28 = vpop.permute.xlu0 %8291  ;;  %v875_v50 = vsel %vm874_vm7, %v858_v35, %v8228_v40 }
 0x120   :  { %v8294_v0 = vunpack.i.h.bf16 %v8292_v28  ;;  %v8293_v37 = vunpack.i.l.bf16 %v8292_v28  ;;  %v892_v31 = vsel %vm891_vm8, %v875_v50, %v8268_v56  ;;  %v8074_v50 = vunpack.i.h.bf16 %v10336_v61 }
 0x121   :  { %v10494_v30 = vpop.permute.xlu1 %8311 }
 0x122   :  { %v902_v58 = vsel %vm891_vm8, %v885_v38, %v8293_v37  ;;  %v903_v22 = vsel %vm891_vm8, %v886_v48, %v8294_v0  ;;  %v859_v38 = vsel %vm857_vm5, %v842_v24, %v8189_v41  ;;  %v8269_v48 = vunpack.i.h.bf16 %v8267_v23 }
 0x123   :  { %v10502_v47 = vsel %vm908_vm9, %v902_v58, %v8333_v45  ;;  %v10505_v29 = vsel %vm908_vm9, %v903_v22, %v8334_v1  ;;  %v876_v0 = vsel %vm874_vm7, %v859_v38, %v8229_v21  ;;  %v8099_v24 = vunpack.i.h.bf16 %v10344_v19 }
 0x124   :  { %v8347_v37 = vpop.permute.xlu2 %8346  ;;  %v893_v41 = vsel %vm891_vm8, %v876_v0, %v8269_v48  ;;  %v10542_v19 = vsel %vm133_vm2, %v10225_v11, %v8078_v33  ;;  %v810_v11 = vsel %vm133_vm2, %v10223_v10, %v8074_v50  ;;  %v8218_v33 = vunpack.i.l.bf16 %v10437_v43 }
 0x125   :  { %v8349_v28 = vunpack.i.h.bf16 %v8347_v37  ;;  %v8348_v45 = vunpack.i.l.bf16 %v8347_v37  ;;  %v8154_v50 = vunpack.i.h.bf16 %v10352_v27 }
 0x127   :  { %v8307_v42 = vpop.permute.xlu0 %8306 }
 0x128   :  { %v8309_v1 = vunpack.i.h.bf16 %v8307_v42  ;;  %v8308_v58 = vunpack.i.l.bf16 %v8307_v42  ;;  %v8073_v42 = vunpack.i.l.bf16 %v10336_v61  ;;  %v820_v61 = vsel %vm133_vm2, %v10236_v15, %v8099_v24 }
 0x129   :  { %v8327_v62 = vpop.permute.xlu1 %8326  ;;  %v8104_v15 = vunpack.i.h.bf16 %v10339_v9 }
 0x12a   :  { %v909_v23 = vsel %vm908_vm9, %v892_v31, %v8308_v58  ;;  %v910_v22 = vsel %vm908_vm9, %v893_v41, %v8309_v1  ;;  %v8329_v18 = vunpack.i.h.bf16 %v8327_v62  ;;  %v8328_v40 = vunpack.i.l.bf16 %v8327_v62 }
 0x12b   :  { %v926_v35 = vsel %vm925_vm10, %v909_v23, %v8348_v45  ;;  %v927_v21 = vsel %vm925_vm10, %v910_v22, %v8349_v28  ;;  %v10537_v28 = vsel %vm133_vm2, %v10229_v12, %v8079_v5  ;;  %v8138_v45 = vunpack.i.l.bf16 %v10341_v14 }
 0x12c   :  { %v942_v37 = vpack.c.bf16 %v927_v21, %v926_v35  ;;  %v10523_v38 = vpop.permute.xlu2 %8361  ;;  %v10527_v48 = vsel %vm908_vm9, %v10465_v44, %v8328_v40  ;;  %v10531_v56 = vsel %vm908_vm9, %v10468_v26, %v8329_v18  ;;  %v8139_v44 = vunpack.i.h.bf16 %v10341_v14 }
 0x12d   :  { %v8113_v26 = vunpack.i.l.bf16 %v10354_v4  ;;  %v819_v12 = vsel %vm133_vm2, %v10252_v32, %v8098_v52  ;;  %v8179_v1 = vunpack.i.h.bf16 %v10395_v34  ;;  %v8178_v58 = vunpack.i.l.bf16 %v10395_v34 }
 0x12e   :  { %7434 = vmatmul.msk.bf16.vlgmr.msra.gmra.mxu0 %vm1005_vm11, %v942_v37  ;;  %v809_v14 = vsel %vm133_vm2, %v10190_v59, %v8073_v42  ;;  %v8219_v5 = vunpack.i.h.bf16 %v10437_v43  ;;  %v8103_v32 = vunpack.i.l.bf16 %v10339_v9  ;;  %v8114_v41 = vunpack.i.h.bf16 %v10354_v4 }
 0x12f   :  { %v10547_v0 = vpop.permute.xlu0 %8321  ;;  %v8153_v34 = vunpack.i.l.bf16 %v10352_v27  ;;  %v836_v62 = vsel %vm823_vm3, %v819_v12, %v8138_v45  ;;  %v837_v10 = vsel %vm823_vm3, %v820_v61, %v8139_v44  ;;  %v8119_v59 = vunpack.i.h.bf16 %v10348_v25 }
 0x130   :  { %v826_v23 = vsel %vm823_vm3, %v809_v14, %v8113_v26  ;;  %v853_v43 = vsel %vm840_vm4, %v836_v62, %v8178_v58  ;;  %v854_v22 = vsel %vm840_vm4, %v837_v10, %v8179_v1  ;;  %v8259_v18 = vunpack.i.h.bf16 %v10432_v57 }
 0x131   :  { %v10561_v31 = vpop.permute.xlu1 %8341  ;;  %v8258_v9 = vunpack.i.l.bf16 %v10432_v57  ;;  %v870_v4 = vsel %vm857_vm5, %v853_v43, %v8218_v33  ;;  %v871_v24 = vsel %vm857_vm5, %v854_v22, %v8219_v5  ;;  %v8299_v35 = vunpack.i.h.bf16 %v10480_v36 }
 0x132   :  { %v8298_v21 = vunpack.i.l.bf16 %v10480_v36  ;;  %v8118_v52 = vunpack.i.l.bf16 %v10348_v25  ;;  %v827_v37 = vsel %vm823_vm3, %v810_v11, %v8114_v41  ;;  %v843_v42 = vsel %vm840_vm4, %v826_v23, %v8153_v34 }
 0x133   :  { %v8194_v44 = vunpack.i.h.bf16 %v10408_v3  ;;  %v8193_v57 = vunpack.i.l.bf16 %v10408_v3  ;;  %v887_v12 = vsel %vm874_vm7, %v870_v4, %v8258_v9  ;;  %v888_v1 = vsel %vm874_vm7, %v871_v24, %v8259_v18 }
 0x134   :  { %v8377_v40 = vpop.permute.xlu2 %8376  ;;  %v8234_v25 = vunpack.i.h.bf16 %v10449_v60  ;;  %v8233_v11 = vunpack.i.l.bf16 %v10449_v60  ;;  %v904_v27 = vsel %vm891_vm8, %v887_v12, %v8298_v21  ;;  %v905_v14 = vsel %vm891_vm8, %v888_v1, %v8299_v35 }
 0x135   :  { %v8379_v26 = vunpack.i.h.bf16 %v8377_v40  ;;  %v8378_v61 = vunpack.i.l.bf16 %v8377_v40  ;;  %v844_v3 = vsel %vm840_vm4, %v827_v37, %v8154_v50  ;;  %v8144_v33 = vunpack.i.h.bf16 %v10381_v49 }
 0x136   :  { %v8143_v62 = vunpack.i.l.bf16 %v10381_v49  ;;  %v860_v10 = vsel %vm857_vm5, %v843_v42, %v8193_v57  ;;  %v861_v43 = vsel %vm857_vm5, %v844_v3, %v8194_v44  ;;  %v8274_v22 = vunpack.i.h.bf16 %v10444_v51 }
 0x137   :  { %v8337_v45 = vpop.permute.xlu0 %8336  ;;  %v8273_v18 = vunpack.i.l.bf16 %v10444_v51  ;;  %v877_v40 = vsel %vm874_vm7, %v860_v10, %v8233_v11  ;;  %v878_v4 = vsel %vm874_vm7, %v861_v43, %v8234_v25  ;;  %v8314_v24 = vunpack.i.h.bf16 %v10494_v30 }
 0x138   :  { %v8339_v36 = vunpack.i.h.bf16 %v8337_v45  ;;  %v8338_v58 = vunpack.i.l.bf16 %v8337_v45  ;;  %v8313_v49 = vunpack.i.l.bf16 %v10494_v30  ;;  %v822_v35 = vsel %vm133_vm2, %v10262_v55, %v8104_v15 }
 0x139   :  { %v10591_v5 = vpop.permute.xlu1 %8356  ;;  %v821_v21 = vsel %vm133_vm2, %v10238_v16, %v8103_v32  ;;  %v828_v37 = vsel %vm823_vm3, %v10542_v19, %v8118_v52  ;;  %v829_v51 = vsel %vm823_vm3, %v10537_v28, %v8119_v59  ;;  %v8184_v50 = vunpack.i.h.bf16 %v10375_v46 }
 0x13a   :  { %v921_v41 = vsel %vm908_vm9, %v904_v27, %v8338_v58  ;;  %v922_v34 = vsel %vm908_vm9, %v905_v14, %v8339_v36  ;;  %v8183_v42 = vunpack.i.l.bf16 %v10375_v46  ;;  %v8159_v30 = vunpack.i.h.bf16 %v10392_v63 }
 0x13b   :  { %v938_v60 = vsel %vm925_vm10, %v921_v41, %v8378_v61  ;;  %v939_v23 = vsel %vm925_vm10, %v922_v34, %v8379_v26  ;;  %v8158_v44 = vunpack.i.l.bf16 %v10392_v63  ;;  %v894_v15 = vsel %vm891_vm8, %v877_v40, %v8273_v18 }
 0x13c   :  { %v948_v9 = vpack.c.bf16 %v939_v23, %v938_v60  ;;  %v895_v16 = vsel %vm891_vm8, %v878_v4, %v8274_v22  ;;  %v839_v52 = vsel %vm823_vm3, %v822_v35, %v8144_v33  ;;  %v838_v28 = vsel %vm823_vm3, %v821_v21, %v8143_v62 }
 0x13d   :  { %v911_v59 = vsel %vm908_vm9, %v894_v15, %v8313_v49  ;;  %v912_v57 = vsel %vm908_vm9, %v895_v16, %v8314_v24  ;;  %v8199_v12 = vunpack.i.h.bf16 %v10388_v53  ;;  %v8198_v1 = vunpack.i.l.bf16 %v10388_v53 }
 0x13e   :  { %7440 = vmatmul.msk.bf16.vlgmr.msra.gmra.mxu2 %vm1005_vm11, %v948_v9  ;;  %v8223_v36 = vunpack.i.l.bf16 %v10430_v2  ;;  %v846_v25 = vsel %vm840_vm4, %v829_v51, %v8159_v30  ;;  %v845_v11 = vsel %vm840_vm4, %v828_v37, %v8158_v44  ;;  %v8224_v3 = vunpack.i.h.bf16 %v10430_v2 }
 0x13f   :  { %v8352_v55 = vpop.permute.xlu0 %8351  ;;  %v8239_v33 = vunpack.i.h.bf16 %v10439_v54  ;;  %v8238_v53 = vunpack.i.l.bf16 %v10439_v54  ;;  %v855_v34 = vsel %vm840_vm4, %v838_v28, %v8183_v42  ;;  %v8263_v62 = vunpack.i.l.bf16 %v10472_v39 }
 0x140   :  { %v8354_v32 = vunpack.i.h.bf16 %v8352_v55  ;;  %v8353_v19 = vunpack.i.l.bf16 %v8352_v55  ;;  %v863_v10 = vsel %vm857_vm5, %v846_v25, %v8199_v12  ;;  %v872_v2 = vsel %vm857_vm5, %v855_v34, %v8223_v36  ;;  %v14276_v36 = vld [vmem:[#allocation5_spill] sm:$0xff] }
 0x141   :  { %v8372_v46 = vpop.permute.xlu1 %8371  ;;  %v8264_v60 = vunpack.i.h.bf16 %v10472_v39  ;;  %v8279_v23 = vunpack.i.h.bf16 %v10478_v8  ;;  %v8278_v43 = vunpack.i.l.bf16 %v10478_v8  ;;  %v880_v4 = vsel %vm874_vm7, %v863_v10, %v8239_v33 }
 0x142   :  { %v928_v45 = vsel %vm925_vm10, %v911_v59, %v8353_v19  ;;  %v929_v63 = vsel %vm925_vm10, %v912_v57, %v8354_v32  ;;  %v8374_v26 = vunpack.i.h.bf16 %v8372_v46  ;;  %v8373_v61 = vunpack.i.l.bf16 %v8372_v46 }
 0x143   :  { %v943_v58 = vpack.c.bf16 %v929_v63, %v928_v45  ;;  %v8304_v24 = vunpack.i.h.bf16 %v10470_v17  ;;  %v889_v49 = vsel %vm874_vm7, %v872_v2, %v8263_v62  ;;  %v8303_v35 = vunpack.i.l.bf16 %v10470_v17  ;;  %v14275_v63 = vld [vmem:[#allocation3_spill] sm:$0xff] }
 0x144   :  { %v10636_v27 = vsel %vm925_vm10, %v10502_v47, %v8373_v61  ;;  %v10640_v14 = vsel %vm925_vm10, %v10505_v29, %v8374_v26  ;;  %v856_v47 = vsel %vm840_vm4, %v839_v52, %v8184_v50  ;;  %v862_v29 = vsel %vm857_vm5, %v845_v11, %v8198_v1 }
 0x145   :  { %7435 = vmatmul.msk.bf16.gmra.mxu0 %vm1005_vm11, %v943_v58  ;;  %v947_v41 = vpack.c.bf16 %v10640_v14, %v10636_v27  ;;  %v873_v9 = vsel %vm857_vm5, %v856_v47, %v8224_v3  ;;  %v879_v40 = vsel %vm874_vm7, %v862_v29, %v8238_v53  ;;  %v8319_v37 = vunpack.i.h.bf16 %v10476_v20  ;;  %v14277_v3 = vld [vmem:[#allocation7_spill] sm:$0xff]  ;;  %v14278_v29 = vld [vmem:[#allocation6_spill] sm:$0xff] }
 0x146   :  { %v890_v21 = vsel %vm874_vm7, %v873_v9, %v8264_v60  ;;  %v8318_v51 = vunpack.i.l.bf16 %v10476_v20  ;;  %v896_v42 = vsel %vm891_vm8, %v879_v40, %v8278_v43  ;;  %v897_v17 = vsel %vm891_vm8, %v880_v4, %v8279_v23  ;;  %v14279_v23 = vld [vmem:[#allocation8_spill] sm:$0xff]  ;;  %v7945_v14 = vld [vmem:[%s14282_s27 + $0x80] sm:$0xff] }
 0x147   :  { %v8367_v54 = vpop.permute.xlu0 %8366  ;;  %v8358_v30 = vunpack.i.l.bf16 %v10591_v5  ;;  %v8083_v44 = vunpack.i.l.bf16 %v10331_v7  ;;  %v8344_v55 = vunpack.i.h.bf16 %v10561_v31  ;;  %v8343_v15 = vunpack.i.l.bf16 %v10561_v31 }
 0x148   :  { %v8369_v22 = vunpack.i.h.bf16 %v8367_v54  ;;  %v8368_v18 = vunpack.i.l.bf16 %v8367_v54  ;;  %v906_v20 = vsel %vm891_vm8, %v889_v49, %v8303_v35  ;;  %v907_v16 = vsel %vm891_vm8, %v890_v21, %v8304_v24 }
 0x149   :  { %v913_v19 = vsel %vm908_vm9, %v896_v42, %v8318_v51  ;;  %v914_v52 = vsel %vm908_vm9, %v897_v17, %v8319_v37  ;;  %v813_v31 = vsel %vm133_vm2, %v10231_v13, %v8083_v44  ;;  %v923_v46 = vsel %vm908_vm9, %v906_v20, %v8343_v15  ;;  %v10742_v42 = vld [vmem:[%s14281_s2] ss:$0 sm:$0xff]  ;;  %v7946_v17 = vld [vmem:[%s14282_s27 + $0x88] sm:$0xff]  ;;  %s14289_s2 = sld [smem:[#allocation16_spill]] }
 0x14a   :  { %v10665_v39 = vsel %vm925_vm10, %v10527_v48, %v8368_v18  ;;  %v10669_v8 = vsel %vm925_vm10, %v10531_v56, %v8369_v22  ;;  %v8359_v48 = vunpack.i.h.bf16 %v10591_v5  ;;  %v8084_v56 = vunpack.i.h.bf16 %v10331_v7  ;;  %2076 = vmatpush.bf16.msra.mxu3 %v7946_v17  ;;  %v1171_v15 = vld [vmem:[#allocation2 + $0x1] sm:$0xff] }
 0x14b   :  { %v946_v50 = vpack.c.bf16 %v10669_v8, %v10665_v39  ;;  %v930_v5 = vsel %vm925_vm10, %v913_v19, %v8358_v30  ;;  %v924_v45 = vsel %vm908_vm9, %v907_v16, %v8344_v55  ;;  %v8124_v26 = vunpack.i.h.bf16 %v14275_v63  ;;  %v1187_v55 = vld [vmem:[#allocation2 + $0x2] sm:$0xff] }
 0x14c   :  { %v931_v57 = vsel %vm925_vm10, %v914_v52, %v8359_v48  ;;  %v814_v7 = vsel %vm133_vm2, %v10211_v6, %v8084_v56  ;;  %v8123_v61 = vunpack.i.l.bf16 %v14275_v63  ;;  %v8164_v58 = vunpack.i.h.bf16 %v14276_v36 }
 0x14d   :  { %v8163_v25 = vunpack.i.l.bf16 %v14276_v36  ;;  %v944_v6 = vpack.c.bf16 %v931_v57, %v930_v5  ;;  %v8204_v13 = vunpack.i.h.bf16 %v14277_v3  ;;  %v8203_v33 = vunpack.i.l.bf16 %v14277_v3 }
 0x14e   :  { %v831_v53 = vsel %vm823_vm3, %v814_v7, %v8124_v26  ;;  %v830_v34 = vsel %vm823_vm3, %v813_v31, %v8123_v61  ;;  %v8244_v10 = vunpack.i.h.bf16 %v14278_v29  ;;  %v8243_v2 = vunpack.i.l.bf16 %v14278_v29  ;;  %2077 = vmatpush.bf16.msra.mxu3 %v7945_v14 }
 0x14f   :  { %v8382_v32 = vpop.permute.xlu0 %8381  ;;  %v847_v47 = vsel %vm840_vm4, %v830_v34, %v8163_v25  ;;  %v848_v62 = vsel %vm840_vm4, %v831_v53, %v8164_v58  ;;  %v8284_v43 = vunpack.i.h.bf16 %v14279_v23  ;;  %v8283_v22 = vunpack.i.l.bf16 %v14279_v23 }
 0x150   :  { %v8384_v28 = vunpack.i.h.bf16 %v8382_v32  ;;  %v8383_v59 = vunpack.i.l.bf16 %v8382_v32  ;;  %v865_v60 = vsel %vm857_vm5, %v848_v62, %v8204_v13  ;;  %v864_v54 = vsel %vm857_vm5, %v847_v47, %v8203_v33 }
 0x151   :  { %v8324_v18 = vunpack.i.h.bf16 %v10547_v0  ;;  %v8323_v9 = vunpack.i.l.bf16 %v10547_v0  ;;  %v881_v40 = vsel %vm874_vm7, %v864_v54, %v8243_v2  ;;  %v882_v4 = vsel %vm874_vm7, %v865_v60, %v8244_v10 }
 0x152   :  { %v940_v12 = vsel %vm925_vm10, %v923_v46, %v8383_v59  ;;  %v941_v1 = vsel %vm925_vm10, %v924_v45, %v8384_v28  ;;  %v898_v24 = vsel %vm891_vm8, %v881_v40, %v8283_v22  ;;  %v899_v49 = vsel %vm891_vm8, %v882_v4, %v8284_v43 }
 0x153   :  { %v949_v11 = vpack.c.bf16 %v941_v1, %v940_v12  ;;  %v8364_v35 = vunpack.i.h.bf16 %v10523_v38  ;;  %v8363_v39 = vunpack.i.l.bf16 %v10523_v38  ;;  %v915_v8 = vsel %vm908_vm9, %v898_v24, %v8323_v9  ;;  %v10737_v38 = vld [vmem:[%s14280_s5] ss:$0 sm:$0xff]  ;;  %s14288_s5 = sld [smem:[#allocation15_spill]] }
 0x154   :  { %v916_v21 = vsel %vm908_vm9, %v899_v49, %v8324_v18 }
 0x155   :  { %7436 = vmatmul.msk.bf16.gmra.mxu0 %vm1005_vm11, %v944_v6  ;;  %7441 = vmatmul.msk.bf16.gmra.mxu2 %vm1005_vm11, %v949_v11  ;;  %v932_v37 = vsel %vm925_vm10, %v915_v8, %v8363_v39  ;;  %v933_v0 = vsel %vm925_vm10, %v916_v21, %v8364_v35 }
 0x156   :  { %v945_v51 = vpack.c.bf16 %v933_v0, %v932_v37 }
 0x165   :  { %7437 = vmatmul.msk.bf16.gmra.mxu0 %vm1005_vm11, %v945_v51 }
 0x175   :  { %7438 = vmatmul.msk.bf16.gmra.mxu0 %vm1005_vm11, %v946_v50 }
 0x185   :  { %7439 = vmatmul.msk.bf16.gmra.mxu0 %vm1005_vm11, %v947_v41 }
 0x1ab   :  { %v1043_v50 = vpop.f32.mrf.mxu0 }
 0x1ac   :  { %v1087_v48 = vmul.f32 %v10737_v38, %v1043_v50 }
 0x1ae   :  { %v10749_v27 = vadd.f32 %v10742_v42, %v1087_v48 }
 0x1b0   :  { %v14237_v41 = vmax.f32 %v10749_v27, 0.0 }
 0x1b2   :  { %1139 = vst.msk [vmem:[#allocation2 + $0x11] sm:$0xff] %vm74_vm0, %v14237_v41 }
 0x1b3   :  { %v1045_v30 = vpop.f32.mrf.mxu0 }
 0x1b4   :  { %v1088_v56 = vmul.f32 %v10737_v38, %v1045_v30 }
 0x1b6   :  { %v10760_v44 = vadd.f32 %v10742_v42, %v1088_v56 }
 0x1b8   :  { %v14236_v20 = vmax.f32 %v10760_v44, 0.0 }
 0x1b9   :  { %v10763_v16 = vld [vmem:[#allocation2 + $0x12] sm:$0xff] }
 0x1ba   :  { %v10765_v32 = vld [vmem:[#allocation2 + $0x11] sm:$0xff]  ;;  %1140 = vst.msk [vmem:[#allocation2 + $0x21] sm:$0xff] %vm74_vm0, %v14236_v20  ;;  %v8390_v19 = vpack.i.bf16 %v10763_v16, %v1187_v55 }
 0x1bb   :  { %v8385_v52 = vpack.i.bf16 %v10765_v32, %v1171_v15 }
 0x1bc   :  { %8391 = vrot.lane.b32.xlu0 %v8390_v19, %s9850_s3 }
 0x1bd   :  { %8386 = vrot.lane.b32.xlu1 %v8385_v52, %s9851_s0 }
 0x1c1   :  { %v1073_v28 = vpop.f32.mrf.mxu2  ;;  %v10800_v6 = vld [vmem:[#allocation2 + $0x22] sm:$0xff] }
 0x1c2   :  { %v1099_v59 = vmul.f32 %v10737_v38, %v1073_v28  ;;  %v1048_v5 = vpop.f32.mrf.mxu0  ;;  %v10807_v3 = vld [vmem:[#allocation2 + $0x21] sm:$0xff] }
 0x1c3   :  { %v1089_v57 = vmul.f32 %v10737_v38, %v1048_v5 }
 0x1c4   :  { %v10777_v7 = vadd.f32 %v10742_v42, %v1099_v59 }
 0x1c5   :  { %v10780_v31 = vadd.f32 %v10742_v42, %v1089_v57 }
 0x1c6   :  { %v14225_v46 = vmax.f32 %v10777_v7, 0.0 }
 0x1c7   :  { %v14235_v45 = vmax.f32 %v10780_v31, 0.0 }
 0x1c8   :  { %1151 = vst.msk [vmem:[#allocation2 + $0xf1] sm:$0xff] %vm74_vm0, %v14225_v46 }
 0x1c9   :  { %1141 = vst.msk [vmem:[#allocation2 + $0x31] sm:$0xff] %vm74_vm0, %v14235_v45  ;;  %v1075_v63 = vpop.f32.mrf.mxu2  ;;  %v8500_v45 = vpack.i.bf16 %v10800_v6, %v10763_v16  ;;  %v7936_v16 = vld [vmem:[%s14282_s27 + $0x38] sm:$0xff] }
 0x1ca   :  { %v1100_v26 = vmul.f32 %v10737_v38, %v1075_v63  ;;  %v1050_v61 = vpop.f32.mrf.mxu0  ;;  %1972 = vmatpush.bf16.msra.mxu1 %v7936_v16  ;;  %8044 = vmatpush.bf16.msrb.mxu2 %v7936_v16  ;;  %v7930_v16 = vld [vmem:[%s14282_s27 + $0x8] sm:$0xff] }
 0x1cb   :  { %v1090_v12 = vmul.f32 %v10737_v38, %v1050_v61 }
 0x1cc   :  { %v10793_v1 = vadd.f32 %v10742_v42, %v1100_v26 }
 0x1cd   :  { %v10796_v36 = vadd.f32 %v10742_v42, %v1090_v12 }
 0x1ce   :  { %14283 = vst [vmem:[#allocation3_spill] sm:$0xff] %v10793_v1  ;;  %v14224_v58 = vmax.f32 %v10793_v1, 0.0  ;;  %v2302_v1 = vld [vmem:[#allocation2 + $0x130] sm:$0xff] }
 0x1cf   :  { %v14234_v25 = vmax.f32 %v10796_v36, 0.0 }
 0x1d0   :  { %1152 = vst.msk [vmem:[#allocation2 + $0x101] sm:$0xff] %vm74_vm0, %v14224_v58  ;;  %v10805_v11 = vld [vmem:[#allocation2 + $0x32] sm:$0xff] }
 0x1d1   :  { %v1174_v13 = vld [vmem:[#allocation2 + $0x31] sm:$0xff]  ;;  %1142 = vst.msk [vmem:[#allocation2 + $0x41] sm:$0xff] %vm74_vm0, %v14234_v25  ;;  %v1782_v33 = vpack.c.bf16 %v10805_v11, %v10800_v6  ;;  %v8400_v53 = vpack.i.bf16 %v10805_v11, %v10800_v6 }
 0x1d2   :  { %v10817_v34 = vpack.i.bf16 %v1174_v13, %v10807_v3  ;;  %v1053_v47 = vpop.f32.mrf.mxu0  ;;  %v7935_v6 = vld [vmem:[%s14282_s27 + $0x30] sm:$0xff] }
 0x1d3   :  { %v1091_v62 = vmul.f32 %v10737_v38, %v1053_v47  ;;  %7514 = vmatmul.msk.bf16.vlgmr.msra.gmra.mxu3 %vm74_vm0, %v1782_v33  ;;  %8401 = vrot.lane.b32.xlu1 %v8400_v53, %s9850_s3 }
 0x1d4   :  { %8396 = vrot.lane.b32.xlu2 %v10817_v34, %s9851_s0  ;;  %1973 = vmatpush.bf16.msra.mxu1 %v7935_v6 }
 0x1d5   :  { %v10825_v29 = vadd.f32 %v10742_v42, %v1091_v62  ;;  %8045 = vmatpush.bf16.msrb.mxu2 %v7935_v6  ;;  %v1266_v6 = vld [vmem:[#allocation2 + $0x130] sm:$0xff] }
 0x1d7   :  { %v14233_v10 = vmax.f32 %v10825_v29, 0.0  ;;  %v1185_v48 = vld [vmem:[#allocation2 + $0x101] sm:$0xff] }
 0x1d8   :  { %v1078_v2 = vpop.f32.mrf.mxu2  ;;  %v10844_v40 = vld [vmem:[#allocation2 + $0x42] sm:$0xff] }
 0x1d9   :  { %1143 = vst.msk [vmem:[#allocation2 + $0x51] sm:$0xff] %vm74_vm0, %v14233_v10  ;;  %v1101_v60 = vmul.f32 %v10737_v38, %v1078_v2  ;;  %v1175_v49 = vld [vmem:[#allocation2 + $0x41] sm:$0xff] }
 0x1da   :  { %v1055_v54 = vpop.f32.mrf.mxu0  ;;  %v1201_v58 = vld [vmem:[#allocation2 + $0x102] sm:$0xff] }
 0x1db   :  { %v10833_v23 = vadd.f32 %v10742_v42, %v1101_v60  ;;  %v1092_v43 = vmul.f32 %v10737_v38, %v1055_v54 }
 0x1dd   :  { %14284 = vst [vmem:[#allocation5_spill] sm:$0xff] %v10833_v23  ;;  %v14223_v22 = vmax.f32 %v10833_v23, 0.0  ;;  %v10838_v18 = vadd.f32 %v10742_v42, %v1092_v43  ;;  %v1195_v43 = vld [vmem:[#allocation2 + $0xa2] sm:$0xff] }
 0x1df   :  { %1153 = vst.msk [vmem:[#allocation2 + $0x111] sm:$0xff] %vm74_vm0, %v14223_v22  ;;  %v14232_v9 = vmax.f32 %v10838_v18, 0.0 }
 0x1e0   :  { %v1080_v4 = vpop.f32.mrf.mxu2  ;;  %v10846_v24 = vld [vmem:[#allocation2 + $0x52] sm:$0xff] }
 0x1e1   :  { %v1176_v35 = vld [vmem:[#allocation2 + $0x51] sm:$0xff]  ;;  %1144 = vst.msk [vmem:[#allocation2 + $0x61] sm:$0xff] %vm74_vm0, %v14232_v9  ;;  %v1102_v39 = vmul.f32 %v10737_v38, %v1080_v4  ;;  %v1785_v8 = vpack.c.bf16 %v10846_v24, %v10844_v40  ;;  %v8415_v28 = vpack.i.bf16 %v10846_v24, %v10844_v40  ;;  %v1179_v4 = vld [vmem:[#allocation2 + $0xa1] sm:$0xff] }
 0x1e2   :  { %v10854_v21 = vpack.i.bf16 %v1176_v35, %v1175_v49  ;;  %v1058_v37 = vpop.f32.mrf.mxu0 }
 0x1e3   :  { %v10857_v0 = vadd.f32 %v10742_v42, %v1102_v39  ;;  %v1093_v51 = vmul.f32 %v10737_v38, %v1058_v37  ;;  %7515 = vmatmul.msk.bf16.gmra.mxu3 %vm74_vm0, %v1785_v8  ;;  %v14286_v8 = vld [vmem:[#allocation4_spill] sm:$0xff] }
 0x1e4   :  { %8411 = vrot.lane.b32.xlu0 %v10854_v21, %s9851_s0 }
 0x1e5   :  { %14285 = vst [vmem:[#allocation7_spill] sm:$0xff] %v10857_v0  ;;  %v14222_v17 = vmax.f32 %v10857_v0, 0.0  ;;  %v10865_v50 = vadd.f32 %v10742_v42, %v1093_v51 }
 0x1e6   :  { %v1186_v14 = vld [vmem:[#allocation2 + $0x111] sm:$0xff] }
 0x1e7   :  { %1154 = vst.msk [vmem:[#allocation2 + $0x121] sm:$0xff] %vm74_vm0, %v14222_v17  ;;  %v14231_v30 = vmax.f32 %v10865_v50, 0.0  ;;  %v10871_v56 = vpack.i.bf16 %v1186_v14, %v1185_v48  ;;  %v1294_v17 = vld [vmem:[#allocation2 + $0xf2] sm:$0xff] }
 0x1e8   :  { %v10885_v59 = vld [vmem:[#allocation2 + $0x62] sm:$0xff]  ;;  %v11018_v10 = vld [vmem:[#allocation2 + $0x110] sm:$0xff] }
 0x1e9   :  { %1145 = vst.msk [vmem:[#allocation2 + $0x71] sm:$0xff] %vm74_vm0, %v14231_v30  ;;  %8406 = vrot.lane.b32.xlu2 %v10871_v56, %s9851_s0  ;;  %v1177_v57 = vld [vmem:[#allocation2 + $0x61] sm:$0xff]  ;;  %v8505_v30 = vpack.i.bf16 %v10844_v40, %v10805_v11  ;;  %v8510_v11 = vpack.i.bf16 %v10885_v59, %v10846_v24 }
 0x1ea   :  { %v1060_v55 = vpop.f32.mrf.mxu0 }
 0x1eb   :  { %v1094_v15 = vmul.f32 %v10737_v38, %v1060_v55 }
 0x1ed   :  { %v10880_v19 = vadd.f32 %v10742_v42, %v1094_v15 }
 0x1ef   :  { %v14230_v52 = vmax.f32 %v10880_v19, 0.0 }
 0x1f0   :  { %v10887_v5 = vld [vmem:[#allocation2 + $0x72] sm:$0xff] }
 0x1f1   :  { %v1178_v63 = vld [vmem:[#allocation2 + $0x71] sm:$0xff]  ;;  %1146 = vst.msk [vmem:[#allocation2 + $0x81] sm:$0xff] %vm74_vm0, %v14230_v52  ;;  %8416 = vrot.lane.b32.xlu2 %v8415_v28, %s9850_s3  ;;  %v1788_v26 = vpack.c.bf16 %v10887_v5, %v10885_v59  ;;  %v8425_v61 = vpack.i.bf16 %v10887_v5, %v10885_v59  ;;  %v8525_v59 = vpack.i.bf16 %v1201_v58, %v1294_v17 }
 0x1f2   :  { %v10897_v12 = vpack.i.bf16 %v1178_v63, %v1177_v57  ;;  %v1063_v13 = vpop.f32.mrf.mxu0 }
 0x1f3   :  { %v1095_v33 = vmul.f32 %v10737_v38, %v1063_v13  ;;  %7516 = vmatmul.msk.bf16.gmra.mxu3 %vm74_vm0, %v1788_v26  ;;  %8426 = vrot.lane.b32.xlu0 %v8425_v61, %s9850_s3 }
 0x1f4   :  { %8421 = vrot.lane.b32.xlu1 %v10897_v12, %s9851_s0 }
 0x1f5   :  { %v10905_v53 = vadd.f32 %v10742_v42, %v1095_v33 }
 0x1f7   :  { %v14229_v47 = vmax.f32 %v10905_v53, 0.0 }
 0x1f8   :  { %v10915_v54 = vld [vmem:[#allocation2 + $0x82] sm:$0xff] }
 0x1f9   :  { %1147 = vst.msk [vmem:[#allocation2 + $0xb1] sm:$0xff] %vm74_vm0, %v14229_v47  ;;  %v1791_v37 = vpack.c.bf16 %v14286_v8, %v10915_v54  ;;  %v10962_v8 = vld [vmem:[#allocation2 + $0x10] sm:$0xff]  ;;  %v8515_v40 = vpack.i.bf16 %v10915_v54, %v10887_v5  ;;  %v7934_v5 = vld [vmem:[%s14282_s27 + $0x28] sm:$0xff] }
 0x1fa   :  { %v1065_v62 = vpop.f32.mrf.mxu0  ;;  %1974 = vmatpush.bf16.msra.mxu1 %v7934_v5  ;;  %8046 = vmatpush.bf16.msrb.mxu2 %v7934_v5  ;;  %v1258_v54 = vld [vmem:[#allocation2 + $0x90] sm:$0xff] }
 0x1fb   :  { %v1096_v2 = vmul.f32 %v10737_v38, %v1065_v62 }
 0x1fd   :  { %v10913_v60 = vadd.f32 %v10742_v42, %v1096_v2 }
 0x1ff   :  { %v14228_v49 = vmax.f32 %v10913_v60, 0.0 }
 0x200   :  { %v10918_v35 = vld [vmem:[#allocation2 + $0xb2] sm:$0xff] }
 0x201   :  { %v1180_v39 = vld [vmem:[#allocation2 + $0xb1] sm:$0xff]  ;;  %1148 = vst.msk [vmem:[#allocation2 + $0xc1] sm:$0xff] %vm74_vm0, %v14228_v49  ;;  %v8435_v51 = vpack.i.bf16 %v10918_v35, %v1195_v43 }
 0x202   :  { %v8430_v48 = vpack.i.bf16 %v1180_v39, %v1179_v4  ;;  %v1068_v14 = vpop.f32.mrf.mxu0  ;;  %v10960_v39 = vld [vmem:[#allocation2 + $0x40] sm:$0xff]  ;;  %v10999_v49 = vld [vmem:[#allocation2 + $0xf0] sm:$0xff] }
 0x203   :  { %v1097_v55 = vmul.f32 %v10737_v38, %v1068_v14  ;;  %7517 = vmatmul.msk.bf16.gmra.mxu3 %vm74_vm0, %v1791_v37  ;;  %8436 = vrot.lane.b32.xlu1 %v8435_v51, %s9850_s3  ;;  %v1184_v51 = vld [vmem:[#allocation2 + $0xf1] sm:$0xff] }
 0x204   :  { %8431 = vrot.lane.b32.xlu2 %v8430_v48, %s9851_s0  ;;  %v10968_v14 = vld [vmem:[#allocation2 + $0x30] sm:$0xff] }
 0x205   :  { %v10931_v15 = vadd.f32 %v10742_v42, %v1097_v55  ;;  %v11003_v52 = vld [vmem:[#allocation2 + $0xb0] sm:$0xff] }
 0x207   :  { %v14227_v28 = vmax.f32 %v10931_v15, 0.0 }
 0x208   :  { %v1291_v13 = vld [vmem:[#allocation2 + $0xc2] sm:$0xff] }
 0x209   :  { %1149 = vst.msk [vmem:[#allocation2 + $0xd1] sm:$0xff] %vm74_vm0, %v14227_v28  ;;  %v10944_v62 = vld [vmem:[#allocation2 + $0xc1] sm:$0xff] }
 0x20a   :  { %v1070_v57 = vpop.f32.mrf.mxu0  ;;  %v10997_v28 = vld [vmem:[#allocation2 + $0x60] sm:$0xff] }
 0x20b   :  { %v1098_v63 = vmul.f32 %v10737_v38, %v1070_v57  ;;  %v8465_v57 = vpack.i.bf16 %v10960_v39, %v10968_v14 }
 0x20d   :  { %v10939_v26 = vadd.f32 %v10742_v42, %v1098_v63  ;;  %v10958_v42 = vld [vmem:[#allocation2 + $0x20] sm:$0xff] }
 0x20e   :  { %v8460_v48 = vpack.i.bf16 %v10958_v42, %v10962_v8  ;;  %v10979_v63 = vld [vmem:[#allocation2 + $0x80] sm:$0xff] }
 0x20f   :  { %v14226_v61 = vmax.f32 %v10939_v26, 0.0 }
 0x210   :  { %v10942_v33 = vld [vmem:[#allocation2 + $0xd2] sm:$0xff] }
 0x211   :  { %v1182_v2 = vld [vmem:[#allocation2 + $0xd1] sm:$0xff]  ;;  %1150 = vst.msk [vmem:[#allocation2 + $0xe1] sm:$0xff] %vm74_vm0, %v14226_v61  ;;  %v1794_v43 = vpack.c.bf16 %v10942_v33, %v1291_v13  ;;  %v8445_v4 = vpack.i.bf16 %v10942_v33, %v1291_v13  ;;  %v10995_v61 = vld [vmem:[#allocation2 + $0xc0] sm:$0xff] }
 0x212   :  { %v10952_v38 = vpack.i.bf16 %v1182_v2, %v10944_v62 }
 0x213   :  { %7518 = vmatmul.msk.bf16.gmra.mxu3 %vm74_vm0, %v1794_v43  ;;  %8446 = vrot.lane.b32.xlu2 %v8445_v4, %s9850_s3  ;;  %v1202_v43 = vld [vmem:[#allocation2 + $0x112] sm:$0xff] }
 0x214   :  { %8441 = vrot.lane.b32.xlu0 %v10952_v38, %s9851_s0  ;;  %v10983_v4 = vld [vmem:[#allocation2 + $0x70] sm:$0xff]  ;;  %v8455_v46 = vpack.i.bf16 %v1202_v43, %v1201_v58  ;;  %v1800_v9 = vpack.c.bf16 %v1202_v43, %v1201_v58 }
 0x215   :  { %v8545_v58 = vpack.i.bf16 %v10983_v4, %v10997_v28 }
 0x218   :  { %v10964_v37 = vld [vmem:[#allocation2 + $0xe1] sm:$0xff] }
 0x219   :  { %v10971_v55 = vpack.i.bf16 %v1184_v51, %v10964_v37  ;;  %v10981_v2 = vld [vmem:[#allocation2 + $0xe2] sm:$0xff]  ;;  %v8475_v51 = vpack.i.bf16 %v10979_v63, %v10983_v4 }
 0x21a   :  { %v1797_v22 = vpack.c.bf16 %v1294_v17, %v10981_v2 }
 0x21b   :  { %8461 = vrot.lane.b32.xlu2 %v8460_v48, %s9849_s29  ;;  %8451 = vrot.lane.b32.xlu1 %v10971_v55, %s9851_s0  ;;  %v8480_v48 = vpack.i.bf16 %v1294_v17, %v10981_v2  ;;  %v8550_v17 = vpack.i.bf16 %v1258_v54, %v10979_v63  ;;  %v7931_v63 = vld [vmem:[%s14282_s27 + $0x10] sm:$0xff]  ;;  %v8590_v54 = vpack.i.bf16 %v10981_v2, %v10942_v33 }
 0x21c   :  { %8466 = vrot.lane.b32.xlu0 %v8465_v57, %s9849_s29  ;;  %v10993_v57 = vld [vmem:[#allocation2 + $0x100] sm:$0xff] }
 0x21d   :  { %v8490_v47 = vpack.i.bf16 %v10993_v57, %v10999_v49 }
 0x223   :  { %8476 = vrot.lane.b32.xlu2 %v8475_v51, %s9849_s29  ;;  %7519 = vmatmul.msk.bf16.gmra.mxu3 %vm74_vm0, %v1797_v22  ;;  %v11005_v51 = vld [vmem:[#allocation2 + $0x50] sm:$0xff]  ;;  %v8485_v22 = vpack.i.bf16 %v10995_v61, %v11003_v52 }
 0x224   :  { %8481 = vrot.lane.b32.xlu0 %v8480_v48, %s9850_s3  ;;  %8456 = vrot.lane.b32.xlu1 %v8455_v46, %s9850_s3  ;;  %v8470_v46 = vpack.i.bf16 %v10997_v28, %v11005_v51  ;;  %v11014_v48 = vld [vmem:[#allocation2 + $0x120] sm:$0xff] }
 0x225   :  { %v8495_v25 = vpack.i.bf16 %v11014_v48, %v11018_v10 }
 0x22b   :  { %8491 = vrot.lane.b32.xlu2 %v8490_v47, %s9849_s29  ;;  %v8520_v47 = vpack.i.bf16 %v1291_v13, %v10918_v35  ;;  %v7933_v35 = vld [vmem:[%s14282_s27 + $0x20] sm:$0xff]  ;;  %v8540_v13 = vpack.i.bf16 %v11005_v51, %v10960_v39 }
 0x22c   :  { %8486 = vrot.lane.b32.xlu0 %v8485_v22, %s9849_s29  ;;  %8471 = vrot.lane.b32.xlu1 %v8470_v46, %s9849_s29  ;;  %v7932_v22 = vld [vmem:[%s14282_s27 + $0x18] sm:$0xff]  ;;  %v11070_v46 = vld [vmem:[#allocation2 + $0xd0] sm:$0xff] }
 0x22d   :  { %1975 = vmatpush.bf16.msra.mxu1 %v7933_v35  ;;  %8047 = vmatpush.bf16.msrb.mxu2 %v7933_v35 }
 0x22e   :  { %v8392_v35 = vpop.permute.xlu0 %8391 }
 0x22f   :  { %v8387_v33 = vpop.permute.xlu1 %8386 }
 0x231   :  { %1976 = vmatpush.bf16.msra.mxu1 %v7932_v22  ;;  %8048 = vmatpush.bf16.msrb.mxu2 %v7932_v22  ;;  %v1155_v22 = vld [vmem:[#allocation2] sm:$0xff] }
 0x233   :  { %8506 = vrot.lane.b32.xlu2 %v8505_v30, %s9851_s0  ;;  %7520 = vmatmul.msk.bf16.gmra.mxu3 %vm74_vm0, %v1800_v9  ;;  %v8535_v30 = vpack.i.bf16 %v10968_v14, %v10958_v42 }
 0x234   :  { %8496 = vrot.lane.b32.xlu0 %v8495_v25, %s9849_s29  ;;  %8501 = vrot.lane.b32.xlu1 %v8500_v45, %s9851_s0  ;;  %v1250_v45 = vld [vmem:[#allocation2 + $0x122] sm:$0xff]  ;;  %v1298_v25 = vld [vmem:[#allocation2 + $0x132] sm:$0xff] }
 0x235   :  { %v8530_v9 = vpack.i.bf16 %v1250_v45, %v1202_v43  ;;  %v1803_v24 = vpack.c.bf16 %v1298_v25, %v1250_v45  ;;  %v11059_v43 = vpop.permute.xlu2 %8396  ;;  %1977 = vmatpush.bf16.msra.mxu1 %v7931_v63  ;;  %8049 = vmatpush.bf16.msrb.mxu2 %v7931_v63  ;;  %v11085_v45 = vld [vmem:[#allocation2 + $0xe0] sm:$0xff] }
 0x236   :  { %v7929_v25 = vld [vmem:[%s14282_s27] sm:$0xff] }
 0x239   :  { %1978 = vmatpush.bf16.msra.mxu1 %v7930_v16  ;;  %8050 = vmatpush.bf16.msrb.mxu2 %v7930_v16 }
 0x23b   :  { %8521 = vrot.lane.b32.xlu2 %v8520_v47, %s9851_s0  ;;  %v8560_v47 = vpack.i.bf16 %v11018_v10, %v10993_v57 }
 0x23c   :  { %8511 = vrot.lane.b32.xlu0 %v8510_v11, %s9851_s0  ;;  %8516 = vrot.lane.b32.xlu1 %v8515_v40, %s9851_s0  ;;  %v8555_v11 = vpack.i.bf16 %v11070_v46, %v10995_v61 }
 0x23d   :  { %1979 = vmatpush.bf16.msra.mxu1 %v7929_v25  ;;  %8051 = vmatpush.bf16.msrb.mxu2 %v7929_v25 }
 0x243   :  { %8531 = vrot.lane.b32.xlu2 %v8530_v9, %s9851_s0  ;;  %7521 = vmatmul.msk.bf16.gmra.mxu3 %vm74_vm0, %v1803_v24  ;;  %v11076_v40 = vpop.permute.xlu2 %8406  ;;  %v8565_v9 = vpack.i.bf16 %v1266_v6, %v11014_v48  ;;  %v8585_v48 = vpack.i.bf16 %v11085_v45, %v11070_v46 }
 0x244   :  { %8536 = vrot.lane.b32.xlu0 %v8535_v30, %s9850_s3  ;;  %8526 = vrot.lane.b32.xlu1 %v8525_v59, %s9851_s0  ;;  %v11099_v30 = vld [vmem:[#allocation2 + $0x81] sm:$0xff]  ;;  %v1274_v59 = vld [vmem:[#allocation2 + $0x91] sm:$0xff] }
 0x245   :  { %v8600_v5 = vpack.i.bf16 %v1274_v59, %v11099_v30  ;;  %v8402_v16 = vpop.permute.xlu1 %8401 }
 0x24b   :  { %8546 = vrot.lane.b32.xlu2 %v8545_v58, %s9850_s3  ;;  %v11097_v24 = vpop.permute.xlu2 %8416  ;;  %v11119_v58 = vld [vmem:[#allocation2 + $0x121] sm:$0xff] }
 0x24c   :  { %8551 = vrot.lane.b32.xlu0 %v8550_v17, %s9850_s3  ;;  %8541 = vrot.lane.b32.xlu1 %v8540_v13, %s9850_s3  ;;  %v8389_v17 = vunpack.i.h.bf16 %v8387_v33  ;;  %v8388_v13 = vunpack.i.l.bf16 %v8387_v33 }
 0x253   :  { %8571 = vrot.lane.b32.xlu2 %v10817_v34, %s9849_s29  ;;  %v8595_v34 = vpack.i.bf16 %v10999_v49, %v11085_v45 }
 0x254   :  { %8561 = vrot.lane.b32.xlu0 %v8560_v47, %s9850_s3  ;;  %8556 = vrot.lane.b32.xlu1 %v8555_v11, %s9850_s3  ;;  %v8394_v47 = vunpack.i.h.bf16 %v8392_v35  ;;  %v8393_v11 = vunpack.i.l.bf16 %v8392_v35 }
 0x256   :  { %v11128_v6 = vpop.permute.xlu0 %8411 }
 0x25b   :  { %8596 = vrot.lane.b32.xlu2 %v8595_v34, %s9850_s3 }
 0x25c   :  { %8576 = vrot.lane.b32.xlu0 %v10854_v21, %s9849_s29  ;;  %8566 = vrot.lane.b32.xlu1 %v8565_v9, %s9850_s3 }
 0x25e   :  { %v11108_v21 = vpop.permute.xlu2 %8431 }
 0x263   :  { %8601 = vrot.lane.b32.xlu2 %v8600_v5, %s9849_s29 }
 0x264   :  { %8591 = vrot.lane.b32.xlu0 %v8590_v54, %s9851_s0  ;;  %8581 = vrot.lane.b32.xlu1 %v10897_v12, %s9849_s29  ;;  %v1282_v12 = vld [vmem:[#allocation2 + $0x131] sm:$0xff] }
 0x265   :  { %v8620_v63 = vpack.i.bf16 %v1282_v12, %v11119_v58  ;;  %v11141_v12 = vpop.permute.xlu0 %8426 }
 0x266   :  { %v11137_v33 = vpop.permute.xlu1 %8421 }
 0x26b   :  { %8616 = vrot.lane.b32.xlu2 %v10871_v56, %s9849_s29  ;;  %v1683_v56 = vsel %vm74_vm0, %v1155_v22, %v8388_v13  ;;  %v7942_v13 = vld [vmem:[%s14282_s27 + $0x68] sm:$0xff] }
 0x26c   :  { %8606 = vrot.lane.b32.xlu0 %v10952_v38, %s9849_s29  ;;  %8586 = vrot.lane.b32.xlu1 %v8585_v48, %s9849_s29  ;;  %v1684_v38 = vsel %vm74_vm0, %v10962_v8, %v8389_v17  ;;  %v1700_v59 = vsel %vm1699_vm12, %v1683_v56, %v8393_v11  ;;  %v7944_v8 = vld [vmem:[%s14282_s27 + $0x78] sm:$0xff]  ;;  %v7943_v17 = vld [vmem:[%s14282_s27 + $0x70] sm:$0xff]  ;;  %v8399_v56 = vunpack.i.h.bf16 %v11059_v43 }
 0x26d   :  { %v11117_v2 = vpop.permute.xlu2 %8446  ;;  %v1701_v5 = vsel %vm1699_vm12, %v1684_v38, %v8394_v47  ;;  %2021 = vmatpush.bf16.msra.mxu2 %v7944_v8  ;;  %v7941_v11 = vld [vmem:[%s14282_s27 + $0x60] sm:$0xff]  ;;  %v8398_v38 = vunpack.i.l.bf16 %v11059_v43  ;;  %v7939_v43 = vld [vmem:[%s14282_s27 + $0x50] sm:$0xff] }
 0x26f   :  { %v1685_v8 = vsel %vm74_vm0, %v10958_v42, %v8398_v38  ;;  %v7938_v42 = vld [vmem:[%s14282_s27 + $0x48] sm:$0xff] }
 0x271   :  { %2022 = vmatpush.bf16.msra.mxu2 %v7943_v17  ;;  %v1686_v17 = vsel %vm74_vm0, %v10968_v14, %v8399_v56 }
 0x274   :  { %8621 = vrot.lane.b32.xlu0 %v8620_v63, %s9849_s29  ;;  %8611 = vrot.lane.b32.xlu1 %v10971_v55, %s9849_s29 }
 0x275   :  { %v8462_v25 = vpop.permute.xlu2 %8461  ;;  %v11149_v22 = vpop.permute.xlu1 %8436  ;;  %2023 = vmatpush.bf16.msra.mxu2 %v7942_v13 }
 0x276   :  { %v8464_v34 = vunpack.i.h.bf16 %v8462_v25  ;;  %v8463_v9 = vunpack.i.l.bf16 %v8462_v25  ;;  %v8404_v25 = vunpack.i.h.bf16 %v8402_v16 }
 0x278   :  { %v1716_v54 = vsel %vm925_vm10, %v1700_v59, %v8463_v9  ;;  %v1717_v55 = vsel %vm925_vm10, %v1701_v5, %v8464_v34  ;;  %v8403_v34 = vunpack.i.l.bf16 %v8402_v16  ;;  %v7940_v9 = vld [vmem:[%s14282_s27 + $0x58] sm:$0xff]  ;;  %v1703_v13 = vsel %vm1699_vm12, %v1686_v17, %v8404_v25 }
 0x279   :  { %v1780_v48 = vpack.c.bf16 %v1717_v55, %v1716_v54  ;;  %2024 = vmatpush.bf16.msra.mxu2 %v7941_v11  ;;  %v8414_v17 = vunpack.i.h.bf16 %v11128_v6 }
 0x27a   :  { %v1702_v16 = vsel %vm1699_vm12, %v1685_v8, %v8403_v34 }
 0x27b   :  { %1980 = vmatmul.bf16.vlgmr.msra.gmra.mxu1 %v1780_v48 }
 0x27d   :  { %v11139_v35 = vpop.permute.xlu2 %8476  ;;  %2025 = vmatpush.bf16.msra.mxu2 %v7940_v9 }
 0x281   :  { %2026 = vmatpush.bf16.msra.mxu2 %v7939_v43  ;;  %v8413_v43 = vunpack.i.l.bf16 %v11128_v6  ;;  %v8418_v6 = vunpack.i.l.bf16 %v11097_v24 }
 0x285   :  { %v8492_v63 = vpop.permute.xlu2 %8491  ;;  %2027 = vmatpush.bf16.msra.mxu2 %v7938_v42 }
 0x286   :  { %v11151_v47 = vpop.permute.xlu0 %8441  ;;  %v8494_v8 = vunpack.i.h.bf16 %v8492_v63 }
 0x28d   :  { %v11161_v59 = vpop.permute.xlu2 %8506  ;;  %v8452_v5 = vpop.permute.xlu1 %8451 }
 0x28e   :  { %v8467_v54 = vpop.permute.xlu0 %8466  ;;  %v8453_v41 = vunpack.i.l.bf16 %v8452_v5 }
 0x28f   :  { %v8469_v55 = vunpack.i.h.bf16 %v8467_v54  ;;  %v8468_v48 = vunpack.i.l.bf16 %v8467_v54  ;;  %v8454_v54 = vunpack.i.h.bf16 %v8452_v5 }
 0x290   :  { %v1695_v5 = vsel %vm74_vm0, %v11085_v45, %v8453_v41  ;;  %v1687_v41 = vsel %vm74_vm0, %v10960_v39, %v8413_v43  ;;  %v1688_v45 = vsel %vm74_vm0, %v11005_v51, %v8414_v17  ;;  %v8409_v51 = vunpack.i.h.bf16 %v11076_v40 }
 0x291   :  { %v1718_v11 = vsel %vm925_vm10, %v1702_v16, %v8468_v48  ;;  %v1719_v9 = vsel %vm925_vm10, %v1703_v13, %v8469_v55  ;;  %v8493_v48 = vunpack.i.l.bf16 %v8492_v63  ;;  %v1696_v55 = vsel %vm74_vm0, %v10999_v49, %v8454_v54 }
 0x292   :  { %v1783_v20 = vpack.c.bf16 %v1719_v9, %v1718_v11  ;;  %v8419_v9 = vunpack.i.h.bf16 %v11097_v24 }
 0x294   :  { %1985 = vmatmul.bf16.gmra.mxu1 %v1783_v20  ;;  %v7937_v20 = vld [vmem:[%s14282_s27 + $0x40] sm:$0xff] }
 0x295   :  { %v11177_v38 = vpop.permute.xlu2 %8521  ;;  %2028 = vmatpush.bf16.msra.mxu2 %v7937_v20 }
 0x296   :  { %v8482_v14 = vpop.permute.xlu0 %8481  ;;  %v8457_v56 = vpop.permute.xlu1 %8456 }
 0x297   :  { %v8484_v34 = vunpack.i.h.bf16 %v8482_v14  ;;  %v8483_v25 = vunpack.i.l.bf16 %v8482_v14  ;;  %v8459_v20 = vunpack.i.h.bf16 %v8457_v56  ;;  %v8458_v17 = vunpack.i.l.bf16 %v8457_v56 }
 0x299   :  { %v1712_v16 = vsel %vm1699_vm12, %v1695_v5, %v8483_v25  ;;  %v1713_v13 = vsel %vm1699_vm12, %v1696_v55, %v8484_v34  ;;  %v1704_v25 = vsel %vm1699_vm12, %v1687_v41, %v8418_v6  ;;  %v8408_v5 = vunpack.i.l.bf16 %v11076_v40 }
 0x29a   :  { %v1728_v63 = vsel %vm925_vm10, %v1712_v16, %v8493_v48  ;;  %v1729_v11 = vsel %vm925_vm10, %v1713_v13, %v8494_v8  ;;  %v1705_v8 = vsel %vm1699_vm12, %v1688_v45, %v8419_v9 }
 0x29b   :  { %v1798_v49 = vpack.c.bf16 %v1729_v11, %v1728_v63  ;;  %v1697_v13 = vsel %vm74_vm0, %v10993_v57, %v8408_v5  ;;  %v1698_v63 = vsel %vm74_vm0, %v11018_v10, %v8409_v51  ;;  %v8424_v11 = vunpack.i.h.bf16 %v11137_v33 }
 0x29c   :  { %v1714_v40 = vsel %vm1699_vm12, %v1697_v13, %v8458_v17  ;;  %v1715_v9 = vsel %vm1699_vm12, %v1698_v63, %v8459_v20  ;;  %v8428_v57 = vunpack.i.l.bf16 %v11141_v12  ;;  %v8479_v10 = vunpack.i.h.bf16 %v11139_v35 }
 0x29d   :  { %2010 = vmatmul.bf16.vlgmr.msrb.gmra.mxu2 %v1798_v49  ;;  %v11202_v48 = vpop.permute.xlu2 %8531  ;;  %v8423_v49 = vunpack.i.l.bf16 %v11137_v33 }
 0x29e   :  { %v11198_v54 = vpop.permute.xlu0 %8486  ;;  %v8472_v42 = vpop.permute.xlu1 %8471 }
 0x29f   :  { %v8474_v14 = vunpack.i.h.bf16 %v8472_v42  ;;  %v8473_v34 = vunpack.i.l.bf16 %v8472_v42  ;;  %v8429_v42 = vunpack.i.h.bf16 %v11141_v12 }
 0x2a1   :  { %v1720_v39 = vsel %vm925_vm10, %v1704_v25, %v8473_v34  ;;  %v1721_v55 = vsel %vm925_vm10, %v1705_v8, %v8474_v14  ;;  %v8478_v34 = vunpack.i.l.bf16 %v11139_v35  ;;  %v1689_v25 = vsel %vm74_vm0, %v10997_v28, %v8423_v49 }
 0x2a2   :  { %v1786_v24 = vpack.c.bf16 %v1721_v55, %v1720_v39  ;;  %v1690_v8 = vsel %vm74_vm0, %v10983_v4, %v8424_v11  ;;  %v1706_v12 = vsel %vm1699_vm12, %v1689_v25, %v8428_v57 }
 0x2a3   :  { %v1707_v51 = vsel %vm1699_vm12, %v1690_v8, %v8429_v42  ;;  %v1722_v5 = vsel %vm925_vm10, %v1706_v12, %v8478_v34  ;;  %v8438_v42 = vunpack.i.l.bf16 %v11149_v22 }
 0x2a4   :  { %1990 = vmatmul.bf16.gmra.mxu1 %v1786_v24  ;;  %v1723_v35 = vsel %vm925_vm10, %v1707_v51, %v8479_v10  ;;  %v8488_v10 = vunpack.i.l.bf16 %v11198_v54 }
 0x2a5   :  { %v11222_v33 = vpop.permute.xlu2 %8546  ;;  %v1789_v24 = vpack.c.bf16 %v1723_v35, %v1722_v5 }
 0x2a6   :  { %v8497_v43 = vpop.permute.xlu0 %8496  ;;  %v8502_v16 = vpop.permute.xlu1 %8501 }
 0x2a7   :  { %v8499_v41 = vunpack.i.h.bf16 %v8497_v43  ;;  %v8498_v45 = vunpack.i.l.bf16 %v8497_v43  ;;  %v8504_v20 = vunpack.i.h.bf16 %v8502_v16  ;;  %v8503_v17 = vunpack.i.l.bf16 %v8502_v16 }
 0x2a9   :  { %v1730_v56 = vsel %vm925_vm10, %v1714_v40, %v8498_v45  ;;  %v1731_v6 = vsel %vm925_vm10, %v1715_v9, %v8499_v41  ;;  %v1733_v11 = vsel %vm74_vm0, %v10807_v3, %v8504_v20  ;;  %v1732_v49 = vsel %vm74_vm0, %v10765_v32, %v8503_v17 }
 0x2aa   :  { %v1801_v14 = vpack.c.bf16 %v1731_v6, %v1730_v56  ;;  %v8434_v40 = vunpack.i.h.bf16 %v11108_v21  ;;  %v8433_v9 = vunpack.i.l.bf16 %v11108_v21  ;;  %v8439_v6 = vunpack.i.h.bf16 %v11149_v22 }
 0x2ab   :  { %v8489_v32 = vunpack.i.h.bf16 %v11198_v54  ;;  %v8509_v17 = vunpack.i.h.bf16 %v11161_v59 }
 0x2ac   :  { %v1692_v25 = vsel %vm74_vm0, %v11003_v52, %v8434_v40  ;;  %v8508_v52 = vunpack.i.l.bf16 %v11161_v59 }
 0x2ad   :  { %2015 = vmatmul.bf16.gmra.mxu2 %v1801_v14  ;;  %v8572_v28 = vpop.permute.xlu2 %8571  ;;  %v1163_v14 = vld [vmem:[#allocation2 + $0xa0] sm:$0xff]  ;;  %v1709_v51 = vsel %vm1699_vm12, %v1692_v25, %v8439_v6 }
 0x2ae   :  { %v11228_v39 = vpop.permute.xlu0 %8511  ;;  %v11230_v55 = vpop.permute.xlu1 %8516  ;;  %v8574_v41 = vunpack.i.h.bf16 %v8572_v28  ;;  %v8573_v45 = vunpack.i.l.bf16 %v8572_v28  ;;  %v1691_v21 = vsel %vm74_vm0, %v1163_v14, %v8433_v9  ;;  %v1725_v35 = vsel %vm925_vm10, %v1709_v51, %v8489_v32 }
 0x2af   :  { %v1708_v22 = vsel %vm1699_vm12, %v1691_v21, %v8438_v42  ;;  %v8513_v14 = vunpack.i.l.bf16 %v11228_v39  ;;  %v8444_v32 = vunpack.i.h.bf16 %v11151_v47  ;;  %v1224_v21 = vld [vmem:[#allocation2 + $0x61] sm:$0xff] }
 0x2b0   :  { %v1724_v5 = vsel %vm925_vm10, %v1708_v22, %v8488_v10  ;;  %v8443_v10 = vunpack.i.l.bf16 %v11151_v47  ;;  %v8449_v47 = vunpack.i.h.bf16 %v11117_v2 }
 0x2b4   :  { %1995 = vmatmul.bf16.gmra.mxu1 %v1789_v24  ;;  %v1792_v24 = vpack.c.bf16 %v1725_v35, %v1724_v5  ;;  %v8549_v5 = vunpack.i.h.bf16 %v11222_v33  ;;  %v8548_v35 = vunpack.i.l.bf16 %v11222_v33 }
 0x2b6   :  { %v8537_v43 = vpop.permute.xlu0 %8536  ;;  %v11236_v4 = vpop.permute.xlu1 %8526 }
 0x2b7   :  { %v8539_v13 = vunpack.i.h.bf16 %v8537_v43  ;;  %v8538_v63 = vunpack.i.l.bf16 %v8537_v43 }
 0x2b9   :  { %v1748_v16 = vsel %vm1699_vm12, %v1732_v49, %v8538_v63  ;;  %v1749_v56 = vsel %vm1699_vm12, %v1733_v11, %v8539_v13  ;;  %v1221_v11 = vld [vmem:[#allocation2 + $0x31] sm:$0xff]  ;;  %v1222_v49 = vld [vmem:[#allocation2 + $0x41] sm:$0xff] }
 0x2ba   :  { %v1764_v57 = vsel %vm925_vm10, %v1748_v16, %v8573_v45  ;;  %v1765_v3 = vsel %vm925_vm10, %v1749_v56, %v8574_v41  ;;  %v1734_v40 = vsel %vm74_vm0, %v1221_v11, %v8508_v52  ;;  %v1735_v9 = vsel %vm74_vm0, %v1222_v49, %v8509_v17  ;;  %v8597_v52 = vpop.permute.xlu2 %8596 }
 0x2bb   :  { %v1781_v34 = vpack.c.bf16 %v1765_v3, %v1764_v57  ;;  %v8514_v3 = vunpack.i.h.bf16 %v11228_v39  ;;  %v1694_v39 = vsel %vm74_vm0, %v11070_v46, %v8444_v32  ;;  %v8448_v17 = vunpack.i.l.bf16 %v11117_v2 }
 0x2bc   :  { %v1711_v46 = vsel %vm1699_vm12, %v1694_v39, %v8449_v47  ;;  %v1227_v47 = vld [vmem:[#allocation2 + $0xb1] sm:$0xff] }
 0x2bd   :  { %2029 = vmatmul.bf16.vlgmr.msra.gmra.mxu2 %v1781_v34  ;;  %v1223_v34 = vld [vmem:[#allocation2 + $0x51] sm:$0xff]  ;;  %v1737_v51 = vsel %vm74_vm0, %v1224_v21, %v8514_v3 }
 0x2be   :  { %v11255_v8 = vpop.permute.xlu0 %8551  ;;  %v8542_v12 = vpop.permute.xlu1 %8541  ;;  %v1736_v22 = vsel %vm74_vm0, %v1223_v34, %v8513_v14 }
 0x2bf   :  { %v8544_v28 = vunpack.i.h.bf16 %v8542_v12  ;;  %v8543_v43 = vunpack.i.l.bf16 %v8542_v12 }
 0x2c1   :  { %v1750_v16 = vsel %vm1699_vm12, %v1734_v40, %v8543_v43  ;;  %v1751_v56 = vsel %vm1699_vm12, %v1735_v9, %v8544_v28  ;;  %v1752_v43 = vsel %vm1699_vm12, %v1736_v22, %v8548_v35 }
 0x2c4   :  { %2000 = vmatmul.bf16.gmra.mxu1 %v1792_v24  ;;  %v1693_v24 = vsel %vm74_vm0, %v10995_v61, %v8443_v10 }
 0x2c5   :  { %v1710_v61 = vsel %vm1699_vm12, %v1693_v24, %v8448_v17 }
 0x2c6   :  { %v11261_v54 = vpop.permute.xlu0 %8561  ;;  %v11263_v20 = vpop.permute.xlu1 %8556 }
 0x2c7   :  { %v8559_v35 = vunpack.i.h.bf16 %v11263_v20 }
 0x2ce   :  { %v8577_v13 = vpop.permute.xlu0 %8576  ;;  %v11267_v63 = vpop.permute.xlu1 %8566 }
 0x2cf   :  { %v8579_v41 = vunpack.i.h.bf16 %v8577_v13  ;;  %v8578_v45 = vunpack.i.l.bf16 %v8577_v13  ;;  %v1753_v13 = vsel %vm1699_vm12, %v1737_v51, %v8549_v5  ;;  %v8524_v51 = vunpack.i.h.bf16 %v11177_v38 }
 0x2d0   :  { %v8523_v5 = vunpack.i.l.bf16 %v11177_v38 }
 0x2d1   :  { %v1766_v6 = vsel %vm925_vm10, %v1750_v16, %v8578_v45  ;;  %v1767_v59 = vsel %vm925_vm10, %v1751_v56, %v8579_v41  ;;  %v8519_v16 = vunpack.i.h.bf16 %v11230_v55  ;;  %v8518_v56 = vunpack.i.l.bf16 %v11230_v55 }
 0x2d2   :  { %v1784_v42 = vpack.c.bf16 %v1767_v59, %v1766_v6  ;;  %v8602_v6 = vpop.permute.xlu2 %8601  ;;  %v8554_v59 = vunpack.i.h.bf16 %v11255_v8  ;;  %v1740_v17 = vsel %vm74_vm0, %v1227_v47, %v8523_v5  ;;  %v8568_v47 = vunpack.i.l.bf16 %v11267_v63 }
 0x2d3   :  { %v8604_v3 = vunpack.i.h.bf16 %v8602_v6  ;;  %v8603_v14 = vunpack.i.l.bf16 %v8602_v6  ;;  %v1739_v10 = vsel %vm74_vm0, %v11099_v30, %v8519_v16  ;;  %v8558_v30 = vunpack.i.l.bf16 %v11263_v20 }
 0x2d4   :  { %2034 = vmatmul.bf16.gmra.mxu2 %v1784_v42  ;;  %v8553_v42 = vunpack.i.l.bf16 %v11255_v8  ;;  %v1755_v21 = vsel %vm1699_vm12, %v1739_v10, %v8554_v59  ;;  %v1232_v10 = vld [vmem:[#allocation2 + $0x101] sm:$0xff] }
 0x2d6   :  { %v8582_v57 = vpop.permute.xlu1 %8581 }
 0x2d7   :  { %v8584_v25 = vunpack.i.h.bf16 %v8582_v57  ;;  %v8583_v12 = vunpack.i.l.bf16 %v8582_v57  ;;  %v1225_v57 = vld [vmem:[#allocation2 + $0x71] sm:$0xff] }
 0x2d8   :  { %v1738_v32 = vsel %vm74_vm0, %v1225_v57, %v8518_v56  ;;  %v8529_v57 = vunpack.i.h.bf16 %v11236_v4 }
 0x2d9   :  { %v1768_v33 = vsel %vm925_vm10, %v1752_v43, %v8583_v12  ;;  %v1769_v41 = vsel %vm925_vm10, %v1753_v13, %v8584_v25  ;;  %v1754_v34 = vsel %vm1699_vm12, %v1738_v32, %v8553_v42  ;;  %v8592_v25 = vpop.permute.xlu0 %8591  ;;  %v1771_v12 = vsel %vm925_vm10, %v1755_v21, %v8604_v3 }
 0x2da   :  { %v1787_v9 = vpack.c.bf16 %v1769_v41, %v1768_v33  ;;  %v1770_v55 = vsel %vm925_vm10, %v1754_v34, %v8603_v14  ;;  %v1756_v43 = vsel %vm1699_vm12, %v1740_v17, %v8558_v30  ;;  %v8594_v33 = vunpack.i.h.bf16 %v8592_v25  ;;  %v8617_v14 = vpop.permute.xlu2 %8616  ;;  %v2079_v17 = vpop.f32.mrf.mxu3 }
 0x2db   :  { %v1790_v22 = vpack.c.bf16 %v1771_v12, %v1770_v55  ;;  %v8593_v20 = vunpack.i.l.bf16 %v8592_v25  ;;  %v8528_v3 = vunpack.i.l.bf16 %v11236_v4  ;;  %v8564_v32 = vunpack.i.h.bf16 %v11261_v54 }
 0x2dc   :  { %v8619_v34 = vunpack.i.h.bf16 %v8617_v14  ;;  %v8618_v21 = vunpack.i.l.bf16 %v8617_v14  ;;  %v1745_v55 = vsel %vm74_vm0, %v1232_v10, %v8529_v57  ;;  %v8534_v30 = vunpack.i.h.bf16 %v11202_v48 }
 0x2de   :  { %v8587_v28 = vpop.permute.xlu1 %8586 }
 0x2df   :  { %v8589_v11 = vunpack.i.h.bf16 %v8587_v28  ;;  %v8588_v49 = vunpack.i.l.bf16 %v8587_v28  ;;  %v1741_v28 = vsel %vm74_vm0, %v10944_v62, %v8524_v51  ;;  %v1743_v62 = vsel %vm74_vm0, %v10964_v37, %v8594_v33 }
 0x2e0   :  { %v1757_v13 = vsel %vm1699_vm12, %v1741_v28, %v8559_v35  ;;  %v8563_v37 = vunpack.i.l.bf16 %v11261_v54 }
 0x2e1   :  { %v1726_v45 = vsel %vm925_vm10, %v1710_v61, %v8588_v49  ;;  %v1727_v2 = vsel %vm925_vm10, %v1711_v46, %v8589_v11  ;;  %v8607_v8 = vpop.permute.xlu0 %8606  ;;  %v1229_v61 = vld [vmem:[#allocation2 + $0xd1] sm:$0xff] }
 0x2e2   :  { %v1795_v40 = vpack.c.bf16 %v1727_v2, %v1726_v45  ;;  %v8609_v24 = vunpack.i.h.bf16 %v8607_v8  ;;  %v8608_v39 = vunpack.i.l.bf16 %v8607_v8  ;;  %v1742_v2 = vsel %vm74_vm0, %v1229_v61, %v8593_v20  ;;  %v2081_v61 = vpop.f32.mrf.mxu3 }
 0x2e4   :  { %2005 = vmatmul.bf16.gmra.mxu1 %v1795_v40  ;;  %2039 = vmatmul.bf16.gmra.mxu2 %v1787_v9  ;;  %v1772_v11 = vsel %vm925_vm10, %v1756_v43, %v8608_v39  ;;  %v1773_v38 = vsel %vm925_vm10, %v1757_v13, %v8609_v24  ;;  %v8599_v40 = vunpack.i.h.bf16 %v8597_v52  ;;  %v8598_v9 = vunpack.i.l.bf16 %v8597_v52  ;;  %v1231_v52 = vld [vmem:[#allocation2 + $0xf1] sm:$0xff] }
 0x2e5   :  { %v1793_v49 = vpack.c.bf16 %v1773_v38, %v1772_v11  ;;  %v1744_v25 = vsel %vm74_vm0, %v1231_v52, %v8528_v3  ;;  %v8533_v24 = vunpack.i.l.bf16 %v11202_v48  ;;  %v8569_v39 = vunpack.i.h.bf16 %v11267_v63  ;;  %v1233_v13 = vld [vmem:[#allocation2 + $0x111] sm:$0xff]  ;;  %v7963_v52 = vld [vmem:[%s14289_s2 + $0x80] sm:$0xff] }
 0x2e6   :  { %v8612_v41 = vpop.permute.xlu1 %8611  ;;  %v1758_v16 = vsel %vm1699_vm12, %v1742_v2, %v8598_v9  ;;  %v1759_v56 = vsel %vm1699_vm12, %v1743_v62, %v8599_v40  ;;  %v1760_v12 = vsel %vm1699_vm12, %v1744_v25, %v8563_v37  ;;  %v1747_v38 = vsel %vm74_vm0, %v11119_v58, %v8534_v30  ;;  %v11358_v9 = vld [vmem:[%s14287_s30] ss:$0 sm:$0xff]  ;;  %v2223_v25 = vld [vmem:[#allocation2 + $0x2] sm:$0xff] }
 0x2e7   :  { %v8614_v46 = vunpack.i.h.bf16 %v8612_v41  ;;  %v8613_v45 = vunpack.i.l.bf16 %v8612_v41  ;;  %v1776_v8 = vsel %vm925_vm10, %v1760_v12, %v8618_v21  ;;  %v1746_v11 = vsel %vm74_vm0, %v1233_v13, %v8533_v24 }
 0x2e8   :  { %v1763_v33 = vsel %vm1699_vm12, %v1747_v38, %v8569_v39 }
 0x2e9   :  { %v1774_v6 = vsel %vm925_vm10, %v1758_v16, %v8613_v45  ;;  %v1775_v59 = vsel %vm925_vm10, %v1759_v56, %v8614_v46  ;;  %v8622_v54 = vpop.permute.xlu0 %8621  ;;  %v11363_v56 = vld [vmem:[%s14288_s5] ss:$0 sm:$0xff] }
 0x2ea   :  { %v1796_v42 = vpack.c.bf16 %v1775_v59, %v1774_v6  ;;  %v8624_v28 = vunpack.i.h.bf16 %v8622_v54  ;;  %v8623_v43 = vunpack.i.l.bf16 %v8622_v54  ;;  %v2084_v2 = vpop.f32.mrf.mxu3  ;;  %v7964_v59 = vld [vmem:[%s14289_s2 + $0x88] sm:$0xff] }
 0x2eb   :  { %3111 = vmatpush.bf16.msrb.mxu1 %v7964_v59 }
 0x2ec   :  { %v1779_v48 = vsel %vm925_vm10, %v1763_v33, %v8624_v28 }
 0x2ef   :  { %3112 = vmatpush.bf16.msrb.mxu1 %v7963_v52 }
 0x2f2   :  { %v2086_v14 = vpop.f32.mrf.mxu3 }
 0x2f4   :  { %2044 = vmatmul.bf16.gmra.mxu2 %v1790_v22  ;;  %v1761_v22 = vsel %vm1699_vm12, %v1745_v55, %v8564_v32  ;;  %v2207_v55 = vld [vmem:[#allocation2 + $0x1] sm:$0xff] }
 0x2f5   :  { %v1777_v4 = vsel %vm925_vm10, %v1761_v22, %v8619_v34 }
 0x2f6   :  { %v1799_v5 = vpack.c.bf16 %v1777_v4, %v1776_v8 }
 0x2f8   :  { %v1981_v46 = vpop.f32.mrf.mxu1 }
 0x300   :  { %v1983_v62 = vpop.f32.mrf.mxu1 }
 0x304   :  { %2049 = vmatmul.bf16.gmra.mxu2 %v1793_v49  ;;  %v1762_v49 = vsel %vm1699_vm12, %v1746_v11, %v8568_v47 }
 0x305   :  { %v1778_v20 = vsel %vm925_vm10, %v1762_v49, %v8623_v43 }
 0x306   :  { %v1802_v63 = vpack.c.bf16 %v1779_v48, %v1778_v20 }
 0x314   :  { %2054 = vmatmul.bf16.gmra.mxu2 %v1796_v42  ;;  %v1986_v42 = vpop.f32.mrf.mxu1 }
 0x31c   :  { %v1988_v12 = vpop.f32.mrf.mxu1 }
 0x320   :  { %v11336_v51 = vpop.f32.mrf.mxu2 }
 0x324   :  { %2059 = vmatmul.bf16.gmra.mxu2 %v1799_v5  ;;  %v2089_v5 = vpop.f32.mrf.mxu3  ;;  %v1991_v13 = vpop.f32.mrf.mxu1 }
 0x328   :  { %v11338_v35 = vpop.f32.mrf.mxu2 }
 0x32c   :  { %v2091_v33 = vpop.f32.mrf.mxu3 }
 0x330   :  { %v11351_v41 = vpop.f32.mrf.mxu2 }
 0x334   :  { %2064 = vmatmul.bf16.gmra.mxu2 %v1802_v63 }
 0x338   :  { %v11353_v45 = vpop.f32.mrf.mxu2 }
 0x340   :  { %v2030_v40 = vpop.f32.mrf.mxu2 }
 0x341   :  { %v2031_v58 = vadd.f32 %v2030_v40, %v1981_v46 }
 0x343   :  { %v2080_v16 = vadd.f32 %v2079_v17, %v2031_v58  ;;  %v2094_v58 = vpop.f32.mrf.mxu3 }
 0x345   :  { %v2123_v6 = vmul.f32 %v11358_v9, %v2080_v16 }
 0x347   :  { %v2143_v57 = vadd.f32 %v11363_v56, %v2123_v6 }
 0x348   :  { %v2032_v3 = vpop.f32.mrf.mxu2 }
 0x349   :  { %v2159_v32 = vmax.f32 %v2143_v57, 0.0  ;;  %v2033_v37 = vadd.f32 %v2032_v3, %v1983_v62  ;;  %v1993_v62 = vpop.f32.mrf.mxu1 }
 0x34b   :  { %2175 = vst.msk [vmem:[#allocation2 + $0x11] sm:$0xff] %vm74_vm0, %v2159_v32  ;;  %v2082_v10 = vadd.f32 %v2081_v61, %v2033_v37 }
 0x34d   :  { %v2124_v34 = vmul.f32 %v11358_v9, %v2082_v10 }
 0x34f   :  { %v2144_v21 = vadd.f32 %v11363_v56, %v2124_v34  ;;  %v7954_v34 = vld [vmem:[%s14289_s2 + $0x38] sm:$0xff] }
 0x350   :  { %3007 = vmatpush.bf16.msrb.mxu3 %v7954_v34 }
 0x351   :  { %v2160_v22 = vmax.f32 %v2144_v21, 0.0 }
 0x352   :  { %v2224_v8 = vld [vmem:[#allocation2 + $0x12] sm:$0xff] }
 0x353   :  { %v11376_v4 = vld [vmem:[#allocation2 + $0x11] sm:$0xff]  ;;  %2176 = vst.msk [vmem:[#allocation2 + $0x21] sm:$0xff] %vm74_vm0, %v2160_v22  ;;  %v8630_v54 = vpack.i.bf16 %v2224_v8, %v2223_v25 }
 0x354   :  { %v8625_v30 = vpack.i.bf16 %v11376_v4, %v2207_v55  ;;  %v11382_v17 = vld [vmem:[#allocation2 + $0x10] sm:$0xff] }
 0x355   :  { %8631 = vrot.lane.b32.xlu0 %v8630_v54, %s9850_s3  ;;  %v2096_v54 = vpop.f32.mrf.mxu3 }
 0x356   :  { %8626 = vrot.lane.b32.xlu1 %v8625_v30, %s9851_s0 }
 0x357   :  { %v2035_v24 = vpop.f32.mrf.mxu2 }
 0x358   :  { %v2036_v39 = vadd.f32 %v2035_v24, %v1986_v42 }
 0x35a   :  { %v2085_v47 = vadd.f32 %v2084_v2, %v2036_v39  ;;  %v11384_v28 = vld [vmem:[#allocation2 + $0x20] sm:$0xff] }
 0x35b   :  { %v2272_v43 = vld [vmem:[#allocation2 + $0x22] sm:$0xff]  ;;  %v8635_v11 = vpack.i.bf16 %v11384_v28, %v11382_v17 }
 0x35c   :  { %v8640_v38 = vpack.i.bf16 %v2272_v43, %v2224_v8  ;;  %v2125_v49 = vmul.f32 %v11358_v9, %v2085_v47  ;;  %v11395_v42 = vld [vmem:[#allocation2 + $0x21] sm:$0xff] }
 0x35d   :  { %8636 = vrot.lane.b32.xlu2 %v8635_v11, %s9849_s29 }
 0x35e   :  { %8641 = vrot.lane.b32.xlu1 %v8640_v38, %s9851_s0  ;;  %v2145_v20 = vadd.f32 %v11363_v56, %v2125_v49 }
 0x35f   :  { %v2037_v48 = vpop.f32.mrf.mxu2 }
 0x360   :  { %v2161_v63 = vmax.f32 %v2145_v20, 0.0  ;;  %v2038_v61 = vadd.f32 %v2037_v48, %v1988_v12  ;;  %v1996_v12 = vpop.f32.mrf.mxu1 }
 0x362   :  { %2177 = vst.msk [vmem:[#allocation2 + $0x31] sm:$0xff] %vm74_vm0, %v2161_v63  ;;  %v2087_v46 = vadd.f32 %v2086_v14, %v2038_v61 }
 0x364   :  { %v2126_v2 = vmul.f32 %v11358_v9, %v2087_v46 }
 0x366   :  { %v2146_v40 = vadd.f32 %v11363_v56, %v2126_v2 }
 0x367   :  { %v2040_v16 = vpop.f32.mrf.mxu2 }
 0x368   :  { %v2162_v6 = vmax.f32 %v2146_v40, 0.0  ;;  %v2041_v59 = vadd.f32 %v2040_v16, %v1991_v13  ;;  %v1998_v48 = vpop.f32.mrf.mxu1 }
 0x369   :  { %v2320_v57 = vld [vmem:[#allocation2 + $0x32] sm:$0xff] }
 0x36a   :  { %v11397_v3 = vld [vmem:[#allocation2 + $0x31] sm:$0xff]  ;;  %2178 = vst.msk [vmem:[#allocation2 + $0x41] sm:$0xff] %vm74_vm0, %v2162_v6  ;;  %v2090_v37 = vadd.f32 %v2089_v5, %v2041_v59  ;;  %v2817_v14 = vpack.c.bf16 %v2320_v57, %v2272_v43  ;;  %v8650_v21 = vpack.i.bf16 %v2320_v57, %v2272_v43  ;;  %v2099_v59 = vpop.f32.mrf.mxu3 }
 0x36b   :  { %v11399_v32 = vld [vmem:[#allocation2 + $0x30] sm:$0xff]  ;;  %v8645_v52 = vpack.i.bf16 %v11397_v3, %v11395_v42 }
 0x36c   :  { %v8655_v10 = vpack.i.bf16 %v11399_v32, %v11384_v28  ;;  %v2127_v25 = vmul.f32 %v11358_v9, %v2090_v37  ;;  %7594 = vmatmul.msk.bf16.vlgmr.msrb.gmra.mxu1 %vm74_vm0, %v2817_v14  ;;  %8651 = vrot.lane.b32.xlu1 %v8650_v21, %s9850_s3  ;;  %v7953_v6 = vld [vmem:[%s14289_s2 + $0x30] sm:$0xff] }
 0x36d   :  { %8646 = vrot.lane.b32.xlu2 %v8645_v52, %s9851_s0  ;;  %3008 = vmatpush.bf16.msrb.mxu3 %v7953_v6 }
 0x36e   :  { %8656 = vrot.lane.b32.xlu0 %v8655_v10, %s9850_s3  ;;  %v2147_v55 = vadd.f32 %v11363_v56, %v2127_v25 }
 0x36f   :  { %v2042_v22 = vpop.f32.mrf.mxu2 }
 0x370   :  { %v2163_v8 = vmax.f32 %v2147_v55, 0.0  ;;  %v2043_v5 = vadd.f32 %v2042_v22, %v1993_v62  ;;  %v2001_v55 = vpop.f32.mrf.mxu1 }
 0x371   :  { %v11415_v30 = vld [vmem:[#allocation2 + $0x40] sm:$0xff] }
 0x372   :  { %2179 = vst.msk [vmem:[#allocation2 + $0x51] sm:$0xff] %vm74_vm0, %v2163_v8  ;;  %v2092_v24 = vadd.f32 %v2091_v33, %v2043_v5  ;;  %v8665_v39 = vpack.i.bf16 %v11415_v30, %v11399_v32  ;;  %v2321_v13 = vld [vmem:[#allocation2 + $0x42] sm:$0xff]  ;;  %v2101_v22 = vpop.f32.mrf.mxu3 }
 0x373   :  { %v11424_v20 = vld [vmem:[#allocation2 + $0x41] sm:$0xff]  ;;  %v8670_v33 = vpack.i.bf16 %v2321_v13, %v2320_v57 }
 0x374   :  { %v2128_v47 = vmul.f32 %v11358_v9, %v2092_v24 }
 0x375   :  { %8661 = vrot.lane.b32.xlu2 %v8645_v52, %s9849_s29 }
 0x376   :  { %8666 = vrot.lane.b32.xlu0 %v8665_v39, %s9849_s29  ;;  %v2148_v43 = vadd.f32 %v11363_v56, %v2128_v47 }
 0x377   :  { %v2045_v11 = vpop.f32.mrf.mxu2 }
 0x378   :  { %v2164_v38 = vmax.f32 %v2148_v43, 0.0  ;;  %v2046_v49 = vadd.f32 %v2045_v11, %v1996_v12 }
 0x379   :  { %v2322_v63 = vld [vmem:[#allocation2 + $0x52] sm:$0xff] }
 0x37a   :  { %v11426_v61 = vld [vmem:[#allocation2 + $0x51] sm:$0xff]  ;;  %2180 = vst.msk [vmem:[#allocation2 + $0x61] sm:$0xff] %vm74_vm0, %v2164_v38  ;;  %v2095_v2 = vadd.f32 %v2094_v58, %v2046_v49  ;;  %v2820_v62 = vpack.c.bf16 %v2322_v63, %v2321_v13  ;;  %v8680_v21 = vpack.i.bf16 %v2322_v63, %v2321_v13 }
 0x37b   :  { %v11428_v46 = vld [vmem:[#allocation2 + $0x50] sm:$0xff]  ;;  %v8675_v40 = vpack.i.bf16 %v11426_v61, %v11424_v20 }
 0x37c   :  { %v8685_v16 = vpack.i.bf16 %v11428_v46, %v11415_v30  ;;  %v2129_v57 = vmul.f32 %v11358_v9, %v2095_v2  ;;  %7595 = vmatmul.msk.bf16.gmra.mxu1 %vm74_vm0, %v2820_v62  ;;  %v7952_v2 = vld [vmem:[%s14289_s2 + $0x28] sm:$0xff] }
 0x37d   :  { %8671 = vrot.lane.b32.xlu2 %v8670_v33, %s9851_s0  ;;  %3009 = vmatpush.bf16.msrb.mxu3 %v7952_v2 }
 0x37e   :  { %8676 = vrot.lane.b32.xlu0 %v8675_v40, %s9851_s0  ;;  %8686 = vrot.lane.b32.xlu1 %v8685_v16, %s9850_s3  ;;  %v2149_v58 = vadd.f32 %v11363_v56, %v2129_v57  ;;  %v2003_v16 = vpop.f32.mrf.mxu1 }
 0x37f   :  { %v2047_v37 = vpop.f32.mrf.mxu2 }
 0x380   :  { %v2165_v14 = vmax.f32 %v2149_v58, 0.0  ;;  %v2048_v52 = vadd.f32 %v2047_v37, %v1998_v48 }
 0x381   :  { %v11444_v10 = vld [vmem:[#allocation2 + $0x60] sm:$0xff] }
 0x382   :  { %2181 = vst.msk [vmem:[#allocation2 + $0x71] sm:$0xff] %vm74_vm0, %v2165_v14  ;;  %v2097_v34 = vadd.f32 %v2096_v54, %v2048_v52  ;;  %v8695_v25 = vpack.i.bf16 %v11444_v10, %v11428_v46  ;;  %v2323_v54 = vld [vmem:[#allocation2 + $0x62] sm:$0xff] }
 0x383   :  { %v11454_v47 = vld [vmem:[#allocation2 + $0x61] sm:$0xff]  ;;  %v8700_v62 = vpack.i.bf16 %v2323_v54, %v2322_v63 }
 0x384   :  { %v2130_v12 = vmul.f32 %v11358_v9, %v2097_v34  ;;  %v7962_v34 = vld [vmem:[%s14289_s2 + $0x78] sm:$0xff] }
 0x385   :  { %8681 = vrot.lane.b32.xlu2 %v8680_v21, %s9850_s3  ;;  %3056 = vmatpush.bf16.msrb.mxu0 %v7962_v34  ;;  %v2231_v34 = vld [vmem:[#allocation2 + $0xa2] sm:$0xff] }
 0x386   :  { %8691 = vrot.lane.b32.xlu0 %v8675_v40, %s9849_s29  ;;  %8696 = vrot.lane.b32.xlu1 %v8695_v25, %s9849_s29  ;;  %v2150_v8 = vadd.f32 %v11363_v56, %v2130_v12 }
 0x387   :  { %v2050_v5 = vpop.f32.mrf.mxu2 }
 0x388   :  { %v2166_v24 = vmax.f32 %v2150_v8, 0.0  ;;  %v2051_v39 = vadd.f32 %v2050_v5, %v2001_v55  ;;  %v2006_v55 = vpop.f32.mrf.mxu1 }
 0x389   :  { %v2324_v43 = vld [vmem:[#allocation2 + $0x72] sm:$0xff] }
 0x38a   :  { %v11456_v13 = vld [vmem:[#allocation2 + $0x70] sm:$0xff]  ;;  %2182 = vst.msk [vmem:[#allocation2 + $0x81] sm:$0xff] %vm74_vm0, %v2166_v24  ;;  %v2100_v38 = vadd.f32 %v2099_v59, %v2051_v39  ;;  %v2823_v49 = vpack.c.bf16 %v2324_v43, %v2323_v54  ;;  %v2104_v59 = vpop.f32.mrf.mxu3  ;;  %v8710_v21 = vpack.i.bf16 %v2324_v43, %v2323_v54 }
 0x38b   :  { %v11458_v11 = vld [vmem:[#allocation2 + $0x71] sm:$0xff]  ;;  %v8715_v48 = vpack.i.bf16 %v11456_v13, %v11444_v10 }
 0x38c   :  { %v8705_v33 = vpack.i.bf16 %v11458_v11, %v11454_v47  ;;  %v2131_v40 = vmul.f32 %v11358_v9, %v2100_v38  ;;  %7596 = vmatmul.msk.bf16.gmra.mxu1 %vm74_vm0, %v2823_v49  ;;  %v2310_v39 = vld [vmem:[#allocation2 + $0x91] sm:$0xff] }
 0x38d   :  { %8716 = vrot.lane.b32.xlu2 %v8715_v48, %s9850_s3  ;;  %v2294_v49 = vld [vmem:[#allocation2 + $0x90] sm:$0xff] }
 0x38e   :  { %8701 = vrot.lane.b32.xlu0 %v8700_v62, %s9851_s0  ;;  %8706 = vrot.lane.b32.xlu1 %v8705_v33, %s9851_s0  ;;  %v2151_v6 = vadd.f32 %v11363_v56, %v2131_v40 }
 0x38f   :  { %v2052_v57 = vpop.f32.mrf.mxu2 }
 0x390   :  { %v2167_v58 = vmax.f32 %v2151_v6, 0.0  ;;  %v2053_v37 = vadd.f32 %v2052_v57, %v2003_v16 }
 0x391   :  { %v2246_v14 = vld [vmem:[#allocation2 + $0x80] sm:$0xff] }
 0x392   :  { %2183 = vst.msk [vmem:[#allocation2 + $0xb1] sm:$0xff] %vm74_vm0, %v2167_v58  ;;  %v2102_v63 = vadd.f32 %v2101_v22, %v2053_v37  ;;  %v8725_v52 = vpack.i.bf16 %v2246_v14, %v11456_v13  ;;  %v2326_v22 = vld [vmem:[#allocation2 + $0x92] sm:$0xff]  ;;  %v2325_v5 = vld [vmem:[#allocation2 + $0x82] sm:$0xff]  ;;  %v2106_v48 = vpop.f32.mrf.mxu3  ;;  %v8735_v16 = vpack.i.bf16 %v2294_v49, %v2246_v14  ;;  %v2008_v58 = vpop.f32.mrf.mxu1 }
 0x393   :  { %v11484_v24 = vld [vmem:[#allocation2 + $0x81] sm:$0xff]  ;;  %v2826_v62 = vpack.c.bf16 %v2326_v22, %v2325_v5  ;;  %v8730_v6 = vpack.i.bf16 %v2325_v5, %v2324_v43 }
 0x394   :  { %v2132_v25 = vmul.f32 %v11358_v9, %v2102_v63  ;;  %v8740_v40 = vpack.i.bf16 %v2310_v39, %v11484_v24  ;;  %v2215_v63 = vld [vmem:[#allocation2 + $0xa1] sm:$0xff]  ;;  %v7961_v39 = vld [vmem:[%s14289_s2 + $0x70] sm:$0xff] }
 0x395   :  { %8726 = vrot.lane.b32.xlu2 %v8725_v52, %s9849_s29  ;;  %3057 = vmatpush.bf16.msrb.mxu0 %v7961_v39 }
 0x396   :  { %8711 = vrot.lane.b32.xlu0 %v8710_v21, %s9850_s3  ;;  %8721 = vrot.lane.b32.xlu1 %v8705_v33, %s9849_s29  ;;  %v2152_v12 = vadd.f32 %v11363_v56, %v2132_v25  ;;  %v7951_v33 = vld [vmem:[%s14289_s2 + $0x20] sm:$0xff]  ;;  %v7950_v25 = vld [vmem:[%s14289_s2 + $0x18] sm:$0xff] }
 0x397   :  { %v2055_v8 = vpop.f32.mrf.mxu2  ;;  %3010 = vmatpush.bf16.msrb.mxu3 %v7951_v33 }
 0x398   :  { %v2168_v38 = vmax.f32 %v2152_v12, 0.0  ;;  %v2056_v54 = vadd.f32 %v2055_v8, %v2006_v55 }
 0x399   :  { %v11497_v52 = vld [vmem:[#allocation2 + $0xb1] sm:$0xff] }
 0x39a   :  { %2184 = vst.msk [vmem:[#allocation2 + $0xc1] sm:$0xff] %vm74_vm0, %v2168_v38  ;;  %v2105_v2 = vadd.f32 %v2104_v59, %v2056_v54  ;;  %v2232_v21 = vld [vmem:[#allocation2 + $0xb2] sm:$0xff]  ;;  %v8745_v8 = vpack.i.bf16 %v11497_v52, %v2215_v63  ;;  %v2109_v38 = vpop.f32.mrf.mxu3 }
 0x39b   :  { %v11502_v55 = vld [vmem:[#allocation2 + $0xb0] sm:$0xff]  ;;  %3011 = vmatpush.bf16.msrb.mxu3 %v7950_v25  ;;  %v8750_v54 = vpack.i.bf16 %v2232_v21, %v2231_v34  ;;  %v7960_v25 = vld [vmem:[%s14289_s2 + $0x68] sm:$0xff] }
 0x39c   :  { %v2133_v57 = vmul.f32 %v11358_v9, %v2105_v2  ;;  %7597 = vmatmul.msk.bf16.gmra.mxu1 %vm74_vm0, %v2826_v62  ;;  %3058 = vmatpush.bf16.msrb.mxu0 %v7960_v25 }
 0x39d   :  { %8741 = vrot.lane.b32.xlu2 %v8740_v40, %s9849_s29 }
 0x39e   :  { %8736 = vrot.lane.b32.xlu0 %v8735_v16, %s9850_s3  ;;  %8731 = vrot.lane.b32.xlu1 %v8730_v6, %s9851_s0  ;;  %v2153_v59 = vadd.f32 %v11363_v56, %v2133_v57  ;;  %v7948_v57 = vld [vmem:[%s14289_s2 + $0x8] sm:$0xff] }
 0x39f   :  { %v2057_v37 = vpop.f32.mrf.mxu2 }
 0x3a0   :  { %v2169_v14 = vmax.f32 %v2153_v59, 0.0  ;;  %v2058_v43 = vadd.f32 %v2057_v37, %v2008_v58 }
 0x3a1   :  { %v11504_v12 = vld [vmem:[#allocation2 + $0xc0] sm:$0xff] }
 0x3a2   :  { %2185 = vst.msk [vmem:[#allocation2 + $0xd1] sm:$0xff] %vm74_vm0, %v2169_v14  ;;  %v2107_v22 = vadd.f32 %v2106_v48, %v2058_v43  ;;  %v8755_v5 = vpack.i.bf16 %v11504_v12, %v11502_v55  ;;  %v7949_v48 = vld [vmem:[%s14289_s2 + $0x10] sm:$0xff]  ;;  %v2327_v62 = vld [vmem:[#allocation2 + $0xc2] sm:$0xff] }
 0x3a3   :  { %3012 = vmatpush.bf16.msrb.mxu3 %v7949_v48  ;;  %v11522_v6 = vld [vmem:[#allocation2 + $0xc1] sm:$0xff]  ;;  %v8760_v58 = vpack.i.bf16 %v2327_v62, %v2232_v21 }
 0x3a4   :  { %v2134_v49 = vmul.f32 %v11358_v9, %v2107_v22  ;;  %v7947_v21 = vld [vmem:[%s14289_s2] sm:$0xff] }
 0x3a5   :  { %8746 = vrot.lane.b32.xlu2 %v8745_v8, %s9851_s0  ;;  %v2111_v8 = vpop.f32.mrf.mxu3 }
 0x3a6   :  { %8756 = vrot.lane.b32.xlu0 %v8755_v5, %s9849_s29  ;;  %8751 = vrot.lane.b32.xlu1 %v8750_v54, %s9850_s3  ;;  %v2154_v2 = vadd.f32 %v11363_v56, %v2134_v49 }
 0x3a7   :  { %v2060_v40 = vpop.f32.mrf.mxu2  ;;  %3013 = vmatpush.bf16.msrb.mxu3 %v7948_v57  ;;  %v7959_v57 = vld [vmem:[%s14289_s2 + $0x60] sm:$0xff] }
 0x3a8   :  { %v2170_v33 = vmax.f32 %v2154_v2, 0.0  ;;  %v2061_v16 = vadd.f32 %v2060_v40, %v11336_v51  ;;  %3059 = vmatpush.bf16.msrb.mxu0 %v7959_v57 }
 0x3a9   :  { %v2328_v59 = vld [vmem:[#allocation2 + $0xd2] sm:$0xff] }
 0x3aa   :  { %v11527_v37 = vld [vmem:[#allocation2 + $0xd1] sm:$0xff]  ;;  %2186 = vst.msk [vmem:[#allocation2 + $0xe1] sm:$0xff] %vm74_vm0, %v2170_v33  ;;  %v2110_v14 = vadd.f32 %v2109_v38, %v2061_v16  ;;  %v2829_v43 = vpack.c.bf16 %v2328_v59, %v2327_v62  ;;  %v8770_v40 = vpack.i.bf16 %v2328_v59, %v2327_v62 }
 0x3ab   :  { %v11529_v63 = vld [vmem:[#allocation2 + $0xd0] sm:$0xff]  ;;  %v11534_v34 = vpack.i.bf16 %v11527_v37, %v11522_v6  ;;  %3014 = vmatpush.bf16.msrb.mxu3 %v7947_v21 }
 0x3ac   :  { %v8775_v51 = vpack.i.bf16 %v11529_v63, %v11504_v12  ;;  %v2135_v22 = vmul.f32 %v11358_v9, %v2110_v14  ;;  %7598 = vmatmul.msk.bf16.gmra.mxu1 %vm74_vm0, %v2829_v43 }
 0x3ad   :  { %8761 = vrot.lane.b32.xlu2 %v8760_v58, %s9851_s0 }
 0x3ae   :  { %8766 = vrot.lane.b32.xlu0 %v11534_v34, %s9851_s0  ;;  %8776 = vrot.lane.b32.xlu1 %v8775_v51, %s9850_s3  ;;  %v2155_v5 = vadd.f32 %v11363_v56, %v2135_v22 }
 0x3af   :  { %v2062_v39 = vpop.f32.mrf.mxu2 }
 0x3b0   :  { %v2171_v38 = vmax.f32 %v2155_v5, 0.0  ;;  %v2063_v54 = vadd.f32 %v2062_v39, %v11338_v35  ;;  %v7958_v35 = vld [vmem:[%s14289_s2 + $0x58] sm:$0xff] }
 0x3b1   :  { %v2282_v49 = vld [vmem:[#allocation2 + $0xe2] sm:$0xff]  ;;  %3060 = vmatpush.bf16.msrb.mxu0 %v7958_v35 }
 0x3b2   :  { %v11552_v48 = vld [vmem:[#allocation2 + $0xe0] sm:$0xff]  ;;  %2187 = vst.msk [vmem:[#allocation2 + $0xf1] sm:$0xff] %vm74_vm0, %v2171_v38  ;;  %v2112_v2 = vadd.f32 %v2111_v8, %v2063_v54  ;;  %v8785_v33 = vpack.i.bf16 %v2282_v49, %v2328_v59  ;;  %v2114_v59 = vpop.f32.mrf.mxu3 }
 0x3b3   :  { %v8780_v16 = vpack.i.bf16 %v11552_v48, %v11529_v63  ;;  %v11576_v54 = vld [vmem:[#allocation2 + $0xe1] sm:$0xff] }
 0x3b4   :  { %v2136_v58 = vmul.f32 %v11358_v9, %v2112_v2 }
 0x3b5   :  { %8771 = vrot.lane.b32.xlu2 %v8770_v40, %s9850_s3 }
 0x3b6   :  { %8786 = vrot.lane.b32.xlu0 %v8785_v33, %s9851_s0  ;;  %8781 = vrot.lane.b32.xlu1 %v8780_v16, %s9849_s29  ;;  %v2156_v62 = vadd.f32 %v11363_v56, %v2136_v58  ;;  %v7956_v16 = vld [vmem:[%s14289_s2 + $0x48] sm:$0xff] }
 0x3b7   :  { %v2065_v14 = vpop.f32.mrf.mxu2  ;;  %v8637_v33 = vpop.permute.xlu2 %8636 }
 0x3b8   :  { %v2172_v43 = vmax.f32 %v2156_v62, 0.0  ;;  %v2066_v51 = vadd.f32 %v2065_v14, %v11351_v41  ;;  %v7957_v41 = vld [vmem:[%s14289_s2 + $0x50] sm:$0xff] }
 0x3b9   :  { %v2330_v25 = vld [vmem:[#allocation2 + $0xf2] sm:$0xff]  ;;  %3061 = vmatpush.bf16.msrb.mxu0 %v7957_v41 }
 0x3ba   :  { %v11569_v21 = vld [vmem:[#allocation2 + $0xf0] sm:$0xff]  ;;  %2188 = vst.msk [vmem:[#allocation2 + $0x101] sm:$0xff] %vm74_vm0, %v2172_v43  ;;  %v2115_v8 = vadd.f32 %v2114_v59, %v2066_v51  ;;  %v2832_v5 = vpack.c.bf16 %v2330_v25, %v2282_v49  ;;  %v8795_v38 = vpack.i.bf16 %v2330_v25, %v2282_v49  ;;  %v2116_v62 = vpop.f32.mrf.mxu3 }
 0x3bb   :  { %v11571_v22 = vld [vmem:[#allocation2 + $0xf1] sm:$0xff]  ;;  %v8800_v39 = vpack.i.bf16 %v11569_v21, %v11552_v48 }
 0x3bc   :  { %v11583_v2 = vpack.i.bf16 %v11571_v22, %v11576_v54  ;;  %v2137_v40 = vmul.f32 %v11358_v9, %v2115_v8  ;;  %7599 = vmatmul.msk.bf16.gmra.mxu1 %vm74_vm0, %v2832_v5  ;;  %v7955_v5 = vld [vmem:[%s14289_s2 + $0x40] sm:$0xff] }
 0x3bd   :  { %8801 = vrot.lane.b32.xlu2 %v8800_v39, %s9850_s3  ;;  %3062 = vmatpush.bf16.msrb.mxu0 %v7956_v16 }
 0x3be   :  { %8796 = vrot.lane.b32.xlu0 %v8795_v38, %s9850_s3  ;;  %8791 = vrot.lane.b32.xlu1 %v11583_v2, %s9851_s0  ;;  %v2157_v49 = vadd.f32 %v11363_v56, %v2137_v40 }
 0x3bf   :  { %v2067_v57 = vpop.f32.mrf.mxu2 }
 0x3c0   :  { %v2173_v58 = vmax.f32 %v2157_v49, 0.0  ;;  %v2068_v35 = vadd.f32 %v2067_v57, %v11353_v45  ;;  %v2191_v57 = vld [vmem:[#allocation2] sm:$0xff] }
 0x3c1   :  { %v11596_v59 = vld [vmem:[#allocation2 + $0x100] sm:$0xff]  ;;  %3063 = vmatpush.bf16.msrb.mxu0 %v7955_v5 }
 0x3c2   :  { %v2284_v14 = vld [vmem:[#allocation2 + $0x102] sm:$0xff]  ;;  %2189 = vst.msk [vmem:[#allocation2 + $0x111] sm:$0xff] %vm74_vm0, %v2173_v58  ;;  %v2117_v43 = vadd.f32 %v2116_v62, %v2068_v35  ;;  %v8805_v51 = vpack.i.bf16 %v11596_v59, %v11569_v21  ;;  %v8639_v62 = vunpack.i.h.bf16 %v8637_v33 }
 0x3c3   :  { %v8810_v8 = vpack.i.bf16 %v2284_v14, %v2330_v25  ;;  %v11610_v35 = vld [vmem:[#allocation2 + $0x101] sm:$0xff] }
 0x3c4   :  { %v2138_v39 = vmul.f32 %v11358_v9, %v2117_v43 }
 0x3c5   :  { %8806 = vrot.lane.b32.xlu2 %v8805_v51, %s9849_s29 }
 0x3c6   :  { %8811 = vrot.lane.b32.xlu1 %v8810_v8, %s9851_s0  ;;  %v2158_v45 = vadd.f32 %v11363_v56, %v2138_v39 }
 0x3c7   :  { %v11608_v38 = vpop.permute.xlu2 %8646  ;;  %v8632_v41 = vpop.permute.xlu0 %8631 }
 0x3c8   :  { %v8627_v40 = vpop.permute.xlu1 %8626  ;;  %v2174_v49 = vmax.f32 %v2158_v45, 0.0  ;;  %v8634_v25 = vunpack.i.h.bf16 %v8632_v41  ;;  %v8633_v16 = vunpack.i.l.bf16 %v8632_v41  ;;  %v8638_v41 = vunpack.i.l.bf16 %v8637_v33 }
 0x3c9   :  { %v8629_v58 = vunpack.i.h.bf16 %v8627_v40  ;;  %v8628_v9 = vunpack.i.l.bf16 %v8627_v40  ;;  %v2332_v43 = vld [vmem:[#allocation2 + $0x112] sm:$0xff] }
 0x3ca   :  { %v11612_v51 = vld [vmem:[#allocation2 + $0x111] sm:$0xff]  ;;  %2190 = vst.msk [vmem:[#allocation2 + $0x121] sm:$0xff] %vm74_vm0, %v2174_v49  ;;  %v2835_v5 = vpack.c.bf16 %v2332_v43, %v2284_v14  ;;  %v8820_v0 = vpack.i.bf16 %v2332_v43, %v2284_v14 }
 0x3cb   :  { %v11614_v8 = vld [vmem:[#allocation2 + $0x110] sm:$0xff]  ;;  %v2720_v56 = vsel %vm74_vm0, %v11382_v17, %v8629_v58  ;;  %v8815_v39 = vpack.i.bf16 %v11612_v51, %v11610_v35  ;;  %v2719_v40 = vsel %vm74_vm0, %v2191_v57, %v8628_v9 }
 0x3cc   :  { %v8825_v45 = vpack.i.bf16 %v11614_v8, %v11596_v59  ;;  %v2736_v23 = vsel %vm1699_vm12, %v2720_v56, %v8634_v25  ;;  %7600 = vmatmul.msk.bf16.gmra.mxu1 %vm74_vm0, %v2835_v5  ;;  %v2735_v49 = vsel %vm1699_vm12, %v2719_v40, %v8633_v16 }
 0x3cd   :  { %8816 = vrot.lane.b32.xlu2 %v8815_v39, %s9851_s0  ;;  %v2752_v17 = vsel %vm925_vm10, %v2736_v23, %v8639_v62  ;;  %v2751_v58 = vsel %vm925_vm10, %v2735_v49, %v8638_v41  ;;  %v2334_v23 = vld [vmem:[#allocation2 + $0x132] sm:$0xff] }
 0x3ce   :  { %8826 = vrot.lane.b32.xlu0 %v8825_v45, %s9850_s3  ;;  %8821 = vrot.lane.b32.xlu1 %v8820_v0, %s9850_s3  ;;  %v2815_v33 = vpack.c.bf16 %v2752_v17, %v2751_v58  ;;  %v2318_v49 = vld [vmem:[#allocation2 + $0x131] sm:$0xff] }
 0x3cf   :  { %v8662_v57 = vpop.permute.xlu2 %8661 }
 0x3d0   :  { %3015 = vmatmul.bf16.vlgmr.msrb.gmra.mxu3 %v2815_v33  ;;  %v8642_v16 = vpop.permute.xlu1 %8641  ;;  %v8664_v17 = vunpack.i.h.bf16 %v8662_v57  ;;  %v8663_v58 = vunpack.i.l.bf16 %v8662_v57  ;;  %v8648_v57 = vunpack.i.l.bf16 %v11608_v38 }
 0x3d1   :  { %v2286_v14 = vld [vmem:[#allocation2 + $0x122] sm:$0xff] }
 0x3d2   :  { %v2301_v25 = vld [vmem:[#allocation2 + $0x120] sm:$0xff]  ;;  %v8840_v9 = vpack.i.bf16 %v2286_v14, %v2332_v43  ;;  %v2838_v62 = vpack.c.bf16 %v2334_v23, %v2286_v14  ;;  %v8644_v43 = vunpack.i.h.bf16 %v8642_v16 }
 0x3d3   :  { %v8845_v56 = vpack.i.bf16 %v2302_v1, %v2301_v25  ;;  %v8835_v5 = vpack.i.bf16 %v2301_v25, %v11614_v8  ;;  %v8643_v1 = vunpack.i.l.bf16 %v8642_v16  ;;  %v11644_v40 = vld [vmem:[#allocation2 + $0x121] sm:$0xff]  ;;  %v8649_v16 = vunpack.i.h.bf16 %v11608_v38 }
 0x3d4   :  { %v2768_v33 = vsel %vm74_vm0, %v11395_v42, %v8644_v43 }
 0x3d5   :  { %8841 = vrot.lane.b32.xlu2 %v8840_v9, %s9851_s0 }
 0x3d6   :  { %8831 = vrot.lane.b32.xlu0 %v11534_v34, %s9849_s29  ;;  %8846 = vrot.lane.b32.xlu1 %v8845_v56, %s9850_s3 }
 0x3d7   :  { %v11636_v0 = vpop.permute.xlu2 %8671 }
 0x3dc   :  { %7601 = vmatmul.msk.bf16.gmra.mxu1 %vm74_vm0, %v2838_v62 }
 0x3dd   :  { %8856 = vrot.lane.b32.xlu2 %v8815_v39, %s9849_s29  ;;  %v2767_v39 = vsel %vm74_vm0, %v11376_v4, %v8643_v1 }
 0x3de   :  { %8836 = vrot.lane.b32.xlu0 %v8835_v5, %s9849_s29  ;;  %8851 = vrot.lane.b32.xlu1 %v11583_v2, %s9849_s29  ;;  %v8652_v14 = vpop.permute.xlu1 %8651  ;;  %v8860_v2 = vpack.i.bf16 %v2318_v49, %v11644_v40 }
 0x3df   :  { %v8682_v62 = vpop.permute.xlu2 %8681  ;;  %v8654_v5 = vunpack.i.h.bf16 %v8652_v14  ;;  %v8653_v43 = vunpack.i.l.bf16 %v8652_v14 }
 0x3e0   :  { %v8657_v34 = vpop.permute.xlu0 %8656 }
 0x3e1   :  { %v8659_v45 = vunpack.i.h.bf16 %v8657_v34  ;;  %v8658_v41 = vunpack.i.l.bf16 %v8657_v34 }
 0x3e3   :  { %v2783_v25 = vsel %vm1699_vm12, %v2767_v39, %v8658_v41  ;;  %v2784_v9 = vsel %vm1699_vm12, %v2768_v33, %v8659_v45  ;;  %v2721_v45 = vsel %vm74_vm0, %v11384_v28, %v8648_v57  ;;  %v2722_v41 = vsel %vm74_vm0, %v11399_v32, %v8649_v16 }
 0x3e4   :  { %v2799_v56 = vsel %vm925_vm10, %v2783_v25, %v8663_v58  ;;  %v2800_v23 = vsel %vm925_vm10, %v2784_v9, %v8664_v17  ;;  %v2737_v49 = vsel %vm1699_vm12, %v2721_v45, %v8653_v43  ;;  %v2738_v38 = vsel %vm1699_vm12, %v2722_v41, %v8654_v5 }
 0x3e5   :  { %v2816_v42 = vpack.c.bf16 %v2800_v23, %v2799_v56  ;;  %v8674_v28 = vunpack.i.h.bf16 %v11636_v0  ;;  %v8673_v56 = vunpack.i.l.bf16 %v11636_v0  ;;  %v8683_v5 = vunpack.i.l.bf16 %v8682_v62 }
 0x3e6   :  { %8861 = vrot.lane.b32.xlu0 %v8860_v2, %s9849_s29 }
 0x3e7   :  { %3064 = vmatmul.bf16.vlgmr.msrb.gmra.mxu0 %v2816_v42  ;;  %v8717_v39 = vpop.permute.xlu2 %8716  ;;  %v8684_v42 = vunpack.i.h.bf16 %v8682_v62 }
 0x3e8   :  { %v8667_v4 = vpop.permute.xlu0 %8666 }
 0x3e9   :  { %v8669_v1 = vunpack.i.h.bf16 %v8667_v4  ;;  %v8668_v34 = vunpack.i.l.bf16 %v8667_v4 }
 0x3eb   :  { %v2753_v17 = vsel %vm925_vm10, %v2737_v49, %v8668_v34  ;;  %v2754_v58 = vsel %vm925_vm10, %v2738_v38, %v8669_v1  ;;  %v2769_v1 = vsel %vm74_vm0, %v11397_v3, %v8673_v56  ;;  %v2770_v34 = vsel %vm74_vm0, %v11424_v20, %v8674_v28 }
 0x3ec   :  { %v2818_v33 = vpack.c.bf16 %v2754_v58, %v2753_v17 }
 0x3ee   :  { %3020 = vmatmul.bf16.gmra.mxu3 %v2818_v33 }
 0x3ef   :  { %v8727_v45 = vpop.permute.xlu2 %8726 }
 0x3f0   :  { %v8677_v14 = vpop.permute.xlu0 %8676  ;;  %v8687_v25 = vpop.permute.xlu1 %8686 }
 0x3f1   :  { %v8679_v9 = vunpack.i.h.bf16 %v8677_v14  ;;  %v8678_v2 = vunpack.i.l.bf16 %v8677_v14  ;;  %v8689_v32 = vunpack.i.h.bf16 %v8687_v25  ;;  %v8688_v23 = vunpack.i.l.bf16 %v8687_v25 }
 0x3f3   :  { %v2723_v16 = vsel %vm74_vm0, %v11415_v30, %v8678_v2  ;;  %v2724_v57 = vsel %vm74_vm0, %v11428_v46, %v8679_v9  ;;  %v2785_v46 = vsel %vm1699_vm12, %v2769_v1, %v8688_v23  ;;  %v2786_v62 = vsel %vm1699_vm12, %v2770_v34, %v8689_v32 }
 0x3f4   :  { %v2739_v30 = vsel %vm1699_vm12, %v2723_v16, %v8683_v5  ;;  %v2740_v17 = vsel %vm1699_vm12, %v2724_v57, %v8684_v42  ;;  %v8719_v5 = vunpack.i.h.bf16 %v8717_v39  ;;  %v8728_v1 = vunpack.i.l.bf16 %v8727_v45 }
 0x3f7   :  { %v8742_v28 = vpop.permute.xlu2 %8741 }
 0x3f8   :  { %v8692_v43 = vpop.permute.xlu0 %8691  ;;  %v8697_v4 = vpop.permute.xlu1 %8696 }
 0x3f9   :  { %v8694_v0 = vunpack.i.h.bf16 %v8692_v43  ;;  %v8693_v41 = vunpack.i.l.bf16 %v8692_v43  ;;  %v8699_v49 = vunpack.i.h.bf16 %v8697_v4  ;;  %v8698_v38 = vunpack.i.l.bf16 %v8697_v4 }
 0x3fa   :  { %v8718_v43 = vunpack.i.l.bf16 %v8717_v39  ;;  %v8729_v4 = vunpack.i.h.bf16 %v8727_v45 }
 0x3fb   :  { %v2755_v58 = vsel %vm925_vm10, %v2739_v30, %v8698_v38  ;;  %v2756_v3 = vsel %vm925_vm10, %v2740_v17, %v8699_v49  ;;  %v2801_v33 = vsel %vm925_vm10, %v2785_v46, %v8693_v41  ;;  %v2802_v20 = vsel %vm925_vm10, %v2786_v62, %v8694_v0 }
 0x3fc   :  { %v2821_v14 = vpack.c.bf16 %v2756_v3, %v2755_v58  ;;  %v2819_v25 = vpack.c.bf16 %v2802_v20, %v2801_v33 }
 0x3fe   :  { %3025 = vmatmul.bf16.gmra.mxu3 %v2821_v14  ;;  %3069 = vmatmul.bf16.gmra.mxu0 %v2819_v25 }
 0x3ff   :  { %v8747_v14 = vpop.permute.xlu2 %8746 }
 0x400   :  { %v8702_v9 = vpop.permute.xlu0 %8701  ;;  %v8707_v2 = vpop.permute.xlu1 %8706 }
 0x401   :  { %v8704_v56 = vunpack.i.h.bf16 %v8702_v9  ;;  %v8703_v16 = vunpack.i.l.bf16 %v8702_v9  ;;  %v8709_v23 = vunpack.i.h.bf16 %v8707_v2  ;;  %v8708_v57 = vunpack.i.l.bf16 %v8707_v2 }
 0x403   :  { %v2771_v32 = vsel %vm74_vm0, %v11426_v61, %v8703_v16  ;;  %v2772_v42 = vsel %vm74_vm0, %v11454_v47, %v8704_v56  ;;  %v2725_v61 = vsel %vm74_vm0, %v11444_v10, %v8708_v57  ;;  %v2726_v47 = vsel %vm74_vm0, %v11456_v13, %v8709_v23 }
 0x404   :  { %v2787_v17 = vsel %vm1699_vm12, %v2771_v32, %v8718_v43  ;;  %v2788_v46 = vsel %vm1699_vm12, %v2772_v42, %v8719_v5  ;;  %v8744_v5 = vunpack.i.h.bf16 %v8742_v28  ;;  %v8743_v43 = vunpack.i.l.bf16 %v8742_v28 }
 0x408   :  { %v8712_v34 = vpop.permute.xlu0 %8711  ;;  %v8722_v0 = vpop.permute.xlu1 %8721 }
 0x409   :  { %v8714_v41 = vunpack.i.h.bf16 %v8712_v34  ;;  %v8713_v49 = vunpack.i.l.bf16 %v8712_v34  ;;  %v8724_v38 = vunpack.i.h.bf16 %v8722_v0  ;;  %v8723_v30 = vunpack.i.l.bf16 %v8722_v0  ;;  %v2199_v34 = vld [vmem:[#allocation2 + $0xa0] sm:$0xff]  ;;  %v11706_v0 = vpop.permute.xlu2 %8761 }
 0x40b   :  { %v2803_v39 = vsel %vm925_vm10, %v2787_v17, %v8723_v30  ;;  %v2804_v45 = vsel %vm925_vm10, %v2788_v46, %v8724_v38  ;;  %v2741_v62 = vsel %vm1699_vm12, %v2725_v61, %v8713_v49  ;;  %v2742_v58 = vsel %vm1699_vm12, %v2726_v47, %v8714_v41 }
 0x40c   :  { %v2822_v3 = vpack.c.bf16 %v2804_v45, %v2803_v39  ;;  %v2757_v33 = vsel %vm925_vm10, %v2741_v62, %v8728_v1  ;;  %v2758_v20 = vsel %vm925_vm10, %v2742_v58, %v8729_v4  ;;  %v8749_v4 = vunpack.i.h.bf16 %v8747_v14 }
 0x40d   :  { %v2824_v25 = vpack.c.bf16 %v2758_v20, %v2757_v33  ;;  %v8748_v1 = vunpack.i.l.bf16 %v8747_v14 }
 0x40e   :  { %3074 = vmatmul.bf16.gmra.mxu0 %v2822_v3  ;;  %v2728_v61 = vsel %vm74_vm0, %v11502_v55, %v8749_v4 }
 0x40f   :  { %3030 = vmatmul.bf16.gmra.mxu3 %v2824_v25  ;;  %v2727_v28 = vsel %vm74_vm0, %v2199_v34, %v8748_v1 }
 0x410   :  { %v8737_v10 = vpop.permute.xlu0 %8736  ;;  %v8732_v9 = vpop.permute.xlu1 %8731 }
 0x411   :  { %v8739_v13 = vunpack.i.h.bf16 %v8737_v10  ;;  %v8738_v2 = vunpack.i.l.bf16 %v8737_v10  ;;  %v8734_v56 = vunpack.i.h.bf16 %v8732_v9  ;;  %v8733_v16 = vunpack.i.l.bf16 %v8732_v9  ;;  %v8772_v14 = vpop.permute.xlu2 %8771 }
 0x413   :  { %v2773_v23 = vsel %vm74_vm0, %v11458_v11, %v8733_v16  ;;  %v2774_v57 = vsel %vm74_vm0, %v11484_v24, %v8734_v56 }
 0x414   :  { %v2789_v32 = vsel %vm1699_vm12, %v2773_v23, %v8738_v2  ;;  %v2790_v42 = vsel %vm1699_vm12, %v2774_v57, %v8739_v13  ;;  %v8774_v13 = vunpack.i.h.bf16 %v8772_v14  ;;  %v8773_v2 = vunpack.i.l.bf16 %v8772_v14 }
 0x415   :  { %v2805_v38 = vsel %vm925_vm10, %v2789_v32, %v8743_v43  ;;  %v2806_v11 = vsel %vm925_vm10, %v2790_v42, %v8744_v5 }
 0x416   :  { %v2825_v45 = vpack.c.bf16 %v2806_v11, %v2805_v38 }
 0x418   :  { %v8757_v41 = vpop.permute.xlu0 %8756  ;;  %v8752_v49 = vpop.permute.xlu1 %8751 }
 0x419   :  { %v8759_v30 = vunpack.i.h.bf16 %v8757_v41  ;;  %v8758_v17 = vunpack.i.l.bf16 %v8757_v41  ;;  %v8754_v24 = vunpack.i.h.bf16 %v8752_v49  ;;  %v8753_v46 = vunpack.i.l.bf16 %v8752_v49  ;;  %v11725_v5 = vpop.permute.xlu2 %8801 }
 0x41b   :  { %v2743_v47 = vsel %vm1699_vm12, %v2727_v28, %v8753_v46  ;;  %v2744_v39 = vsel %vm1699_vm12, %v2728_v61, %v8754_v24 }
 0x41c   :  { %v2759_v62 = vsel %vm925_vm10, %v2743_v47, %v8758_v17  ;;  %v2760_v58 = vsel %vm925_vm10, %v2744_v39, %v8759_v30 }
 0x41d   :  { %v2827_v3 = vpack.c.bf16 %v2760_v58, %v2759_v62 }
 0x41e   :  { %3079 = vmatmul.bf16.gmra.mxu0 %v2825_v45 }
 0x41f   :  { %3035 = vmatmul.bf16.gmra.mxu3 %v2827_v3  ;;  %v8763_v3 = vunpack.i.l.bf16 %v11706_v0 }
 0x420   :  { %v8767_v33 = vpop.permute.xlu0 %8766  ;;  %v8777_v20 = vpop.permute.xlu1 %8776 }
 0x421   :  { %v8769_v25 = vunpack.i.h.bf16 %v8767_v33  ;;  %v8768_v10 = vunpack.i.l.bf16 %v8767_v33  ;;  %v8807_v17 = vpop.permute.xlu2 %8806  ;;  %v8779_v33 = vunpack.i.h.bf16 %v8777_v20  ;;  %v8778_v14 = vunpack.i.l.bf16 %v8777_v20 }
 0x422   :  { %v8809_v61 = vunpack.i.h.bf16 %v8807_v17  ;;  %v8808_v28 = vunpack.i.l.bf16 %v8807_v17 }
 0x423   :  { %v2730_v55 = vsel %vm74_vm0, %v11529_v63, %v8769_v25  ;;  %v2729_v9 = vsel %vm74_vm0, %v11504_v12, %v8768_v10 }
 0x424   :  { %v2745_v32 = vsel %vm1699_vm12, %v2729_v9, %v8773_v2  ;;  %v2746_v42 = vsel %vm1699_vm12, %v2730_v55, %v8774_v13  ;;  %v2775_v13 = vsel %vm74_vm0, %v11497_v52, %v8763_v3 }
 0x428   :  { %v11721_v56 = vpop.permute.xlu0 %8786  ;;  %v8782_v16 = vpop.permute.xlu1 %8781 }
 0x429   :  { %v8784_v23 = vunpack.i.h.bf16 %v8782_v16  ;;  %v8783_v57 = vunpack.i.l.bf16 %v8782_v16  ;;  %v8817_v16 = vpop.permute.xlu2 %8816  ;;  %v8789_v52 = vunpack.i.h.bf16 %v11721_v56 }
 0x42b   :  { %v2761_v43 = vsel %vm925_vm10, %v2745_v32, %v8783_v57  ;;  %v2762_v63 = vsel %vm925_vm10, %v2746_v42, %v8784_v23  ;;  %v2791_v23 = vsel %vm1699_vm12, %v2775_v13, %v8778_v14  ;;  %v8819_v42 = vunpack.i.h.bf16 %v8817_v16 }
 0x42c   :  { %v2830_v4 = vpack.c.bf16 %v2762_v63, %v2761_v43  ;;  %v8818_v43 = vunpack.i.l.bf16 %v8817_v16 }
 0x42f   :  { %3040 = vmatmul.bf16.gmra.mxu3 %v2830_v4 }
 0x430   :  { %v8797_v12 = vpop.permute.xlu0 %8796  ;;  %v8792_v1 = vpop.permute.xlu1 %8791 }
 0x431   :  { %v8794_v34 = vunpack.i.h.bf16 %v8792_v1  ;;  %v8793_v41 = vunpack.i.l.bf16 %v8792_v1  ;;  %v8799_v49 = vunpack.i.h.bf16 %v8797_v12  ;;  %v8798_v38 = vunpack.i.l.bf16 %v8797_v12  ;;  %v8842_v3 = vpop.permute.xlu2 %8841 }
 0x432   :  { %v8788_v12 = vunpack.i.l.bf16 %v11721_v56  ;;  %v2734_v1 = vsel %vm74_vm0, %v11614_v8, %v8819_v42 }
 0x433   :  { %v2732_v11 = vsel %vm74_vm0, %v11569_v21, %v8794_v34  ;;  %v2731_v30 = vsel %vm74_vm0, %v11552_v48, %v8793_v41  ;;  %v8764_v48 = vunpack.i.h.bf16 %v11706_v0  ;;  %v2733_v34 = vsel %vm74_vm0, %v11596_v59, %v8818_v43 }
 0x434   :  { %v2747_v24 = vsel %vm1699_vm12, %v2731_v30, %v8798_v38  ;;  %v2748_v46 = vsel %vm1699_vm12, %v2732_v11, %v8799_v49  ;;  %v2777_v8 = vsel %vm74_vm0, %v11527_v37, %v8788_v12  ;;  %v2778_v59 = vsel %vm74_vm0, %v11576_v54, %v8789_v52  ;;  %v3114_v37 = vpop.f32.mrf.mxu1  ;;  %v7982_v52 = vld [vmem:[%s14198_s10 + $0x88] sm:$0xff] }
 0x435   :  { %v2763_v39 = vsel %vm925_vm10, %v2747_v24, %v8808_v28  ;;  %v2764_v45 = vsel %vm925_vm10, %v2748_v46, %v8809_v61  ;;  %v2776_v2 = vsel %vm74_vm0, %v11522_v6, %v8764_v48  ;;  %v8804_v28 = vunpack.i.h.bf16 %v11725_v5  ;;  %4162 = vmatpush.bf16.msra.mxu0 %v7982_v52 }
 0x436   :  { %v2833_v62 = vpack.c.bf16 %v2764_v45, %v2763_v39  ;;  %v2792_v57 = vsel %vm1699_vm12, %v2776_v2, %v8779_v33  ;;  %v8803_v39 = vunpack.i.l.bf16 %v11725_v5 }
 0x438   :  { %v11735_v47 = vpop.permute.xlu1 %8811  ;;  %v2793_v45 = vsel %vm1699_vm12, %v2777_v8, %v8803_v39 }
 0x439   :  { %v8814_v54 = vunpack.i.h.bf16 %v11735_v47 }
 0x43b   :  { %v2780_v2 = vsel %vm74_vm0, %v11610_v35, %v8814_v54  ;;  %v11791_v35 = vld [vmem:[%s14197_s9] ss:$0 sm:$0xff] }
 0x43c   :  { %v3116_v42 = vpop.f32.mrf.mxu1 }
 0x43f   :  { %3045 = vmatmul.bf16.gmra.mxu3 %v2833_v62  ;;  %v2794_v62 = vsel %vm1699_vm12, %v2778_v59, %v8804_v28 }
 0x440   :  { %v11739_v58 = vpop.permute.xlu0 %8826  ;;  %v8822_v21 = vpop.permute.xlu1 %8821 }
 0x441   :  { %v8824_v63 = vunpack.i.h.bf16 %v8822_v21  ;;  %v8823_v4 = vunpack.i.l.bf16 %v8822_v21  ;;  %v8829_v5 = vunpack.i.h.bf16 %v11739_v58 }
 0x443   :  { %v2749_v11 = vsel %vm1699_vm12, %v2733_v34, %v8823_v4  ;;  %v2750_v30 = vsel %vm1699_vm12, %v2734_v1, %v8824_v63  ;;  %v14290_v34 = vmax.f32 %v10749_v27, 0.0 }
 0x448   :  { %v8832_v25 = vpop.permute.xlu0 %8831  ;;  %v11743_v10 = vpop.permute.xlu1 %8846 }
 0x449   :  { %v8834_v55 = vunpack.i.h.bf16 %v8832_v25  ;;  %v8833_v9 = vunpack.i.l.bf16 %v8832_v25  ;;  %v8813_v25 = vunpack.i.l.bf16 %v11735_v47  ;;  %v8849_v59 = vunpack.i.h.bf16 %v11743_v10 }
 0x44a   :  { %v8848_v28 = vunpack.i.l.bf16 %v11743_v10 }
 0x44b   :  { %v2807_v0 = vsel %vm925_vm10, %v2791_v23, %v8833_v9  ;;  %v2808_v20 = vsel %vm925_vm10, %v2792_v57, %v8834_v55  ;;  %v8828_v55 = vunpack.i.l.bf16 %v11739_v58  ;;  %v8857_v9 = vpop.permute.xlu2 %8856  ;;  %v2779_v16 = vsel %vm74_vm0, %v11571_v22, %v8813_v25  ;;  %v11784_v57 = vld [vmem:[%s14196_s8] ss:$0 sm:$0xff] }
 0x44c   :  { %v2828_v32 = vpack.c.bf16 %v2808_v20, %v2807_v0  ;;  %v2796_v0 = vsel %vm1699_vm12, %v2780_v2, %v8829_v5  ;;  %v8859_v20 = vunpack.i.h.bf16 %v8857_v9  ;;  %v8858_v58 = vunpack.i.l.bf16 %v8857_v9 }
 0x44d   :  { %v2795_v47 = vsel %vm1699_vm12, %v2779_v16, %v8828_v55 }
 0x44e   :  { %3084 = vmatmul.bf16.gmra.mxu0 %v2828_v32  ;;  %v2811_v63 = vsel %vm925_vm10, %v2795_v47, %v8858_v58  ;;  %v2812_v4 = vsel %vm925_vm10, %v2796_v0, %v8859_v20 }
 0x44f   :  { %v2834_v1 = vpack.c.bf16 %v2812_v4, %v2811_v63  ;;  %v14292_v4 = vmax.f32 %v10780_v31, 0.0 }
 0x450   :  { %v8837_v6 = vpop.permute.xlu0 %8836  ;;  %v8852_v38 = vpop.permute.xlu1 %8851 }
 0x451   :  { %v8839_v41 = vunpack.i.h.bf16 %v8837_v6  ;;  %v8838_v49 = vunpack.i.l.bf16 %v8837_v6  ;;  %v8854_v56 = vunpack.i.h.bf16 %v8852_v38  ;;  %v8853_v61 = vunpack.i.l.bf16 %v8852_v38  ;;  %v7981_v38 = vld [vmem:[%s14198_s10 + $0x80] sm:$0xff] }
 0x452   :  { %4163 = vmatpush.bf16.msra.mxu0 %v7981_v38 }
 0x453   :  { %v2765_v17 = vsel %vm925_vm10, %v2749_v11, %v8838_v49  ;;  %v2766_v24 = vsel %vm925_vm10, %v2750_v30, %v8839_v41  ;;  %v2809_v21 = vsel %vm925_vm10, %v2793_v45, %v8853_v61  ;;  %v2810_v48 = vsel %vm925_vm10, %v2794_v62, %v8854_v56  ;;  %v3016_v14 = vpop.f32.mrf.mxu3 }
 0x454   :  { %v2836_v46 = vpack.c.bf16 %v2766_v24, %v2765_v17  ;;  %v2831_v33 = vpack.c.bf16 %v2810_v48, %v2809_v21  ;;  %v8844_v56 = vunpack.i.h.bf16 %v8842_v3  ;;  %v8843_v61 = vunpack.i.l.bf16 %v8842_v3  ;;  %v3274_v48 = vld [vmem:[#allocation2 + $0x2] sm:$0xff] }
 0x455   :  { %v14291_v62 = vmax.f32 %v10760_v44, 0.0 }
 0x456   :  { %3050 = vmatmul.bf16.gmra.mxu3 %v2836_v46  ;;  %v3119_v46 = vpop.f32.mrf.mxu1  ;;  %v2781_v3 = vsel %vm74_vm0, %v11612_v51, %v8843_v61 }
 0x457   :  { %v2797_v10 = vsel %vm1699_vm12, %v2781_v3, %v8848_v28 }
 0x458   :  { %v8862_v27 = vpop.permute.xlu0 %8861 }
 0x459   :  { %v8864_v39 = vunpack.i.h.bf16 %v8862_v27  ;;  %v8863_v45 = vunpack.i.l.bf16 %v8862_v27 }
 0x45b   :  { %v3018_v22 = vpop.f32.mrf.mxu3 }
 0x45e   :  { %3089 = vmatmul.bf16.gmra.mxu0 %v2831_v33  ;;  %v3258_v33 = vld [vmem:[#allocation2 + $0x1] sm:$0xff] }
 0x464   :  { %v3065_v13 = vpop.f32.mrf.mxu0 }
 0x465   :  { %v3066_v23 = vadd.f32 %v3065_v13, %v3016_v14 }
 0x467   :  { %v3115_v32 = vadd.f32 %v3114_v37, %v3066_v23  ;;  %v2782_v37 = vsel %vm74_vm0, %v11644_v40, %v8844_v56  ;;  %v2813_v40 = vsel %vm925_vm10, %v2797_v10, %v8863_v45  ;;  %v3121_v23 = vpop.f32.mrf.mxu1  ;;  %v14294_v10 = vmax.f32 %v10825_v29, 0.0 }
 0x468   :  { %v2798_v5 = vsel %vm1699_vm12, %v2782_v37, %v8849_v59 }
 0x469   :  { %v3158_v43 = vmul.f32 %v11784_v57, %v3115_v32  ;;  %v2814_v51 = vsel %vm925_vm10, %v2798_v5, %v8864_v39 }
 0x46a   :  { %v2837_v16 = vpack.c.bf16 %v2814_v51, %v2813_v40 }
 0x46b   :  { %v3178_v12 = vadd.f32 %v11791_v35, %v3158_v43 }
 0x46c   :  { %v3067_v6 = vpop.f32.mrf.mxu0 }
 0x46d   :  { %v11802_v41 = vadd.f32 %v3178_v12, %v14290_v34  ;;  %v3068_v49 = vadd.f32 %v3067_v6, %v3018_v22 }
 0x46e   :  { %3094 = vmatmul.bf16.gmra.mxu0 %v2834_v1 }
 0x46f   :  { %v14248_v11 = vmax.f32 %v11802_v41, 0.0  ;;  %v3117_v30 = vadd.f32 %v3116_v42, %v3068_v49  ;;  %v3124_v49 = vpop.f32.mrf.mxu1 }
 0x471   :  { %3226 = vst.msk [vmem:[#allocation2 + $0x11] sm:$0xff] %vm74_vm0, %v14248_v11  ;;  %v3159_v17 = vmul.f32 %v11784_v57, %v3117_v30  ;;  %v3021_v24 = vpop.f32.mrf.mxu3 }
 0x473   :  { %v3179_v8 = vadd.f32 %v11791_v35, %v3159_v17 }
 0x475   :  { %v11817_v21 = vadd.f32 %v3179_v8, %v14291_v62 }
 0x477   :  { %v14243_v14 = vmax.f32 %v11817_v21, 0.0 }
 0x478   :  { %v3275_v54 = vld [vmem:[#allocation2 + $0x12] sm:$0xff] }
 0x479   :  { %v11824_v25 = vld [vmem:[#allocation2 + $0x11] sm:$0xff]  ;;  %3227 = vst.msk [vmem:[#allocation2 + $0x21] sm:$0xff] %vm74_vm0, %v14243_v14  ;;  %v8870_v44 = vpack.i.bf16 %v3275_v54, %v3274_v48  ;;  %v3023_v9 = vpop.f32.mrf.mxu3 }
 0x47a   :  { %v8865_v55 = vpack.i.bf16 %v11824_v25, %v3258_v33  ;;  %v11837_v58 = vld [vmem:[#allocation2 + $0x10] sm:$0xff]  ;;  %v3126_v33 = vpop.f32.mrf.mxu1 }
 0x47b   :  { %v3070_v13 = vpop.f32.mrf.mxu0  ;;  %8871 = vrot.lane.b32.xlu0 %v8870_v44, %s9850_s3 }
 0x47c   :  { %8866 = vrot.lane.b32.xlu1 %v8865_v55, %s9851_s0  ;;  %v3071_v2 = vadd.f32 %v3070_v13, %v3021_v24  ;;  %v14293_v24 = vmax.f32 %v10796_v36, 0.0 }
 0x47e   :  { %v3120_v47 = vadd.f32 %v3119_v46, %v3071_v2  ;;  %3099 = vmatmul.bf16.gmra.mxu0 %v2837_v16 }
 0x480   :  { %v3160_v0 = vmul.f32 %v11784_v57, %v3120_v47  ;;  %v3323_v20 = vld [vmem:[#allocation2 + $0x22] sm:$0xff] }
 0x481   :  { %v11839_v32 = vld [vmem:[#allocation2 + $0x20] sm:$0xff]  ;;  %v8880_v42 = vpack.i.bf16 %v3323_v20, %v3275_v54  ;;  %v3026_v6 = vpop.f32.mrf.mxu3 }
 0x482   :  { %v8875_v22 = vpack.i.bf16 %v11839_v32, %v11837_v58  ;;  %v3180_v43 = vadd.f32 %v11791_v35, %v3160_v0  ;;  %v11871_v48 = vld [vmem:[#allocation2 + $0x21] sm:$0xff]  ;;  %v3129_v47 = vpop.f32.mrf.mxu1 }
 0x483   :  { %v3072_v63 = vpop.f32.mrf.mxu0 }
 0x484   :  { %8881 = vrot.lane.b32.xlu1 %v8880_v42, %s9851_s0  ;;  %8876 = vrot.lane.b32.xlu2 %v8875_v22, %s9849_s29  ;;  %v11848_v52 = vadd.f32 %v3180_v43, %v14292_v4  ;;  %v3073_v12 = vadd.f32 %v3072_v63, %v3023_v9 }
 0x486   :  { %v14254_v1 = vmax.f32 %v11848_v52, 0.0  ;;  %v3122_v34 = vadd.f32 %v3121_v23, %v3073_v12 }
 0x488   :  { %3228 = vst.msk [vmem:[#allocation2 + $0x31] sm:$0xff] %vm74_vm0, %v14254_v1  ;;  %v3161_v38 = vmul.f32 %v11784_v57, %v3122_v34 }
 0x489   :  { %v3028_v61 = vpop.f32.mrf.mxu3 }
 0x48a   :  { %v3181_v30 = vadd.f32 %v11791_v35, %v3161_v38 }
 0x48b   :  { %v3075_v17 = vpop.f32.mrf.mxu0 }
 0x48c   :  { %v11858_v31 = vadd.f32 %v3181_v30, %v14293_v24  ;;  %v3076_v27 = vadd.f32 %v3075_v17, %v3026_v6 }
 0x48e   :  { %v14253_v46 = vmax.f32 %v11858_v31, 0.0  ;;  %v3125_v56 = vadd.f32 %v3124_v49, %v3076_v27  ;;  %v14296_v27 = vmax.f32 %v10865_v50, 0.0 }
 0x48f   :  { %v3371_v8 = vld [vmem:[#allocation2 + $0x32] sm:$0xff] }
 0x490   :  { %v11861_v59 = vld [vmem:[#allocation2 + $0x30] sm:$0xff]  ;;  %3229 = vst.msk [vmem:[#allocation2 + $0x41] sm:$0xff] %vm74_vm0, %v14253_v46  ;;  %v3162_v39 = vmul.f32 %v11784_v57, %v3125_v56  ;;  %v3868_v45 = vpack.c.bf16 %v3371_v8, %v3323_v20  ;;  %v8890_v62 = vpack.i.bf16 %v3371_v8, %v3323_v20  ;;  %v14295_v20 = vmax.f32 %v10838_v18, 0.0 }
 0x491   :  { %v11863_v28 = vld [vmem:[#allocation2 + $0x31] sm:$0xff]  ;;  %v8895_v36 = vpack.i.bf16 %v11861_v59, %v11839_v32 }
 0x492   :  { %v8885_v37 = vpack.i.bf16 %v11863_v28, %v11871_v48  ;;  %v3182_v3 = vadd.f32 %v11791_v35, %v3162_v39  ;;  %7674 = vmatmul.msk.bf16.vlgmr.msra.gmra.mxu0 %vm74_vm0, %v3868_v45  ;;  %8891 = vrot.lane.b32.xlu1 %v8890_v62, %s9850_s3  ;;  %v3031_v29 = vpop.f32.mrf.mxu3 }
 0x493   :  { %8896 = vrot.lane.b32.xlu0 %v8895_v36, %s9850_s3  ;;  %v3077_v54 = vpop.f32.mrf.mxu0 }
 0x494   :  { %8886 = vrot.lane.b32.xlu2 %v8885_v37, %s9851_s0  ;;  %v11882_v5 = vadd.f32 %v3182_v3, %v14294_v10  ;;  %v3078_v44 = vadd.f32 %v3077_v54, %v3028_v61  ;;  %v7972_v54 = vld [vmem:[%s14198_s10 + $0x38] sm:$0xff] }
 0x495   :  { %v7980_v10 = vld [vmem:[%s14198_s10 + $0x78] sm:$0xff]  ;;  %4058 = vmatpush.bf16.msrb.mxu2 %v7972_v54 }
 0x496   :  { %v14252_v55 = vmax.f32 %v11882_v5, 0.0  ;;  %v3127_v40 = vadd.f32 %v3126_v33, %v3078_v44  ;;  %v14297_v44 = vmax.f32 %v10880_v19, 0.0  ;;  %4107 = vmatpush.bf16.msra.mxu3 %v7980_v10  ;;  %v7968_v54 = vld [vmem:[%s14198_s10 + $0x18] sm:$0xff] }
 0x497   :  { %v3325_v51 = vld [vmem:[#allocation2 + $0x42] sm:$0xff] }
 0x498   :  { %v11885_v9 = vld [vmem:[#allocation2 + $0x40] sm:$0xff]  ;;  %3230 = vst.msk [vmem:[#allocation2 + $0x51] sm:$0xff] %vm74_vm0, %v14252_v55  ;;  %v3163_v13 = vmul.f32 %v11784_v57, %v3127_v40  ;;  %v8910_v2 = vpack.i.bf16 %v3325_v51, %v3371_v8  ;;  %v3131_v8 = vpop.f32.mrf.mxu1 }
 0x499   :  { %v8905_v16 = vpack.i.bf16 %v11885_v9, %v11861_v59  ;;  %v11902_v12 = vld [vmem:[#allocation2 + $0x41] sm:$0xff] }
 0x49a   :  { %v3183_v23 = vadd.f32 %v11791_v35, %v3163_v13  ;;  %8901 = vrot.lane.b32.xlu1 %v8885_v37, %s9849_s29  ;;  %v3033_v17 = vpop.f32.mrf.mxu3 }
 0x49b   :  { %8906 = vrot.lane.b32.xlu0 %v8905_v16, %s9849_s29  ;;  %v3080_v0 = vpop.f32.mrf.mxu0 }
 0x49c   :  { %8911 = vrot.lane.b32.xlu2 %v8910_v2, %s9851_s0  ;;  %v11899_v42 = vadd.f32 %v3183_v23, %v14295_v20  ;;  %v3081_v22 = vadd.f32 %v3080_v0, %v3031_v29 }
 0x49e   :  { %v14251_v43 = vmax.f32 %v11899_v42, 0.0  ;;  %v3130_v63 = vadd.f32 %v3129_v47, %v3081_v22 }
 0x49f   :  { %v3373_v4 = vld [vmem:[#allocation2 + $0x52] sm:$0xff] }
 0x4a0   :  { %v11904_v6 = vld [vmem:[#allocation2 + $0x51] sm:$0xff]  ;;  %3231 = vst.msk [vmem:[#allocation2 + $0x61] sm:$0xff] %vm74_vm0, %v14251_v43  ;;  %v3164_v34 = vmul.f32 %v11784_v57, %v3130_v63  ;;  %v3871_v49 = vpack.c.bf16 %v3373_v4, %v3325_v51  ;;  %v8920_v38 = vpack.i.bf16 %v3373_v4, %v3325_v51 }
 0x4a1   :  { %v8915_v18 = vpack.i.bf16 %v11904_v6, %v11902_v12  ;;  %v11921_v36 = vld [vmem:[#allocation2 + $0x50] sm:$0xff] }
 0x4a2   :  { %v3184_v30 = vadd.f32 %v11791_v35, %v3164_v34  ;;  %7675 = vmatmul.msk.bf16.gmra.mxu0 %vm74_vm0, %v3871_v49  ;;  %v8925_v37 = vpack.i.bf16 %v11921_v36, %v11885_v9  ;;  %v7971_v34 = vld [vmem:[%s14198_s10 + $0x30] sm:$0xff] }
 0x4a3   :  { %8916 = vrot.lane.b32.xlu0 %v8915_v18, %s9851_s0  ;;  %v3082_v24 = vpop.f32.mrf.mxu0  ;;  %v3377_v49 = vld [vmem:[#allocation2 + $0x92] sm:$0xff]  ;;  %4059 = vmatpush.bf16.msrb.mxu2 %v7971_v34 }
 0x4a4   :  { %8921 = vrot.lane.b32.xlu2 %v8920_v38, %s9850_s3  ;;  %v11918_v56 = vadd.f32 %v3184_v30, %v14296_v27  ;;  %v3083_v61 = vadd.f32 %v3082_v24, %v3033_v17  ;;  %v7970_v30 = vld [vmem:[%s14198_s10 + $0x28] sm:$0xff]  ;;  %v3134_v17 = vpop.f32.mrf.mxu1  ;;  %v3361_v27 = vld [vmem:[#allocation2 + $0x91] sm:$0xff] }
 0x4a6   :  { %v14250_v39 = vmax.f32 %v11918_v56, 0.0  ;;  %v3132_v45 = vadd.f32 %v3131_v8, %v3083_v61  ;;  %v3036_v61 = vpop.f32.mrf.mxu3 }
 0x4a7   :  { %v11923_v62 = vld [vmem:[#allocation2 + $0x60] sm:$0xff]  ;;  %4060 = vmatpush.bf16.msrb.mxu2 %v7970_v30 }
 0x4a8   :  { %3232 = vst.msk [vmem:[#allocation2 + $0x71] sm:$0xff] %vm74_vm0, %v14250_v39  ;;  %v3165_v33 = vmul.f32 %v11784_v57, %v3132_v45  ;;  %v8935_v50 = vpack.i.bf16 %v11923_v62, %v11921_v36  ;;  %v3327_v51 = vld [vmem:[#allocation2 + $0x62] sm:$0xff] }
 0x4a9   :  { %v11948_v16 = vld [vmem:[#allocation2 + $0x61] sm:$0xff]  ;;  %v8940_v23 = vpack.i.bf16 %v3327_v51, %v3373_v4 }
 0x4aa   :  { %v3185_v3 = vadd.f32 %v11791_v35, %v3165_v33  ;;  %8936 = vrot.lane.b32.xlu1 %v8935_v50, %s9849_s29  ;;  %v7979_v33 = vld [vmem:[%s14198_s10 + $0x70] sm:$0xff] }
 0x4ab   :  { %8931 = vrot.lane.b32.xlu0 %v8915_v18, %s9849_s29  ;;  %v3345_v18 = vld [vmem:[#allocation2 + $0x90] sm:$0xff]  ;;  %4108 = vmatpush.bf16.msra.mxu3 %v7979_v33 }
 0x4ac   :  { %8926 = vrot.lane.b32.xlu2 %v8925_v37, %s9850_s3  ;;  %v11945_v40 = vadd.f32 %v3185_v3, %v14297_v44  ;;  %v7969_v3 = vld [vmem:[%s14198_s10 + $0x20] sm:$0xff]  ;;  %v3136_v10 = vpop.f32.mrf.mxu1 }
 0x4ad   :  { %4061 = vmatpush.bf16.msrb.mxu2 %v7969_v3 }
 0x4ae   :  { %v14249_v13 = vmax.f32 %v11945_v40, 0.0  ;;  %v3038_v44 = vpop.f32.mrf.mxu3 }
 0x4af   :  { %v3375_v2 = vld [vmem:[#allocation2 + $0x72] sm:$0xff] }
 0x4b0   :  { %v11950_v29 = vld [vmem:[#allocation2 + $0x71] sm:$0xff]  ;;  %3233 = vst.msk [vmem:[#allocation2 + $0x81] sm:$0xff] %vm74_vm0, %v14249_v13  ;;  %v3874_v47 = vpack.c.bf16 %v3375_v2, %v3327_v51  ;;  %v8950_v22 = vpack.i.bf16 %v3375_v2, %v3327_v51 }
 0x4b1   :  { %v8960_v19 = vpack.i.bf16 %v11950_v29, %v11948_v16  ;;  %v11961_v0 = vld [vmem:[#allocation2 + $0x70] sm:$0xff]  ;;  %4062 = vmatpush.bf16.msrb.mxu2 %v7968_v54 }
 0x4b2   :  { %7676 = vmatmul.msk.bf16.gmra.mxu0 %vm74_vm0, %v3874_v47  ;;  %v8955_v4 = vpack.i.bf16 %v11961_v0, %v11923_v62  ;;  %v7967_v51 = vld [vmem:[%s14198_s10 + $0x10] sm:$0xff]  ;;  %v7966_v47 = vld [vmem:[%s14198_s10 + $0x8] sm:$0xff] }
 0x4b3   :  { %8941 = vrot.lane.b32.xlu0 %v8940_v23, %s9851_s0  ;;  %8946 = vrot.lane.b32.xlu1 %v8960_v19, %s9851_s0 }
 0x4b4   :  { %8961 = vrot.lane.b32.xlu2 %v8960_v19, %s9849_s29 }
 0x4b5   :  { %4063 = vmatpush.bf16.msrb.mxu2 %v7967_v51  ;;  %v3266_v51 = vld [vmem:[#allocation2 + $0xa1] sm:$0xff] }
 0x4b7   :  { %v3297_v20 = vld [vmem:[#allocation2 + $0x80] sm:$0xff] }
 0x4b8   :  { %v8965_v63 = vpack.i.bf16 %v3297_v20, %v11961_v0  ;;  %v3376_v38 = vld [vmem:[#allocation2 + $0x82] sm:$0xff]  ;;  %v8975_v45 = vpack.i.bf16 %v3345_v18, %v3297_v20  ;;  %v14298_v18 = vmax.f32 %v10905_v53, 0.0 }
 0x4b9   :  { %v11975_v24 = vld [vmem:[#allocation2 + $0x81] sm:$0xff]  ;;  %v3877_v8 = vpack.c.bf16 %v3377_v49, %v3376_v38  ;;  %v8970_v50 = vpack.i.bf16 %v3376_v38, %v3375_v2  ;;  %4064 = vmatpush.bf16.msrb.mxu2 %v7966_v47  ;;  %v3041_v49 = vpop.f32.mrf.mxu3 }
 0x4ba   :  { %v8980_v37 = vpack.i.bf16 %v3361_v27, %v11975_v24 }
 0x4bb   :  { %8951 = vrot.lane.b32.xlu0 %v8950_v22, %s9850_s3  ;;  %8956 = vrot.lane.b32.xlu1 %v8955_v4, %s9850_s3  ;;  %v7978_v22 = vld [vmem:[%s14198_s10 + $0x68] sm:$0xff]  ;;  %v3139_v4 = vpop.f32.mrf.mxu1 }
 0x4bc   :  { %8966 = vrot.lane.b32.xlu2 %v8965_v63, %s9849_s29  ;;  %v7965_v63 = vld [vmem:[%s14198_s10] sm:$0xff]  ;;  %4109 = vmatpush.bf16.msra.mxu3 %v7978_v22 }
 0x4bd   :  { %4065 = vmatpush.bf16.msrb.mxu2 %v7965_v63  ;;  %v7977_v22 = vld [vmem:[%s14198_s10 + $0x60] sm:$0xff] }
 0x4c0   :  { %4110 = vmatpush.bf16.msra.mxu3 %v7977_v22 }
 0x4c1   :  { %v3043_v54 = vpop.f32.mrf.mxu3 }
 0x4c2   :  { %7677 = vmatmul.msk.bf16.gmra.mxu0 %vm74_vm0, %v3877_v8 }
 0x4c3   :  { %8976 = vrot.lane.b32.xlu0 %v8975_v45, %s9850_s3  ;;  %8971 = vrot.lane.b32.xlu1 %v8970_v50, %s9851_s0  ;;  %v14299_v50 = vmax.f32 %v10913_v60, 0.0  ;;  %v3141_v3 = vpop.f32.mrf.mxu1 }
 0x4c4   :  { %8981 = vrot.lane.b32.xlu2 %v8980_v37, %s9849_s29 }
 0x4cb   :  { %v3085_v2 = vpop.f32.mrf.mxu0 }
 0x4cc   :  { %v3086_v23 = vadd.f32 %v3085_v2, %v3036_v61 }
 0x4ce   :  { %v3135_v19 = vadd.f32 %v3134_v17, %v3086_v23 }
 0x4d0   :  { %v3166_v20 = vmul.f32 %v11784_v57, %v3135_v19 }
 0x4d2   :  { %v3186_v34 = vadd.f32 %v11791_v35, %v3166_v20 }
 0x4d3   :  { %v3087_v38 = vpop.f32.mrf.mxu0 }
 0x4d4   :  { %v12007_v30 = vadd.f32 %v3186_v34, %v14298_v18  ;;  %v3088_v17 = vadd.f32 %v3087_v38, %v3038_v44  ;;  %v3282_v44 = vld [vmem:[#allocation2 + $0xa2] sm:$0xff]  ;;  %v7976_v34 = vld [vmem:[%s14198_s10 + $0x58] sm:$0xff] }
 0x4d5   :  { %4111 = vmatpush.bf16.msra.mxu3 %v7976_v34 }
 0x4d6   :  { %v14245_v27 = vmax.f32 %v12007_v30, 0.0  ;;  %v3137_v61 = vadd.f32 %v3136_v10, %v3088_v17 }
 0x4d8   :  { %3234 = vst.msk [vmem:[#allocation2 + $0xb1] sm:$0xff] %vm74_vm0, %v14245_v27  ;;  %v3167_v8 = vmul.f32 %v11784_v57, %v3137_v61 }
 0x4da   :  { %v3187_v45 = vadd.f32 %v11791_v35, %v3167_v8  ;;  %v3144_v8 = vpop.f32.mrf.mxu1 }
 0x4db   :  { %v3090_v33 = vpop.f32.mrf.mxu0 }
 0x4dc   :  { %v12017_v37 = vadd.f32 %v3187_v45, %v14299_v50  ;;  %v3091_v53 = vadd.f32 %v3090_v33, %v3041_v49  ;;  %v14300_v49 = vmax.f32 %v10931_v15, 0.0  ;;  %v3046_v45 = vpop.f32.mrf.mxu3 }
 0x4de   :  { %v14242_v10 = vmax.f32 %v12017_v37, 0.0  ;;  %v3140_v2 = vadd.f32 %v3139_v4, %v3091_v53  ;;  %v8877_v22 = vpop.permute.xlu2 %8876 }
 0x4df   :  { %v3283_v23 = vld [vmem:[#allocation2 + $0xb2] sm:$0xff] }
 0x4e0   :  { %v12020_v47 = vld [vmem:[#allocation2 + $0xb1] sm:$0xff]  ;;  %3235 = vst.msk [vmem:[#allocation2 + $0xc1] sm:$0xff] %vm74_vm0, %v14242_v10  ;;  %v3168_v19 = vmul.f32 %v11784_v57, %v3140_v2  ;;  %v8990_v60 = vpack.i.bf16 %v3283_v23, %v3282_v44 }
 0x4e1   :  { %v8985_v20 = vpack.i.bf16 %v12020_v47, %v3266_v51  ;;  %v12041_v50 = vld [vmem:[#allocation2 + $0xb0] sm:$0xff] }
 0x4e2   :  { %v3188_v63 = vadd.f32 %v11791_v35, %v3168_v19  ;;  %8991 = vrot.lane.b32.xlu1 %v8990_v60, %s9850_s3  ;;  %v7974_v19 = vld [vmem:[%s14198_s10 + $0x48] sm:$0xff] }
 0x4e3   :  { %8986 = vrot.lane.b32.xlu2 %v8985_v20, %s9851_s0  ;;  %v3092_v4 = vpop.f32.mrf.mxu0 }
 0x4e4   :  { %v12038_v38 = vadd.f32 %v3188_v63, %v14300_v49  ;;  %v3093_v18 = vadd.f32 %v3092_v4, %v3043_v54  ;;  %v3242_v49 = vld [vmem:[#allocation2] sm:$0xff] }
 0x4e6   :  { %v14241_v17 = vmax.f32 %v12038_v38, 0.0  ;;  %v3142_v61 = vadd.f32 %v3141_v3, %v3093_v18  ;;  %v7975_v3 = vld [vmem:[%s14198_s10 + $0x50] sm:$0xff] }
 0x4e7   :  { %v3331_v33 = vld [vmem:[#allocation2 + $0xc2] sm:$0xff]  ;;  %4112 = vmatpush.bf16.msra.mxu3 %v7975_v3 }
 0x4e8   :  { %v12043_v53 = vld [vmem:[#allocation2 + $0xc0] sm:$0xff]  ;;  %3236 = vst.msk [vmem:[#allocation2 + $0xd1] sm:$0xff] %vm74_vm0, %v14241_v17  ;;  %v3169_v15 = vmul.f32 %v11784_v57, %v3142_v61  ;;  %v9000_v44 = vpack.i.bf16 %v3331_v33, %v3283_v23  ;;  %v14301_v23 = vmax.f32 %v10939_v26, 0.0  ;;  %v8879_v26 = vunpack.i.h.bf16 %v8877_v22 }
 0x4e9   :  { %v8995_v54 = vpack.i.bf16 %v12043_v53, %v12041_v50  ;;  %v12081_v14 = vld [vmem:[#allocation2 + $0xc1] sm:$0xff] }
 0x4ea   :  { %v3189_v51 = vadd.f32 %v11791_v35, %v3169_v15 }
 0x4eb   :  { %9001 = vrot.lane.b32.xlu2 %v9000_v44, %s9851_s0  ;;  %8996 = vrot.lane.b32.xlu0 %v8995_v54, %s9849_s29  ;;  %v3095_v2 = vpop.f32.mrf.mxu0 }
 0x4ec   :  { %v12062_v60 = vadd.f32 %v3189_v51, %v14301_v23  ;;  %v3096_v20 = vadd.f32 %v3095_v2, %v3046_v45  ;;  %4113 = vmatpush.bf16.msra.mxu3 %v7974_v19  ;;  %v8878_v51 = vunpack.i.l.bf16 %v8877_v22  ;;  %v7973_v2 = vld [vmem:[%s14198_s10 + $0x40] sm:$0xff]  ;;  %v3146_v23 = vpop.f32.mrf.mxu1 }
 0x4ed   :  { %v8872_v63 = vpop.permute.xlu0 %8871 }
 0x4ee   :  { %v14244_v4 = vmax.f32 %v12062_v60, 0.0  ;;  %v3145_v34 = vadd.f32 %v3144_v8, %v3096_v20  ;;  %v8867_v18 = vpop.permute.xlu1 %8866  ;;  %v8874_v61 = vunpack.i.h.bf16 %v8872_v63  ;;  %v8873_v15 = vunpack.i.l.bf16 %v8872_v63  ;;  %v3048_v20 = vpop.f32.mrf.mxu3 }
 0x4ef   :  { %v8869_v44 = vunpack.i.h.bf16 %v8867_v18  ;;  %v8868_v54 = vunpack.i.l.bf16 %v8867_v18  ;;  %v3379_v3 = vld [vmem:[#allocation2 + $0xd2] sm:$0xff] }
 0x4f0   :  { %v12065_v17 = vld [vmem:[#allocation2 + $0xd0] sm:$0xff]  ;;  %3237 = vst.msk [vmem:[#allocation2 + $0xe1] sm:$0xff] %vm74_vm0, %v14244_v4  ;;  %v3170_v8 = vmul.f32 %v11784_v57, %v3145_v34  ;;  %v3880_v45 = vpack.c.bf16 %v3379_v3, %v3331_v33  ;;  %v9010_v18 = vpack.i.bf16 %v3379_v3, %v3331_v33  ;;  %4114 = vmatpush.bf16.msra.mxu3 %v7973_v2 }
 0x4f1   :  { %v12067_v10 = vld [vmem:[#allocation2 + $0xd1] sm:$0xff]  ;;  %v3770_v63 = vsel %vm74_vm0, %v3242_v49, %v8868_v54  ;;  %v3771_v19 = vsel %vm74_vm0, %v11837_v58, %v8869_v44  ;;  %v9015_v22 = vpack.i.bf16 %v12065_v17, %v12043_v53  ;;  %v14302_v44 = vmax.f32 %v10777_v7, 0.0 }
 0x4f2   :  { %v3190_v34 = vadd.f32 %v11791_v35, %v3170_v8  ;;  %v3786_v4 = vsel %vm1699_vm12, %v3770_v63, %v8873_v15  ;;  %v3787_v27 = vsel %vm1699_vm12, %v3771_v19, %v8874_v61  ;;  %7678 = vmatmul.msk.bf16.gmra.mxu0 %vm74_vm0, %v3880_v45  ;;  %v9005_v49 = vpack.i.bf16 %v12067_v10, %v12081_v14 }
 0x4f3   :  { %v3802_v54 = vsel %vm925_vm10, %v3786_v4, %v8878_v51  ;;  %v3803_v58 = vsel %vm925_vm10, %v3787_v27, %v8879_v26  ;;  %9016 = vrot.lane.b32.xlu1 %v9015_v22, %s9850_s3  ;;  %9011 = vrot.lane.b32.xlu2 %v9010_v18, %s9850_s3  ;;  %v3097_v33 = vpop.f32.mrf.mxu0  ;;  %v8887_v26 = vpop.permute.xlu2 %8886  ;;  %v14303_v18 = vld [vmem:[#allocation3_spill] sm:$0xff] }
 0x4f4   :  { %v12095_v8 = vadd.f32 %v3190_v34, %v14302_v44  ;;  %9006 = vrot.lane.b32.xlu0 %v9005_v49, %s9851_s0  ;;  %v3098_v61 = vadd.f32 %v3097_v33, %v3048_v20  ;;  %v3866_v15 = vpack.c.bf16 %v3803_v58, %v3802_v54  ;;  %v3149_v22 = vpop.f32.mrf.mxu1  ;;  %v14304_v34 = vmax.f32 %v14303_v18, 0.0  ;;  %v14305_v18 = vld [vmem:[#allocation5_spill] sm:$0xff] }
 0x4f5   :  { %v8889_v13 = vunpack.i.h.bf16 %v8887_v26 }
 0x4f6   :  { %v14247_v45 = vmax.f32 %v12095_v8, 0.0  ;;  %v3147_v63 = vadd.f32 %v3146_v23, %v3098_v61  ;;  %4066 = vmatmul.bf16.vlgmr.msrb.gmra.mxu2 %v3866_v15  ;;  %v3051_v19 = vpop.f32.mrf.mxu3 }
 0x4f7   :  { %v3333_v4 = vld [vmem:[#allocation2 + $0xe2] sm:$0xff] }
 0x4f8   :  { %v12099_v27 = vld [vmem:[#allocation2 + $0xe0] sm:$0xff]  ;;  %3238 = vst.msk [vmem:[#allocation2 + $0xf1] sm:$0xff] %vm74_vm0, %v14247_v45  ;;  %v3171_v7 = vmul.f32 %v11784_v57, %v3147_v63  ;;  %v9025_v51 = vpack.i.bf16 %v3333_v4, %v3379_v3  ;;  %v8882_v3 = vpop.permute.xlu1 %8881 }
 0x4f9   :  { %v9020_v20 = vpack.i.bf16 %v12099_v27, %v12065_v17  ;;  %v12116_v15 = vld [vmem:[#allocation2 + $0xe1] sm:$0xff]  ;;  %v8883_v46 = vunpack.i.l.bf16 %v8882_v3 }
 0x4fa   :  { %v3191_v2 = vadd.f32 %v11791_v35, %v3171_v7 }
 0x4fb   :  { %9046 = vrot.lane.b32.xlu2 %v9005_v49, %s9849_s29  ;;  %9021 = vrot.lane.b32.xlu1 %v9020_v20, %s9849_s29  ;;  %v3100_v23 = vpop.f32.mrf.mxu0 }
 0x4fc   :  { %v12112_v54 = vadd.f32 %v3191_v2, %v14304_v34  ;;  %9026 = vrot.lane.b32.xlu0 %v9025_v51, %s9851_s0  ;;  %v3101_v58 = vadd.f32 %v3100_v23, %v3051_v19  ;;  %v12128_v19 = vpop.permute.xlu2 %8911  ;;  %v14306_v34 = vmax.f32 %v14305_v18, 0.0 }
 0x4fe   :  { %v14246_v33 = vmax.f32 %v12112_v54, 0.0  ;;  %v3150_v44 = vadd.f32 %v3149_v22, %v3101_v58  ;;  %v3053_v22 = vpop.f32.mrf.mxu3 }
 0x4ff   :  { %v3381_v61 = vld [vmem:[#allocation2 + $0xf2] sm:$0xff] }
 0x500   :  { %v12118_v63 = vld [vmem:[#allocation2 + $0xf1] sm:$0xff]  ;;  %3239 = vst.msk [vmem:[#allocation2 + $0x101] sm:$0xff] %vm74_vm0, %v14246_v33  ;;  %v3172_v49 = vmul.f32 %v11784_v57, %v3150_v44  ;;  %v3883_v7 = vpack.c.bf16 %v3381_v61, %v3333_v4  ;;  %v9035_v20 = vpack.i.bf16 %v3381_v61, %v3333_v4  ;;  %v3151_v33 = vpop.f32.mrf.mxu1 }
 0x501   :  { %v12126_v51 = vpack.i.bf16 %v12118_v63, %v12116_v15  ;;  %v12140_v39 = vld [vmem:[#allocation2 + $0xf0] sm:$0xff] }
 0x502   :  { %v3192_v2 = vadd.f32 %v11791_v35, %v3172_v49  ;;  %7679 = vmatmul.msk.bf16.gmra.mxu0 %vm74_vm0, %v3883_v7  ;;  %v8888_v7 = vunpack.i.l.bf16 %v8887_v26 }
 0x503   :  { %9031 = vrot.lane.b32.xlu1 %v12126_v51, %s9851_s0  ;;  %v3102_v23 = vpop.f32.mrf.mxu0 }
 0x504   :  { %v12136_v58 = vadd.f32 %v3192_v2, %v14306_v34  ;;  %9036 = vrot.lane.b32.xlu0 %v9035_v20, %s9850_s3  ;;  %v3103_v4 = vadd.f32 %v3102_v23, %v3053_v22  ;;  %v8892_v45 = vpop.permute.xlu1 %8891  ;;  %v8884_v23 = vunpack.i.h.bf16 %v8882_v3  ;;  %v9040_v34 = vpack.i.bf16 %v12140_v39, %v12099_v27 }
 0x505   :  { %v8897_v44 = vpop.permute.xlu0 %8896  ;;  %v8894_v18 = vunpack.i.h.bf16 %v8892_v45  ;;  %v3818_v3 = vsel %vm74_vm0, %v11824_v25, %v8883_v46 }
 0x506   :  { %14307 = vst [vmem:[#allocation6_spill] sm:$0xff] %v12136_v58  ;;  %v14255_v11 = vmax.f32 %v12136_v58, 0.0  ;;  %v3152_v49 = vadd.f32 %v3151_v33, %v3103_v4  ;;  %v8893_v33 = vunpack.i.l.bf16 %v8892_v45  ;;  %v8899_v4 = vunpack.i.h.bf16 %v8897_v44  ;;  %v14308_v45 = vld [vmem:[#allocation7_spill] sm:$0xff] }
 0x507   :  { %v3335_v43 = vld [vmem:[#allocation2 + $0x102] sm:$0xff]  ;;  %v8898_v1 = vunpack.i.l.bf16 %v8897_v44 }
 0x508   :  { %v12142_v55 = vld [vmem:[#allocation2 + $0x100] sm:$0xff]  ;;  %3240 = vst.msk [vmem:[#allocation2 + $0x111] sm:$0xff] %vm74_vm0, %v14255_v11  ;;  %v3173_v20 = vmul.f32 %v11784_v57, %v3152_v49  ;;  %v9055_v2 = vpack.i.bf16 %v3335_v43, %v3381_v61  ;;  %v3772_v57 = vsel %vm74_vm0, %v11839_v32, %v8888_v7  ;;  %v3773_v61 = vsel %vm74_vm0, %v11861_v59, %v8889_v13 }
 0x509   :  { %v9050_v22 = vpack.i.bf16 %v12142_v55, %v12140_v39  ;;  %v14309_v49 = vmax.f32 %v14308_v45, 0.0  ;;  %v3788_v59 = vsel %vm1699_vm12, %v3772_v57, %v8893_v33  ;;  %v3789_v11 = vsel %vm1699_vm12, %v3773_v61, %v8894_v18 }
 0x50a   :  { %v3193_v26 = vadd.f32 %v11791_v35, %v3173_v20  ;;  %v12161_v35 = vpop.permute.xlu2 %8921  ;;  %v3834_v45 = vsel %vm1699_vm12, %v3818_v3, %v8898_v1 }
 0x50b   :  { %9051 = vrot.lane.b32.xlu2 %v9050_v22, %s9849_s29  ;;  %9056 = vrot.lane.b32.xlu1 %v9055_v2, %s9851_s0  ;;  %v3819_v2 = vsel %vm74_vm0, %v11871_v48, %v8884_v23 }
 0x50c   :  { %v12165_v20 = vadd.f32 %v3193_v26, %v14309_v49  ;;  %9041 = vrot.lane.b32.xlu0 %v9040_v34, %s9850_s3  ;;  %v8902_v22 = vpop.permute.xlu1 %8901  ;;  %v3835_v26 = vsel %vm1699_vm12, %v3819_v2, %v8899_v4  ;;  %v12184_v4 = vld [vmem:[#allocation2 + $0x101] sm:$0xff] }
 0x50d   :  { %v8907_v44 = vpop.permute.xlu0 %8906  ;;  %v8904_v25 = vunpack.i.h.bf16 %v8902_v22  ;;  %v8903_v46 = vunpack.i.l.bf16 %v8902_v22 }
 0x50e   :  { %14310 = vst [vmem:[#allocation8_spill] sm:$0xff] %v12165_v20  ;;  %v8909_v32 = vunpack.i.h.bf16 %v8907_v44  ;;  %v8908_v7 = vunpack.i.l.bf16 %v8907_v44  ;;  %v14256_v13 = vmax.f32 %v12165_v20, 0.0 }
 0x50f   :  { %v3383_v48 = vld [vmem:[#allocation2 + $0x112] sm:$0xff]  ;;  %v3851_v33 = vsel %vm925_vm10, %v3835_v26, %v8904_v25  ;;  %v3850_v57 = vsel %vm925_vm10, %v3834_v45, %v8903_v46  ;;  %v8913_v46 = vunpack.i.l.bf16 %v12128_v19 }
 0x510   :  { %v3804_v34 = vsel %vm925_vm10, %v3788_v59, %v8908_v7  ;;  %v3805_v49 = vsel %vm925_vm10, %v3789_v11, %v8909_v32  ;;  %v12177_v23 = vld [vmem:[#allocation2 + $0x111] sm:$0xff]  ;;  %3241 = vst.msk [vmem:[#allocation2 + $0x121] sm:$0xff] %vm74_vm0, %v14256_v13  ;;  %v3886_v61 = vpack.c.bf16 %v3383_v48, %v3335_v43  ;;  %v3867_v1 = vpack.c.bf16 %v3851_v33, %v3850_v57 }
 0x511   :  { %v3869_v18 = vpack.c.bf16 %v3805_v49, %v3804_v34  ;;  %v9065_v3 = vpack.i.bf16 %v3383_v48, %v3335_v43  ;;  %v9060_v11 = vpack.i.bf16 %v12177_v23, %v12184_v4  ;;  %v12191_v22 = vld [vmem:[#allocation2 + $0x110] sm:$0xff]  ;;  %v8914_v43 = vunpack.i.h.bf16 %v12128_v19 }
 0x512   :  { %7680 = vmatmul.msk.bf16.gmra.mxu0 %vm74_vm0, %v3886_v61  ;;  %4115 = vmatmul.bf16.vlgmr.msra.gmra.mxu3 %v3867_v1  ;;  %v8927_v2 = vpop.permute.xlu2 %8926  ;;  %v9070_v34 = vpack.i.bf16 %v12191_v22, %v12142_v55  ;;  %v3820_v19 = vsel %vm74_vm0, %v11863_v28, %v8913_v46  ;;  %v8924_v61 = vunpack.i.h.bf16 %v12161_v35  ;;  %v8923_v1 = vunpack.i.l.bf16 %v12161_v35 }
 0x513   :  { %4071 = vmatmul.bf16.gmra.mxu2 %v3869_v18  ;;  %9066 = vrot.lane.b32.xlu1 %v9065_v3, %s9850_s3  ;;  %v8929_v49 = vunpack.i.h.bf16 %v8927_v2  ;;  %v8928_v33 = vunpack.i.l.bf16 %v8927_v2 }
 0x514   :  { %9061 = vrot.lane.b32.xlu2 %v9060_v11, %s9851_s0 }
 0x515   :  { %v8917_v44 = vpop.permute.xlu0 %8916  ;;  %v3836_v46 = vsel %vm1699_vm12, %v3820_v19, %v8928_v33  ;;  %v3369_v19 = vld [vmem:[#allocation2 + $0x131] sm:$0xff] }
 0x516   :  { %v8919_v32 = vunpack.i.h.bf16 %v8917_v44  ;;  %v8918_v7 = vunpack.i.l.bf16 %v8917_v44 }
 0x517   :  { %v3337_v59 = vld [vmem:[#allocation2 + $0x122] sm:$0xff] }
 0x518   :  { %v3305_v25 = vld [vmem:[#allocation2 + $0x120] sm:$0xff]  ;;  %v9085_v26 = vpack.i.bf16 %v3337_v59, %v3383_v48  ;;  %v3774_v57 = vsel %vm74_vm0, %v11885_v9, %v8918_v7  ;;  %v3775_v18 = vsel %vm74_vm0, %v11921_v36, %v8919_v32  ;;  %v3821_v48 = vsel %vm74_vm0, %v11902_v12, %v8914_v43  ;;  %v3385_v32 = vld [vmem:[#allocation2 + $0x132] sm:$0xff] }
 0x519   :  { %v9080_v45 = vpack.i.bf16 %v3305_v25, %v12191_v22  ;;  %v3791_v28 = vsel %vm1699_vm12, %v3775_v18, %v8924_v61  ;;  %v3837_v12 = vsel %vm1699_vm12, %v3821_v48, %v8929_v49  ;;  %v3889_v58 = vpack.c.bf16 %v3385_v32, %v3337_v59  ;;  %v12224_v18 = vld [vmem:[#allocation2 + $0x121] sm:$0xff] }
 0x51a   :  { %v8962_v13 = vpop.permute.xlu2 %8961 }
 0x51b   :  { %9081 = vrot.lane.b32.xlu0 %v9080_v45, %s9849_s29  ;;  %9071 = vrot.lane.b32.xlu1 %v9070_v34, %s9850_s3  ;;  %v3790_v45 = vsel %vm1699_vm12, %v3774_v57, %v8923_v1  ;;  %v9100_v1 = vpack.i.bf16 %v3369_v19, %v12224_v18 }
 0x51c   :  { %9086 = vrot.lane.b32.xlu2 %v9085_v26, %s9851_s0  ;;  %v8937_v44 = vpop.permute.xlu1 %8936 }
 0x51d   :  { %v8932_v3 = vpop.permute.xlu0 %8931  ;;  %v8939_v7 = vunpack.i.h.bf16 %v8937_v44  ;;  %v8938_v36 = vunpack.i.l.bf16 %v8937_v44 }
 0x51e   :  { %v8934_v9 = vunpack.i.h.bf16 %v8932_v3  ;;  %v8933_v2 = vunpack.i.l.bf16 %v8932_v3  ;;  %v3353_v3 = vld [vmem:[#allocation2 + $0x130] sm:$0xff] }
 0x51f   :  { %v3806_v43 = vsel %vm925_vm10, %v3790_v45, %v8938_v36  ;;  %v3807_v35 = vsel %vm925_vm10, %v3791_v28, %v8939_v7  ;;  %v9095_v57 = vpack.i.bf16 %v3353_v3, %v3305_v25 }
 0x520   :  { %v3852_v26 = vsel %vm925_vm10, %v3836_v46, %v8933_v2  ;;  %v3853_v34 = vsel %vm925_vm10, %v3837_v12, %v8934_v9  ;;  %v3872_v44 = vpack.c.bf16 %v3807_v35, %v3806_v43  ;;  %v8963_v9 = vunpack.i.l.bf16 %v8962_v13 }
 0x521   :  { %v3870_v20 = vpack.c.bf16 %v3853_v34, %v3852_v26 }
 0x522   :  { %7681 = vmatmul.msk.bf16.gmra.mxu0 %vm74_vm0, %v3889_v58  ;;  %v8967_v48 = vpop.permute.xlu2 %8966 }
 0x523   :  { %4076 = vmatmul.bf16.gmra.mxu2 %v3872_v44  ;;  %4120 = vmatmul.bf16.gmra.mxu3 %v3870_v20  ;;  %v8964_v20 = vunpack.i.h.bf16 %v8962_v13  ;;  %v8968_v2 = vunpack.i.l.bf16 %v8967_v48 }
 0x524   :  { %9076 = vrot.lane.b32.xlu1 %v12126_v51, %s9849_s29  ;;  %9091 = vrot.lane.b32.xlu2 %v9060_v11, %s9849_s29  ;;  %v8969_v11 = vunpack.i.h.bf16 %v8967_v48 }
 0x525   :  { %9096 = vrot.lane.b32.xlu0 %v9095_v57, %s9850_s3  ;;  %v8942_v49 = vpop.permute.xlu0 %8941  ;;  %v8947_v33 = vpop.permute.xlu1 %8946 }
 0x526   :  { %v8949_v61 = vunpack.i.h.bf16 %v8947_v33  ;;  %v8948_v59 = vunpack.i.l.bf16 %v8947_v33  ;;  %v8944_v58 = vunpack.i.h.bf16 %v8942_v49  ;;  %v8943_v25 = vunpack.i.l.bf16 %v8942_v49 }
 0x528   :  { %v3776_v45 = vsel %vm74_vm0, %v11923_v62, %v8948_v59  ;;  %v3777_v28 = vsel %vm74_vm0, %v11961_v0, %v8949_v61  ;;  %v3822_v43 = vsel %vm74_vm0, %v11904_v6, %v8943_v25  ;;  %v3823_v13 = vsel %vm74_vm0, %v11948_v16, %v8944_v58 }
 0x52a   :  { %v8982_v25 = vpop.permute.xlu2 %8981 }
 0x52d   :  { %9101 = vrot.lane.b32.xlu0 %v9100_v1, %s9849_s29  ;;  %v8952_v51 = vpop.permute.xlu0 %8951  ;;  %v8957_v32 = vpop.permute.xlu1 %8956 }
 0x52e   :  { %v8954_v7 = vunpack.i.h.bf16 %v8952_v51  ;;  %v8953_v36 = vunpack.i.l.bf16 %v8952_v51  ;;  %v8959_v46 = vunpack.i.h.bf16 %v8957_v32  ;;  %v8958_v12 = vunpack.i.l.bf16 %v8957_v32 }
 0x52f   :  { %v8984_v51 = vunpack.i.h.bf16 %v8982_v25 }
 0x530   :  { %v3792_v35 = vsel %vm1699_vm12, %v3776_v45, %v8953_v36  ;;  %v3793_v26 = vsel %vm1699_vm12, %v3777_v28, %v8954_v7  ;;  %v3838_v62 = vsel %vm1699_vm12, %v3822_v43, %v8958_v12  ;;  %v3839_v0 = vsel %vm1699_vm12, %v3823_v13, %v8959_v46  ;;  %v3250_v12 = vld [vmem:[#allocation2 + $0xa0] sm:$0xff] }
 0x531   :  { %v3808_v34 = vsel %vm925_vm10, %v3792_v35, %v8968_v2  ;;  %v3809_v3 = vsel %vm925_vm10, %v3793_v26, %v8969_v11  ;;  %v3854_v57 = vsel %vm925_vm10, %v3838_v62, %v8963_v9  ;;  %v3855_v6 = vsel %vm925_vm10, %v3839_v0, %v8964_v20 }
 0x532   :  { %v3875_v44 = vpack.c.bf16 %v3809_v3, %v3808_v34  ;;  %v3873_v49 = vpack.c.bf16 %v3855_v6, %v3854_v57  ;;  %v8983_v11 = vunpack.i.l.bf16 %v8982_v25 }
 0x534   :  { %4081 = vmatmul.bf16.gmra.mxu2 %v3875_v44  ;;  %4125 = vmatmul.bf16.gmra.mxu3 %v3873_v49 }
 0x535   :  { %v8977_v16 = vpop.permute.xlu0 %8976  ;;  %v8972_v33 = vpop.permute.xlu1 %8971 }
 0x536   :  { %v8974_v19 = vunpack.i.h.bf16 %v8972_v33  ;;  %v8973_v48 = vunpack.i.l.bf16 %v8972_v33  ;;  %v8979_v61 = vunpack.i.h.bf16 %v8977_v16  ;;  %v8978_v59 = vunpack.i.l.bf16 %v8977_v16 }
 0x538   :  { %v3824_v1 = vsel %vm74_vm0, %v11950_v29, %v8973_v48  ;;  %v3825_v58 = vsel %vm74_vm0, %v11975_v24, %v8974_v19 }
 0x539   :  { %v3840_v9 = vsel %vm1699_vm12, %v3824_v1, %v8978_v59  ;;  %v3841_v20 = vsel %vm1699_vm12, %v3825_v58, %v8979_v61 }
 0x53a   :  { %v3856_v2 = vsel %vm925_vm10, %v3840_v9, %v8983_v11  ;;  %v3857_v7 = vsel %vm925_vm10, %v3841_v20, %v8984_v51 }
 0x53b   :  { %v3876_v36 = vpack.c.bf16 %v3857_v7, %v3856_v2 }
 0x53d   :  { %v8987_v32 = vpop.permute.xlu2 %8986 }
 0x53e   :  { %v8989_v29 = vunpack.i.h.bf16 %v8987_v32  ;;  %v8988_v46 = vunpack.i.l.bf16 %v8987_v32 }
 0x540   :  { %v3778_v26 = vsel %vm74_vm0, %v3250_v12, %v8988_v46  ;;  %v3779_v34 = vsel %vm74_vm0, %v12041_v50, %v8989_v29 }
 0x544   :  { %4130 = vmatmul.bf16.gmra.mxu3 %v3876_v36 }
 0x545   :  { %v9002_v45 = vpop.permute.xlu2 %9001 }
 0x546   :  { %v9004_v16 = vunpack.i.h.bf16 %v9002_v45  ;;  %v9003_v33 = vunpack.i.l.bf16 %v9002_v45 }
 0x548   :  { %v3826_v50 = vsel %vm74_vm0, %v12020_v47, %v9003_v33  ;;  %v3827_v58 = vsel %vm74_vm0, %v12081_v14, %v9004_v16 }
 0x54d   :  { %v9012_v24 = vpop.permute.xlu2 %9011 }
 0x54e   :  { %v9014_v14 = vunpack.i.h.bf16 %v9012_v24 }
 0x554   :  { %v8992_v28 = vpop.permute.xlu1 %8991 }
 0x555   :  { %v8994_v43 = vunpack.i.h.bf16 %v8992_v28  ;;  %v8993_v13 = vunpack.i.l.bf16 %v8992_v28  ;;  %v9047_v19 = vpop.permute.xlu2 %9046  ;;  %v9013_v28 = vunpack.i.l.bf16 %v9012_v24 }
 0x556   :  { %v9049_v25 = vunpack.i.h.bf16 %v9047_v19  ;;  %v9048_v9 = vunpack.i.l.bf16 %v9047_v19 }
 0x557   :  { %v3794_v0 = vsel %vm1699_vm12, %v3778_v26, %v8993_v13  ;;  %v3795_v44 = vsel %vm1699_vm12, %v3779_v34, %v8994_v43 }
 0x55d   :  { %v8997_v35 = vpop.permute.xlu0 %8996 }
 0x55e   :  { %v8999_v3 = vunpack.i.h.bf16 %v8997_v35  ;;  %v8998_v62 = vunpack.i.l.bf16 %v8997_v35 }
 0x560   :  { %v3810_v57 = vsel %vm925_vm10, %v3794_v0, %v8998_v62  ;;  %v3811_v6 = vsel %vm925_vm10, %v3795_v44, %v8999_v3 }
 0x561   :  { %v3878_v49 = vpack.c.bf16 %v3811_v6, %v3810_v57 }
 0x563   :  { %4086 = vmatmul.bf16.gmra.mxu2 %v3878_v49 }
 0x565   :  { %v9017_v48 = vpop.permute.xlu1 %9016  ;;  %v9052_v49 = vpop.permute.xlu2 %9051 }
 0x566   :  { %v9019_v61 = vunpack.i.h.bf16 %v9017_v48  ;;  %v9018_v59 = vunpack.i.l.bf16 %v9017_v48  ;;  %v9007_v1 = vpop.permute.xlu0 %9006  ;;  %v9054_v19 = vunpack.i.h.bf16 %v9052_v49  ;;  %v9053_v48 = vunpack.i.l.bf16 %v9052_v49 }
 0x567   :  { %v9009_v20 = vunpack.i.h.bf16 %v9007_v1  ;;  %v9008_v51 = vunpack.i.l.bf16 %v9007_v1 }
 0x568   :  { %v3842_v11 = vsel %vm1699_vm12, %v3826_v50, %v9018_v59  ;;  %v3843_v2 = vsel %vm1699_vm12, %v3827_v58, %v9019_v61 }
 0x569   :  { %v3858_v7 = vsel %vm925_vm10, %v3842_v11, %v9048_v9  ;;  %v3859_v36 = vsel %vm925_vm10, %v3843_v2, %v9049_v25  ;;  %v3780_v45 = vsel %vm74_vm0, %v12043_v53, %v9008_v51  ;;  %v3781_v47 = vsel %vm74_vm0, %v12065_v17, %v9009_v20  ;;  %v4165_v20 = vpop.f32.mrf.mxu0 }
 0x56a   :  { %v3879_v32 = vpack.c.bf16 %v3859_v36, %v3858_v7  ;;  %v3796_v13 = vsel %vm1699_vm12, %v3780_v45, %v9013_v28  ;;  %v3797_v35 = vsel %vm1699_vm12, %v3781_v47, %v9014_v14 }
 0x56c   :  { %4135 = vmatmul.bf16.gmra.mxu3 %v3879_v32 }
 0x56d   :  { %v9022_v29 = vpop.permute.xlu1 %9021 }
 0x56e   :  { %v9027_v46 = vpop.permute.xlu0 %9026  ;;  %v9024_v12 = vunpack.i.h.bf16 %v9022_v29  ;;  %v9023_v43 = vunpack.i.l.bf16 %v9022_v29  ;;  %v9062_v25 = vpop.permute.xlu2 %9061 }
 0x56f   :  { %v9064_v9 = vunpack.i.h.bf16 %v9062_v25 }
 0x570   :  { %v3812_v26 = vsel %vm925_vm10, %v3796_v13, %v9023_v43  ;;  %v3813_v34 = vsel %vm925_vm10, %v3797_v35, %v9024_v12  ;;  %v9029_v35 = vunpack.i.h.bf16 %v9027_v46 }
 0x571   :  { %v3881_v3 = vpack.c.bf16 %v3813_v34, %v3812_v26  ;;  %v3785_v32 = vsel %vm74_vm0, %v12191_v22, %v9064_v9  ;;  %v9028_v26 = vunpack.i.l.bf16 %v9027_v46  ;;  %v12302_v46 = vld [vmem:[%s14199_s11] ss:$0 sm:$0xff] }
 0x573   :  { %4091 = vmatmul.bf16.gmra.mxu2 %v3881_v3 }
 0x575   :  { %v9032_v53 = vpop.permute.xlu1 %9031 }
 0x576   :  { %v9037_v62 = vpop.permute.xlu0 %9036  ;;  %v9034_v17 = vunpack.i.h.bf16 %v9032_v53  ;;  %v9033_v0 = vunpack.i.l.bf16 %v9032_v53 }
 0x577   :  { %v9039_v44 = vunpack.i.h.bf16 %v9037_v62  ;;  %v9038_v24 = vunpack.i.l.bf16 %v9037_v62  ;;  %v3828_v62 = vsel %vm74_vm0, %v12067_v10, %v9028_v26  ;;  %v4309_v26 = vld [vmem:[#allocation2 + $0x2] sm:$0xff] }
 0x578   :  { %v3782_v57 = vsel %vm74_vm0, %v12099_v27, %v9033_v0  ;;  %v3783_v6 = vsel %vm74_vm0, %v12140_v39, %v9034_v17  ;;  %v9063_v39 = vunpack.i.l.bf16 %v9062_v25  ;;  %v3829_v17 = vsel %vm74_vm0, %v12116_v15, %v9029_v35 }
 0x579   :  { %v3798_v16 = vsel %vm1699_vm12, %v3782_v57, %v9038_v24  ;;  %v3799_v33 = vsel %vm1699_vm12, %v3783_v6, %v9039_v44  ;;  %v4067_v2 = vpop.f32.mrf.mxu2  ;;  %v12297_v57 = vpop.permute.xlu2 %9086 }
 0x57a   :  { %v3814_v59 = vsel %vm925_vm10, %v3798_v16, %v9053_v48  ;;  %v3815_v1 = vsel %vm925_vm10, %v3799_v33, %v9054_v19  ;;  %v3784_v36 = vsel %vm74_vm0, %v12142_v55, %v9063_v39  ;;  %v4167_v55 = vpop.f32.mrf.mxu0  ;;  %v12311_v19 = vld [vmem:[%s14200_s12] ss:$0 sm:$0xff] }
 0x57b   :  { %v3884_v50 = vpack.c.bf16 %v3815_v1, %v3814_v59 }
 0x57d   :  { %v12281_v61 = vpop.permute.xlu1 %9056 }
 0x57e   :  { %v9042_v58 = vpop.permute.xlu0 %9041 }
 0x57f   :  { %v9044_v34 = vunpack.i.h.bf16 %v9042_v58  ;;  %v9043_v3 = vunpack.i.l.bf16 %v9042_v58  ;;  %v9059_v58 = vunpack.i.h.bf16 %v12281_v61 }
 0x581   :  { %v4069_v53 = vpop.f32.mrf.mxu2  ;;  %v3844_v49 = vsel %vm1699_vm12, %v3828_v62, %v9043_v3  ;;  %v3845_v16 = vsel %vm1699_vm12, %v3829_v17, %v9044_v34 }
 0x582   :  { %v4170_v9 = vpop.f32.mrf.mxu0 }
 0x583   :  { %4096 = vmatmul.bf16.gmra.mxu2 %v3884_v50 }
 0x585   :  { %v9067_v27 = vpop.permute.xlu1 %9066 }
 0x586   :  { %v9069_v51 = vunpack.i.h.bf16 %v9067_v27  ;;  %v9068_v11 = vunpack.i.l.bf16 %v9067_v27  ;;  %v9058_v27 = vunpack.i.l.bf16 %v12281_v61 }
 0x588   :  { %v3800_v28 = vsel %vm1699_vm12, %v3784_v36, %v9068_v11  ;;  %v3801_v29 = vsel %vm1699_vm12, %v3785_v32, %v9069_v51  ;;  %v3830_v36 = vsel %vm74_vm0, %v12118_v63, %v9058_v27  ;;  %v3831_v32 = vsel %vm74_vm0, %v12184_v4, %v9059_v58 }
 0x589   :  { %v9088_v27 = vunpack.i.l.bf16 %v12297_v57 }
 0x58a   :  { %v4172_v62 = vpop.f32.mrf.mxu0 }
 0x58d   :  { %v9082_v7 = vpop.permute.xlu0 %9081  ;;  %v9072_v45 = vpop.permute.xlu1 %9071 }
 0x58e   :  { %v9084_v47 = vunpack.i.h.bf16 %v9082_v7  ;;  %v9083_v14 = vunpack.i.l.bf16 %v9082_v7  ;;  %v9074_v39 = vunpack.i.h.bf16 %v9072_v45 }
 0x590   :  { %v3816_v12 = vsel %vm925_vm10, %v3800_v28, %v9083_v14  ;;  %v3817_v43 = vsel %vm925_vm10, %v3801_v29, %v9084_v47  ;;  %v3847_v14 = vsel %vm1699_vm12, %v3831_v32, %v9074_v39  ;;  %v12328_v29 = vld [vmem:[%s14201_s13 + $0x88] sm:$0xff] }
 0x591   :  { %v3887_v13 = vpack.c.bf16 %v3817_v43, %v3816_v12  ;;  %8052 = vmatpush.bf16.msrb.mxu3 %v12328_v29 }
 0x593   :  { %4101 = vmatmul.bf16.gmra.mxu2 %v3887_v13  ;;  %v4293_v13 = vld [vmem:[#allocation2 + $0x1] sm:$0xff] }
 0x595   :  { %v4116_v24 = vpop.f32.mrf.mxu3 }
 0x596   :  { %v9077_v22 = vpop.permute.xlu1 %9076  ;;  %v4117_v6 = vadd.f32 %v4116_v24, %v4067_v2  ;;  %v4072_v1 = vpop.f32.mrf.mxu2 }
 0x597   :  { %v9079_v0 = vunpack.i.h.bf16 %v9077_v22  ;;  %v9078_v44 = vunpack.i.l.bf16 %v9077_v22  ;;  %v9092_v2 = vpop.permute.xlu2 %9091  ;;  %v9097_v43 = vpop.permute.xlu0 %9096 }
 0x598   :  { %v4166_v15 = vadd.f32 %v4165_v20, %v4117_v6  ;;  %v9073_v20 = vunpack.i.l.bf16 %v9072_v45  ;;  %v9094_v28 = vunpack.i.h.bf16 %v9092_v2  ;;  %v9093_v45 = vunpack.i.l.bf16 %v9092_v2  ;;  %v12341_v6 = vld [vmem:[%s14201_s13 + $0x80] sm:$0xff]  ;;  %v4175_v2 = vpop.f32.mrf.mxu0 }
 0x599   :  { %v3860_v10 = vsel %vm925_vm10, %v3844_v49, %v9078_v44  ;;  %v3861_v33 = vsel %vm925_vm10, %v3845_v16, %v9079_v0  ;;  %8053 = vmatpush.bf16.msrb.mxu3 %v12341_v6 }
 0x59a   :  { %v3882_v48 = vpack.c.bf16 %v3861_v33, %v3860_v10  ;;  %v4209_v59 = vmul.f32 %v12302_v46, %v4166_v15  ;;  %v3846_v61 = vsel %vm1699_vm12, %v3830_v36, %v9073_v20  ;;  %v3863_v35 = vsel %vm925_vm10, %v3847_v14, %v9094_v28 }
 0x59b   :  { %v3862_v4 = vsel %vm925_vm10, %v3846_v61, %v9093_v45 }
 0x59c   :  { %4140 = vmatmul.bf16.gmra.mxu3 %v3882_v48  ;;  %v4229_v50 = vadd.f32 %v12311_v19, %v4209_v59  ;;  %v3885_v44 = vpack.c.bf16 %v3863_v35, %v3862_v4  ;;  %v9089_v48 = vunpack.i.h.bf16 %v12297_v57  ;;  %v3832_v57 = vsel %vm74_vm0, %v12177_v23, %v9088_v27 }
 0x59d   :  { %v4118_v25 = vpop.f32.mrf.mxu3 }
 0x59e   :  { %v4245_v51 = vmax.f32 %v4229_v50, 0.0  ;;  %v4119_v11 = vadd.f32 %v4118_v25, %v4069_v53  ;;  %v4074_v34 = vpop.f32.mrf.mxu2 }
 0x59f   :  { %v9102_v59 = vpop.permute.xlu0 %9101 }
 0x5a0   :  { %4261 = vst.msk [vmem:[#allocation2 + $0x11] sm:$0xff] %vm74_vm0, %v4245_v51  ;;  %v4168_v7 = vadd.f32 %v4167_v55, %v4119_v11  ;;  %v9099_v51 = vunpack.i.h.bf16 %v9097_v43  ;;  %v9098_v11 = vunpack.i.l.bf16 %v9097_v43  ;;  %v9103_v36 = vunpack.i.l.bf16 %v9102_v59 }
 0x5a2   :  { %v4210_v47 = vmul.f32 %v12302_v46, %v4168_v7  ;;  %v9104_v7 = vunpack.i.h.bf16 %v9102_v59  ;;  %v3848_v14 = vsel %vm1699_vm12, %v3832_v57, %v9098_v11 }
 0x5a3   :  { %v3864_v43 = vsel %vm925_vm10, %v3848_v14, %v9103_v36 }
 0x5a4   :  { %v4230_v12 = vadd.f32 %v12311_v19, %v4210_v47  ;;  %v3833_v47 = vsel %vm74_vm0, %v12224_v18, %v9089_v48 }
 0x5a5   :  { %v3849_v28 = vsel %vm1699_vm12, %v3833_v47, %v9099_v51 }
 0x5a6   :  { %v4121_v63 = vpop.f32.mrf.mxu3  ;;  %v4246_v3 = vmax.f32 %v4230_v12, 0.0  ;;  %v4077_v25 = vpop.f32.mrf.mxu2 }
 0x5a7   :  { %v4122_v55 = vadd.f32 %v4121_v63, %v4072_v1  ;;  %v12334_v53 = vld [vmem:[#allocation2 + $0x11] sm:$0xff]  ;;  %v3865_v63 = vsel %vm925_vm10, %v3849_v28, %v9104_v7 }
 0x5a8   :  { %v4310_v22 = vld [vmem:[#allocation2 + $0x12] sm:$0xff]  ;;  %4262 = vst.msk [vmem:[#allocation2 + $0x21] sm:$0xff] %vm74_vm0, %v4246_v3  ;;  %v9105_v0 = vpack.i.bf16 %v12334_v53, %v4293_v13  ;;  %v3888_v3 = vpack.c.bf16 %v3865_v63, %v3864_v43 }
 0x5a9   :  { %v4171_v17 = vadd.f32 %v4170_v9, %v4122_v55  ;;  %v9110_v24 = vpack.i.bf16 %v4310_v22, %v4309_v26  ;;  %v12349_v50 = vld [vmem:[#allocation2 + $0x10] sm:$0xff] }
 0x5aa   :  { %9106 = vrot.lane.b32.xlu1 %v9105_v0, %s9851_s0 }
 0x5ab   :  { %v4211_v49 = vmul.f32 %v12302_v46, %v4171_v17  ;;  %9111 = vrot.lane.b32.xlu0 %v9110_v24, %s9850_s3 }
 0x5ac   :  { %4145 = vmatmul.bf16.gmra.mxu3 %v3885_v44 }
 0x5ad   :  { %v4231_v16 = vadd.f32 %v12311_v19, %v4211_v49 }
 0x5ae   :  { %v4123_v10 = vpop.f32.mrf.mxu3  ;;  %v4079_v55 = vpop.f32.mrf.mxu2 }
 0x5af   :  { %v4247_v33 = vmax.f32 %v4231_v16, 0.0  ;;  %v4124_v15 = vadd.f32 %v4123_v10, %v4074_v34  ;;  %v4358_v1 = vld [vmem:[#allocation2 + $0x22] sm:$0xff] }
 0x5b0   :  { %v12351_v58 = vld [vmem:[#allocation2 + $0x20] sm:$0xff]  ;;  %v9120_v39 = vpack.i.bf16 %v4358_v1, %v4310_v22 }
 0x5b1   :  { %4263 = vst.msk [vmem:[#allocation2 + $0x31] sm:$0xff] %vm74_vm0, %v4247_v33  ;;  %v4173_v9 = vadd.f32 %v4172_v62, %v4124_v15  ;;  %v9115_v20 = vpack.i.bf16 %v12351_v58, %v12349_v50  ;;  %v12369_v35 = vld [vmem:[#allocation2 + $0x21] sm:$0xff]  ;;  %v4177_v62 = vpop.f32.mrf.mxu0 }
 0x5b2   :  { %9121 = vrot.lane.b32.xlu1 %v9120_v39, %s9851_s0 }
 0x5b3   :  { %v4212_v32 = vmul.f32 %v12302_v46, %v4173_v9  ;;  %9116 = vrot.lane.b32.xlu2 %v9115_v20, %s9849_s29 }
 0x5b5   :  { %v4232_v61 = vadd.f32 %v12311_v19, %v4212_v32 }
 0x5b7   :  { %v4248_v45 = vmax.f32 %v4232_v61, 0.0  ;;  %v4126_v12 = vpop.f32.mrf.mxu3  ;;  %v4082_v27 = vpop.f32.mrf.mxu2 }
 0x5b8   :  { %v4127_v13 = vadd.f32 %v4126_v12, %v4077_v25  ;;  %v4312_v4 = vld [vmem:[#allocation2 + $0x32] sm:$0xff] }
 0x5b9   :  { %v12371_v23 = vld [vmem:[#allocation2 + $0x31] sm:$0xff]  ;;  %4264 = vst.msk [vmem:[#allocation2 + $0x41] sm:$0xff] %vm74_vm0, %v4248_v45  ;;  %v9130_v18 = vpack.i.bf16 %v4312_v4, %v4358_v1  ;;  %v4180_v9 = vpop.f32.mrf.mxu0 }
 0x5ba   :  { %v9125_v26 = vpack.i.bf16 %v12371_v23, %v12369_v35  ;;  %v4176_v34 = vadd.f32 %v4175_v2, %v4127_v13  ;;  %v12381_v0 = vld [vmem:[#allocation2 + $0x30] sm:$0xff] }
 0x5bb   :  { %9131 = vrot.lane.b32.xlu1 %v9130_v18, %s9850_s3  ;;  %v9135_v15 = vpack.i.bf16 %v12381_v0, %v12351_v58 }
 0x5bc   :  { %9126 = vrot.lane.b32.xlu2 %v9125_v26, %s9851_s0  ;;  %v4213_v22 = vmul.f32 %v12302_v46, %v4176_v34  ;;  %9141 = vrot.lane.b32.xlu0 %v9125_v26, %s9849_s29 }
 0x5bd   :  { %4150 = vmatmul.bf16.gmra.mxu3 %v3888_v3 }
 0x5be   :  { %v4233_v17 = vadd.f32 %v12311_v19, %v4213_v22 }
 0x5bf   :  { %v4128_v44 = vpop.f32.mrf.mxu3  ;;  %v4084_v28 = vpop.f32.mrf.mxu2 }
 0x5c0   :  { %v4249_v24 = vmax.f32 %v4233_v17, 0.0  ;;  %v4129_v49 = vadd.f32 %v4128_v44, %v4079_v55  ;;  %v4360_v16 = vld [vmem:[#allocation2 + $0x42] sm:$0xff] }
 0x5c1   :  { %v12383_v10 = vld [vmem:[#allocation2 + $0x40] sm:$0xff]  ;;  %v9150_v33 = vpack.i.bf16 %v4360_v16, %v4312_v4  ;;  %v4182_v13 = vpop.f32.mrf.mxu0 }
 0x5c2   :  { %v9145_v48 = vpack.i.bf16 %v12383_v10, %v12381_v0  ;;  %4265 = vst.msk [vmem:[#allocation2 + $0x51] sm:$0xff] %vm74_vm0, %v4249_v24  ;;  %v4178_v59 = vadd.f32 %v4177_v62, %v4129_v49  ;;  %v12395_v2 = vld [vmem:[#allocation2 + $0x41] sm:$0xff] }
 0x5c3   :  { %9151 = vrot.lane.b32.xlu1 %v9150_v33, %s9851_s0 }
 0x5c4   :  { %9136 = vrot.lane.b32.xlu2 %v9135_v15, %s9850_s3  ;;  %v4214_v1 = vmul.f32 %v12302_v46, %v4178_v59  ;;  %9146 = vrot.lane.b32.xlu0 %v9145_v48, %s9849_s29  ;;  %v4380_v59 = vld [vmem:[#allocation2 + $0x90] sm:$0xff] }
 0x5c6   :  { %v4234_v25 = vadd.f32 %v12311_v19, %v4214_v1 }
 0x5c7   :  { %v4131_v39 = vpop.f32.mrf.mxu3 }
 0x5c8   :  { %v4250_v20 = vmax.f32 %v4234_v25, 0.0  ;;  %v4132_v51 = vadd.f32 %v4131_v39, %v4082_v27  ;;  %v7990_v39 = vld [vmem:[%s14201_s13 + $0x38] sm:$0xff] }
 0x5c9   :  { %v4314_v11 = vld [vmem:[#allocation2 + $0x52] sm:$0xff]  ;;  %5093 = vmatpush.bf16.msra.mxu1 %v7990_v39  ;;  %v4301_v39 = vld [vmem:[#allocation2 + $0xa1] sm:$0xff] }
 0x5ca   :  { %v12397_v7 = vld [vmem:[#allocation2 + $0x51] sm:$0xff]  ;;  %4266 = vst.msk [vmem:[#allocation2 + $0x61] sm:$0xff] %vm74_vm0, %v4250_v20  ;;  %v4181_v36 = vadd.f32 %v4180_v9, %v4132_v51  ;;  %v9160_v32 = vpack.i.bf16 %v4314_v11, %v4360_v16  ;;  %v4906_v47 = vpack.c.bf16 %v4314_v11, %v4360_v16 }
 0x5cb   :  { %v9155_v57 = vpack.i.bf16 %v12397_v7, %v12395_v2  ;;  %v12407_v12 = vld [vmem:[#allocation2 + $0x50] sm:$0xff] }
 0x5cc   :  { %v4215_v61 = vmul.f32 %v12302_v46, %v4181_v36  ;;  %9161 = vrot.lane.b32.xlu2 %v9160_v32, %s9850_s3  ;;  %v9165_v34 = vpack.i.bf16 %v12407_v12, %v12383_v10  ;;  %v7989_v20 = vld [vmem:[%s14201_s13 + $0x30] sm:$0xff] }
 0x5cd   :  { %9156 = vrot.lane.b32.xlu0 %v9155_v57, %s9851_s0  ;;  %7755 = vmatmul.msk.bf16.vlgmr.msrb.gmra.mxu3 %vm74_vm0, %v4906_v47  ;;  %v4412_v36 = vld [vmem:[#allocation2 + $0x92] sm:$0xff] }
 0x5ce   :  { %v4235_v14 = vadd.f32 %v12311_v19, %v4215_v61  ;;  %5094 = vmatpush.bf16.msra.mxu1 %v7989_v20  ;;  %v7988_v61 = vld [vmem:[%s14201_s13 + $0x28] sm:$0xff]  ;;  %v7995_v20 = vld [vmem:[%s14201_s13 + $0x60] sm:$0xff] }
 0x5cf   :  { %v4133_v45 = vpop.f32.mrf.mxu3 }
 0x5d0   :  { %v4251_v43 = vmax.f32 %v4235_v14, 0.0  ;;  %v4134_v63 = vadd.f32 %v4133_v45, %v4084_v28  ;;  %v4185_v14 = vpop.f32.mrf.mxu0  ;;  %v7987_v45 = vld [vmem:[%s14201_s13 + $0x20] sm:$0xff] }
 0x5d1   :  { %v4362_v4 = vld [vmem:[#allocation2 + $0x62] sm:$0xff] }
 0x5d2   :  { %4267 = vst.msk [vmem:[#allocation2 + $0x71] sm:$0xff] %vm74_vm0, %v4251_v43  ;;  %v4183_v18 = vadd.f32 %v4182_v13, %v4134_v63  ;;  %v9175_v26 = vpack.i.bf16 %v4362_v4, %v4314_v11  ;;  %v12417_v62 = vld [vmem:[#allocation2 + $0x61] sm:$0xff]  ;;  %v4396_v11 = vld [vmem:[#allocation2 + $0x91] sm:$0xff]  ;;  %5095 = vmatpush.bf16.msra.mxu1 %v7988_v61 }
 0x5d3   :  { %v12419_v17 = vld [vmem:[#allocation2 + $0x60] sm:$0xff]  ;;  %v7998_v43 = vld [vmem:[%s14201_s13 + $0x78] sm:$0xff] }
 0x5d4   :  { %v4216_v3 = vmul.f32 %v12302_v46, %v4183_v18  ;;  %9176 = vrot.lane.b32.xlu1 %v9175_v26, %s9851_s0  ;;  %9166 = vrot.lane.b32.xlu2 %v9165_v34, %s9850_s3  ;;  %v7986_v18 = vld [vmem:[%s14201_s13 + $0x18] sm:$0xff] }
 0x5d5   :  { %9171 = vrot.lane.b32.xlu0 %v9155_v57, %s9849_s29  ;;  %5142 = vmatpush.bf16.msra.mxu2 %v7998_v43 }
 0x5d6   :  { %v4236_v55 = vadd.f32 %v12311_v19, %v4216_v3  ;;  %5096 = vmatpush.bf16.msra.mxu1 %v7987_v45 }
 0x5d8   :  { %v4252_v22 = vmax.f32 %v4236_v55, 0.0  ;;  %v7997_v55 = vld [vmem:[%s14201_s13 + $0x70] sm:$0xff] }
 0x5d9   :  { %v12421_v44 = vld [vmem:[#allocation2 + $0x71] sm:$0xff]  ;;  %5143 = vmatpush.bf16.msra.mxu2 %v7997_v55 }
 0x5da   :  { %v12423_v24 = vld [vmem:[#allocation2 + $0x70] sm:$0xff]  ;;  %4268 = vst.msk [vmem:[#allocation2 + $0x81] sm:$0xff] %vm74_vm0, %v4252_v22  ;;  %v9180_v16 = vpack.i.bf16 %v12421_v44, %v12417_v62  ;;  %5097 = vmatpush.bf16.msra.mxu1 %v7986_v18 }
 0x5db   :  { %v4316_v49 = vld [vmem:[#allocation2 + $0x72] sm:$0xff]  ;;  %v9190_v33 = vpack.i.bf16 %v12423_v24, %v12419_v17 }
 0x5dc   :  { %v9185_v15 = vpack.i.bf16 %v4316_v49, %v4362_v4  ;;  %v4909_v48 = vpack.c.bf16 %v4316_v49, %v4362_v4  ;;  %9181 = vrot.lane.b32.xlu1 %v9180_v16, %s9851_s0 }
 0x5dd   :  { %9191 = vrot.lane.b32.xlu2 %v9190_v33, %s9850_s3  ;;  %v4187_v33 = vpop.f32.mrf.mxu0 }
 0x5de   :  { %9186 = vrot.lane.b32.xlu0 %v9185_v15, %s9850_s3  ;;  %7756 = vmatmul.msk.bf16.gmra.mxu3 %vm74_vm0, %v4909_v48  ;;  %v7996_v15 = vld [vmem:[%s14201_s13 + $0x68] sm:$0xff] }
 0x5df   :  { %5144 = vmatpush.bf16.msra.mxu2 %v7996_v15 }
 0x5e1   :  { %v4364_v1 = vld [vmem:[#allocation2 + $0x82] sm:$0xff] }
 0x5e2   :  { %v12434_v27 = vld [vmem:[#allocation2 + $0x80] sm:$0xff]  ;;  %v9200_v25 = vpack.i.bf16 %v4364_v1, %v4316_v49  ;;  %v4912_v57 = vpack.c.bf16 %v4412_v36, %v4364_v1  ;;  %v7984_v1 = vld [vmem:[%s14201_s13 + $0x8] sm:$0xff] }
 0x5e3   :  { %v9205_v9 = vpack.i.bf16 %v4380_v59, %v12434_v27  ;;  %v12446_v51 = vld [vmem:[#allocation2 + $0x81] sm:$0xff]  ;;  %5145 = vmatpush.bf16.msra.mxu2 %v7995_v20 }
 0x5e4   :  { %9201 = vrot.lane.b32.xlu1 %v9200_v25, %s9851_s0  ;;  %v9210_v32 = vpack.i.bf16 %v4396_v11, %v12446_v51 }
 0x5e5   :  { %9206 = vrot.lane.b32.xlu2 %v9205_v9, %s9850_s3  ;;  %v4317_v9 = vld [vmem:[#allocation2 + $0xa2] sm:$0xff]  ;;  %v4190_v18 = vpop.f32.mrf.mxu0 }
 0x5e6   :  { %9196 = vrot.lane.b32.xlu0 %v9180_v16, %s9849_s29  ;;  %v4087_v47 = vpop.f32.mrf.mxu2  ;;  %v7985_v16 = vld [vmem:[%s14201_s13 + $0x10] sm:$0xff] }
 0x5e7   :  { %5098 = vmatpush.bf16.msra.mxu1 %v7985_v16 }
 0x5eb   :  { %5099 = vmatpush.bf16.msra.mxu1 %v7984_v1 }
 0x5ee   :  { %9211 = vrot.lane.b32.xlu0 %v9210_v32, %s9849_s29  ;;  %7757 = vmatmul.msk.bf16.gmra.mxu3 %vm74_vm0, %v4912_v57  ;;  %v4089_v34 = vpop.f32.mrf.mxu2  ;;  %v7983_v57 = vld [vmem:[%s14201_s13] sm:$0xff] }
 0x5ef   :  { %v4136_v28 = vpop.f32.mrf.mxu3  ;;  %5100 = vmatpush.bf16.msra.mxu1 %v7983_v57 }
 0x5f0   :  { %v4137_v63 = vadd.f32 %v4136_v28, %v4087_v47  ;;  %v7993_v28 = vld [vmem:[%s14201_s13 + $0x50] sm:$0xff] }
 0x5f2   :  { %v4186_v13 = vadd.f32 %v4185_v14, %v4137_v63  ;;  %v7994_v14 = vld [vmem:[%s14201_s13 + $0x58] sm:$0xff]  ;;  %v7992_v63 = vld [vmem:[%s14201_s13 + $0x48] sm:$0xff] }
 0x5f3   :  { %5146 = vmatpush.bf16.msra.mxu2 %v7994_v14 }
 0x5f4   :  { %v4217_v4 = vmul.f32 %v12302_v46, %v4186_v13  ;;  %v7991_v13 = vld [vmem:[%s14201_s13 + $0x40] sm:$0xff] }
 0x5f6   :  { %v4237_v26 = vadd.f32 %v12311_v19, %v4217_v4  ;;  %v4092_v4 = vpop.f32.mrf.mxu2 }
 0x5f7   :  { %v4138_v3 = vpop.f32.mrf.mxu3  ;;  %5147 = vmatpush.bf16.msra.mxu2 %v7993_v28 }
 0x5f8   :  { %v4253_v22 = vmax.f32 %v4237_v26, 0.0  ;;  %v4139_v49 = vadd.f32 %v4138_v3, %v4089_v34  ;;  %v4277_v3 = vld [vmem:[#allocation2] sm:$0xff] }
 0x5fa   :  { %4269 = vst.msk [vmem:[#allocation2 + $0xb1] sm:$0xff] %vm74_vm0, %v4253_v22  ;;  %v4188_v48 = vadd.f32 %v4187_v33, %v4139_v49 }
 0x5fb   :  { %5148 = vmatpush.bf16.msra.mxu2 %v7992_v63 }
 0x5fc   :  { %v4218_v59 = vmul.f32 %v12302_v46, %v4188_v48 }
 0x5fe   :  { %v4238_v25 = vadd.f32 %v12311_v19, %v4218_v59  ;;  %v4094_v34 = vpop.f32.mrf.mxu2 }
 0x5ff   :  { %5149 = vmatpush.bf16.msra.mxu2 %v7991_v13 }
 0x600   :  { %v4254_v11 = vmax.f32 %v4238_v25, 0.0 }
 0x601   :  { %v4318_v36 = vld [vmem:[#allocation2 + $0xb2] sm:$0xff] }
 0x602   :  { %v12483_v32 = vld [vmem:[#allocation2 + $0xb1] sm:$0xff]  ;;  %4270 = vst.msk [vmem:[#allocation2 + $0xc1] sm:$0xff] %vm74_vm0, %v4254_v11  ;;  %v9220_v47 = vpack.i.bf16 %v4318_v36, %v4317_v9 }
 0x603   :  { %v9215_v61 = vpack.i.bf16 %v12483_v32, %v4301_v39  ;;  %5197 = vmatpush.bf16.msrb.mxu2 %v12328_v29 }
 0x604   :  { %9221 = vrot.lane.b32.xlu1 %v9220_v47, %s9850_s3 }
 0x605   :  { %9216 = vrot.lane.b32.xlu2 %v9215_v61, %s9851_s0 }
 0x607   :  { %5198 = vmatpush.bf16.msrb.mxu2 %v12341_v6  ;;  %v4192_v6 = vpop.f32.mrf.mxu0 }
 0x609   :  { %v12498_v45 = vld [vmem:[#allocation2 + $0xc2] sm:$0xff] }
 0x60a   :  { %v9225_v43 = vpack.i.bf16 %v12498_v45, %v4318_v36 }
 0x60c   :  { %9226 = vrot.lane.b32.xlu1 %v9225_v43, %s9851_s0 }
 0x60d   :  { %v9117_v26 = vpop.permute.xlu2 %9116 }
 0x60e   :  { %v9119_v1 = vunpack.i.h.bf16 %v9117_v26  ;;  %v9118_v25 = vunpack.i.l.bf16 %v9117_v26 }
 0x616   :  { %v12513_v39 = vpop.permute.xlu2 %9126 }
 0x61c   :  { %v9107_v55 = vpop.permute.xlu1 %9106 }
 0x61d   :  { %v9109_v22 = vunpack.i.h.bf16 %v9107_v55  ;;  %v9108_v49 = vunpack.i.l.bf16 %v9107_v55  ;;  %v9112_v16 = vpop.permute.xlu0 %9111  ;;  %v4195_v55 = vpop.f32.mrf.mxu0 }
 0x61e   :  { %v9114_v15 = vunpack.i.h.bf16 %v9112_v16  ;;  %v9113_v48 = vunpack.i.l.bf16 %v9112_v16 }
 0x61f   :  { %v4141_v33 = vpop.f32.mrf.mxu3  ;;  %v4805_v9 = vsel %vm74_vm0, %v4277_v3, %v9108_v49  ;;  %v4806_v29 = vsel %vm74_vm0, %v12349_v50, %v9109_v22  ;;  %v9137_v22 = vpop.permute.xlu2 %9136 }
 0x620   :  { %v4142_v59 = vadd.f32 %v4141_v33, %v4092_v4  ;;  %v4822_v20 = vsel %vm1699_vm12, %v4806_v29, %v9114_v15  ;;  %v4821_v11 = vsel %vm1699_vm12, %v4805_v9, %v9113_v48  ;;  %v4097_v4 = vpop.f32.mrf.mxu2  ;;  %v9139_v48 = vunpack.i.h.bf16 %v9137_v22 }
 0x621   :  { %v4838_v57 = vsel %vm925_vm10, %v4822_v20, %v9119_v1  ;;  %v4837_v47 = vsel %vm925_vm10, %v4821_v11, %v9118_v25 }
 0x622   :  { %v4191_v36 = vadd.f32 %v4190_v18, %v4142_v59  ;;  %v4901_v61 = vpack.c.bf16 %v4838_v57, %v4837_v47  ;;  %v12530_v57 = vld [vmem:[#allocation2 + $0xc1] sm:$0xff] }
 0x624   :  { %v4219_v14 = vmul.f32 %v12302_v46, %v4191_v36  ;;  %5101 = vmatmul.bf16.vlgmr.msra.gmra.mxu1 %v4901_v61  ;;  %v9122_v43 = vpop.permute.xlu1 %9121 }
 0x625   :  { %v9124_v26 = vunpack.i.h.bf16 %v9122_v43  ;;  %v9123_v3 = vunpack.i.l.bf16 %v9122_v43 }
 0x626   :  { %v4239_v28 = vadd.f32 %v12311_v19, %v4219_v14 }
 0x627   :  { %v4143_v50 = vpop.f32.mrf.mxu3  ;;  %v4854_v16 = vsel %vm74_vm0, %v12369_v35, %v9124_v26  ;;  %v4853_v33 = vsel %vm74_vm0, %v12334_v53, %v9123_v3  ;;  %v9128_v26 = vunpack.i.l.bf16 %v12513_v39 }
 0x628   :  { %v4255_v63 = vmax.f32 %v4239_v28, 0.0  ;;  %v4144_v13 = vadd.f32 %v4143_v50, %v4094_v34  ;;  %v9138_v34 = vunpack.i.l.bf16 %v9137_v22  ;;  %v4870_v20 = vsel %vm1699_vm12, %v4854_v16, %v9139_v48  ;;  %v4099_v43 = vpop.f32.mrf.mxu2 }
 0x62a   :  { %4271 = vst.msk [vmem:[#allocation2 + $0xd1] sm:$0xff] %vm74_vm0, %v4255_v63  ;;  %v4193_v18 = vadd.f32 %v4192_v6, %v4144_v13  ;;  %v4869_v6 = vsel %vm1699_vm12, %v4853_v33, %v9138_v34  ;;  %v4807_v33 = vsel %vm74_vm0, %v12351_v58, %v9128_v26 }
 0x62c   :  { %v4220_v49 = vmul.f32 %v12302_v46, %v4193_v18 }
 0x62d   :  { %v9132_v53 = vpop.permute.xlu1 %9131 }
 0x62e   :  { %v4240_v15 = vadd.f32 %v12311_v19, %v4220_v49  ;;  %v9142_v59 = vpop.permute.xlu0 %9141  ;;  %v9134_v3 = vunpack.i.h.bf16 %v9132_v53  ;;  %v9133_v18 = vunpack.i.l.bf16 %v9132_v53  ;;  %v4197_v49 = vpop.f32.mrf.mxu0 }
 0x62f   :  { %v9144_v25 = vunpack.i.h.bf16 %v9142_v59  ;;  %v9143_v9 = vunpack.i.l.bf16 %v9142_v59  ;;  %v4146_v29 = vpop.f32.mrf.mxu3  ;;  %v9162_v53 = vpop.permute.xlu2 %9161 }
 0x630   :  { %v4256_v1 = vmax.f32 %v4240_v15, 0.0  ;;  %v4147_v11 = vadd.f32 %v4146_v29, %v4097_v4  ;;  %v9129_v4 = vunpack.i.h.bf16 %v12513_v39  ;;  %v4823_v59 = vsel %vm1699_vm12, %v4807_v33, %v9133_v18 }
 0x631   :  { %v4320_v36 = vld [vmem:[#allocation2 + $0xd2] sm:$0xff]  ;;  %v4886_v47 = vsel %vm925_vm10, %v4870_v20, %v9144_v25  ;;  %v4885_v61 = vsel %vm925_vm10, %v4869_v6, %v9143_v9  ;;  %v12556_v6 = vld [vmem:[#allocation2 + $0xc0] sm:$0xff]  ;;  %v9164_v18 = vunpack.i.h.bf16 %v9162_v53 }
 0x632   :  { %v12532_v35 = vld [vmem:[#allocation2 + $0xd1] sm:$0xff]  ;;  %4272 = vst.msk [vmem:[#allocation2 + $0xe1] sm:$0xff] %vm74_vm0, %v4256_v1  ;;  %v9235_v14 = vpack.i.bf16 %v4320_v36, %v12498_v45  ;;  %v4902_v50 = vpack.c.bf16 %v4886_v47, %v4885_v61  ;;  %v4196_v63 = vadd.f32 %v4195_v55, %v4147_v11  ;;  %v4915_v13 = vpack.c.bf16 %v4320_v36, %v12498_v45 }
 0x633   :  { %v9230_v28 = vpack.i.bf16 %v12532_v35, %v12530_v57  ;;  %v12548_v45 = vld [vmem:[#allocation2 + $0xd0] sm:$0xff]  ;;  %v4808_v39 = vsel %vm74_vm0, %v12381_v0, %v9129_v4 }
 0x634   :  { %9236 = vrot.lane.b32.xlu2 %v9235_v14, %s9850_s3  ;;  %v4221_v22 = vmul.f32 %v12302_v46, %v4196_v63  ;;  %5150 = vmatmul.bf16.vlgmr.msra.gmra.mxu2 %v4902_v50  ;;  %v4824_v1 = vsel %vm1699_vm12, %v4808_v39, %v9134_v3  ;;  %v9240_v11 = vpack.i.bf16 %v12548_v45, %v12556_v6  ;;  %v4102_v14 = vpop.f32.mrf.mxu2 }
 0x635   :  { %9231 = vrot.lane.b32.xlu0 %v9230_v28, %s9851_s0  ;;  %7758 = vmatmul.msk.bf16.gmra.mxu3 %vm74_vm0, %v4915_v13 }
 0x636   :  { %v4241_v55 = vadd.f32 %v12311_v19, %v4221_v22  ;;  %v9147_v16 = vpop.permute.xlu0 %9146  ;;  %v4200_v13 = vpop.f32.mrf.mxu0  ;;  %v9163_v22 = vunpack.i.l.bf16 %v9162_v53 }
 0x637   :  { %v9149_v15 = vunpack.i.h.bf16 %v9147_v16  ;;  %v9148_v48 = vunpack.i.l.bf16 %v9147_v16  ;;  %v4148_v34 = vpop.f32.mrf.mxu3  ;;  %v9167_v53 = vpop.permute.xlu2 %9166 }
 0x638   :  { %v4257_v25 = vmax.f32 %v4241_v55, 0.0  ;;  %v4149_v9 = vadd.f32 %v4148_v34, %v4099_v43 }
 0x639   :  { %v4368_v29 = vld [vmem:[#allocation2 + $0xe2] sm:$0xff]  ;;  %v4839_v0 = vsel %vm925_vm10, %v4823_v59, %v9148_v48  ;;  %v4840_v58 = vsel %vm925_vm10, %v4824_v1, %v9149_v15 }
 0x63a   :  { %v9250_v20 = vpack.i.bf16 %v4368_v29, %v4320_v36  ;;  %4273 = vst.msk [vmem:[#allocation2 + $0xf1] sm:$0xff] %vm74_vm0, %v4257_v25  ;;  %v4198_v47 = vadd.f32 %v4197_v49, %v4149_v9  ;;  %v4904_v61 = vpack.c.bf16 %v4840_v58, %v4839_v0  ;;  %v9152_v36 = vpop.permute.xlu1 %9151  ;;  %v12568_v16 = vld [vmem:[#allocation2 + $0xe0] sm:$0xff] }
 0x63b   :  { %v12570_v39 = vld [vmem:[#allocation2 + $0xe1] sm:$0xff]  ;;  %v9154_v33 = vunpack.i.h.bf16 %v9152_v36  ;;  %v9153_v15 = vunpack.i.l.bf16 %v9152_v36 }
 0x63c   :  { %9251 = vrot.lane.b32.xlu1 %v9250_v20, %s9851_s0  ;;  %9241 = vrot.lane.b32.xlu2 %v9240_v11, %s9850_s3  ;;  %v4222_v43 = vmul.f32 %v12302_v46, %v4198_v47 }
 0x63d   :  { %9246 = vrot.lane.b32.xlu0 %v9230_v28, %s9849_s29  ;;  %5106 = vmatmul.bf16.gmra.mxu1 %v4904_v61  ;;  %v4104_v61 = vpop.f32.mrf.mxu2 }
 0x63e   :  { %v4242_v50 = vadd.f32 %v12311_v19, %v4222_v43 }
 0x63f   :  { %v9157_v63 = vpop.permute.xlu0 %9156 }
 0x640   :  { %v9159_v4 = vunpack.i.h.bf16 %v9157_v63  ;;  %v9158_v26 = vunpack.i.l.bf16 %v9157_v63  ;;  %v4151_v3 = vpop.f32.mrf.mxu3  ;;  %v4258_v49 = vmax.f32 %v4242_v50, 0.0  ;;  %v9169_v50 = vunpack.i.h.bf16 %v9167_v53 }
 0x641   :  { %v4152_v55 = vadd.f32 %v4151_v3, %v4102_v14  ;;  %v12576_v34 = vld [vmem:[#allocation2 + $0xf0] sm:$0xff]  ;;  %v4855_v14 = vsel %vm74_vm0, %v12371_v23, %v9153_v15  ;;  %v9168_v63 = vunpack.i.l.bf16 %v9167_v53 }
 0x642   :  { %v4810_v28 = vsel %vm74_vm0, %v12407_v12, %v9159_v4  ;;  %v4809_v48 = vsel %vm74_vm0, %v12383_v10, %v9158_v26  ;;  %v12578_v59 = vld [vmem:[#allocation2 + $0xf1] sm:$0xff]  ;;  %4274 = vst.msk [vmem:[#allocation2 + $0x101] sm:$0xff] %vm74_vm0, %v4258_v49  ;;  %v9265_v9 = vpack.i.bf16 %v12576_v34, %v12568_v16  ;;  %v4202_v49 = vpop.f32.mrf.mxu0 }
 0x643   :  { %v4322_v1 = vld [vmem:[#allocation2 + $0xf2] sm:$0xff]  ;;  %v4201_v25 = vadd.f32 %v4200_v13, %v4152_v55  ;;  %v9255_v20 = vpack.i.bf16 %v12578_v59, %v12570_v39  ;;  %v12586_v58 = vsel %vm1699_vm12, %v4809_v48, %v9163_v22  ;;  %v12589_v10 = vsel %vm1699_vm12, %v4810_v28, %v9164_v18 }
 0x644   :  { %v9260_v11 = vpack.i.bf16 %v4322_v1, %v4368_v29  ;;  %v4918_v0 = vpack.c.bf16 %v4322_v1, %v4368_v29  ;;  %9266 = vrot.lane.b32.xlu2 %v9265_v9, %s9850_s3  ;;  %v4856_v29 = vsel %vm74_vm0, %v12395_v2, %v9154_v33  ;;  %v4871_v28 = vsel %vm1699_vm12, %v4855_v14, %v9168_v63 }
 0x645   :  { %v4223_v47 = vmul.f32 %v12302_v46, %v4201_v25  ;;  %9256 = vrot.lane.b32.xlu1 %v9255_v20, %s9851_s0  ;;  %v4872_v2 = vsel %vm1699_vm12, %v4856_v29, %v9169_v50 }
 0x646   :  { %9261 = vrot.lane.b32.xlu0 %v9260_v11, %s9850_s3  ;;  %7759 = vmatmul.msk.bf16.gmra.mxu3 %vm74_vm0, %v4918_v0  ;;  %v9177_v36 = vpop.permute.xlu1 %9176 }
 0x647   :  { %v4243_v43 = vadd.f32 %v12311_v19, %v4223_v47  ;;  %v9172_v13 = vpop.permute.xlu0 %9171  ;;  %v9178_v50 = vunpack.i.l.bf16 %v9177_v36 }
 0x648   :  { %v4153_v4 = vpop.f32.mrf.mxu3  ;;  %v9174_v3 = vunpack.i.h.bf16 %v9172_v13  ;;  %v9173_v18 = vunpack.i.l.bf16 %v9172_v13 }
 0x649   :  { %v4259_v26 = vmax.f32 %v4243_v43, 0.0  ;;  %v4154_v22 = vadd.f32 %v4153_v4, %v4104_v61  ;;  %v4370_v55 = vld [vmem:[#allocation2 + $0x102] sm:$0xff]  ;;  %v9179_v43 = vunpack.i.h.bf16 %v9177_v36 }
 0x64a   :  { %v9275_v33 = vpack.i.bf16 %v4370_v55, %v4322_v1  ;;  %v4887_v15 = vsel %vm925_vm10, %v4871_v28, %v9173_v18  ;;  %v4888_v48 = vsel %vm925_vm10, %v4872_v2, %v9174_v3  ;;  %v4857_v28 = vsel %vm74_vm0, %v12397_v7, %v9178_v50 }
 0x64b   :  { %4275 = vst.msk [vmem:[#allocation2 + $0x111] sm:$0xff] %vm74_vm0, %v4259_v26  ;;  %v4203_v23 = vadd.f32 %v4202_v49, %v4154_v22  ;;  %v4905_v25 = vpack.c.bf16 %v4888_v48, %v4887_v15  ;;  %v9192_v22 = vpop.permute.xlu2 %9191  ;;  %v4858_v49 = vsel %vm74_vm0, %v12417_v62, %v9179_v43  ;;  %v4404_v15 = vld [vmem:[#allocation2 + $0x131] sm:$0xff] }
 0x64d   :  { %v4224_v9 = vmul.f32 %v12302_v46, %v4203_v23  ;;  %9276 = vrot.lane.b32.xlu1 %v9275_v33, %s9851_s0  ;;  %5155 = vmatmul.bf16.gmra.mxu2 %v4905_v25  ;;  %v9194_v23 = vunpack.i.h.bf16 %v9192_v22  ;;  %v9193_v33 = vunpack.i.l.bf16 %v9192_v22  ;;  %v4286_v22 = vld [vmem:[#allocation2 + $0xb0] sm:$0xff] }
 0x64e   :  { %9271 = vrot.lane.b32.xlu0 %v9255_v20, %s9849_s29  ;;  %v9182_v0 = vpop.permute.xlu1 %9181  ;;  %v12614_v20 = vld [vmem:[#allocation2 + $0x101] sm:$0xff] }
 0x64f   :  { %v4244_v11 = vadd.f32 %v12311_v19, %v4224_v9  ;;  %v9184_v53 = vunpack.i.h.bf16 %v9182_v0  ;;  %v9183_v47 = vunpack.i.l.bf16 %v9182_v0  ;;  %v12637_v9 = vld [vmem:[#allocation2 + $0x100] sm:$0xff]  ;;  %v4873_v7 = vsel %vm1699_vm12, %v4857_v28, %v9193_v33 }
 0x650   :  { %v9187_v61 = vpop.permute.xlu0 %9186  ;;  %v9315_v33 = vpack.i.bf16 %v12419_v17, %v12407_v12 }
 0x651   :  { %v4260_v29 = vmax.f32 %v4244_v11, 0.0  ;;  %v9189_v1 = vunpack.i.h.bf16 %v9187_v61  ;;  %v9188_v14 = vunpack.i.l.bf16 %v9187_v61  ;;  %v4812_v63 = vsel %vm74_vm0, %v12423_v24, %v9184_v53 }
 0x652   :  { %v4811_v46 = vsel %vm74_vm0, %v12419_v17, %v9183_v47  ;;  %v4418_v13 = vld [vmem:[#allocation2 + $0x112] sm:$0xff]  ;;  %v4874_v53 = vsel %vm1699_vm12, %v4858_v49, %v9194_v23  ;;  %v9325_v23 = vpack.i.bf16 %v12556_v6, %v4286_v22 }
 0x653   :  { %v12616_v4 = vld [vmem:[#allocation2 + $0x111] sm:$0xff]  ;;  %4276 = vst.msk [vmem:[#allocation2 + $0x121] sm:$0xff] %vm74_vm0, %v4260_v29  ;;  %v12620_v19 = vsel %vm1699_vm12, %v4812_v63, %v9189_v1  ;;  %v12623_v26 = vsel %vm1699_vm12, %v4811_v46, %v9188_v14  ;;  %v4921_v36 = vpack.c.bf16 %v4418_v13, %v4370_v55  ;;  %v9285_v18 = vpack.i.bf16 %v4418_v13, %v4370_v55 }
 0x654   :  { %v9295_v3 = vpack.i.bf16 %v12616_v4, %v12614_v20  ;;  %v12635_v2 = vld [vmem:[#allocation2 + $0x110] sm:$0xff] }
 0x655   :  { %9286 = vrot.lane.b32.xlu1 %v9285_v18, %s9850_s3  ;;  %v9290_v11 = vpack.i.bf16 %v12635_v2, %v12637_v9  ;;  %v4388_v63 = vld [vmem:[#allocation2 + $0x130] sm:$0xff] }
 0x656   :  { %9281 = vrot.lane.b32.xlu2 %v9295_v3, %s9851_s0  ;;  %7760 = vmatmul.msk.bf16.gmra.mxu3 %vm74_vm0, %v4921_v36  ;;  %v9202_v43 = vpop.permute.xlu1 %9201 }
 0x657   :  { %9296 = vrot.lane.b32.xlu0 %v9295_v3, %s9849_s29  ;;  %v9204_v46 = vunpack.i.h.bf16 %v9202_v43  ;;  %v9203_v36 = vunpack.i.l.bf16 %v9202_v43  ;;  %v4420_v3 = vld [vmem:[#allocation2 + $0x132] sm:$0xff] }
 0x658   :  { %v9197_v55 = vpop.permute.xlu0 %9196 }
 0x659   :  { %v9199_v48 = vunpack.i.h.bf16 %v9197_v55  ;;  %v9198_v25 = vunpack.i.l.bf16 %v9197_v55  ;;  %v4860_v55 = vsel %vm74_vm0, %v12446_v51, %v9204_v46 }
 0x65a   :  { %v12641_v0 = vld [vmem:[#allocation2 + $0x121] sm:$0xff] }
 0x65b   :  { %v4372_v62 = vld [vmem:[#allocation2 + $0x122] sm:$0xff]  ;;  %v9310_v47 = vpack.i.bf16 %v4404_v15, %v12641_v0  ;;  %v4889_v29 = vsel %vm925_vm10, %v4873_v7, %v9198_v25  ;;  %v4890_v1 = vsel %vm925_vm10, %v4874_v53, %v9199_v48  ;;  %v4859_v15 = vsel %vm74_vm0, %v12421_v44, %v9203_v36 }
 0x65c   :  { %v9300_v61 = vpack.i.bf16 %v4372_v62, %v4418_v13  ;;  %v4908_v14 = vpack.c.bf16 %v4890_v1, %v4889_v29  ;;  %v4387_v50 = vld [vmem:[#allocation2 + $0x120] sm:$0xff]  ;;  %v9207_v13 = vpop.permute.xlu2 %9206  ;;  %v4924_v28 = vpack.c.bf16 %v4420_v3, %v4372_v62  ;;  %v9320_v62 = vpack.i.bf16 %v12434_v27, %v12423_v24 }
 0x65d   :  { %v9305_v49 = vpack.i.bf16 %v4388_v63, %v4387_v50  ;;  %v9208_v7 = vunpack.i.l.bf16 %v9207_v13  ;;  %v9340_v53 = vpack.i.bf16 %v4387_v50, %v12635_v2  ;;  %v9335_v1 = vpack.i.bf16 %v12637_v9, %v12576_v34  ;;  %v4285_v24 = vld [vmem:[#allocation2 + $0xa0] sm:$0xff] }
 0x65e   :  { %9291 = vrot.lane.b32.xlu2 %v9290_v11, %s9850_s3  ;;  %5160 = vmatmul.bf16.gmra.mxu2 %v4908_v14  ;;  %v9209_v11 = vunpack.i.h.bf16 %v9207_v13 }
 0x65f   :  { %9311 = vrot.lane.b32.xlu0 %v9310_v47, %s9849_s29  ;;  %9301 = vrot.lane.b32.xlu1 %v9300_v61, %s9851_s0  ;;  %v4875_v12 = vsel %vm1699_vm12, %v4859_v15, %v9208_v7  ;;  %v9330_v61 = vpack.i.bf16 %v12568_v16, %v12548_v45 }
 0x660   :  { %v9212_v18 = vpop.permute.xlu0 %9211  ;;  %v4876_v17 = vsel %vm1699_vm12, %v4860_v55, %v9209_v11 }
 0x661   :  { %v9214_v48 = vunpack.i.h.bf16 %v9212_v18  ;;  %v9213_v25 = vunpack.i.l.bf16 %v9212_v18 }
 0x663   :  { %v4891_v51 = vsel %vm925_vm10, %v4875_v12, %v9213_v25  ;;  %v4892_v44 = vsel %vm925_vm10, %v4876_v17, %v9214_v48 }
 0x664   :  { %v4911_v47 = vpack.c.bf16 %v4892_v44, %v4891_v51  ;;  %v9217_v29 = vpop.permute.xlu2 %9216 }
 0x665   :  { %v9219_v14 = vunpack.i.h.bf16 %v9217_v29  ;;  %v9218_v43 = vunpack.i.l.bf16 %v9217_v29 }
 0x666   :  { %9306 = vrot.lane.b32.xlu2 %v9305_v49, %s9850_s3  ;;  %7761 = vmatmul.msk.bf16.gmra.mxu3 %vm74_vm0, %v4924_v28 }
 0x667   :  { %9326 = vrot.lane.b32.xlu0 %v9325_v23, %s9849_s29  ;;  %9316 = vrot.lane.b32.xlu1 %v9315_v33, %s9849_s29  ;;  %v4814_v46 = vsel %vm74_vm0, %v4286_v22, %v9219_v14  ;;  %v4813_v36 = vsel %vm74_vm0, %v4285_v24, %v9218_v43 }
 0x66e   :  { %9321 = vrot.lane.b32.xlu2 %v9320_v62, %s9849_s29  ;;  %5165 = vmatmul.bf16.gmra.mxu2 %v4911_v47 }
 0x66f   :  { %9341 = vrot.lane.b32.xlu0 %v9340_v53, %s9849_s29  ;;  %9331 = vrot.lane.b32.xlu1 %v9330_v61, %s9849_s29 }
 0x676   :  { %9336 = vrot.lane.b32.xlu2 %v9335_v1, %s9849_s29  ;;  %v9222_v27 = vpop.permute.xlu1 %9221 }
 0x677   :  { %v9224_v50 = vunpack.i.h.bf16 %v9222_v27  ;;  %v9223_v63 = vunpack.i.l.bf16 %v9222_v27 }
 0x679   :  { %v12680_v3 = vsel %vm1699_vm12, %v4813_v36, %v9223_v63  ;;  %v12683_v18 = vsel %vm1699_vm12, %v4814_v46, %v9224_v50 }
 0x67e   :  { %v9227_v28 = vpop.permute.xlu1 %9226 }
 0x67f   :  { %v9229_v17 = vunpack.i.h.bf16 %v9227_v28  ;;  %v9228_v51 = vunpack.i.l.bf16 %v9227_v28 }
 0x681   :  { %v4862_v29 = vsel %vm74_vm0, %v12530_v57, %v9229_v17 }
 0x68e   :  { %v9237_v13 = vpop.permute.xlu2 %9236 }
 0x68f   :  { %v9239_v48 = vunpack.i.h.bf16 %v9237_v13  ;;  %v9238_v25 = vunpack.i.l.bf16 %v9237_v13 }
 0x696   :  { %v9242_v49 = vpop.permute.xlu2 %9241 }
 0x697   :  { %v9244_v44 = vunpack.i.h.bf16 %v9242_v49  ;;  %v9243_v62 = vunpack.i.l.bf16 %v9242_v49 }
 0x699   :  { %v4878_v14 = vsel %vm1699_vm12, %v4862_v29, %v9244_v44 }
 0x69e   :  { %v9267_v33 = vpop.permute.xlu2 %9266 }
 0x69f   :  { %v9269_v29 = vunpack.i.h.bf16 %v9267_v33 }
 0x6a1   :  { %v5102_v63 = vpop.f32.mrf.mxu1 }
 0x6a7   :  { %v9232_v23 = vpop.permute.xlu0 %9231 }
 0x6a8   :  { %v9234_v55 = vunpack.i.h.bf16 %v9232_v23  ;;  %v9233_v15 = vunpack.i.l.bf16 %v9232_v23 }
 0x6aa   :  { %v4816_v22 = vsel %vm74_vm0, %v12548_v45, %v9234_v55  ;;  %v4815_v11 = vsel %vm74_vm0, %v12556_v6, %v9233_v15  ;;  %v4861_v45 = vsel %vm74_vm0, %v12483_v32, %v9228_v51 }
 0x6ab   :  { %v12690_v7 = vsel %vm1699_vm12, %v4815_v11, %v9238_v25  ;;  %v12693_v12 = vsel %vm1699_vm12, %v4816_v22, %v9239_v48  ;;  %v4877_v43 = vsel %vm1699_vm12, %v4861_v45, %v9243_v62 }
 0x6ae   :  { %v9252_v53 = vpop.permute.xlu1 %9251 }
 0x6af   :  { %v9247_v47 = vpop.permute.xlu0 %9246  ;;  %v9254_v25 = vunpack.i.h.bf16 %v9252_v53  ;;  %v9253_v22 = vunpack.i.l.bf16 %v9252_v53 }
 0x6b0   :  { %v9282_v61 = vpop.permute.xlu2 %9281  ;;  %v9249_v6 = vunpack.i.h.bf16 %v9247_v47  ;;  %v9248_v1 = vunpack.i.l.bf16 %v9247_v47 }
 0x6b1   :  { %v4864_v51 = vsel %vm74_vm0, %v12570_v39, %v9254_v25  ;;  %v4863_v44 = vsel %vm74_vm0, %v12532_v35, %v9253_v22  ;;  %v9283_v35 = vunpack.i.l.bf16 %v9282_v61 }
 0x6b2   :  { %v4893_v24 = vsel %vm925_vm10, %v4877_v43, %v9248_v1  ;;  %v4894_v27 = vsel %vm925_vm10, %v4878_v14, %v9249_v6  ;;  %v4880_v1 = vsel %vm1699_vm12, %v4864_v51, %v9269_v29 }
 0x6b3   :  { %v4914_v50 = vpack.c.bf16 %v4894_v27, %v4893_v24  ;;  %v9284_v24 = vunpack.i.h.bf16 %v9282_v61 }
 0x6b5   :  { %5170 = vmatmul.bf16.gmra.mxu2 %v4914_v50  ;;  %v12723_v50 = vpop.f32.mrf.mxu1  ;;  %v4820_v25 = vsel %vm74_vm0, %v12635_v2, %v9284_v24 }
 0x6b7   :  { %v9257_v46 = vpop.permute.xlu1 %9256  ;;  %v5151_v32 = vpop.f32.mrf.mxu2 }
 0x6b8   :  { %v12703_v36 = vpop.permute.xlu2 %9291  ;;  %v9259_v57 = vunpack.i.h.bf16 %v9257_v46  ;;  %v9258_v13 = vunpack.i.l.bf16 %v9257_v46  ;;  %v9262_v49 = vpop.permute.xlu0 %9261  ;;  %v12705_v55 = vadd.f32 %v5151_v32, %v5102_v63 }
 0x6b9   :  { %v9264_v28 = vunpack.i.h.bf16 %v9262_v49  ;;  %v9263_v23 = vunpack.i.l.bf16 %v9262_v49  ;;  %v9294_v29 = vunpack.i.h.bf16 %v12703_v36  ;;  %v9293_v2 = vunpack.i.l.bf16 %v12703_v36 }
 0x6ba   :  { %v4817_v15 = vsel %vm74_vm0, %v12568_v16, %v9258_v13  ;;  %v4818_v48 = vsel %vm74_vm0, %v12576_v34, %v9259_v57  ;;  %v9268_v16 = vunpack.i.l.bf16 %v9267_v33 }
 0x6bb   :  { %v4834_v11 = vsel %vm1699_vm12, %v4818_v48, %v9264_v28  ;;  %v4833_v17 = vsel %vm1699_vm12, %v4817_v15, %v9263_v23  ;;  %v4819_v48 = vsel %vm74_vm0, %v12637_v9, %v9283_v35 }
 0x6bc   :  { %v4879_v53 = vsel %vm1699_vm12, %v4863_v44, %v9268_v16 }
 0x6bf   :  { %v9277_v62 = vpop.permute.xlu1 %9276  ;;  %v12725_v32 = vpop.f32.mrf.mxu2 }
 0x6c0   :  { %v12717_v47 = vpop.permute.xlu2 %9306  ;;  %v9272_v45 = vpop.permute.xlu0 %9271  ;;  %v9279_v57 = vunpack.i.h.bf16 %v9277_v62  ;;  %v9278_v13 = vunpack.i.l.bf16 %v9277_v62 }
 0x6c1   :  { %v9274_v6 = vunpack.i.h.bf16 %v9272_v45  ;;  %v9273_v34 = vunpack.i.l.bf16 %v9272_v45  ;;  %v5107_v45 = vpop.f32.mrf.mxu1 }
 0x6c3   :  { %v4895_v14 = vsel %vm925_vm10, %v4879_v53, %v9273_v34  ;;  %v4896_v43 = vsel %vm925_vm10, %v4880_v1, %v9274_v6 }
 0x6c4   :  { %v4917_v39 = vpack.c.bf16 %v4896_v43, %v4895_v14 }
 0x6c6   :  { %5175 = vmatmul.bf16.gmra.mxu2 %v4917_v39  ;;  %v5205_v39 = vpop.f32.mrf.mxu3 }
 0x6c7   :  { %v9287_v49 = vpop.permute.xlu1 %9286 }
 0x6c8   :  { %v9322_v27 = vpop.permute.xlu2 %9321  ;;  %v9289_v28 = vunpack.i.h.bf16 %v9287_v49  ;;  %v9288_v23 = vunpack.i.l.bf16 %v9287_v49 }
 0x6c9   :  { %v9297_v63 = vpop.permute.xlu0 %9296  ;;  %v9324_v33 = vunpack.i.h.bf16 %v9322_v27  ;;  %v9323_v46 = vunpack.i.l.bf16 %v9322_v27 }
 0x6ca   :  { %v12742_v51 = vsel %vm1699_vm12, %v4819_v48, %v9288_v23  ;;  %v12745_v44 = vsel %vm1699_vm12, %v4820_v25, %v9289_v28  ;;  %v9299_v62 = vunpack.i.h.bf16 %v9297_v63  ;;  %v9298_v9 = vunpack.i.l.bf16 %v9297_v63  ;;  %v12766_v63 = vld [vmem:[%s14202_s14] ss:$0 sm:$0xff] }
 0x6cb   :  { %v12729_v15 = vsel %vm925_vm10, %v12623_v26, %v9323_v46  ;;  %v12733_v61 = vsel %vm925_vm10, %v12620_v19, %v9324_v33  ;;  %v4866_v26 = vsel %vm74_vm0, %v12614_v20, %v9279_v57  ;;  %v4865_v19 = vsel %vm74_vm0, %v12578_v59, %v9278_v13  ;;  %v12773_v13 = vld [vmem:[%s14203_s15] ss:$0 sm:$0xff] }
 0x6cc   :  { %v4910_v22 = vpack.c.bf16 %v12733_v61, %v12729_v15  ;;  %v4881_v1 = vsel %vm1699_vm12, %v4865_v19, %v9293_v2  ;;  %v4882_v14 = vsel %vm1699_vm12, %v4866_v26, %v9294_v29  ;;  %v9308_v23 = vunpack.i.l.bf16 %v12717_v47 }
 0x6cd   :  { %v4897_v20 = vsel %vm925_vm10, %v4881_v1, %v9298_v9  ;;  %v4898_v59 = vsel %vm925_vm10, %v4882_v14, %v9299_v62  ;;  %v5109_v62 = vpop.f32.mrf.mxu1 }
 0x6ce   :  { %v4920_v46 = vpack.c.bf16 %v4898_v59, %v4897_v20  ;;  %v5207_v20 = vpop.f32.mrf.mxu3  ;;  %v9309_v59 = vunpack.i.h.bf16 %v12717_v47 }
 0x6d0   :  { %v9337_v16 = vpop.permute.xlu2 %9336  ;;  %v5156_v24 = vpop.f32.mrf.mxu2 }
 0x6d1   :  { %v9312_v6 = vpop.permute.xlu0 %9311  ;;  %v9339_v34 = vunpack.i.h.bf16 %v9337_v16  ;;  %v9338_v53 = vunpack.i.l.bf16 %v9337_v16  ;;  %v9302_v43 = vpop.permute.xlu1 %9301  ;;  %v5157_v27 = vadd.f32 %v5156_v24, %v5107_v45 }
 0x6d2   :  { %v9303_v49 = vunpack.i.l.bf16 %v9302_v43 }
 0x6d3   :  { %v12758_v35 = vsel %vm925_vm10, %v4833_v17, %v9338_v53  ;;  %v12761_v36 = vsel %vm925_vm10, %v4834_v11, %v9339_v34  ;;  %v5206_v57 = vadd.f32 %v5205_v39, %v5157_v27  ;;  %v9304_v17 = vunpack.i.h.bf16 %v9302_v43 }
 0x6d4   :  { %v4919_v33 = vpack.c.bf16 %v12761_v36, %v12758_v35  ;;  %v4867_v9 = vsel %vm74_vm0, %v12616_v4, %v9303_v49  ;;  %v14311_v34 = vmax.f32 %v11848_v52, 0.0 }
 0x6d5   :  { %v5246_v11 = vmul.f32 %v12766_v63, %v5206_v57  ;;  %v4868_v29 = vsel %vm74_vm0, %v12641_v0, %v9304_v17  ;;  %v9313_v57 = vunpack.i.l.bf16 %v9312_v6  ;;  %v4406_v17 = vld [vmem:[#allocation2 + $0x32] sm:$0xff] }
 0x6d6   :  { %5180 = vmatmul.bf16.gmra.mxu2 %v4920_v46  ;;  %v4883_v46 = vsel %vm1699_vm12, %v4867_v9, %v9308_v23 }
 0x6d7   :  { %v5266_v48 = vadd.f32 %v12773_v13, %v5246_v11  ;;  %v4899_v47 = vsel %vm925_vm10, %v4883_v46, %v9313_v57 }
 0x6d8   :  { %v5158_v45 = vpop.f32.mrf.mxu2 }
 0x6d9   :  { %v9327_v28 = vpop.permute.xlu0 %9326  ;;  %v9317_v19 = vpop.permute.xlu1 %9316  ;;  %v5282_v53 = vadd.f32 %v5266_v48, %v14311_v34  ;;  %v5159_v1 = vadd.f32 %v5158_v45, %v5109_v62 }
 0x6da   :  { %v9329_v25 = vunpack.i.h.bf16 %v9327_v28  ;;  %v9328_v26 = vunpack.i.l.bf16 %v9327_v28  ;;  %v9319_v2 = vunpack.i.h.bf16 %v9317_v19  ;;  %v9318_v16 = vunpack.i.l.bf16 %v9317_v19 }
 0x6db   :  { %v5298_v24 = vmax.f32 %v5282_v53, 0.0  ;;  %v5208_v52 = vadd.f32 %v5207_v20, %v5159_v1  ;;  %v14312_v19 = vmax.f32 %v11858_v31, 0.0 }
 0x6dc   :  { %v4845_v14 = vsel %vm925_vm10, %v12680_v3, %v9328_v26  ;;  %v4846_v43 = vsel %vm925_vm10, %v12683_v18, %v9329_v25  ;;  %v4841_v4 = vsel %vm925_vm10, %v12586_v58, %v9318_v16  ;;  %v4842_v0 = vsel %vm925_vm10, %v12589_v10, %v9319_v2 }
 0x6dd   :  { %v4913_v39 = vpack.c.bf16 %v4846_v43, %v4845_v14  ;;  %v4907_v27 = vpack.c.bf16 %v4842_v0, %v4841_v4  ;;  %v4884_v3 = vsel %vm1699_vm12, %v4868_v29, %v9309_v59  ;;  %v9314_v18 = vunpack.i.h.bf16 %v9312_v6  ;;  %5314 = vst.msk [vmem:[#allocation2 + $0x31] sm:$0xff] %vm74_vm0, %v5298_v24  ;;  %v5210_v59 = vpop.f32.mrf.mxu3 }
 0x6de   :  { %v5247_v49 = vmul.f32 %v12766_v63, %v5208_v52 }
 0x6df   :  { %5111 = vmatmul.bf16.gmra.mxu1 %v4907_v27  ;;  %v4900_v23 = vsel %vm925_vm10, %v4884_v3, %v9314_v18  ;;  %v14313_v3 = vmax.f32 %v11882_v5, 0.0  ;;  %v8018_v5 = vld [vmem:[%s14204_s16 + $0x88] sm:$0xff] }
 0x6e0   :  { %v5267_v10 = vadd.f32 %v12773_v13, %v5247_v49  ;;  %v4923_v29 = vpack.c.bf16 %v4900_v23, %v4899_v47  ;;  %v14314_v23 = vmax.f32 %v11899_v42, 0.0  ;;  %6248 = vmatpush.bf16.msra.mxu2 %v8018_v5 }
 0x6e1   :  { %v9342_v58 = vpop.permute.xlu0 %9341  ;;  %v9332_v11 = vpop.permute.xlu1 %9331 }
 0x6e2   :  { %v9344_v28 = vunpack.i.h.bf16 %v9342_v58  ;;  %v9343_v48 = vunpack.i.l.bf16 %v9342_v58  ;;  %v9334_v25 = vunpack.i.h.bf16 %v9332_v11  ;;  %v9333_v26 = vunpack.i.l.bf16 %v9332_v11 }
 0x6e3   :  { %v5283_v6 = vadd.f32 %v5267_v10, %v14312_v19 }
 0x6e4   :  { %v4851_v62 = vsel %vm925_vm10, %v12742_v51, %v9343_v48  ;;  %v4852_v9 = vsel %vm925_vm10, %v12745_v44, %v9344_v28  ;;  %v4847_v2 = vsel %vm925_vm10, %v12690_v7, %v9333_v26  ;;  %v4848_v16 = vsel %vm925_vm10, %v12693_v12, %v9334_v25  ;;  %v12811_v31 = vld [vmem:[#allocation2 + $0x30] sm:$0xff]  ;;  %v4405_v12 = vld [vmem:[#allocation2 + $0x22] sm:$0xff]  ;;  %v5161_v44 = vpop.f32.mrf.mxu2 }
 0x6e5   :  { %v4922_v45 = vpack.c.bf16 %v4852_v9, %v4851_v62  ;;  %v5299_v34 = vmax.f32 %v5283_v6, 0.0  ;;  %v4916_v53 = vpack.c.bf16 %v4848_v16, %v4847_v2  ;;  %v4903_v51 = vpack.c.bf16 %v4406_v17, %v4405_v12  ;;  %v5212_v0 = vpop.f32.mrf.mxu3  ;;  %v8017_v12 = vld [vmem:[%s14204_s16 + $0x80] sm:$0xff] }
 0x6e6   :  { %5185 = vmatmul.bf16.gmra.mxu2 %v4923_v29 }
 0x6e7   :  { %5315 = vst.msk [vmem:[#allocation2 + $0x41] sm:$0xff] %vm74_vm0, %v5299_v34  ;;  %6249 = vmatpush.bf16.msra.mxu2 %v8017_v12  ;;  %v14318_v12 = vmax.f32 %v12007_v30, 0.0 }
 0x6ec   :  { %v5163_v14 = vpop.f32.mrf.mxu2 }
 0x6ed   :  { %v5215_v27 = vpop.f32.mrf.mxu3 }
 0x6ee   :  { %v12813_v1 = vld [vmem:[#allocation2 + $0x40] sm:$0xff] }
 0x6ef   :  { %5116 = vmatmul.bf16.gmra.mxu1 %v4910_v22  ;;  %v12820_v7 = vpack.i.bf16 %v12813_v1, %v12811_v31  ;;  %v12854_v62 = vld [vmem:[#allocation2 + $0x42] sm:$0xff] }
 0x6f0   :  { %v5348_v2 = vld [vmem:[#allocation2 + $0x41] sm:$0xff] }
 0x6f1   :  { %9346 = vrot.lane.b32.xlu0 %v12820_v7, %s9849_s29 }
 0x6f4   :  { %v5166_v15 = vpop.f32.mrf.mxu2 }
 0x6f5   :  { %v5217_v47 = vpop.f32.mrf.mxu3 }
 0x6f6   :  { %7754 = vmatmul.msk.bf16.vlgmr.msrb.gmra.mxu2 %vm74_vm0, %v4903_v51 }
 0x6fc   :  { %v5168_v61 = vpop.f32.mrf.mxu2 }
 0x6fd   :  { %v5220_v9 = vpop.f32.mrf.mxu3 }
 0x6ff   :  { %5121 = vmatmul.bf16.gmra.mxu1 %v4913_v39 }
 0x70f   :  { %5126 = vmatmul.bf16.gmra.mxu1 %v4916_v53 }
 0x71f   :  { %5131 = vmatmul.bf16.gmra.mxu1 %v4919_v33 }
 0x72f   :  { %5136 = vmatmul.bf16.gmra.mxu1 %v4922_v45 }
 0x738   :  { %v12828_v22 = vpop.f32.mrf.mxu2 }
 0x740   :  { %v12830_v43 = vpop.f32.mrf.mxu2 }
 0x749   :  { %v12832_v20 = vpop.f32.mrf.mxu2 }
 0x751   :  { %v12834_v4 = vpop.f32.mrf.mxu2 }
 0x759   :  { %v12836_v39 = vpop.f32.mrf.mxu2 }
 0x75c   :  { %v5112_v24 = vpop.f32.mrf.mxu1 }
 0x75d   :  { %v5162_v52 = vadd.f32 %v5161_v44, %v5112_v24 }
 0x75f   :  { %v5211_v35 = vadd.f32 %v5210_v59, %v5162_v52 }
 0x761   :  { %v5248_v36 = vmul.f32 %v12766_v63, %v5211_v35  ;;  %v12839_v33 = vpop.f32.mrf.mxu2 }
 0x763   :  { %v5268_v46 = vadd.f32 %v12773_v13, %v5248_v36 }
 0x764   :  { %v5114_v57 = vpop.f32.mrf.mxu1 }
 0x765   :  { %v5284_v17 = vadd.f32 %v5268_v46, %v14313_v3  ;;  %v5164_v18 = vadd.f32 %v5163_v14, %v5114_v57  ;;  %v14315_v14 = vmax.f32 %v11918_v56, 0.0 }
 0x767   :  { %v5300_v49 = vmax.f32 %v5284_v17, 0.0  ;;  %v5213_v58 = vadd.f32 %v5212_v0, %v5164_v18 }
 0x769   :  { %5316 = vst.msk [vmem:[#allocation2 + $0x51] sm:$0xff] %vm74_vm0, %v5300_v49  ;;  %v5249_v10 = vmul.f32 %v12766_v63, %v5213_v58  ;;  %v12846_v11 = vpop.f32.mrf.mxu2  ;;  %v14316_v58 = vmax.f32 %v11945_v40, 0.0 }
 0x76b   :  { %v5269_v28 = vadd.f32 %v12773_v13, %v5249_v10 }
 0x76c   :  { %v5117_v48 = vpop.f32.mrf.mxu1 }
 0x76d   :  { %v5285_v25 = vadd.f32 %v5269_v28, %v14314_v23  ;;  %v5167_v26 = vadd.f32 %v5166_v15, %v5117_v48 }
 0x76f   :  { %v5301_v19 = vmax.f32 %v5285_v25, 0.0  ;;  %v5216_v6 = vadd.f32 %v5215_v27, %v5167_v26  ;;  %v14317_v25 = vmax.f32 %v11802_v41, 0.0 }
 0x770   :  { %v12856_v29 = vld [vmem:[#allocation2 + $0x52] sm:$0xff] }
 0x771   :  { %v5349_v16 = vld [vmem:[#allocation2 + $0x51] sm:$0xff]  ;;  %5317 = vst.msk [vmem:[#allocation2 + $0x61] sm:$0xff] %vm74_vm0, %v5301_v19  ;;  %v5250_v42 = vmul.f32 %v12766_v63, %v5216_v6  ;;  %v12860_v45 = vpop.f32.mrf.mxu2  ;;  %v9355_v34 = vpack.i.bf16 %v12856_v29, %v12854_v62 }
 0x772   :  { %v12864_v53 = vpack.i.bf16 %v5349_v16, %v5348_v2  ;;  %v12875_v52 = vld [vmem:[#allocation2 + $0x50] sm:$0xff] }
 0x773   :  { %v5270_v51 = vadd.f32 %v12773_v13, %v5250_v42  ;;  %9356 = vrot.lane.b32.xlu2 %v9355_v34, %s9850_s3 }
 0x774   :  { %9351 = vrot.lane.b32.xlu0 %v12864_v53, %s9851_s0  ;;  %v5119_v44 = vpop.f32.mrf.mxu1 }
 0x775   :  { %v5286_v15 = vadd.f32 %v5270_v51, %v14315_v14  ;;  %v5169_v59 = vadd.f32 %v5168_v61, %v5119_v44  ;;  %v5222_v61 = vpop.f32.mrf.mxu3 }
 0x777   :  { %v5302_v0 = vmax.f32 %v5286_v15, 0.0  ;;  %v5218_v24 = vadd.f32 %v5217_v47, %v5169_v59 }
 0x778   :  { %v12877_v27 = vld [vmem:[#allocation2 + $0x60] sm:$0xff] }
 0x779   :  { %v12879_v35 = vld [vmem:[#allocation2 + $0x62] sm:$0xff]  ;;  %5318 = vst.msk [vmem:[#allocation2 + $0x71] sm:$0xff] %vm74_vm0, %v5302_v0  ;;  %v5251_v36 = vmul.f32 %v12766_v63, %v5218_v24  ;;  %v5200_v46 = vpop.f32.mrf.mxu2  ;;  %v12885_v57 = vpack.i.bf16 %v12877_v27, %v12875_v52  ;;  %v14319_v0 = vmax.f32 %v11817_v21, 0.0 }
 0x77a   :  { %v9495_v56 = vpack.i.bf16 %v12879_v35, %v12856_v29  ;;  %v5201_v3 = vadd.f32 %v5200_v46, %v12705_v55  ;;  %v5154_v55 = vadd.f32 %v12725_v32, %v12723_v50  ;;  %v5350_v5 = vld [vmem:[#allocation2 + $0x61] sm:$0xff] }
 0x77b   :  { %v5271_v17 = vadd.f32 %v12773_v13, %v5251_v36  ;;  %9361 = vrot.lane.b32.xlu1 %v12885_v57, %s9849_s29 }
 0x77c   :  { %v5244_v18 = vmul.f32 %v12766_v63, %v5201_v3  ;;  %v5122_v49 = vpop.f32.mrf.mxu1 }
 0x77d   :  { %v5287_v47 = vadd.f32 %v5271_v17, %v14316_v58  ;;  %v5172_v10 = vadd.f32 %v12828_v22, %v5122_v49  ;;  %v5225_v41 = vpop.f32.mrf.mxu3 }
 0x77e   :  { %v5264_v28 = vadd.f32 %v12773_v13, %v5244_v18 }
 0x77f   :  { %v5303_v48 = vmax.f32 %v5287_v47, 0.0  ;;  %v5221_v23 = vadd.f32 %v5220_v9, %v5172_v10  ;;  %v5368_v47 = vld [vmem:[#allocation2 + $0xa2] sm:$0xff] }
 0x780   :  { %v5280_v26 = vadd.f32 %v5264_v28, %v14317_v25  ;;  %v5351_v19 = vld [vmem:[#allocation2 + $0x71] sm:$0xff]  ;;  %v5352_v10 = vld [vmem:[#allocation2 + $0xa1] sm:$0xff] }
 0x781   :  { %v12902_v6 = vld [vmem:[#allocation2 + $0x72] sm:$0xff]  ;;  %5319 = vst.msk [vmem:[#allocation2 + $0x81] sm:$0xff] %vm74_vm0, %v5303_v48  ;;  %v5252_v40 = vmul.f32 %v12766_v63, %v5221_v23  ;;  %v5202_v2 = vpop.f32.mrf.mxu2  ;;  %v12906_v22 = vpack.i.bf16 %v5351_v19, %v5350_v5 }
 0x782   :  { %v9370_v9 = vpack.i.bf16 %v12902_v6, %v12879_v35  ;;  %v5296_v16 = vmax.f32 %v5280_v26, 0.0  ;;  %v5203_v42 = vadd.f32 %v5202_v2, %v5154_v55  ;;  %v12922_v36 = vld [vmem:[#allocation2 + $0x70] sm:$0xff] }
 0x783   :  { %v5272_v50 = vadd.f32 %v12773_v13, %v5252_v40  ;;  %9366 = vrot.lane.b32.xlu1 %v12906_v22, %s9851_s0  ;;  %v12949_v19 = vld [vmem:[#allocation2 + $0x32] sm:$0xff] }
 0x784   :  { %9371 = vrot.lane.b32.xlu0 %v9370_v9, %s9850_s3  ;;  %5312 = vst.msk [vmem:[#allocation2 + $0x11] sm:$0xff] %vm74_vm0, %v5296_v16  ;;  %v5245_v32 = vmul.f32 %v12766_v63, %v5203_v42  ;;  %v5124_v34 = vpop.f32.mrf.mxu1  ;;  %v14321_v9 = vmax.f32 %v12038_v38, 0.0 }
 0x785   :  { %v5288_v51 = vadd.f32 %v5272_v50, %v14318_v12  ;;  %v5174_v44 = vadd.f32 %v12830_v43, %v5124_v34  ;;  %v5227_v58 = vpop.f32.mrf.mxu3 }
 0x786   :  { %v5265_v14 = vadd.f32 %v12773_v13, %v5245_v32 }
 0x787   :  { %v5304_v15 = vmax.f32 %v5288_v51, 0.0  ;;  %v5223_v59 = vadd.f32 %v5222_v61, %v5174_v44  ;;  %v14320_v61 = vmax.f32 %v12017_v37, 0.0 }
 0x788   :  { %v5281_v24 = vadd.f32 %v5265_v14, %v14319_v0  ;;  %v12924_v46 = vld [vmem:[#allocation2 + $0x80] sm:$0xff] }
 0x789   :  { %5320 = vst.msk [vmem:[#allocation2 + $0xb1] sm:$0xff] %vm74_vm0, %v5304_v15  ;;  %v5253_v3 = vmul.f32 %v12766_v63, %v5223_v59  ;;  %v12930_v30 = vpack.i.bf16 %v12924_v46, %v12922_v36  ;;  %v14322_v59 = vmax.f32 %v12062_v60, 0.0 }
 0x78a   :  { %v5297_v43 = vmax.f32 %v5281_v24, 0.0 }
 0x78b   :  { %v5273_v17 = vadd.f32 %v12773_v13, %v5253_v3  ;;  %9376 = vrot.lane.b32.xlu2 %v12930_v30, %s9849_s29 }
 0x78c   :  { %5313 = vst.msk [vmem:[#allocation2 + $0x21] sm:$0xff] %vm74_vm0, %v5297_v43  ;;  %v5127_v21 = vpop.f32.mrf.mxu1 }
 0x78d   :  { %v5289_v18 = vadd.f32 %v5273_v17, %v14320_v61  ;;  %v5177_v49 = vadd.f32 %v12832_v20, %v5127_v21  ;;  %v5230_v32 = vpop.f32.mrf.mxu3 }
 0x78f   :  { %v5305_v28 = vmax.f32 %v5289_v18, 0.0  ;;  %v5226_v48 = vadd.f32 %v5225_v41, %v5177_v49 }
 0x790   :  { %v12939_v23 = vld [vmem:[#allocation2 + $0xb2] sm:$0xff] }
 0x791   :  { %v5353_v55 = vld [vmem:[#allocation2 + $0xb1] sm:$0xff]  ;;  %5321 = vst.msk [vmem:[#allocation2 + $0xc1] sm:$0xff] %vm74_vm0, %v5305_v28  ;;  %v5254_v25 = vmul.f32 %v12766_v63, %v5226_v48  ;;  %v9385_v26 = vpack.i.bf16 %v12939_v23, %v5368_v47  ;;  %v14323_v28 = vmax.f32 %v12095_v8, 0.0 }
 0x792   :  { %v9380_v5 = vpack.i.bf16 %v5353_v55, %v5352_v10  ;;  %v12957_v34 = vld [vmem:[#allocation2 + $0xb0] sm:$0xff]  ;;  %v5957_v10 = vpack.c.bf16 %v12856_v29, %v12854_v62  ;;  %v9500_v29 = vpack.i.bf16 %v12922_v36, %v12877_v27 }
 0x793   :  { %v5274_v37 = vadd.f32 %v12773_v13, %v5254_v25  ;;  %9386 = vrot.lane.b32.xlu1 %v9385_v26, %s9850_s3  ;;  %v12947_v20 = vld [vmem:[#allocation2 + $0x22] sm:$0xff] }
 0x794   :  { %9381 = vrot.lane.b32.xlu2 %v9380_v5, %s9851_s0  ;;  %v5129_v40 = vpop.f32.mrf.mxu1  ;;  %v5954_v2 = vpack.c.bf16 %v12949_v19, %v12947_v20 }
 0x795   :  { %v5290_v16 = vadd.f32 %v5274_v37, %v14321_v9  ;;  %v5179_v42 = vadd.f32 %v12834_v4, %v5129_v40  ;;  %v5232_v47 = vpop.f32.mrf.mxu3 }
 0x796   :  { %7834 = vmatmul.msk.bf16.vlgmr.msra.gmra.mxu2 %vm74_vm0, %v5954_v2 }
 0x797   :  { %v5306_v50 = vmax.f32 %v5290_v16, 0.0  ;;  %v5228_v41 = vadd.f32 %v5227_v58, %v5179_v42 }
 0x798   :  { %v12959_v12 = vld [vmem:[#allocation2 + $0xc0] sm:$0xff] }
 0x799   :  { %v12961_v51 = vld [vmem:[#allocation2 + $0xc2] sm:$0xff]  ;;  %5322 = vst.msk [vmem:[#allocation2 + $0xd1] sm:$0xff] %vm74_vm0, %v5306_v50  ;;  %v5255_v44 = vmul.f32 %v12766_v63, %v5228_v41  ;;  %v9390_v38 = vpack.i.bf16 %v12959_v12, %v12957_v34  ;;  %v14324_v50 = vmax.f32 %v12112_v54, 0.0 }
 0x79a   :  { %v9525_v4 = vpack.i.bf16 %v12961_v51, %v12939_v23  ;;  %v5354_v21 = vld [vmem:[#allocation2 + $0xc1] sm:$0xff] }
 0x79b   :  { %v5275_v14 = vadd.f32 %v12773_v13, %v5255_v44  ;;  %9391 = vrot.lane.b32.xlu0 %v9390_v38, %s9849_s29  ;;  %v5336_v23 = vld [vmem:[#allocation2 + $0xa0] sm:$0xff] }
 0x79c   :  { %v5132_v15 = vpop.f32.mrf.mxu1 }
 0x79d   :  { %v5291_v0 = vadd.f32 %v5275_v14, %v14322_v59  ;;  %v5182_v24 = vadd.f32 %v12836_v39, %v5132_v15  ;;  %v5235_v16 = vpop.f32.mrf.mxu3 }
 0x79f   :  { %v5307_v3 = vmax.f32 %v5291_v0, 0.0  ;;  %v5231_v43 = vadd.f32 %v5230_v32, %v5182_v24 }
 0x7a0   :  { %v12974_v17 = vld [vmem:[#allocation2 + $0xd2] sm:$0xff] }
 0x7a1   :  { %v5355_v61 = vld [vmem:[#allocation2 + $0xd1] sm:$0xff]  ;;  %5323 = vst.msk [vmem:[#allocation2 + $0xe1] sm:$0xff] %vm74_vm0, %v5307_v3  ;;  %v5256_v18 = vmul.f32 %v12766_v63, %v5231_v43  ;;  %v9400_v49 = vpack.i.bf16 %v12974_v17, %v12961_v51  ;;  %v5960_v43 = vpack.c.bf16 %v12902_v6, %v12879_v35 }
 0x7a2   :  { %v12980_v58 = vpack.i.bf16 %v5355_v61, %v5354_v21  ;;  %v12992_v5 = vld [vmem:[#allocation2 + $0xd0] sm:$0xff]  ;;  %v14325_v21 = vld [vmem:[#allocation6_spill] sm:$0xff] }
 0x7a3   :  { %v5276_v60 = vadd.f32 %v12773_v13, %v5256_v18  ;;  %9401 = vrot.lane.b32.xlu2 %v9400_v49, %s9850_s3  ;;  %v14326_v61 = vmax.f32 %v14325_v21, 0.0 }
 0x7a4   :  { %9396 = vrot.lane.b32.xlu0 %v12980_v58, %s9851_s0  ;;  %v5134_v39 = vpop.f32.mrf.mxu1 }
 0x7a5   :  { %v5292_v48 = vadd.f32 %v5276_v60, %v14323_v28  ;;  %v5184_v55 = vadd.f32 %v12839_v33, %v5134_v39  ;;  %v5237_v60 = vpop.f32.mrf.mxu3  ;;  %v5361_v39 = vld [vmem:[#allocation2 + $0x12] sm:$0xff] }
 0x7a6   :  { %7835 = vmatmul.msk.bf16.gmra.mxu2 %vm74_vm0, %v5957_v10  ;;  %v8008_v10 = vld [vmem:[%s14204_s16 + $0x38] sm:$0xff] }
 0x7a7   :  { %v5308_v25 = vmax.f32 %v5292_v48, 0.0  ;;  %v5233_v26 = vadd.f32 %v5232_v47, %v5184_v55  ;;  %v5360_v47 = vld [vmem:[#allocation2 + $0x2] sm:$0xff]  ;;  %v8016_v28 = vld [vmem:[%s14204_s16 + $0x78] sm:$0xff]  ;;  %6144 = vmatpush.bf16.msrb.mxu0 %v8008_v10 }
 0x7a8   :  { %v12994_v37 = vld [vmem:[#allocation2 + $0xe0] sm:$0xff]  ;;  %6193 = vmatpush.bf16.msrb.mxu1 %v8016_v28  ;;  %v13092_v28 = vld [vmem:[#allocation2 + $0x10] sm:$0xff] }
 0x7a9   :  { %v12996_v40 = vld [vmem:[#allocation2 + $0xe2] sm:$0xff]  ;;  %5324 = vst.msk [vmem:[#allocation2 + $0xf1] sm:$0xff] %vm74_vm0, %v5308_v25  ;;  %v5257_v2 = vmul.f32 %v12766_v63, %v5233_v26  ;;  %v9405_v8 = vpack.i.bf16 %v12994_v37, %v12992_v5  ;;  %v13037_v26 = vpack.i.bf16 %v5361_v39, %v5360_v47 }
 0x7aa   :  { %v9540_v33 = vpack.i.bf16 %v12996_v40, %v12974_v17  ;;  %v5356_v14 = vld [vmem:[#allocation2 + $0xe1] sm:$0xff] }
 0x7ab   :  { %v5277_v9 = vadd.f32 %v12773_v13, %v5257_v2  ;;  %9406 = vrot.lane.b32.xlu1 %v9405_v8, %s9849_s29  ;;  %v13090_v10 = vld [vmem:[#allocation2 + $0x20] sm:$0xff] }
 0x7ac   :  { %v5137_v42 = vpop.f32.mrf.mxu1 }
 0x7ad   :  { %v5293_v41 = vadd.f32 %v5277_v9, %v14324_v50  ;;  %v5187_v32 = vadd.f32 %v12846_v11, %v5137_v42  ;;  %v14327_v9 = vld [vmem:[#allocation8_spill] sm:$0xff] }
 0x7af   :  { %v5309_v44 = vmax.f32 %v5293_v41, 0.0  ;;  %v5236_v38 = vadd.f32 %v5235_v16, %v5187_v32  ;;  %v14328_v16 = vmax.f32 %v14327_v9, 0.0 }
 0x7b0   :  { %v5357_v15 = vld [vmem:[#allocation2 + $0xf1] sm:$0xff] }
 0x7b1   :  { %v13009_v59 = vld [vmem:[#allocation2 + $0xf2] sm:$0xff]  ;;  %5325 = vst.msk [vmem:[#allocation2 + $0x101] sm:$0xff] %vm74_vm0, %v5309_v44  ;;  %v5258_v0 = vmul.f32 %v12766_v63, %v5236_v38  ;;  %v13013_v24 = vpack.i.bf16 %v5357_v15, %v5356_v14  ;;  %v13053_v14 = vld [vmem:[#allocation2 + $0x82] sm:$0xff] }
 0x7b2   :  { %v9415_v3 = vpack.i.bf16 %v13009_v59, %v12996_v40 }
 0x7b3   :  { %v5278_v54 = vadd.f32 %v12773_v13, %v5258_v0  ;;  %9411 = vrot.lane.b32.xlu1 %v13013_v24, %s9851_s0  ;;  %v5344_v0 = vld [vmem:[#allocation2 + $0x1] sm:$0xff] }
 0x7b4   :  { %9416 = vrot.lane.b32.xlu0 %v9415_v3, %s9850_s3  ;;  %v5139_v11 = vpop.f32.mrf.mxu1  ;;  %v13060_v3 = vld [vmem:[#allocation2 + $0x11] sm:$0xff] }
 0x7b5   :  { %v5294_v18 = vadd.f32 %v5278_v54, %v14326_v61  ;;  %v5189_v49 = vadd.f32 %v12860_v45, %v5139_v11  ;;  %v13062_v54 = vld [vmem:[#allocation2 + $0x21] sm:$0xff]  ;;  %v13064_v11 = vld [vmem:[#allocation2 + $0x31] sm:$0xff] }
 0x7b6   :  { %7836 = vmatmul.msk.bf16.gmra.mxu2 %vm74_vm0, %v5960_v43  ;;  %v8007_v61 = vld [vmem:[%s14204_s16 + $0x30] sm:$0xff]  ;;  %v13081_v47 = vpack.i.bf16 %v13064_v11, %v13062_v54 }
 0x7b7   :  { %v5310_v48 = vmax.f32 %v5294_v18, 0.0  ;;  %v5238_v55 = vadd.f32 %v5237_v60, %v5189_v49  ;;  %v8015_v18 = vld [vmem:[%s14204_s16 + $0x70] sm:$0xff]  ;;  %v13077_v49 = vpack.i.bf16 %v13060_v3, %v5344_v0  ;;  %6145 = vmatpush.bf16.msrb.mxu0 %v8007_v61  ;;  %v13147_v61 = vld [vmem:[#allocation2 + $0x81] sm:$0xff] }
 0x7b8   :  { %v13033_v25 = vld [vmem:[#allocation2 + $0x102] sm:$0xff]  ;;  %6194 = vmatpush.bf16.msrb.mxu1 %v8015_v18  ;;  %v5447_v18 = vld [vmem:[#allocation2 + $0x91] sm:$0xff] }
 0x7b9   :  { %5326 = vst.msk [vmem:[#allocation2 + $0x111] sm:$0xff] %vm74_vm0, %v5310_v48  ;;  %v5259_v45 = vmul.f32 %v12766_v63, %v5238_v55  ;;  %v9555_v2 = vpack.i.bf16 %v13033_v25, %v13009_v59  ;;  %v5358_v32 = vld [vmem:[#allocation2 + $0x101] sm:$0xff]  ;;  %v13096_v48 = vpack.i.bf16 %v12949_v19, %v12947_v20  ;;  %v13100_v55 = vpack.i.bf16 %v13090_v10, %v13092_v28 }
 0x7ba   :  { %v13112_v9 = vld [vmem:[#allocation2 + $0x100] sm:$0xff] }
 0x7bb   :  { %v5279_v8 = vadd.f32 %v12773_v13, %v5259_v45  ;;  %v5463_v13 = vld [vmem:[#allocation2 + $0x92] sm:$0xff]  ;;  %v9475_v45 = vpack.i.bf16 %v12811_v31, %v13090_v10 }
 0x7bc   :  { %9436 = vrot.lane.b32.xlu0 %v13037_v26, %s9850_s3  ;;  %v5963_v15 = vpack.c.bf16 %v5463_v13, %v13053_v14 }
 0x7bd   :  { %v5295_v42 = vadd.f32 %v5279_v8, %v14328_v16  ;;  %v5966_v8 = vpack.c.bf16 %v12974_v17, %v12961_v51  ;;  %v13114_v16 = vld [vmem:[#allocation2 + $0xf0] sm:$0xff] }
 0x7be   :  { %v9455_v31 = vpack.i.bf16 %v13112_v9, %v13114_v16  ;;  %v5455_v17 = vld [vmem:[#allocation2 + $0x131] sm:$0xff] }
 0x7bf   :  { %v5311_v50 = vmax.f32 %v5295_v42, 0.0  ;;  %v13117_v42 = vpack.i.bf16 %v12947_v20, %v5361_v39  ;;  %v13132_v20 = vpop.permute.xlu0 %9346  ;;  %v13136_v39 = vpack.i.bf16 %v12854_v62, %v12949_v19 }
 0x7c0   :  { %v13046_v41 = vld [vmem:[#allocation2 + $0x112] sm:$0xff] }
 0x7c1   :  { %v5359_v44 = vld [vmem:[#allocation2 + $0x111] sm:$0xff]  ;;  %5327 = vst.msk [vmem:[#allocation2 + $0x121] sm:$0xff] %vm74_vm0, %v5311_v50  ;;  %v9425_v63 = vpack.i.bf16 %v13046_v41, %v13033_v25  ;;  %v8006_v50 = vld [vmem:[%s14204_s16 + $0x28] sm:$0xff] }
 0x7c2   :  { %v13051_v38 = vpack.i.bf16 %v5359_v44, %v5358_v32  ;;  %v13066_v43 = vld [vmem:[#allocation2 + $0x110] sm:$0xff]  ;;  %v8014_v32 = vld [vmem:[%s14204_s16 + $0x68] sm:$0xff]  ;;  %6146 = vmatpush.bf16.msrb.mxu0 %v8006_v50  ;;  %v9485_v50 = vpack.i.bf16 %v12875_v52, %v12813_v1 }
 0x7c3   :  { %9426 = vrot.lane.b32.xlu1 %v9425_v63, %s9850_s3  ;;  %6195 = vmatpush.bf16.msrb.mxu1 %v8014_v32  ;;  %v5969_v63 = vpack.c.bf16 %v13009_v59, %v12996_v40  ;;  %v9560_v59 = vpack.i.bf16 %v13066_v43, %v13112_v9 }
 0x7c4   :  { %9421 = vrot.lane.b32.xlu2 %v13051_v38, %s9851_s0 }
 0x7c6   :  { %7837 = vmatmul.msk.bf16.gmra.mxu2 %vm74_vm0, %v5963_v15 }
 0x7c8   :  { %v13068_v21 = vld [vmem:[#allocation2 + $0x120] sm:$0xff] }
 0x7c9   :  { %v9460_v60 = vpack.i.bf16 %v13068_v21, %v13066_v43 }
 0x7cb   :  { %9431 = vrot.lane.b32.xlu1 %v13077_v49, %s9851_s0  ;;  %9461 = vrot.lane.b32.xlu0 %v9460_v60, %s9849_s29 }
 0x7cc   :  { %9441 = vrot.lane.b32.xlu2 %v13081_v47, %s9851_s0 }
 0x7cd   :  { %v9357_v44 = vpop.permute.xlu2 %9356 }
 0x7ce   :  { %v9359_v62 = vunpack.i.h.bf16 %v9357_v44  ;;  %v9358_v19 = vunpack.i.l.bf16 %v9357_v44 }
 0x7d3   :  { %9446 = vrot.lane.b32.xlu1 %v13096_v48, %s9850_s3  ;;  %9476 = vrot.lane.b32.xlu0 %v9475_v45, %s9850_s3 }
 0x7d4   :  { %9451 = vrot.lane.b32.xlu2 %v13100_v55, %s9849_s29 }
 0x7d6   :  { %7838 = vmatmul.msk.bf16.gmra.mxu2 %vm74_vm0, %v5966_v8  ;;  %v8005_v8 = vld [vmem:[%s14204_s16 + $0x20] sm:$0xff] }
 0x7d7   :  { %6147 = vmatpush.bf16.msrb.mxu0 %v8005_v8 }
 0x7db   :  { %9471 = vrot.lane.b32.xlu1 %v13117_v42, %s9851_s0  ;;  %9491 = vrot.lane.b32.xlu0 %v12864_v53, %s9849_s29 }
 0x7dc   :  { %9456 = vrot.lane.b32.xlu2 %v9455_v31, %s9849_s29  ;;  %v8013_v31 = vld [vmem:[%s14204_s16 + $0x60] sm:$0xff] }
 0x7dd   :  { %6196 = vmatpush.bf16.msrb.mxu1 %v8013_v31 }
 0x7e3   :  { %9481 = vrot.lane.b32.xlu1 %v13081_v47, %s9849_s29  ;;  %9506 = vrot.lane.b32.xlu0 %v12906_v22, %s9849_s29 }
 0x7e4   :  { %9466 = vrot.lane.b32.xlu2 %v13136_v39, %s9851_s0 }
 0x7e6   :  { %v9352_v13 = vpop.permute.xlu0 %9351  ;;  %7839 = vmatmul.msk.bf16.gmra.mxu2 %vm74_vm0, %v5969_v63  ;;  %v13164_v63 = vpack.i.bf16 %v5447_v18, %v13147_v61  ;;  %v5972_v18 = vpack.c.bf16 %v13046_v41, %v13033_v25 }
 0x7e7   :  { %v9354_v15 = vunpack.i.h.bf16 %v9352_v13  ;;  %v9353_v0 = vunpack.i.l.bf16 %v9352_v13 }
 0x7e9   :  { %v5861_v60 = vsel %vm74_vm0, %v12875_v52, %v9354_v15  ;;  %v5860_v45 = vsel %vm74_vm0, %v12813_v1, %v9353_v0 }
 0x7ea   :  { %v5876_v32 = vsel %vm1699_vm12, %v5860_v45, %v9358_v19  ;;  %v5877_v44 = vsel %vm1699_vm12, %v5861_v60, %v9359_v62  ;;  %v9510_v19 = vpack.i.bf16 %v13053_v14, %v12902_v6 }
 0x7eb   :  { %9496 = vrot.lane.b32.xlu1 %v9495_v56, %s9851_s0  ;;  %9521 = vrot.lane.b32.xlu0 %v13164_v63, %s9849_s29  ;;  %v9377_v56 = vpop.permute.xlu2 %9376 }
 0x7ec   :  { %9486 = vrot.lane.b32.xlu2 %v9485_v50, %s9850_s3 }
 0x7ed   :  { %v9362_v1 = vpop.permute.xlu1 %9361 }
 0x7ee   :  { %v9364_v13 = vunpack.i.h.bf16 %v9362_v1  ;;  %v9363_v15 = vunpack.i.l.bf16 %v9362_v1  ;;  %v9378_v1 = vunpack.i.l.bf16 %v9377_v56 }
 0x7f0   :  { %v13174_v0 = vsel %vm925_vm10, %v5876_v32, %v9363_v15  ;;  %v13177_v62 = vsel %vm925_vm10, %v5877_v44, %v9364_v13  ;;  %v13192_v32 = vld [vmem:[#allocation2 + $0x90] sm:$0xff]  ;;  %v9379_v44 = vunpack.i.h.bf16 %v9377_v56  ;;  %v8004_v15 = vld [vmem:[%s14204_s16 + $0x18] sm:$0xff] }
 0x7f1   :  { %v5958_v35 = vpack.c.bf16 %v13177_v62, %v13174_v0  ;;  %v8012_v56 = vld [vmem:[%s14204_s16 + $0x58] sm:$0xff]  ;;  %6148 = vmatpush.bf16.msrb.mxu0 %v8004_v15  ;;  %v8003_v15 = vld [vmem:[%s14204_s16 + $0x10] sm:$0xff]  ;;  %v8031_v0 = vld [vmem:[%s14205_s19 + $0x60] sm:$0xff] }
 0x7f2   :  { %6197 = vmatpush.bf16.msrb.mxu1 %v8012_v56 }
 0x7f3   :  { %9511 = vrot.lane.b32.xlu1 %v9510_v19, %s9851_s0  ;;  %9536 = vrot.lane.b32.xlu0 %v12980_v58, %s9849_s29 }
 0x7f4   :  { %9501 = vrot.lane.b32.xlu2 %v9500_v29, %s9850_s3 }
 0x7f5   :  { %v9367_v60 = vpop.permute.xlu1 %9366  ;;  %6149 = vmatpush.bf16.msrb.mxu0 %v8003_v15  ;;  %v8001_v15 = vld [vmem:[%s14204_s16] sm:$0xff] }
 0x7f6   :  { %v9372_v45 = vpop.permute.xlu0 %9371  ;;  %v9369_v6 = vunpack.i.h.bf16 %v9367_v60  ;;  %v9368_v8 = vunpack.i.l.bf16 %v9367_v60  ;;  %7840 = vmatmul.msk.bf16.gmra.mxu2 %vm74_vm0, %v5972_v18  ;;  %v9515_v18 = vpack.i.bf16 %v13192_v32, %v12924_v46  ;;  %v9382_v60 = vpop.permute.xlu2 %9381 }
 0x7f7   :  { %v9374_v31 = vunpack.i.h.bf16 %v9372_v45  ;;  %v9373_v50 = vunpack.i.l.bf16 %v9372_v45  ;;  %v9530_v45 = vpack.i.bf16 %v12992_v5, %v12959_v12 }
 0x7f8   :  { %v5862_v13 = vsel %vm74_vm0, %v12877_v27, %v9368_v8  ;;  %v5863_v58 = vsel %vm74_vm0, %v12922_v36, %v9369_v6  ;;  %v5470_v6 = vld [vmem:[#allocation2 + $0x122] sm:$0xff]  ;;  %v5471_v8 = vld [vmem:[#allocation2 + $0x132] sm:$0xff] }
 0x7f9   :  { %v5879_v19 = vsel %vm1699_vm12, %v5863_v58, %v9374_v31  ;;  %v5878_v29 = vsel %vm1699_vm12, %v5862_v13, %v9373_v50  ;;  %v9384_v31 = vunpack.i.h.bf16 %v9382_v60  ;;  %v9383_v50 = vunpack.i.l.bf16 %v9382_v60  ;;  %v13236_v58 = vld [vmem:[#allocation2 + $0x121] sm:$0xff] }
 0x7fa   :  { %v13209_v27 = vsel %vm925_vm10, %v5878_v29, %v9378_v1  ;;  %v13212_v36 = vsel %vm925_vm10, %v5879_v19, %v9379_v44  ;;  %v5975_v51 = vpack.c.bf16 %v5471_v8, %v5470_v6  ;;  %v8011_v19 = vld [vmem:[%s14204_s16 + $0x50] sm:$0xff]  ;;  %v9570_v25 = vpack.i.bf16 %v5470_v6, %v13046_v41 }
 0x7fb   :  { %9526 = vrot.lane.b32.xlu1 %v9525_v4, %s9851_s0  ;;  %v5961_v46 = vpack.c.bf16 %v13212_v36, %v13209_v27  ;;  %9551 = vrot.lane.b32.xlu0 %v13013_v24, %s9849_s29  ;;  %v5864_v1 = vsel %vm74_vm0, %v5336_v23, %v9383_v50  ;;  %v5865_v13 = vsel %vm74_vm0, %v12957_v34, %v9384_v31 }
 0x7fc   :  { %9516 = vrot.lane.b32.xlu2 %v9515_v18, %s9850_s3  ;;  %v13249_v34 = vpack.i.bf16 %v5455_v17, %v13236_v58  ;;  %6198 = vmatpush.bf16.msrb.mxu1 %v8011_v19 }
 0x7fe   :  { %v9402_v8 = vpop.permute.xlu2 %9401 }
 0x803   :  { %9541 = vrot.lane.b32.xlu1 %v9540_v33, %s9851_s0  ;;  %9566 = vrot.lane.b32.xlu0 %v13051_v38, %s9849_s29  ;;  %v9545_v38 = vpack.i.bf16 %v13114_v16, %v12994_v37 }
 0x804   :  { %9531 = vrot.lane.b32.xlu2 %v9530_v45, %s9850_s3 }
 0x805   :  { %v9387_v4 = vpop.permute.xlu1 %9386 }
 0x806   :  { %v9389_v24 = vunpack.i.h.bf16 %v9387_v4  ;;  %v9388_v44 = vunpack.i.l.bf16 %v9387_v4  ;;  %7841 = vmatmul.msk.bf16.gmra.mxu2 %vm74_vm0, %v5975_v51  ;;  %v5439_v51 = vld [vmem:[#allocation2 + $0x130] sm:$0xff]  ;;  %v9404_v4 = vunpack.i.h.bf16 %v9402_v8 }
 0x808   :  { %v5880_v40 = vsel %vm1699_vm12, %v5864_v1, %v9388_v44  ;;  %v5881_v33 = vsel %vm1699_vm12, %v5865_v13, %v9389_v24  ;;  %v9403_v24 = vunpack.i.l.bf16 %v9402_v8  ;;  %v8002_v44 = vld [vmem:[%s14204_s16 + $0x8] sm:$0xff]  ;;  %v9575_v1 = vpack.i.bf16 %v5439_v51, %v13068_v21  ;;  %v8009_v51 = vld [vmem:[%s14204_s16 + $0x40] sm:$0xff] }
 0x809   :  { %6150 = vmatpush.bf16.msrb.mxu0 %v8002_v44 }
 0x80b   :  { %9556 = vrot.lane.b32.xlu1 %v9555_v2, %s9851_s0  ;;  %9581 = vrot.lane.b32.xlu0 %v13249_v34, %s9849_s29 }
 0x80c   :  { %9546 = vrot.lane.b32.xlu2 %v9545_v38, %s9850_s3 }
 0x80d   :  { %v9392_v29 = vpop.permute.xlu0 %9391  ;;  %6151 = vmatpush.bf16.msrb.mxu0 %v8001_v15 }
 0x80e   :  { %v9394_v18 = vunpack.i.h.bf16 %v9392_v29  ;;  %v9393_v56 = vunpack.i.l.bf16 %v9392_v29 }
 0x810   :  { %v13259_v60 = vsel %vm925_vm10, %v5880_v40, %v9393_v56  ;;  %v13262_v45 = vsel %vm925_vm10, %v5881_v33, %v9394_v18 }
 0x811   :  { %v5964_v2 = vpack.c.bf16 %v13262_v45, %v13259_v60  ;;  %v13645_v60 = vld [vmem:[#allocation2 + $0x112] sm:$0xff]  ;;  %v6458_v45 = vld [vmem:[#allocation2 + $0x122] sm:$0xff] }
 0x813   :  { %9571 = vrot.lane.b32.xlu1 %v9570_v25, %s9851_s0  ;;  %9596 = vrot.lane.b32.xlu0 %v13100_v55, %s9849_s29  ;;  %v8010_v55 = vld [vmem:[%s14204_s16 + $0x48] sm:$0xff] }
 0x814   :  { %9561 = vrot.lane.b32.xlu2 %v9560_v59, %s9850_s3  ;;  %6199 = vmatpush.bf16.msrb.mxu1 %v8010_v55 }
 0x816   :  { %v9397_v31 = vpop.permute.xlu0 %9396 }
 0x817   :  { %v9399_v50 = vunpack.i.h.bf16 %v9397_v31  ;;  %v9398_v23 = vunpack.i.l.bf16 %v9397_v31 }
 0x818   :  { %6200 = vmatpush.bf16.msrb.mxu1 %v8009_v51 }
 0x819   :  { %v5867_v41 = vsel %vm74_vm0, %v12992_v5, %v9399_v50  ;;  %v5866_v6 = vsel %vm74_vm0, %v12959_v12, %v9398_v23  ;;  %v13314_v50 = vld [vmem:[#allocation2 + $0x30] sm:$0xff] }
 0x81a   :  { %v5882_v13 = vsel %vm1699_vm12, %v5866_v6, %v9403_v24  ;;  %v5883_v17 = vsel %vm1699_vm12, %v5867_v41, %v9404_v4  ;;  %v9605_v23 = vpack.i.bf16 %v13314_v50, %v13090_v10 }
 0x81b   :  { %9586 = vrot.lane.b32.xlu1 %v13077_v49, %s9851_s0  ;;  %9611 = vrot.lane.b32.xlu0 %v13081_v47, %s9849_s29 }
 0x81c   :  { %9576 = vrot.lane.b32.xlu2 %v9575_v1, %s9850_s3  ;;  %v13334_v1 = vld [vmem:[#allocation2 + $0x51] sm:$0xff] }
 0x81d   :  { %v9407_v12 = vpop.permute.xlu1 %9406 }
 0x81e   :  { %v9422_v5 = vpop.permute.xlu2 %9421  ;;  %v9409_v21 = vunpack.i.h.bf16 %v9407_v12  ;;  %v9408_v40 = vunpack.i.l.bf16 %v9407_v12  ;;  %v13344_v12 = vld [vmem:[#allocation2 + $0x41] sm:$0xff] }
 0x81f   :  { %v9423_v4 = vunpack.i.l.bf16 %v9422_v5 }
 0x820   :  { %v13292_v33 = vsel %vm925_vm10, %v5882_v13, %v9408_v40  ;;  %v13295_v38 = vsel %vm925_vm10, %v5883_v17, %v9409_v21  ;;  %v9645_v21 = vpack.i.bf16 %v13334_v1, %v13344_v12 }
 0x821   :  { %v5967_v49 = vpack.c.bf16 %v13295_v38, %v13292_v33 }
 0x823   :  { %9601 = vrot.lane.b32.xlu1 %v13117_v42, %s9851_s0  ;;  %9616 = vrot.lane.b32.xlu0 %v12820_v7, %s9849_s29 }
 0x824   :  { %9591 = vrot.lane.b32.xlu2 %v13037_v26, %s9850_s3 }
 0x825   :  { %v9412_v19 = vpop.permute.xlu1 %9411 }
 0x826   :  { %v9417_v29 = vpop.permute.xlu0 %9416  ;;  %v9414_v18 = vunpack.i.h.bf16 %v9412_v19  ;;  %v9413_v56 = vunpack.i.l.bf16 %v9412_v19  ;;  %v13308_v8 = vpop.permute.xlu2 %9441  ;;  %v13368_v19 = vld [vmem:[#allocation2] sm:$0xff] }
 0x827   :  { %v9419_v59 = vunpack.i.h.bf16 %v9417_v29  ;;  %v9418_v25 = vunpack.i.l.bf16 %v9417_v29 }
 0x828   :  { %v5868_v31 = vsel %vm74_vm0, %v12994_v37, %v9413_v56  ;;  %v5869_v26 = vsel %vm74_vm0, %v13114_v16, %v9414_v18  ;;  %v9424_v16 = vunpack.i.h.bf16 %v9422_v5 }
 0x829   :  { %v5885_v42 = vsel %vm1699_vm12, %v5869_v26, %v9419_v59  ;;  %v5884_v7 = vsel %vm1699_vm12, %v5868_v31, %v9418_v25  ;;  %v6400_v31 = vld [vmem:[#allocation2 + $0x52] sm:$0xff]  ;;  %v13372_v26 = vld [vmem:[#allocation2 + $0x62] sm:$0xff] }
 0x82a   :  { %v5871_v55 = vsel %vm74_vm0, %v13066_v43, %v9424_v16  ;;  %v8034_v43 = vld [vmem:[%s14205_s19 + $0x78] sm:$0xff] }
 0x82b   :  { %9621 = vrot.lane.b32.xlu1 %v13081_v47, %s9851_s0  ;;  %9641 = vrot.lane.b32.xlu0 %v12864_v53, %s9849_s29  ;;  %v5870_v53 = vsel %vm74_vm0, %v13112_v9, %v9423_v4  ;;  %v8036_v9 = vld [vmem:[%s14205_s19 + $0x88] sm:$0xff] }
 0x82c   :  { %9606 = vrot.lane.b32.xlu2 %v9605_v23, %s9850_s3  ;;  %7228 = vmatpush.bf16.msra.mxu0 %v8034_v43 }
 0x82d   :  { %7283 = vmatpush.bf16.msra.mxu1 %v8036_v9 }
 0x82e   :  { %v9452_v37 = vpop.permute.xlu2 %9451  ;;  %v9437_v41 = vpop.permute.xlu0 %9436 }
 0x82f   :  { %v9454_v16 = vunpack.i.h.bf16 %v9452_v37  ;;  %v9453_v4 = vunpack.i.l.bf16 %v9452_v37 }
 0x833   :  { %9626 = vrot.lane.b32.xlu1 %v13136_v39, %s9851_s0  ;;  %9656 = vrot.lane.b32.xlu0 %v12885_v57, %s9849_s29  ;;  %v13342_v57 = vld [vmem:[#allocation2 + $0x40] sm:$0xff] }
 0x834   :  { %9631 = vrot.lane.b32.xlu2 %v13096_v48, %s9850_s3  ;;  %v9635_v5 = vpack.i.bf16 %v12875_v52, %v13342_v57 }
 0x835   :  { %v9427_v24 = vpop.permute.xlu1 %9426 }
 0x836   :  { %v9429_v6 = vunpack.i.h.bf16 %v9427_v24  ;;  %v9428_v47 = vunpack.i.l.bf16 %v9427_v24  ;;  %v9457_v44 = vpop.permute.xlu2 %9456 }
 0x837   :  { %v9459_v48 = vunpack.i.h.bf16 %v9457_v44  ;;  %v9458_v13 = vunpack.i.l.bf16 %v9457_v44 }
 0x838   :  { %v5886_v39 = vsel %vm1699_vm12, %v5870_v53, %v9428_v47  ;;  %v5887_v17 = vsel %vm1699_vm12, %v5871_v55, %v9429_v6  ;;  %v6399_v6 = vld [vmem:[#allocation2 + $0x42] sm:$0xff]  ;;  %v9660_v55 = vpack.i.bf16 %v13372_v26, %v6400_v31 }
 0x839   :  { %v13357_v40 = vsel %vm925_vm10, %v5884_v7, %v9458_v13  ;;  %v13360_v15 = vsel %vm925_vm10, %v5885_v42, %v9459_v48  ;;  %v9439_v42 = vunpack.i.h.bf16 %v9437_v41  ;;  %v9438_v7 = vunpack.i.l.bf16 %v9437_v41  ;;  %v8026_v41 = vld [vmem:[%s14205_s19 + $0x38] sm:$0xff] }
 0x83a   :  { %v5970_v52 = vpack.c.bf16 %v13360_v15, %v13357_v40  ;;  %v9650_v53 = vpack.i.bf16 %v6400_v31, %v6399_v6  ;;  %7179 = vmatpush.bf16.msra.mxu3 %v8026_v41  ;;  %v13408_v31 = vld [vmem:[#allocation2 + $0x61] sm:$0xff]  ;;  %v9349_v6 = vunpack.i.h.bf16 %v13132_v20 }
 0x83b   :  { %9646 = vrot.lane.b32.xlu1 %v9645_v21, %s9851_s0  ;;  %9671 = vrot.lane.b32.xlu0 %v12906_v22, %s9849_s29 }
 0x83c   :  { %9636 = vrot.lane.b32.xlu2 %v9635_v5, %s9850_s3 }
 0x83d   :  { %v9432_v29 = vpop.permute.xlu1 %9431  ;;  %v9462_v25 = vpop.permute.xlu0 %9461 }
 0x83e   :  { %v9434_v18 = vunpack.i.h.bf16 %v9432_v29  ;;  %v9433_v56 = vunpack.i.l.bf16 %v9432_v29  ;;  %v13370_v59 = vpop.permute.xlu2 %9466  ;;  %v9464_v23 = vunpack.i.h.bf16 %v9462_v25  ;;  %v9463_v51 = vunpack.i.l.bf16 %v9462_v25  ;;  %v13400_v29 = vld [vmem:[#allocation2 + $0x70] sm:$0xff]  ;;  %v13406_v25 = vld [vmem:[#allocation2 + $0x60] sm:$0xff] }
 0x840   :  { %v5857_v22 = vsel %vm74_vm0, %v13092_v28, %v9434_v18  ;;  %v5856_v24 = vsel %vm74_vm0, %v13368_v19, %v9433_v56  ;;  %v13387_v28 = vsel %vm925_vm10, %v5886_v39, %v9463_v51  ;;  %v13390_v13 = vsel %vm925_vm10, %v5887_v17, %v9464_v23  ;;  %v13402_v17 = vld [vmem:[#allocation2 + $0x71] sm:$0xff] }
 0x841   :  { %v5873_v47 = vsel %vm1699_vm12, %v5857_v22, %v9439_v42  ;;  %v5872_v44 = vsel %vm1699_vm12, %v5856_v24, %v9438_v7  ;;  %v9444_v18 = vunpack.i.h.bf16 %v13308_v8  ;;  %v9443_v56 = vunpack.i.l.bf16 %v13308_v8 }
 0x842   :  { %v5888_v37 = vsel %vm925_vm10, %v5872_v44, %v9453_v4  ;;  %v5889_v48 = vsel %vm925_vm10, %v5873_v47, %v9454_v16  ;;  %v9665_v23 = vpack.i.bf16 %v13400_v29, %v13406_v25  ;;  %v9675_v51 = vpack.i.bf16 %v13402_v17, %v13408_v31 }
 0x843   :  { %v5952_v5 = vpack.c.bf16 %v5889_v48, %v5888_v37  ;;  %9661 = vrot.lane.b32.xlu1 %v9660_v55, %s9851_s0  ;;  %9686 = vrot.lane.b32.xlu0 %v12930_v30, %s9849_s29  ;;  %v8033_v30 = vld [vmem:[%s14205_s19 + $0x70] sm:$0xff]  ;;  %v5859_v8 = vsel %vm74_vm0, %v13314_v50, %v9444_v18  ;;  %v5858_v16 = vsel %vm74_vm0, %v13090_v10, %v9443_v56  ;;  %v9348_v47 = vunpack.i.l.bf16 %v13132_v20  ;;  %v13433_v55 = vld [vmem:[#allocation2 + $0xc0] sm:$0xff] }
 0x844   :  { %9651 = vrot.lane.b32.xlu2 %v9650_v53, %s9850_s3  ;;  %7229 = vmatpush.bf16.msra.mxu0 %v8033_v30  ;;  %v6402_v50 = vld [vmem:[#allocation2 + $0x72] sm:$0xff] }
 0x845   :  { %v9447_v43 = vpop.permute.xlu1 %9446  ;;  %6152 = vmatmul.bf16.vlgmr.msrb.gmra.mxu0 %v5952_v5  ;;  %v9477_v39 = vpop.permute.xlu0 %9476  ;;  %v8025_v48 = vld [vmem:[%s14205_s19 + $0x30] sm:$0xff]  ;;  %v9680_v5 = vpack.i.bf16 %v6402_v50, %v13372_v26  ;;  %v9690_v20 = vpack.i.bf16 %v13053_v14, %v6402_v50  ;;  %v8032_v50 = vld [vmem:[%s14205_s19 + $0x68] sm:$0xff] }
 0x846   :  { %v13398_v9 = vpop.permute.xlu2 %9486  ;;  %v9449_v42 = vunpack.i.h.bf16 %v9447_v43  ;;  %v9448_v7 = vunpack.i.l.bf16 %v9447_v43  ;;  %v13442_v43 = vld [vmem:[#allocation2 + $0xb0] sm:$0xff]  ;;  %7180 = vmatpush.bf16.msra.mxu3 %v8025_v48  ;;  %v9479_v14 = vunpack.i.h.bf16 %v9477_v39  ;;  %v9478_v26 = vunpack.i.l.bf16 %v9477_v39 }
 0x847   :  { %v9715_v18 = vpack.i.bf16 %v13433_v55, %v13442_v43 }
 0x848   :  { %v5874_v4 = vsel %vm1699_vm12, %v5858_v16, %v9448_v7  ;;  %v5875_v22 = vsel %vm1699_vm12, %v5859_v8, %v9449_v42  ;;  %7230 = vmatpush.bf16.msra.mxu0 %v8032_v50 }
 0x849   :  { %v5891_v37 = vsel %vm925_vm10, %v5875_v22, %v9349_v6  ;;  %v6387_v22 = vld [vmem:[#allocation2 + $0xa1] sm:$0xff]  ;;  %v13461_v6 = vld [vmem:[#allocation2 + $0xd1] sm:$0xff] }
 0x84b   :  { %9676 = vrot.lane.b32.xlu1 %v9675_v51, %s9851_s0  ;;  %9701 = vrot.lane.b32.xlu0 %v13164_v63, %s9849_s29  ;;  %v5890_v63 = vsel %vm925_vm10, %v5874_v4, %v9348_v47  ;;  %v6465_v4 = vld [vmem:[#allocation2 + $0x80] sm:$0xff] }
 0x84c   :  { %9666 = vrot.lane.b32.xlu2 %v9665_v23, %s9850_s3  ;;  %v5955_v56 = vpack.c.bf16 %v5891_v37, %v5890_v63  ;;  %v13470_v37 = vld [vmem:[#allocation2 + $0xc1] sm:$0xff]  ;;  %7231 = vmatpush.bf16.msra.mxu0 %v8031_v0 }
 0x84d   :  { %v9472_v24 = vpop.permute.xlu1 %9471  ;;  %v13431_v53 = vpop.permute.xlu0 %9491  ;;  %v9730_v48 = vpack.i.bf16 %v13461_v6, %v13470_v37 }
 0x84e   :  { %v13429_v44 = vpop.permute.xlu2 %9501  ;;  %v9474_v10 = vunpack.i.h.bf16 %v9472_v24  ;;  %v9473_v41 = vunpack.i.l.bf16 %v9472_v24  ;;  %v13457_v24 = vld [vmem:[#allocation2 + $0xb1] sm:$0xff] }
 0x84f   :  { %v9705_v63 = vpack.i.bf16 %v13457_v24, %v6387_v22  ;;  %v8023_v22 = vld [vmem:[%s14205_s19 + $0x20] sm:$0xff] }
 0x850   :  { %v5905_v30 = vsel %vm74_vm0, %v13062_v54, %v9474_v10  ;;  %v5904_v42 = vsel %vm74_vm0, %v13060_v3, %v9473_v41  ;;  %v9695_v41 = vpack.i.bf16 %v13192_v32, %v6465_v4  ;;  %v13491_v4 = vld [vmem:[#allocation2 + $0xd0] sm:$0xff] }
 0x851   :  { %v5920_v54 = vsel %vm1699_vm12, %v5904_v42, %v9478_v26  ;;  %v5921_v3 = vsel %vm1699_vm12, %v5905_v30, %v9479_v14  ;;  %v13481_v30 = vld [vmem:[#allocation2 + $0xc2] sm:$0xff]  ;;  %v9469_v26 = vunpack.i.h.bf16 %v13370_v59  ;;  %v9725_v62 = vpack.i.bf16 %v13491_v4, %v13433_v55 }
 0x852   :  { %v8024_v42 = vld [vmem:[%s14205_s19 + $0x28] sm:$0xff]  ;;  %v13486_v14 = vld [vmem:[#allocation2 + $0xe0] sm:$0xff] }
 0x853   :  { %9691 = vrot.lane.b32.xlu1 %v9690_v20, %s9851_s0  ;;  %9716 = vrot.lane.b32.xlu0 %v9715_v18, %s9849_s29  ;;  %v6403_v20 = vld [vmem:[#allocation2 + $0xa2] sm:$0xff]  ;;  %v5907_v50 = vsel %vm74_vm0, %v13344_v12, %v9469_v26 }
 0x854   :  { %9681 = vrot.lane.b32.xlu2 %v9680_v5, %s9850_s3  ;;  %7181 = vmatpush.bf16.msra.mxu3 %v8024_v42  ;;  %v13523_v42 = vld [vmem:[#allocation2 + $0xf1] sm:$0xff] }
 0x855   :  { %v9482_v7 = vpop.permute.xlu1 %9481  ;;  %6157 = vmatmul.bf16.gmra.mxu0 %v5955_v56  ;;  %v13455_v16 = vpop.permute.xlu0 %9506  ;;  %v6404_v56 = vld [vmem:[#allocation2 + $0xb2] sm:$0xff] }
 0x856   :  { %v9484_v23 = vunpack.i.h.bf16 %v9482_v7  ;;  %v9483_v51 = vunpack.i.l.bf16 %v9482_v7  ;;  %v13453_v8 = vpop.permute.xlu2 %9516  ;;  %v9468_v7 = vunpack.i.l.bf16 %v13370_v59  ;;  %v9493_v59 = vunpack.i.l.bf16 %v13431_v53 }
 0x858   :  { %v5936_v39 = vsel %vm925_vm10, %v5920_v54, %v9483_v51  ;;  %v5937_v47 = vsel %vm925_vm10, %v5921_v3, %v9484_v23  ;;  %v9710_v23 = vpack.i.bf16 %v6404_v56, %v6403_v20  ;;  %v9720_v51 = vpack.i.bf16 %v13481_v30, %v6404_v56  ;;  %7182 = vmatpush.bf16.msra.mxu3 %v8023_v22  ;;  %v8022_v56 = vld [vmem:[%s14205_s19 + $0x18] sm:$0xff] }
 0x859   :  { %v5953_v10 = vpack.c.bf16 %v5937_v47, %v5936_v39  ;;  %v9489_v54 = vunpack.i.h.bf16 %v13398_v9  ;;  %v9488_v3 = vunpack.i.l.bf16 %v13398_v9  ;;  %v9745_v39 = vpack.i.bf16 %v13486_v14, %v13491_v4 }
 0x85a   :  { %v9494_v47 = vunpack.i.h.bf16 %v13431_v53  ;;  %v5906_v9 = vsel %vm74_vm0, %v13064_v11, %v9468_v7  ;;  %v8021_v7 = vld [vmem:[%s14205_s19 + $0x10] sm:$0xff] }
 0x85b   :  { %9706 = vrot.lane.b32.xlu1 %v9705_v63, %s9851_s0  ;;  %9731 = vrot.lane.b32.xlu0 %v9730_v48, %s9849_s29  ;;  %v5922_v53 = vsel %vm1699_vm12, %v5906_v9, %v9488_v3  ;;  %v13551_v9 = vld [vmem:[#allocation2 + $0x100] sm:$0xff] }
 0x85c   :  { %9696 = vrot.lane.b32.xlu2 %v9695_v41, %s9850_s3  ;;  %6201 = vmatmul.bf16.vlgmr.msrb.gmra.mxu1 %v5953_v10  ;;  %v5923_v41 = vsel %vm1699_vm12, %v5907_v50, %v9489_v54  ;;  %v5938_v11 = vsel %vm925_vm10, %v5922_v53, %v9493_v59  ;;  %v6454_v59 = vld [vmem:[#allocation2 + $0xe2] sm:$0xff] }
 0x85d   :  { %v9497_v5 = vpop.permute.xlu1 %9496  ;;  %v13479_v32 = vpop.permute.xlu0 %9521  ;;  %v5939_v26 = vsel %vm925_vm10, %v5923_v41, %v9494_v47  ;;  %7183 = vmatpush.bf16.msra.mxu3 %v8022_v56  ;;  %v6406_v47 = vld [vmem:[#allocation2 + $0xd2] sm:$0xff]  ;;  %v8020_v50 = vld [vmem:[%s14205_s19 + $0x8] sm:$0xff] }
 0x85e   :  { %v13477_v18 = vpop.permute.xlu2 %9531  ;;  %v9499_v22 = vunpack.i.h.bf16 %v9497_v5  ;;  %v9498_v55 = vunpack.i.l.bf16 %v9497_v5  ;;  %v9740_v53 = vpack.i.bf16 %v6406_v47, %v13481_v30  ;;  %v9750_v41 = vpack.i.bf16 %v6454_v59, %v6406_v47  ;;  %v13558_v56 = vld [vmem:[#allocation2 + $0xf0] sm:$0xff] }
 0x85f   :  { %v9775_v0 = vpack.i.bf16 %v13551_v9, %v13558_v56 }
 0x860   :  { %v5908_v5 = vsel %vm74_vm0, %v13334_v1, %v9498_v55 }
 0x861   :  { %7184 = vmatpush.bf16.msra.mxu3 %v8021_v7 }
 0x863   :  { %9721 = vrot.lane.b32.xlu1 %v9720_v51, %s9851_s0  ;;  %9746 = vrot.lane.b32.xlu0 %v9745_v39, %s9849_s29  ;;  %v5956_v51 = vpack.c.bf16 %v5939_v26, %v5938_v11  ;;  %v9504_v11 = vunpack.i.h.bf16 %v13429_v44  ;;  %v9503_v26 = vunpack.i.l.bf16 %v13429_v44  ;;  %v9508_v44 = vunpack.i.l.bf16 %v13455_v16 }
 0x864   :  { %9711 = vrot.lane.b32.xlu2 %v9710_v23, %s9850_s3 }
 0x865   :  { %v13509_v10 = vpop.permute.xlu1 %9511  ;;  %6162 = vmatmul.bf16.gmra.mxu0 %v5958_v35  ;;  %v13518_v20 = vpop.permute.xlu0 %9536  ;;  %v13532_v35 = vld [vmem:[#allocation2 + $0xe1] sm:$0xff]  ;;  %7185 = vmatpush.bf16.msra.mxu3 %v8020_v50  ;;  %v5924_v30 = vsel %vm1699_vm12, %v5908_v5, %v9503_v26  ;;  %v13583_v50 = vld [vmem:[#allocation2 + $0x111] sm:$0xff] }
 0x866   :  { %v13516_v63 = vpop.permute.xlu2 %9546  ;;  %v9760_v23 = vpack.i.bf16 %v13523_v42, %v13532_v35  ;;  %v5940_v5 = vsel %vm925_vm10, %v5924_v30, %v9508_v44  ;;  %v6456_v30 = vld [vmem:[#allocation2 + $0x102] sm:$0xff] }
 0x86b   :  { %9736 = vrot.lane.b32.xlu1 %v9730_v48, %s9851_s0  ;;  %9761 = vrot.lane.b32.xlu0 %v9760_v23, %s9849_s29  ;;  %v5909_v48 = vsel %vm74_vm0, %v13408_v31, %v9499_v22 }
 0x86c   :  { %9726 = vrot.lane.b32.xlu2 %v9725_v62, %s9850_s3  ;;  %6206 = vmatmul.bf16.gmra.mxu1 %v5956_v51  ;;  %v8019_v62 = vld [vmem:[%s14205_s19] sm:$0xff]  ;;  %v5925_v7 = vsel %vm1699_vm12, %v5909_v48, %v9504_v11  ;;  %v9509_v51 = vunpack.i.h.bf16 %v13455_v16  ;;  %v9755_v16 = vpack.i.bf16 %v13558_v56, %v13486_v14  ;;  %v9514_v14 = vunpack.i.h.bf16 %v13509_v10 }
 0x86d   :  { %v13542_v54 = vpop.permute.xlu1 %9526  ;;  %v13546_v39 = vpop.permute.xlu0 %9551  ;;  %7186 = vmatpush.bf16.msra.mxu3 %v8019_v62  ;;  %v9513_v11 = vunpack.i.l.bf16 %v13509_v10  ;;  %v6408_v62 = vld [vmem:[#allocation2 + $0xf2] sm:$0xff] }
 0x86e   :  { %v13544_v3 = vpop.permute.xlu2 %9561  ;;  %v5941_v48 = vsel %vm925_vm10, %v5925_v7, %v9509_v51  ;;  %v13608_v7 = vld [vmem:[#allocation2 + $0x120] sm:$0xff]  ;;  %v5911_v51 = vsel %vm74_vm0, %v13147_v61, %v9514_v14  ;;  %v13614_v10 = vld [vmem:[#allocation2 + $0x110] sm:$0xff]  ;;  %v9523_v14 = vunpack.i.l.bf16 %v13479_v32 }
 0x86f   :  { %v5959_v36 = vpack.c.bf16 %v5941_v48, %v5940_v5  ;;  %v5910_v44 = vsel %vm74_vm0, %v13402_v17, %v9513_v11  ;;  %v9770_v5 = vpack.i.bf16 %v6408_v62, %v6454_v59  ;;  %v9780_v48 = vpack.i.bf16 %v6456_v30, %v6408_v62 }
 0x873   :  { %9751 = vrot.lane.b32.xlu1 %v9750_v41, %s9851_s0  ;;  %9776 = vrot.lane.b32.xlu0 %v9775_v0, %s9849_s29  ;;  %v8035_v41 = vld [vmem:[%s14205_s19 + $0x80] sm:$0xff] }
 0x874   :  { %9741 = vrot.lane.b32.xlu2 %v9740_v53, %s9850_s3  ;;  %v13589_v53 = vld [vmem:[#allocation2 + $0x101] sm:$0xff]  ;;  %7284 = vmatpush.bf16.msra.mxu1 %v8035_v41  ;;  %v9524_v41 = vunpack.i.h.bf16 %v13479_v32  ;;  %v9785_v32 = vpack.i.bf16 %v13614_v10, %v13551_v9 }
 0x875   :  { %v13574_v22 = vpop.permute.xlu1 %9541  ;;  %6167 = vmatmul.bf16.gmra.mxu0 %v5961_v46  ;;  %v13581_v47 = vpop.permute.xlu0 %9566  ;;  %v9790_v27 = vpack.i.bf16 %v13583_v50, %v13589_v53  ;;  %v8030_v46 = vld [vmem:[%s14205_s19 + $0x58] sm:$0xff] }
 0x876   :  { %v13579_v55 = vpop.permute.xlu2 %9576  ;;  %7232 = vmatpush.bf16.msra.mxu0 %v8030_v46  ;;  %v9805_v46 = vpack.i.bf16 %v13608_v7, %v13614_v10  ;;  %v9544_v33 = vunpack.i.h.bf16 %v13574_v22  ;;  %v9543_v38 = vunpack.i.l.bf16 %v13574_v22 }
 0x878   :  { %v5914_v22 = vsel %vm74_vm0, %v13461_v6, %v9543_v38 }
 0x87b   :  { %9766 = vrot.lane.b32.xlu1 %v9760_v23, %s9851_s0  ;;  %9791 = vrot.lane.b32.xlu0 %v9790_v27, %s9849_s29 }
 0x87c   :  { %9756 = vrot.lane.b32.xlu2 %v9755_v16, %s9850_s3  ;;  %6211 = vmatmul.bf16.gmra.mxu1 %v5959_v36  ;;  %v9519_v16 = vunpack.i.h.bf16 %v13453_v8  ;;  %v9518_v36 = vunpack.i.l.bf16 %v13453_v8 }
 0x87d   :  { %v13604_v26 = vpop.permute.xlu1 %9556  ;;  %v13606_v0 = vpop.permute.xlu0 %9581 }
 0x87e   :  { %v9592_v23 = vpop.permute.xlu2 %9591  ;;  %v5926_v61 = vsel %vm1699_vm12, %v5910_v44, %v9518_v36  ;;  %v5927_v59 = vsel %vm1699_vm12, %v5911_v51, %v9519_v16  ;;  %v8029_v51 = vld [vmem:[%s14205_s19 + $0x50] sm:$0xff]  ;;  %v9528_v16 = vunpack.i.l.bf16 %v13542_v54 }
 0x87f   :  { %7233 = vmatpush.bf16.msra.mxu0 %v8029_v51 }
 0x883   :  { %9781 = vrot.lane.b32.xlu1 %v9780_v48, %s9851_s0  ;;  %9806 = vrot.lane.b32.xlu0 %v9805_v46, %s9849_s29  ;;  %v5943_v48 = vsel %vm925_vm10, %v5927_v59, %v9524_v41  ;;  %v9594_v41 = vunpack.i.h.bf16 %v9592_v23 }
 0x884   :  { %9771 = vrot.lane.b32.xlu2 %v9770_v5, %s9850_s3  ;;  %v5942_v5 = vsel %vm925_vm10, %v5926_v61, %v9523_v14  ;;  %v9593_v14 = vunpack.i.l.bf16 %v9592_v23 }
 0x885   :  { %6172 = vmatmul.bf16.gmra.mxu0 %v5964_v2  ;;  %v13630_v8 = vpop.permute.xlu1 %9571  ;;  %v9597_v62 = vpop.permute.xlu0 %9596  ;;  %v5962_v44 = vpack.c.bf16 %v5943_v48, %v5942_v5  ;;  %v9529_v2 = vunpack.i.h.bf16 %v13542_v54  ;;  %v9800_v5 = vpack.i.bf16 %v13645_v60, %v6456_v30  ;;  %v9534_v30 = vunpack.i.h.bf16 %v13477_v18 }
 0x886   :  { %v13632_v11 = vpop.permute.xlu2 %9606  ;;  %v9599_v48 = vunpack.i.h.bf16 %v9597_v62  ;;  %v9598_v51 = vunpack.i.l.bf16 %v9597_v62 }
 0x88b   :  { %9796 = vrot.lane.b32.xlu1 %v9790_v27, %s9851_s0  ;;  %9821 = vrot.lane.b32.xlu0 %v13249_v34, %s9849_s29  ;;  %v6364_v27 = vld [vmem:[#allocation2 + $0x10] sm:$0xff]  ;;  %v9810_v34 = vpack.i.bf16 %v6458_v45, %v13645_v60  ;;  %v9533_v45 = vunpack.i.l.bf16 %v13477_v18 }
 0x88c   :  { %9786 = vrot.lane.b32.xlu2 %v9785_v32, %s9850_s3  ;;  %6216 = vmatmul.bf16.gmra.mxu1 %v5962_v44  ;;  %v5913_v44 = vsel %vm74_vm0, %v13470_v37, %v9529_v2 }
 0x88d   :  { %v9587_v36 = vpop.permute.xlu1 %9586  ;;  %v13649_v59 = vpop.permute.xlu0 %9611  ;;  %v5929_v2 = vsel %vm1699_vm12, %v5913_v44, %v9534_v30 }
 0x88e   :  { %v9632_v46 = vpop.permute.xlu2 %9631  ;;  %v9589_v9 = vunpack.i.h.bf16 %v9587_v36  ;;  %v9588_v61 = vunpack.i.l.bf16 %v9587_v36  ;;  %v5912_v36 = vsel %vm74_vm0, %v13457_v24, %v9528_v16  ;;  %v9539_v16 = vunpack.i.h.bf16 %v13518_v20 }
 0x88f   :  { %v9633_v30 = vunpack.i.l.bf16 %v9632_v46 }
 0x890   :  { %v6892_v32 = vsel %vm74_vm0, %v6364_v27, %v9589_v9  ;;  %v6891_v54 = vsel %vm74_vm0, %v13368_v19, %v9588_v61  ;;  %v5928_v19 = vsel %vm1699_vm12, %v5912_v36, %v9533_v45  ;;  %v9538_v61 = vunpack.i.l.bf16 %v13518_v20  ;;  %v6365_v45 = vld [vmem:[#allocation2 + $0x20] sm:$0xff] }
 0x891   :  { %v6908_v23 = vsel %vm1699_vm12, %v6892_v32, %v9594_v41  ;;  %v6907_v21 = vsel %vm1699_vm12, %v6891_v54, %v9593_v14  ;;  %v6474_v14 = vld [vmem:[#allocation2 + $0x130] sm:$0xff] }
 0x892   :  { %v6923_v62 = vsel %vm925_vm10, %v6907_v21, %v9598_v51  ;;  %v6924_v9 = vsel %vm925_vm10, %v6908_v23, %v9599_v48  ;;  %v8028_v48 = vld [vmem:[%s14205_s19 + $0x48] sm:$0xff]  ;;  %v9815_v20 = vpack.i.bf16 %v6474_v14, %v13608_v7  ;;  %v9634_v23 = vunpack.i.h.bf16 %v9632_v46 }
 0x893   :  { %v6987_v27 = vpack.c.bf16 %v6924_v9, %v6923_v62  ;;  %9811 = vrot.lane.b32.xlu1 %v9810_v34, %s9851_s0  ;;  %v5945_v34 = vsel %vm925_vm10, %v5929_v2, %v9539_v16  ;;  %7234 = vmatpush.bf16.msra.mxu0 %v8028_v48  ;;  %v6366_v62 = vld [vmem:[#allocation2 + $0x30] sm:$0xff]  ;;  %v5915_v2 = vsel %vm74_vm0, %v13532_v35, %v9544_v33  ;;  %v9549_v46 = vunpack.i.h.bf16 %v13516_v63 }
 0x894   :  { %9801 = vrot.lane.b32.xlu2 %v9800_v5, %s9850_s3  ;;  %v5944_v5 = vsel %vm925_vm10, %v5928_v19, %v9538_v61  ;;  %v9548_v14 = vunpack.i.l.bf16 %v13516_v63  ;;  %v9553_v33 = vunpack.i.l.bf16 %v13546_v39 }
 0x895   :  { %6177 = vmatmul.bf16.gmra.mxu0 %v5967_v49  ;;  %v13675_v21 = vpop.permute.xlu1 %9601  ;;  %7187 = vmatmul.bf16.vlgmr.msra.gmra.mxu3 %v6987_v27  ;;  %v9617_v41 = vpop.permute.xlu0 %9616  ;;  %v5965_v51 = vpack.c.bf16 %v5945_v34, %v5944_v5  ;;  %v8027_v34 = vld [vmem:[%s14205_s19 + $0x40] sm:$0xff]  ;;  %v5931_v6 = vsel %vm1699_vm12, %v5915_v2, %v9549_v46 }
 0x896   :  { %v13677_v18 = vpop.permute.xlu2 %9636  ;;  %v9619_v7 = vunpack.i.h.bf16 %v9617_v41  ;;  %v9618_v9 = vunpack.i.l.bf16 %v9617_v41 }
 0x897   :  { %7235 = vmatpush.bf16.msra.mxu0 %v8027_v34 }
 0x89c   :  { %9816 = vrot.lane.b32.xlu2 %v9815_v20, %s9850_s3  ;;  %6221 = vmatmul.bf16.gmra.mxu1 %v5965_v51  ;;  %v5930_v20 = vsel %vm1699_vm12, %v5914_v22, %v9548_v14  ;;  %v9554_v51 = vunpack.i.h.bf16 %v13546_v39  ;;  %v9558_v39 = vunpack.i.l.bf16 %v13604_v26 }
 0x89d   :  { %v9622_v49 = vpop.permute.xlu1 %9621  ;;  %v13688_v36 = vpop.permute.xlu0 %9641 }
 0x89e   :  { %v9652_v32 = vpop.permute.xlu2 %9651  ;;  %v9624_v54 = vunpack.i.h.bf16 %v9622_v49  ;;  %v9623_v44 = vunpack.i.l.bf16 %v9622_v49 }
 0x8a0   :  { %v6894_v27 = vsel %vm74_vm0, %v6366_v62, %v9624_v54  ;;  %v6893_v19 = vsel %vm74_vm0, %v6365_v45, %v9623_v44  ;;  %v5946_v54 = vsel %vm925_vm10, %v5930_v20, %v9553_v33  ;;  %v5947_v44 = vsel %vm925_vm10, %v5931_v6, %v9554_v51 }
 0x8a1   :  { %v6909_v16 = vsel %vm1699_vm12, %v6893_v19, %v9633_v30  ;;  %v6910_v61 = vsel %vm1699_vm12, %v6894_v27, %v9634_v23  ;;  %v5968_v23 = vpack.c.bf16 %v5947_v44, %v5946_v54  ;;  %v9559_v30 = vunpack.i.h.bf16 %v13604_v26  ;;  %v6368_v27 = vld [vmem:[#allocation2 + $0x50] sm:$0xff] }
 0x8a2   :  { %v6925_v41 = vsel %vm925_vm10, %v6909_v16, %v9618_v9  ;;  %v6926_v5 = vsel %vm925_vm10, %v6910_v61, %v9619_v7  ;;  %v9654_v7 = vunpack.i.h.bf16 %v9652_v32  ;;  %v9653_v9 = vunpack.i.l.bf16 %v9652_v32 }
 0x8a3   :  { %v6990_v48 = vpack.c.bf16 %v6926_v5, %v6925_v41  ;;  %v5917_v26 = vsel %vm74_vm0, %v13589_v53, %v9559_v30  ;;  %v5916_v61 = vsel %vm74_vm0, %v13523_v42, %v9558_v39  ;;  %v9564_v32 = vunpack.i.h.bf16 %v13544_v3  ;;  %v6427_v39 = vld [vmem:[#allocation2 + $0x11] sm:$0xff] }
 0x8a4   :  { %v9563_v41 = vunpack.i.l.bf16 %v13544_v3  ;;  %v9569_v6 = vunpack.i.h.bf16 %v13581_v47  ;;  %v9568_v42 = vunpack.i.l.bf16 %v13581_v47  ;;  %v9604_v51 = vunpack.i.h.bf16 %v13675_v21  ;;  %v6428_v47 = vld [vmem:[#allocation2 + $0x21] sm:$0xff] }
 0x8a5   :  { %6182 = vmatmul.bf16.gmra.mxu0 %v5970_v52  ;;  %v13712_v63 = vpop.permute.xlu1 %9626  ;;  %7192 = vmatmul.bf16.gmra.mxu3 %v6990_v48  ;;  %v9657_v49 = vpop.permute.xlu0 %9656  ;;  %v5933_v20 = vsel %vm1699_vm12, %v5917_v26, %v9564_v32  ;;  %v9603_v33 = vunpack.i.l.bf16 %v13675_v21  ;;  %v14329_v3 = vpack.c.bf16 %v13390_v13, %v13387_v28 }
 0x8a6   :  { %v13714_v38 = vpop.permute.xlu2 %9666  ;;  %v9659_v19 = vunpack.i.h.bf16 %v9657_v49  ;;  %v9658_v2 = vunpack.i.l.bf16 %v9657_v49  ;;  %v5949_v30 = vsel %vm925_vm10, %v5933_v20, %v9569_v6 }
 0x8a7   :  { %v6939_v21 = vsel %vm74_vm0, %v6427_v39, %v9603_v33  ;;  %v9629_v39 = vunpack.i.h.bf16 %v13712_v63 }
 0x8ac   :  { %6226 = vmatmul.bf16.gmra.mxu1 %v5968_v23 }
 0x8ad   :  { %v9647_v45 = vpop.permute.xlu1 %9646  ;;  %v13722_v52 = vpop.permute.xlu0 %9671 }
 0x8ae   :  { %v13720_v62 = vpop.permute.xlu2 %9681  ;;  %v9649_v40 = vunpack.i.h.bf16 %v9647_v45  ;;  %v9648_v15 = vunpack.i.l.bf16 %v9647_v45  ;;  %v6940_v45 = vsel %vm74_vm0, %v6428_v47, %v9604_v51  ;;  %v9578_v51 = vunpack.i.l.bf16 %v13579_v55 }
 0x8af   :  { %v9684_v32 = vunpack.i.h.bf16 %v13720_v62 }
 0x8b0   :  { %v6896_v22 = vsel %vm74_vm0, %v6368_v27, %v9649_v40  ;;  %v6895_v16 = vsel %vm74_vm0, %v13342_v57, %v9648_v15  ;;  %v5932_v57 = vsel %vm1699_vm12, %v5916_v61, %v9563_v41  ;;  %v9609_v40 = vunpack.i.h.bf16 %v13632_v11 }
 0x8b1   :  { %v6911_v46 = vsel %vm1699_vm12, %v6895_v16, %v9653_v9  ;;  %v6912_v14 = vsel %vm1699_vm12, %v6896_v22, %v9654_v7  ;;  %v5948_v23 = vsel %vm925_vm10, %v5932_v57, %v9568_v42  ;;  %v9608_v15 = vunpack.i.l.bf16 %v13632_v11  ;;  %v13758_v9 = vpop.f32.mrf.mxu2 }
 0x8b2   :  { %v6927_v5 = vsel %vm925_vm10, %v6911_v46, %v9658_v2  ;;  %v6928_v34 = vsel %vm925_vm10, %v6912_v14, %v9659_v19  ;;  %v5971_v28 = vpack.c.bf16 %v5949_v30, %v5948_v23  ;;  %v6956_v13 = vsel %vm1699_vm12, %v6940_v45, %v9609_v40 }
 0x8b3   :  { %v6993_v48 = vpack.c.bf16 %v6928_v34, %v6927_v5  ;;  %v6955_v7 = vsel %vm1699_vm12, %v6939_v21, %v9608_v15  ;;  %v9574_v27 = vunpack.i.h.bf16 %v13630_v8  ;;  %v9573_v19 = vunpack.i.l.bf16 %v13630_v8 }
 0x8b4   :  { %v9614_v2 = vunpack.i.h.bf16 %v13649_v59  ;;  %v9613_v22 = vunpack.i.l.bf16 %v13649_v59  ;;  %v9683_v41 = vunpack.i.l.bf16 %v13720_v62  ;;  %v9579_v62 = vunpack.i.h.bf16 %v13579_v55 }
 0x8b5   :  { %v13743_v49 = vpop.permute.xlu1 %9661  ;;  %6187 = vmatmul.bf16.gmra.mxu0 %v14329_v3  ;;  %7197 = vmatmul.bf16.gmra.mxu3 %v6993_v48  ;;  %v9687_v44 = vpop.permute.xlu0 %9686  ;;  %v5918_v57 = vsel %vm74_vm0, %v13583_v50, %v9573_v19  ;;  %v5919_v20 = vsel %vm74_vm0, %v13236_v58, %v9574_v27  ;;  %v9584_v23 = vunpack.i.h.bf16 %v13606_v0  ;;  %v9583_v30 = vunpack.i.l.bf16 %v13606_v0 }
 0x8b6   :  { %v13748_v54 = vpop.permute.xlu2 %9696  ;;  %v6971_v46 = vsel %vm925_vm10, %v6955_v7, %v9613_v22  ;;  %v6972_v14 = vsel %vm925_vm10, %v6956_v13, %v9614_v2  ;;  %v9689_v34 = vunpack.i.h.bf16 %v9687_v44  ;;  %v9688_v8 = vunpack.i.l.bf16 %v9687_v44 }
 0x8b7   :  { %v6988_v3 = vpack.c.bf16 %v6972_v14, %v6971_v46  ;;  %v5934_v50 = vsel %vm1699_vm12, %v5918_v57, %v9578_v51  ;;  %v5935_v58 = vsel %vm1699_vm12, %v5919_v20, %v9579_v62  ;;  %v9628_v55 = vunpack.i.l.bf16 %v13712_v63 }
 0x8b8   :  { %v5950_v40 = vsel %vm925_vm10, %v5934_v50, %v9583_v30  ;;  %v5951_v15 = vsel %vm925_vm10, %v5935_v58, %v9584_v23  ;;  %v6942_v13 = vsel %vm74_vm0, %v13344_v12, %v9629_v39  ;;  %v9639_v63 = vunpack.i.h.bf16 %v13677_v18  ;;  %v6491_v30 = vld [vmem:[#allocation2 + $0x22] sm:$0xff] }
 0x8b9   :  { %v13794_v21 = vpop.f32.mrf.mxu2  ;;  %v9638_v27 = vunpack.i.l.bf16 %v13677_v18  ;;  %v5974_v2 = vpack.c.bf16 %v5951_v15, %v5950_v40  ;;  %v9643_v12 = vunpack.i.l.bf16 %v13688_v36  ;;  %v9663_v50 = vunpack.i.l.bf16 %v13743_v49  ;;  %v6492_v15 = vld [vmem:[#allocation2 + $0x32] sm:$0xff] }
 0x8bb   :  { %v6943_v39 = vsel %vm74_vm0, %v13334_v1, %v9663_v50 }
 0x8bc   :  { %6231 = vmatmul.bf16.gmra.mxu1 %v5971_v28  ;;  %v6429_v28 = vld [vmem:[#allocation2 + $0x31] sm:$0xff] }
 0x8bd   :  { %v9677_v16 = vpop.permute.xlu1 %9676  ;;  %v13764_v11 = vpop.permute.xlu0 %9701  ;;  %v6941_v0 = vsel %vm74_vm0, %v6429_v28, %v9628_v55  ;;  %v9668_v55 = vunpack.i.l.bf16 %v13714_v38  ;;  %v9669_v28 = vunpack.i.h.bf16 %v13714_v38  ;;  %v13852_v38 = vld [vmem:[%s14207_s18] ss:$0 sm:$0xff] }
 0x8be   :  { %v9679_v26 = vunpack.i.h.bf16 %v9677_v16  ;;  %v9678_v61 = vunpack.i.l.bf16 %v9677_v16  ;;  %v9712_v5 = vpop.permute.xlu2 %9711  ;;  %v6957_v22 = vsel %vm1699_vm12, %v6941_v0, %v9638_v27  ;;  %v6958_v16 = vsel %vm1699_vm12, %v6942_v13, %v9639_v63  ;;  %v13840_v13 = vld [vmem:[%s14206_s17] ss:$0 sm:$0xff] }
 0x8bf   :  { %v9713_v18 = vunpack.i.l.bf16 %v9712_v5  ;;  %v6989_v63 = vpack.c.bf16 %v6492_v15, %v6491_v30  ;;  %v6959_v27 = vsel %vm1699_vm12, %v6943_v39, %v9668_v55  ;;  %v6434_v15 = vld [vmem:[#allocation2 + $0x81] sm:$0xff] }
 0x8c0   :  { %v6898_v48 = vsel %vm74_vm0, %v13400_v29, %v9679_v26  ;;  %v6897_v59 = vsel %vm74_vm0, %v13406_v25, %v9678_v61  ;;  %v9644_v26 = vunpack.i.h.bf16 %v13688_v36  ;;  %v6371_v61 = vld [vmem:[#allocation2 + $0xa0] sm:$0xff] }
 0x8c1   :  { %v6913_v6 = vsel %vm1699_vm12, %v6897_v59, %v9683_v41  ;;  %v6914_v42 = vsel %vm1699_vm12, %v6898_v48, %v9684_v32  ;;  %v13818_v36 = vpop.f32.mrf.mxu2 }
 0x8c2   :  { %v13782_v33 = vpop.f32.mrf.mxu0  ;;  %v6929_v29 = vsel %vm925_vm10, %v6913_v6, %v9688_v8  ;;  %v6930_v25 = vsel %vm925_vm10, %v6914_v42, %v9689_v34  ;;  %v9714_v34 = vunpack.i.h.bf16 %v9712_v5  ;;  %v6973_v8 = vsel %vm925_vm10, %v6957_v22, %v9643_v12 }
 0x8c3   :  { %v6996_v44 = vpack.c.bf16 %v6930_v25, %v6929_v29  ;;  %v6974_v48 = vsel %vm925_vm10, %v6958_v16, %v9644_v26  ;;  %v9674_v22 = vunpack.i.h.bf16 %v13722_v52 }
 0x8c5   :  { %v13792_v47 = vpop.permute.xlu1 %9691  ;;  %7202 = vmatmul.bf16.gmra.mxu3 %v6996_v44  ;;  %7236 = vmatmul.bf16.vlgmr.msra.gmra.mxu0 %v6988_v3  ;;  %v9717_v45 = vpop.permute.xlu0 %9716  ;;  %v6991_v44 = vpack.c.bf16 %v6974_v48, %v6973_v8  ;;  %v6373_v8 = vld [vmem:[#allocation2 + $0xc0] sm:$0xff] }
 0x8c6   :  { %v13801_v7 = vpop.permute.xlu2 %9726  ;;  %v9719_v59 = vunpack.i.h.bf16 %v9717_v45  ;;  %v9718_v57 = vunpack.i.l.bf16 %v9717_v45 }
 0x8c9   :  { %v13844_v1 = vpop.f32.mrf.mxu2 }
 0x8ca   :  { %v13805_v19 = vpop.f32.mrf.mxu0 }
 0x8cc   :  { %6236 = vmatmul.bf16.gmra.mxu1 %v5974_v2 }
 0x8cd   :  { %v9707_v46 = vpop.permute.xlu1 %9706  ;;  %v13811_v41 = vpop.permute.xlu0 %9731 }
 0x8ce   :  { %v9709_v14 = vunpack.i.h.bf16 %v9707_v46  ;;  %v9708_v32 = vunpack.i.l.bf16 %v9707_v46  ;;  %v9742_v25 = vpop.permute.xlu2 %9741 }
 0x8d0   :  { %v6900_v20 = vsel %vm74_vm0, %v13442_v43, %v9709_v14  ;;  %v6899_v6 = vsel %vm74_vm0, %v6371_v61, %v9708_v32  ;;  %v9664_v43 = vunpack.i.h.bf16 %v13743_v49  ;;  %v9744_v32 = vunpack.i.h.bf16 %v9742_v25 }
 0x8d1   :  { %v6915_v42 = vsel %vm1699_vm12, %v6899_v6, %v9713_v18  ;;  %v6916_v62 = vsel %vm1699_vm12, %v6900_v20, %v9714_v34  ;;  %v9743_v34 = vunpack.i.l.bf16 %v9742_v25  ;;  %v13881_v30 = vpop.f32.mrf.mxu2 }
 0x8d2   :  { %v13822_v51 = vpop.f32.mrf.mxu0  ;;  %v6931_v5 = vsel %vm925_vm10, %v6915_v42, %v9718_v57  ;;  %v6932_v29 = vsel %vm925_vm10, %v6916_v62, %v9719_v59  ;;  %v6944_v45 = vsel %vm74_vm0, %v13408_v31, %v9664_v43  ;;  %v9673_v31 = vunpack.i.l.bf16 %v13722_v52 }
 0x8d3   :  { %v6999_v3 = vpack.c.bf16 %v6932_v29, %v6931_v5 }
 0x8d5   :  { %v13828_v58 = vpop.permute.xlu1 %9721  ;;  %7207 = vmatmul.bf16.gmra.mxu3 %v6999_v3  ;;  %7241 = vmatmul.bf16.gmra.mxu0 %v6991_v44  ;;  %v9747_v23 = vpop.permute.xlu0 %9746 }
 0x8d6   :  { %v13857_v16 = vpop.permute.xlu2 %9756  ;;  %v9749_v18 = vunpack.i.h.bf16 %v9747_v23  ;;  %v9748_v59 = vunpack.i.l.bf16 %v9747_v23 }
 0x8d9   :  { %v6202_v40 = vpop.f32.mrf.mxu1 }
 0x8da   :  { %v6203_v49 = vadd.f32 %v6202_v40, %v13782_v33  ;;  %v13842_v0 = vpop.f32.mrf.mxu0  ;;  %v6960_v33 = vsel %vm1699_vm12, %v6944_v45, %v9669_v28  ;;  %v6494_v40 = vld [vmem:[#allocation2 + $0x52] sm:$0xff] }
 0x8db   :  { %v6976_v48 = vsel %vm925_vm10, %v6960_v33, %v9674_v22 }
 0x8dc   :  { %v6252_v2 = vadd.f32 %v13758_v9, %v6203_v49  ;;  %7914 = vmatmul.msk.bf16.vlgmr.msra.gmra.mxu1 %vm74_vm0, %v6989_v63  ;;  %v6975_v9 = vsel %vm925_vm10, %v6959_v27, %v9673_v31  ;;  %v6493_v31 = vld [vmem:[#allocation2 + $0x42] sm:$0xff] }
 0x8dd   :  { %v9737_v26 = vpop.permute.xlu1 %9736  ;;  %v13860_v14 = vpop.permute.xlu0 %9761  ;;  %v6994_v43 = vpack.c.bf16 %v6976_v48, %v6975_v9 }
 0x8de   :  { %v6295_v12 = vmul.f32 %v13840_v13, %v6252_v2  ;;  %v9739_v61 = vunpack.i.h.bf16 %v9737_v26  ;;  %v9738_v46 = vunpack.i.l.bf16 %v9737_v26  ;;  %v9772_v45 = vpop.permute.xlu2 %9771  ;;  %v9699_v2 = vunpack.i.h.bf16 %v13748_v54  ;;  %v13908_v48 = vpop.f32.mrf.mxu2 }
 0x8e0   :  { %v6315_v52 = vadd.f32 %v13852_v38, %v6295_v12  ;;  %v6902_v57 = vsel %vm74_vm0, %v13491_v4, %v9739_v61  ;;  %v6901_v20 = vsel %vm74_vm0, %v6373_v8, %v9738_v46  ;;  %v9693_v4 = vunpack.i.l.bf16 %v13792_v47 }
 0x8e1   :  { %v6204_v6 = vpop.f32.mrf.mxu1  ;;  %v6917_v42 = vsel %vm1699_vm12, %v6901_v20, %v9743_v34  ;;  %v6918_v62 = vsel %vm1699_vm12, %v6902_v57, %v9744_v32  ;;  %v6992_v12 = vpack.c.bf16 %v6494_v40, %v6493_v31  ;;  %v6375_v20 = vld [vmem:[#allocation2 + $0xe0] sm:$0xff]  ;;  %v9723_v40 = vunpack.i.l.bf16 %v13828_v58 }
 0x8e2   :  { %v6331_v5 = vmax.f32 %v6315_v52, 0.0  ;;  %v6205_v29 = vadd.f32 %v6204_v6, %v13805_v19  ;;  %v13871_v25 = vpop.f32.mrf.mxu0  ;;  %v6933_v3 = vsel %vm925_vm10, %v6917_v42, %v9748_v59  ;;  %v6934_v44 = vsel %vm925_vm10, %v6918_v62, %v9749_v18 }
 0x8e3   :  { %v7002_v50 = vpack.c.bf16 %v6934_v44, %v6933_v3  ;;  %v9694_v19 = vunpack.i.h.bf16 %v13792_v47  ;;  %v6945_v28 = vsel %vm74_vm0, %v13402_v17, %v9693_v4  ;;  %v9703_v17 = vunpack.i.l.bf16 %v13764_v11 }
 0x8e4   :  { %6347 = vst.msk [vmem:[%s14210_s22] sm:$0xff] %vm74_vm0, %v6331_v5  ;;  %v6254_v23 = vadd.f32 %v13794_v21, %v6205_v29  ;;  %v9698_v21 = vunpack.i.l.bf16 %v13748_v54  ;;  %v9774_v59 = vunpack.i.h.bf16 %v9772_v45  ;;  %v9773_v52 = vunpack.i.l.bf16 %v9772_v45 }
 0x8e5   :  { %v13884_v39 = vpop.permute.xlu1 %9751  ;;  %7212 = vmatmul.bf16.gmra.mxu3 %v7002_v50  ;;  %7246 = vmatmul.bf16.gmra.mxu0 %v6994_v43  ;;  %v9777_v63 = vpop.permute.xlu0 %9776  ;;  %v6946_v27 = vsel %vm74_vm0, %v6434_v15, %v9694_v19  ;;  %v9728_v31 = vunpack.i.l.bf16 %v13801_v7 }
 0x8e6   :  { %v6296_v55 = vmul.f32 %v13840_v13, %v6254_v23  ;;  %v6961_v61 = vsel %vm1699_vm12, %v6945_v28, %v9698_v21  ;;  %v6962_v54 = vsel %vm1699_vm12, %v6946_v27, %v9699_v2  ;;  %v9779_v57 = vunpack.i.h.bf16 %v9777_v63  ;;  %v13915_v5 = vpop.permute.xlu2 %9786  ;;  %v6495_v2 = vld [vmem:[#allocation2 + $0x62] sm:$0xff] }
 0x8e7   :  { %v6977_v8 = vsel %vm925_vm10, %v6961_v61, %v9703_v17  ;;  %v9778_v6 = vunpack.i.l.bf16 %v9777_v63  ;;  %v9724_v28 = vunpack.i.h.bf16 %v13828_v58  ;;  %v6496_v63 = vld [vmem:[#allocation2 + $0x72] sm:$0xff]  ;;  %v6947_v21 = vsel %vm74_vm0, %v13457_v24, %v9723_v40 }
 0x8e8   :  { %v6316_v49 = vadd.f32 %v13852_v38, %v6296_v55  ;;  %v6995_v17 = vpack.c.bf16 %v6496_v63, %v6495_v2  ;;  %v6963_v24 = vsel %vm1699_vm12, %v6947_v21, %v9728_v31  ;;  %v9754_v40 = vunpack.i.h.bf16 %v13884_v39  ;;  %v6437_v21 = vld [vmem:[#allocation2 + $0xd1] sm:$0xff] }
 0x8e9   :  { %v6207_v47 = vpop.f32.mrf.mxu1 }
 0x8ea   :  { %v6332_v33 = vmax.f32 %v6316_v49, 0.0  ;;  %v6208_v22 = vadd.f32 %v6207_v47, %v13822_v51  ;;  %v13894_v26 = vpop.f32.mrf.mxu0  ;;  %v9704_v51 = vunpack.i.h.bf16 %v13764_v11  ;;  %v13939_v47 = vpop.f32.mrf.mxu2 }
 0x8ec   :  { %6348 = vst.msk [vmem:[%s14210_s22 + $0x8] sm:$0xff] %vm74_vm0, %v6332_v33  ;;  %v6257_v46 = vadd.f32 %v13818_v36, %v6208_v22  ;;  %7915 = vmatmul.msk.bf16.gmra.mxu1 %vm74_vm0, %v6992_v12  ;;  %v6978_v36 = vsel %vm925_vm10, %v6962_v54, %v9704_v51  ;;  %v9729_v33 = vunpack.i.h.bf16 %v13801_v7 }
 0x8ed   :  { %v9767_v9 = vpop.permute.xlu1 %9766  ;;  %v13919_v43 = vpop.permute.xlu0 %9791  ;;  %v6997_v45 = vpack.c.bf16 %v6978_v36, %v6977_v8 }
 0x8ee   :  { %v6297_v32 = vmul.f32 %v13840_v13, %v6257_v46  ;;  %v9769_v34 = vunpack.i.h.bf16 %v9767_v9  ;;  %v9768_v18 = vunpack.i.l.bf16 %v9767_v9  ;;  %v9733_v46 = vunpack.i.l.bf16 %v13811_v41  ;;  %v9802_v54 = vpop.permute.xlu2 %9801 }
 0x8f0   :  { %v6317_v42 = vadd.f32 %v13852_v38, %v6297_v32  ;;  %v6904_v11 = vsel %vm74_vm0, %v13558_v56, %v9769_v34  ;;  %v6903_v62 = vsel %vm74_vm0, %v6375_v20, %v9768_v18  ;;  %v6979_v8 = vsel %vm925_vm10, %v6963_v24, %v9733_v46  ;;  %v6377_v20 = vld [vmem:[#allocation2 + $0x100] sm:$0xff] }
 0x8f1   :  { %v6209_v29 = vpop.f32.mrf.mxu1  ;;  %v6919_v3 = vsel %vm1699_vm12, %v6903_v62, %v9773_v52  ;;  %v6920_v44 = vsel %vm1699_vm12, %v6904_v11, %v9774_v59  ;;  %v9804_v59 = vunpack.i.h.bf16 %v9802_v54  ;;  %v9803_v52 = vunpack.i.l.bf16 %v9802_v54 }
 0x8f2   :  { %v6333_v50 = vmax.f32 %v6317_v42, 0.0  ;;  %v6210_v4 = vadd.f32 %v6209_v29, %v13842_v0  ;;  %v13922_v23 = vpop.f32.mrf.mxu0  ;;  %v6935_v19 = vsel %vm925_vm10, %v6919_v3, %v9778_v6  ;;  %v6936_v56 = vsel %vm925_vm10, %v6920_v44, %v9779_v57 }
 0x8f3   :  { %v7005_v55 = vpack.c.bf16 %v6936_v56, %v6935_v19  ;;  %v6268_v56 = vpop.f32.mrf.mxu2  ;;  %v9763_v46 = vunpack.i.l.bf16 %v13860_v14 }
 0x8f4   :  { %6349 = vst.msk [vmem:[%s14210_s22 + $0x10] sm:$0xff] %vm74_vm0, %v6333_v50  ;;  %v6259_v15 = vadd.f32 %v13844_v1, %v6210_v4  ;;  %v6948_v1 = vsel %vm74_vm0, %v13470_v37, %v9724_v28  ;;  %v6497_v28 = vld [vmem:[#allocation2 + $0x82] sm:$0xff] }
 0x8f5   :  { %v13933_v0 = vpop.permute.xlu1 %9781  ;;  %7217 = vmatmul.bf16.gmra.mxu3 %v7005_v55  ;;  %7251 = vmatmul.bf16.gmra.mxu0 %v6997_v45  ;;  %v9807_v37 = vpop.permute.xlu0 %9806  ;;  %v6964_v7 = vsel %vm1699_vm12, %v6948_v1, %v9729_v33  ;;  %v6950_v1 = vsel %vm74_vm0, %v13532_v35, %v9754_v40 }
 0x8f6   :  { %v6298_v49 = vmul.f32 %v13840_v13, %v6259_v15  ;;  %v9809_v57 = vunpack.i.h.bf16 %v9807_v37 }
 0x8f8   :  { %v6318_v27 = vadd.f32 %v13852_v38, %v6298_v49  ;;  %v6498_v49 = vld [vmem:[#allocation2 + $0x92] sm:$0xff] }
 0x8f9   :  { %v6212_v58 = vpop.f32.mrf.mxu1  ;;  %v6998_v31 = vpack.c.bf16 %v6498_v49, %v6497_v28 }
 0x8fa   :  { %v6334_v22 = vmax.f32 %v6318_v27, 0.0  ;;  %v6213_v12 = vadd.f32 %v6212_v58, %v13871_v25  ;;  %v13946_v61 = vpop.f32.mrf.mxu0  ;;  %v9734_v25 = vunpack.i.h.bf16 %v13811_v41 }
 0x8fb   :  { %v6271_v35 = vpop.f32.mrf.mxu2 }
 0x8fc   :  { %6350 = vst.msk [vmem:[%s14210_s22 + $0x18] sm:$0xff] %vm74_vm0, %v6334_v22  ;;  %v6262_v51 = vadd.f32 %v13881_v30, %v6213_v12  ;;  %7916 = vmatmul.msk.bf16.gmra.mxu1 %vm74_vm0, %v6995_v17  ;;  %v6980_v36 = vsel %vm925_vm10, %v6964_v7, %v9734_v25  ;;  %v9808_v30 = vunpack.i.l.bf16 %v9807_v37  ;;  %v9758_v22 = vunpack.i.l.bf16 %v13857_v16 }
 0x8fd   :  { %v9797_v9 = vpop.permute.xlu1 %9796  ;;  %v7000_v45 = vpack.c.bf16 %v6980_v36, %v6979_v8 }
 0x8fe   :  { %v6299_v32 = vmul.f32 %v13840_v13, %v6262_v51  ;;  %v9799_v34 = vunpack.i.h.bf16 %v9797_v9  ;;  %v9798_v18 = vunpack.i.l.bf16 %v9797_v9 }
 0x900   :  { %v6319_v6 = vadd.f32 %v13852_v38, %v6299_v32  ;;  %v6906_v42 = vsel %vm74_vm0, %v13614_v10, %v9799_v34  ;;  %v6905_v41 = vsel %vm74_vm0, %v6377_v20, %v9798_v18  ;;  %v9784_v34 = vunpack.i.h.bf16 %v13933_v0  ;;  %v6439_v20 = vld [vmem:[#allocation2 + $0xf1] sm:$0xff] }
 0x901   :  { %v6214_v11 = vpop.f32.mrf.mxu1  ;;  %v6921_v62 = vsel %vm1699_vm12, %v6905_v41, %v9803_v52  ;;  %v6922_v29 = vsel %vm1699_vm12, %v6906_v42, %v9804_v59  ;;  %v9783_v18 = vunpack.i.l.bf16 %v13933_v0  ;;  %v6500_v59 = vld [vmem:[#allocation2 + $0xd2] sm:$0xff]  ;;  %v9789_v0 = vunpack.i.h.bf16 %v13915_v5 }
 0x902   :  { %v6335_v3 = vmax.f32 %v6319_v6, 0.0  ;;  %v6215_v44 = vadd.f32 %v6214_v11, %v13894_v26  ;;  %v6173_v50 = vpop.f32.mrf.mxu0  ;;  %v6937_v4 = vsel %vm925_vm10, %v6921_v62, %v9808_v30  ;;  %v6938_v19 = vsel %vm925_vm10, %v6922_v29, %v9809_v57 }
 0x903   :  { %v7008_v55 = vpack.c.bf16 %v6938_v19, %v6937_v4  ;;  %v9753_v26 = vunpack.i.l.bf16 %v13884_v39  ;;  %v9759_v39 = vunpack.i.h.bf16 %v13857_v16  ;;  %v6273_v52 = vpop.f32.mrf.mxu2  ;;  %v6952_v6 = vsel %vm74_vm0, %v13589_v53, %v9784_v34 }
 0x904   :  { %6351 = vst.msk [vmem:[%s14210_s22 + $0x20] sm:$0xff] %vm74_vm0, %v6335_v3  ;;  %v6264_v10 = vadd.f32 %v13908_v48, %v6215_v44  ;;  %v6951_v42 = vsel %vm74_vm0, %v6439_v20, %v9783_v18  ;;  %v9788_v29 = vunpack.i.l.bf16 %v13915_v5  ;;  %v6968_v53 = vsel %vm1699_vm12, %v6952_v6, %v9789_v0 }
 0x905   :  { %7222 = vmatmul.bf16.gmra.mxu3 %v7008_v55  ;;  %7256 = vmatmul.bf16.gmra.mxu0 %v7000_v45  ;;  %v6949_v48 = vsel %vm74_vm0, %v6437_v21, %v9753_v26  ;;  %v6966_v24 = vsel %vm1699_vm12, %v6950_v1, %v9759_v39  ;;  %v9794_v4 = vunpack.i.h.bf16 %v13919_v43  ;;  %v9812_v28 = vpop.permute.xlu1 %9811  ;;  %v9817_v1 = vpop.permute.xlu2 %9816 }
 0x906   :  { %v6300_v15 = vmul.f32 %v13840_v13, %v6264_v10  ;;  %v6965_v17 = vsel %vm1699_vm12, %v6949_v48, %v9758_v22  ;;  %v6967_v44 = vsel %vm1699_vm12, %v6951_v42, %v9788_v29  ;;  %v9813_v21 = vunpack.i.l.bf16 %v9812_v28 }
 0x907   :  { %v6981_v37 = vsel %vm925_vm10, %v6965_v17, %v9763_v46  ;;  %v6984_v55 = vsel %vm925_vm10, %v6968_v53, %v9794_v4 }
 0x908   :  { %v6320_v63 = vadd.f32 %v13852_v38, %v6300_v15 }
 0x909   :  { %v6217_v27 = vpop.f32.mrf.mxu1 }
 0x90a   :  { %v6336_v58 = vmax.f32 %v6320_v63, 0.0  ;;  %v6218_v2 = vadd.f32 %v6217_v27, %v13922_v23  ;;  %v6175_v33 = vpop.f32.mrf.mxu0  ;;  %v9764_v23 = vunpack.i.h.bf16 %v13860_v14  ;;  %v9814_v63 = vunpack.i.h.bf16 %v9812_v28 }
 0x90b   :  { %v6276_v45 = vpop.f32.mrf.mxu2 }
 0x90c   :  { %6352 = vst.msk [vmem:[%s14210_s22 + $0x28] sm:$0xff] %vm74_vm0, %v6336_v58  ;;  %v6267_v12 = vadd.f32 %v13939_v47, %v6218_v2  ;;  %7917 = vmatmul.msk.bf16.gmra.mxu1 %vm74_vm0, %v6998_v31  ;;  %v6982_v51 = vsel %vm925_vm10, %v6966_v24, %v9764_v23  ;;  %v6502_v31 = vld [vmem:[#allocation2 + $0xf2] sm:$0xff]  ;;  %v6501_v58 = vld [vmem:[#allocation2 + $0xe2] sm:$0xff] }
 0x90d   :  { %v7003_v32 = vpack.c.bf16 %v6982_v51, %v6981_v37  ;;  %v6442_v2 = vld [vmem:[#allocation2 + $0x121] sm:$0xff]  ;;  %v7004_v39 = vpack.c.bf16 %v6502_v31, %v6501_v58  ;;  %v9822_v37 = vpop.permute.xlu0 %9821 }
 0x90e   :  { %v6301_v16 = vmul.f32 %v13840_v13, %v6267_v12  ;;  %v6954_v22 = vsel %vm74_vm0, %v6442_v2, %v9814_v63  ;;  %v9839_v12 = vld [vmem:[#allocation2 + $0x111] sm:$0xff] }
 0x910   :  { %v6321_v54 = vadd.f32 %v13852_v38, %v6301_v16  ;;  %v9819_v16 = vunpack.i.h.bf16 %v9817_v1 }
 0x911   :  { %v6219_v47 = vpop.f32.mrf.mxu1 }
 0x912   :  { %v6337_v7 = vmax.f32 %v6321_v54, 0.0  ;;  %v6220_v25 = vadd.f32 %v6219_v47, %v13946_v61  ;;  %v6178_v9 = vpop.f32.mrf.mxu0  ;;  %v6499_v61 = vld [vmem:[#allocation2 + $0xc2] sm:$0xff]  ;;  %v9818_v54 = vunpack.i.l.bf16 %v9817_v1 }
 0x913   :  { %v7001_v30 = vpack.c.bf16 %v6500_v59, %v6499_v61  ;;  %v6278_v46 = vpop.f32.mrf.mxu2 }
 0x914   :  { %6353 = vst.msk [vmem:[%s14210_s22 + $0x30] sm:$0xff] %vm74_vm0, %v6337_v7  ;;  %v6269_v14 = vadd.f32 %v6268_v56, %v6220_v25  ;;  %v6970_v7 = vsel %vm1699_vm12, %v6954_v22, %v9819_v16  ;;  %v9824_v25 = vunpack.i.h.bf16 %v9822_v37  ;;  %v14081_v16 = vld [vmem:[%s14208_s20] ss:$0 sm:$0xff] }
 0x915   :  { %7261 = vmatmul.bf16.gmra.mxu0 %v7003_v32  ;;  %v9823_v32 = vunpack.i.l.bf16 %v9822_v37 }
 0x916   :  { %v6302_v8 = vmul.f32 %v13840_v13, %v6269_v14  ;;  %v6986_v18 = vsel %vm925_vm10, %v6970_v7, %v9824_v25 }
 0x918   :  { %v6322_v57 = vadd.f32 %v13852_v38, %v6302_v8  ;;  %v7188_v42 = vpop.f32.mrf.mxu3 }
 0x919   :  { %v6222_v36 = vpop.f32.mrf.mxu1 }
 0x91a   :  { %v6338_v41 = vmax.f32 %v6322_v57, 0.0  ;;  %v6223_v11 = vadd.f32 %v6222_v36, %v6173_v50  ;;  %v6180_v62 = vpop.f32.mrf.mxu0  ;;  %v9793_v50 = vunpack.i.l.bf16 %v13919_v43 }
 0x91b   :  { %v6281_v36 = vpop.f32.mrf.mxu2 }
 0x91c   :  { %6354 = vst.msk [vmem:[%s14210_s22 + $0x38] sm:$0xff] %vm74_vm0, %v6338_v41  ;;  %v6272_v3 = vadd.f32 %v6271_v35, %v6223_v11  ;;  %7918 = vmatmul.msk.bf16.gmra.mxu1 %vm74_vm0, %v7001_v30  ;;  %v6983_v56 = vsel %vm925_vm10, %v6967_v44, %v9793_v50  ;;  %v6953_v35 = vsel %vm74_vm0, %v9839_v12, %v9813_v21  ;;  %v6503_v11 = vld [vmem:[#allocation2 + $0x102] sm:$0xff] }
 0x91d   :  { %v7006_v49 = vpack.c.bf16 %v6984_v55, %v6983_v56  ;;  %v6969_v47 = vsel %vm1699_vm12, %v6953_v35, %v9818_v54  ;;  %v9840_v21 = vld [vmem:[#allocation2 + $0x122] sm:$0xff] }
 0x91e   :  { %v6303_v19 = vmul.f32 %v13840_v13, %v6272_v3  ;;  %v6985_v34 = vsel %vm925_vm10, %v6969_v47, %v9823_v32  ;;  %v7007_v3 = vpack.c.bf16 %v13645_v60, %v6503_v11  ;;  %v14086_v47 = vld [vmem:[%s14209_s21] ss:$0 sm:$0xff] }
 0x91f   :  { %v7009_v61 = vpack.c.bf16 %v6986_v18, %v6985_v34 }
 0x920   :  { %v6323_v5 = vadd.f32 %v13852_v38, %v6303_v19 }
 0x921   :  { %v6224_v10 = vpop.f32.mrf.mxu1 }
 0x922   :  { %v6339_v40 = vmax.f32 %v6323_v5, 0.0  ;;  %v6225_v26 = vadd.f32 %v6224_v10, %v6175_v33  ;;  %v6183_v15 = vpop.f32.mrf.mxu0 }
 0x923   :  { %v6283_v4 = vpop.f32.mrf.mxu2 }
 0x924   :  { %6355 = vst.msk [vmem:[%s14210_s22 + $0x40] sm:$0xff] %vm74_vm0, %v6339_v40  ;;  %v6274_v43 = vadd.f32 %v6273_v52, %v6225_v26  ;;  %v6506_v40 = vld [vmem:[#allocation2 + $0x132] sm:$0xff] }
 0x925   :  { %7266 = vmatmul.bf16.gmra.mxu0 %v7006_v49 }
 0x926   :  { %v6304_v27 = vmul.f32 %v13840_v13, %v6274_v43 }
 0x928   :  { %v6324_v48 = vadd.f32 %v13852_v38, %v6304_v27  ;;  %v7010_v27 = vpack.c.bf16 %v6506_v40, %v9840_v21 }
 0x929   :  { %v6227_v33 = vpop.f32.mrf.mxu1 }
 0x92a   :  { %v6340_v17 = vmax.f32 %v6324_v48, 0.0  ;;  %v6228_v24 = vadd.f32 %v6227_v33, %v6178_v9  ;;  %v6185_v23 = vpop.f32.mrf.mxu0 }
 0x92c   :  { %6356 = vst.msk [vmem:[%s14210_s22 + $0x48] sm:$0xff] %vm74_vm0, %v6340_v17  ;;  %v6277_v51 = vadd.f32 %v6276_v45, %v6228_v24  ;;  %7919 = vmatmul.msk.bf16.gmra.mxu1 %vm74_vm0, %v7004_v39  ;;  %v7190_v45 = vpop.f32.mrf.mxu3 }
 0x92e   :  { %v6305_v9 = vmul.f32 %v13840_v13, %v6277_v51 }
 0x930   :  { %v6325_v14 = vadd.f32 %v13852_v38, %v6305_v9 }
 0x931   :  { %v6229_v8 = vpop.f32.mrf.mxu1 }
 0x932   :  { %v6341_v59 = vmax.f32 %v6325_v14, 0.0  ;;  %v6230_v52 = vadd.f32 %v6229_v8, %v6180_v62  ;;  %v6188_v57 = vpop.f32.mrf.mxu0 }
 0x934   :  { %6357 = vst.msk [vmem:[%s14210_s22 + $0x50] sm:$0xff] %vm74_vm0, %v6341_v59  ;;  %v6279_v20 = vadd.f32 %v6278_v46, %v6230_v52  ;;  %v7193_v1 = vpop.f32.mrf.mxu3 }
 0x935   :  { %7271 = vmatmul.bf16.gmra.mxu0 %v7009_v61 }
 0x936   :  { %v6306_v30 = vmul.f32 %v13840_v13, %v6279_v20 }
 0x938   :  { %v6326_v6 = vadd.f32 %v13852_v38, %v6306_v30 }
 0x939   :  { %v6232_v41 = vpop.f32.mrf.mxu1 }
 0x93a   :  { %v6342_v0 = vmax.f32 %v6326_v6, 0.0  ;;  %v6233_v29 = vadd.f32 %v6232_v41, %v6183_v15  ;;  %v6190_v62 = vpop.f32.mrf.mxu0  ;;  %v6286_v15 = vpop.f32.mrf.mxu2 }
 0x93c   :  { %6358 = vst.msk [vmem:[%s14210_s22 + $0x58] sm:$0xff] %vm74_vm0, %v6342_v0  ;;  %v6282_v44 = vadd.f32 %v6281_v36, %v6233_v29  ;;  %7920 = vmatmul.msk.bf16.gmra.mxu1 %vm74_vm0, %v7007_v3  ;;  %v7195_v24 = vpop.f32.mrf.mxu3 }
 0x93e   :  { %v6307_v53 = vmul.f32 %v13840_v13, %v6282_v44 }
 0x940   :  { %v6327_v50 = vadd.f32 %v13852_v38, %v6307_v53 }
 0x941   :  { %v6234_v19 = vpop.f32.mrf.mxu1 }
 0x942   :  { %v6343_v5 = vmax.f32 %v6327_v50, 0.0  ;;  %v6235_v56 = vadd.f32 %v6234_v19, %v6185_v23  ;;  %v7237_v55 = vpop.f32.mrf.mxu0  ;;  %v6288_v12 = vpop.f32.mrf.mxu2 }
 0x943   :  { %v7238_v23 = vadd.f32 %v7237_v55, %v7188_v42 }
 0x944   :  { %6359 = vst.msk [vmem:[%s14210_s22 + $0x60] sm:$0xff] %vm74_vm0, %v6343_v5  ;;  %v6284_v60 = vadd.f32 %v6283_v4, %v6235_v56  ;;  %v7198_v9 = vpop.f32.mrf.mxu3 }
 0x946   :  { %v6308_v10 = vmul.f32 %v13840_v13, %v6284_v60 }
 0x948   :  { %v6328_v26 = vadd.f32 %v13852_v38, %v6308_v10 }
 0x949   :  { %v6237_v28 = vpop.f32.mrf.mxu1 }
 0x94a   :  { %v6344_v49 = vmax.f32 %v6328_v26, 0.0  ;;  %v6238_v43 = vadd.f32 %v6237_v28, %v6188_v57  ;;  %v7239_v63 = vpop.f32.mrf.mxu0 }
 0x94b   :  { %v7240_v25 = vadd.f32 %v7239_v63, %v7190_v45 }
 0x94c   :  { %6360 = vst.msk [vmem:[%s14210_s22 + $0x68] sm:$0xff] %vm74_vm0, %v6344_v49  ;;  %v6287_v31 = vadd.f32 %v6286_v15, %v6238_v43  ;;  %7921 = vmatmul.msk.bf16.gmra.mxu1 %vm74_vm0, %v7010_v27  ;;  %v7200_v30 = vpop.f32.mrf.mxu3 }
 0x94e   :  { %v6309_v48 = vmul.f32 %v13840_v13, %v6287_v31 }
 0x950   :  { %v6329_v58 = vadd.f32 %v13852_v38, %v6309_v48 }
 0x951   :  { %v6239_v2 = vpop.f32.mrf.mxu1 }
 0x952   :  { %v6345_v33 = vmax.f32 %v6329_v58, 0.0  ;;  %v6240_v39 = vadd.f32 %v6239_v2, %v6190_v62  ;;  %v7242_v22 = vpop.f32.mrf.mxu0 }
 0x953   :  { %v7243_v52 = vadd.f32 %v7242_v22, %v7193_v1 }
 0x954   :  { %6361 = vst.msk [vmem:[%s14210_s22 + $0x70] sm:$0xff] %vm74_vm0, %v6345_v33  ;;  %v6289_v35 = vadd.f32 %v6288_v12, %v6240_v39  ;;  %v7203_v44 = vpop.f32.mrf.mxu3 }
 0x956   :  { %v6310_v17 = vmul.f32 %v13840_v13, %v6289_v35 }
 0x958   :  { %v6330_v46 = vadd.f32 %v13852_v38, %v6310_v17 }
 0x959   :  { %v7286_v54 = vpop.f32.mrf.mxu1 }
 0x95a   :  { %v6346_v37 = vmax.f32 %v6330_v46, 0.0  ;;  %v7287_v51 = vadd.f32 %v7286_v54, %v7238_v23  ;;  %v7244_v7 = vpop.f32.mrf.mxu0 }
 0x95b   :  { %v7245_v41 = vadd.f32 %v7244_v7, %v7195_v24 }
 0x95c   :  { %6362 = vst.msk [vmem:[%s14210_s22 + $0x78] sm:$0xff] %vm74_vm0, %v6346_v37  ;;  %v7330_v13 = vmul.f32 %v14081_v16, %v7287_v51  ;;  %v7205_v60 = vpop.f32.mrf.mxu3 }
 0x95e   :  { %v7350_v38 = vadd.f32 %v14086_v47, %v7330_v13 }
 0x960   :  { %v7366_v32 = vmax.f32 %v7350_v38, 0.0 }
 0x961   :  { %v7288_v14 = vpop.f32.mrf.mxu1 }
 0x962   :  { %7382 = vst.msk [vmem:[%s14211_s23] sm:$0xff] %vm74_vm0, %v7366_v32  ;;  %v7289_v34 = vadd.f32 %v7288_v14, %v7240_v25  ;;  %v7247_v18 = vpop.f32.mrf.mxu0 }
 0x963   :  { %v7248_v4 = vadd.f32 %v7247_v18, %v7198_v9 }
 0x964   :  { %v7331_v8 = vmul.f32 %v14081_v16, %v7289_v34  ;;  %v7208_v27 = vpop.f32.mrf.mxu3 }
 0x966   :  { %v7351_v59 = vadd.f32 %v14086_v47, %v7331_v8 }
 0x968   :  { %v7367_v57 = vmax.f32 %v7351_v59, 0.0 }
 0x969   :  { %v7291_v61 = vpop.f32.mrf.mxu1 }
 0x96a   :  { %7383 = vst.msk [vmem:[%s14211_s23 + $0x8] sm:$0xff] %vm74_vm0, %v7367_v57  ;;  %v7292_v20 = vadd.f32 %v7291_v61, %v7243_v52  ;;  %v7249_v36 = vpop.f32.mrf.mxu0 }
 0x96b   :  { %v7250_v10 = vadd.f32 %v7249_v36, %v7200_v30 }
 0x96c   :  { %v7332_v6 = vmul.f32 %v14081_v16, %v7292_v20  ;;  %v7210_v35 = vpop.f32.mrf.mxu3 }
 0x96e   :  { %v7352_v42 = vadd.f32 %v14086_v47, %v7332_v6 }
 0x970   :  { %v7368_v11 = vmax.f32 %v7352_v42, 0.0 }
 0x971   :  { %v7293_v0 = vpop.f32.mrf.mxu1 }
 0x972   :  { %7384 = vst.msk [vmem:[%s14211_s23 + $0x10] sm:$0xff] %vm74_vm0, %v7368_v11  ;;  %v7294_v29 = vadd.f32 %v7293_v0, %v7245_v41  ;;  %v7252_v62 = vpop.f32.mrf.mxu0 }
 0x973   :  { %v7253_v63 = vadd.f32 %v7252_v62, %v7203_v44 }
 0x974   :  { %v7333_v3 = vmul.f32 %v14081_v16, %v7294_v29  ;;  %v7213_v13 = vpop.f32.mrf.mxu3 }
 0x976   :  { %v7353_v53 = vadd.f32 %v14086_v47, %v7333_v3 }
 0x978   :  { %v7369_v50 = vmax.f32 %v7353_v53, 0.0 }
 0x979   :  { %v7296_v19 = vpop.f32.mrf.mxu1 }
 0x97a   :  { %7385 = vst.msk [vmem:[%s14211_s23 + $0x18] sm:$0xff] %vm74_vm0, %v7369_v50  ;;  %v7297_v5 = vadd.f32 %v7296_v19, %v7248_v4  ;;  %v7254_v55 = vpop.f32.mrf.mxu0 }
 0x97b   :  { %v7255_v2 = vadd.f32 %v7254_v55, %v7205_v60 }
 0x97c   :  { %v7334_v56 = vmul.f32 %v14081_v16, %v7297_v5  ;;  %v7215_v59 = vpop.f32.mrf.mxu3 }
 0x97e   :  { %v7354_v45 = vadd.f32 %v14086_v47, %v7334_v56 }
 0x980   :  { %v7370_v40 = vmax.f32 %v7354_v45, 0.0 }
 0x981   :  { %v7298_v26 = vpop.f32.mrf.mxu1 }
 0x982   :  { %7386 = vst.msk [vmem:[%s14211_s23 + $0x20] sm:$0xff] %vm74_vm0, %v7370_v40  ;;  %v7299_v15 = vadd.f32 %v7298_v26, %v7250_v10  ;;  %v7257_v43 = vpop.f32.mrf.mxu0 }
 0x983   :  { %v7258_v23 = vadd.f32 %v7257_v43, %v7208_v27 }
 0x984   :  { %v7335_v28 = vmul.f32 %v14081_v16, %v7299_v15  ;;  %v7218_v11 = vpop.f32.mrf.mxu3 }
 0x986   :  { %v7355_v49 = vadd.f32 %v14086_v47, %v7335_v28 }
 0x988   :  { %v7371_v21 = vmax.f32 %v7355_v49, 0.0 }
 0x989   :  { %v7301_v31 = vpop.f32.mrf.mxu1 }
 0x98a   :  { %7387 = vst.msk [vmem:[%s14211_s23 + $0x28] sm:$0xff] %vm74_vm0, %v7371_v21  ;;  %v7302_v1 = vadd.f32 %v7301_v31, %v7253_v63  ;;  %v7259_v39 = vpop.f32.mrf.mxu0 }
 0x98b   :  { %v7260_v25 = vadd.f32 %v7259_v39, %v7210_v35 }
 0x98c   :  { %v7336_v48 = vmul.f32 %v14081_v16, %v7302_v1  ;;  %v7220_v5 = vpop.f32.mrf.mxu3 }
 0x98e   :  { %v7356_v58 = vadd.f32 %v14086_v47, %v7336_v48 }
 0x990   :  { %v7372_v33 = vmax.f32 %v7356_v58, 0.0 }
 0x991   :  { %v7303_v22 = vpop.f32.mrf.mxu1 }
 0x992   :  { %7388 = vst.msk [vmem:[%s14211_s23 + $0x30] sm:$0xff] %vm74_vm0, %v7372_v33  ;;  %v7304_v12 = vadd.f32 %v7303_v22, %v7255_v2  ;;  %v7262_v51 = vpop.f32.mrf.mxu0 }
 0x993   :  { %v7263_v52 = vadd.f32 %v7262_v51, %v7213_v13 }
 0x994   :  { %v7337_v17 = vmul.f32 %v14081_v16, %v7304_v12  ;;  %v7223_v28 = vpop.f32.mrf.mxu3 }
 0x996   :  { %v7357_v24 = vadd.f32 %v14086_v47, %v7337_v17 }
 0x998   :  { %v7373_v46 = vmax.f32 %v7357_v24, 0.0 }
 0x999   :  { %v7306_v54 = vpop.f32.mrf.mxu1 }
 0x99a   :  { %7389 = vst.msk [vmem:[%s14211_s23 + $0x38] sm:$0xff] %vm74_vm0, %v7373_v46  ;;  %v7307_v37 = vadd.f32 %v7306_v54, %v7258_v23  ;;  %v7264_v18 = vpop.f32.mrf.mxu0 }
 0x99b   :  { %v7265_v42 = vadd.f32 %v7264_v18, %v7215_v59 }
 0x99c   :  { %v7338_v7 = vmul.f32 %v14081_v16, %v7307_v37  ;;  %v7225_v58 = vpop.f32.mrf.mxu3 }
 0x99e   :  { %v7358_v38 = vadd.f32 %v14086_v47, %v7338_v7 }
 0x9a0   :  { %v7374_v32 = vmax.f32 %v7358_v38, 0.0 }
 0x9a1   :  { %v7308_v9 = vpop.f32.mrf.mxu1 }
 0x9a2   :  { %7390 = vst.msk [vmem:[%s14211_s23 + $0x40] sm:$0xff] %vm74_vm0, %v7374_v32  ;;  %v7309_v14 = vadd.f32 %v7308_v9, %v7260_v25  ;;  %v7267_v6 = vpop.f32.mrf.mxu0 }
 0x9a3   :  { %v7268_v44 = vadd.f32 %v7267_v6, %v7218_v11 }
 0x9a4   :  { %v7339_v34 = vmul.f32 %v14081_v16, %v7309_v14 }
 0x9a6   :  { %v7359_v8 = vadd.f32 %v14086_v47, %v7339_v34 }
 0x9a8   :  { %v7375_v57 = vmax.f32 %v7359_v8, 0.0 }
 0x9a9   :  { %v7311_v61 = vpop.f32.mrf.mxu1 }
 0x9aa   :  { %7391 = vst.msk [vmem:[%s14211_s23 + $0x48] sm:$0xff] %vm74_vm0, %v7375_v57  ;;  %v7312_v20 = vadd.f32 %v7311_v61, %v7263_v52  ;;  %v7269_v4 = vpop.f32.mrf.mxu0 }
 0x9ab   :  { %v7270_v45 = vadd.f32 %v7269_v4, %v7220_v5 }
 0x9ac   :  { %v7340_v36 = vmul.f32 %v14081_v16, %v7312_v20 }
 0x9ae   :  { %v7360_v30 = vadd.f32 %v14086_v47, %v7340_v36 }
 0x9b0   :  { %v7376_v41 = vmax.f32 %v7360_v30, 0.0 }
 0x9b1   :  { %v7313_v0 = vpop.f32.mrf.mxu1 }
 0x9b2   :  { %7392 = vst.msk [vmem:[%s14211_s23 + $0x50] sm:$0xff] %vm74_vm0, %v7376_v41  ;;  %v7314_v29 = vadd.f32 %v7313_v0, %v7265_v42  ;;  %v7272_v26 = vpop.f32.mrf.mxu0 }
 0x9b3   :  { %v7273_v43 = vadd.f32 %v7272_v26, %v7223_v28 }
 0x9b4   :  { %v7341_v62 = vmul.f32 %v14081_v16, %v7314_v29 }
 0x9b6   :  { %v7361_v3 = vadd.f32 %v14086_v47, %v7341_v62 }
 0x9b8   :  { %v7377_v53 = vmax.f32 %v7361_v3, 0.0 }
 0x9b9   :  { %v7316_v50 = vpop.f32.mrf.mxu1 }
 0x9ba   :  { %7393 = vst.msk [vmem:[%s14211_s23 + $0x58] sm:$0xff] %vm74_vm0, %v7377_v53  ;;  %v7317_v19 = vadd.f32 %v7316_v50, %v7268_v44  ;;  %v7274_v1 = vpop.f32.mrf.mxu0 }
 0x9bb   :  { %v7275_v2 = vadd.f32 %v7274_v1, %v7225_v58 }
 0x9bc   :  { %v7342_v56 = vmul.f32 %v14081_v16, %v7317_v19 }
 0x9be   :  { %v7362_v55 = vadd.f32 %v14086_v47, %v7342_v56 }
 0x9c0   :  { %v7378_v60 = vmax.f32 %v7362_v55, 0.0 }
 0x9c1   :  { %v7318_v10 = vpop.f32.mrf.mxu1 }
 0x9c2   :  { %7394 = vst.msk [vmem:[%s14211_s23 + $0x60] sm:$0xff] %vm74_vm0, %v7378_v60  ;;  %v7319_v40 = vadd.f32 %v7318_v10, %v7270_v45 }
 0x9c4   :  { %v7343_v15 = vmul.f32 %v14081_v16, %v7319_v40 }
 0x9c6   :  { %v7363_v49 = vadd.f32 %v14086_v47, %v7343_v15 }
 0x9c8   :  { %v7379_v63 = vmax.f32 %v7363_v49, 0.0 }
 0x9c9   :  { %v7321_v21 = vpop.f32.mrf.mxu1 }
 0x9ca   :  { %7395 = vst.msk [vmem:[%s14211_s23 + $0x68] sm:$0xff] %vm74_vm0, %v7379_v63  ;;  %v7322_v27 = vadd.f32 %v7321_v21, %v7273_v43 }
 0x9cc   :  { %v7344_v31 = vmul.f32 %v14081_v16, %v7322_v27 }
 0x9ce   :  { %v7364_v48 = vadd.f32 %v14086_v47, %v7344_v31 }
 0x9d0   :  { %v7380_v33 = vmax.f32 %v7364_v48, 0.0 }
 0x9d1   :  { %v7323_v39 = vpop.f32.mrf.mxu1 }
 0x9d2   :  { %7396 = vst.msk [vmem:[%s14211_s23 + $0x70] sm:$0xff] %vm74_vm0, %v7380_v33  ;;  %v7324_v22 = vadd.f32 %v7323_v39, %v7275_v2 }
 0x9d4   :  { %v7345_v12 = vmul.f32 %v14081_v16, %v7324_v22 }
 0x9d6   :  { %v7365_v35 = vadd.f32 %v14086_v47, %v7345_v12 }
 0x9d8   :  { %v7381_v17 = vmax.f32 %v7365_v35, 0.0 }
 0x9da   :  { %7397 = vst.msk [vmem:[%s14211_s23 + $0x78] sm:$0xff] %vm74_vm0, %v7381_v17 }

</bundles_post_ra>
